<compile_context>
chip_gen: v7x
topology: tpu7x:2x2x1
jax: 0.10.0
libtpu: 0.0.40
codegen_flags: <defaults>
</compile_context>

<pallas_src>
import functools

import jax
import jax.numpy as jnp
from jax.experimental import pallas as pl
from jax.experimental.pallas import tpu as pltpu


_LANE = 128
_SUB = 8
_N_PARAMS = 18  # 3 MLPs x 3 layers x (W, b)


def _round_up(x, m):
    return (x + m - 1) // m * m


# ---------------------------------------------------------------------------
# in-kernel helpers
# ---------------------------------------------------------------------------
def _dense(z, w, b, dtype, prec):
    return jnp.dot(z.astype(dtype), w.astype(dtype),
                   preferred_element_type=jnp.float32, precision=prec) + b


def _split_linear(parts, w, b, dtype, prec):
    """concat(parts, axis=1) @ w + b, with parts laid out at their own widths."""
    acc = b                      # (1, out) f32, broadcasts against (M, out)
    off = 0
    for p in parts:
        width = p.shape[1]
        acc = acc + jnp.dot(p.astype(dtype), w[off:off + width, :].astype(dtype),
                            preferred_element_type=jnp.float32, precision=prec)
        off += width
    return acc


def _mlp3_packed(z, params, dtype, prec):
    w1, b1, w2, b2, w3, b3 = params
    h = jnp.maximum(_dense(z, w1[...], b1[...], dtype, prec), 0.0)
    h = jnp.maximum(_dense(h, w2[...], b2[...], dtype, prec), 0.0)
    return _dense(h, w3[...], b3[...], dtype, prec)


def _mlp3_split(parts, params, dtype, prec):
    w1, b1, w2, b2, w3, b3 = params
    h = jnp.maximum(_split_linear(parts, w1[...], b1[...], dtype, prec), 0.0)
    h = jnp.maximum(_dense(h, w2[...], b2[...], dtype, prec), 0.0)
    return _dense(h, w3[...], b3[...], dtype, prec)


# ---------------------------------------------------------------------------
# kernel
# ---------------------------------------------------------------------------
def mp_step_kernel(compute_dtype, mxu_precision,
                   # resident VMEM inputs
                   x_ref, x_es_ref, x_er_ref, u_ref, boh_ref,
                   # streamed edge-tile inputs
                   edge_ref, snd_col_ref, rcv_col_ref, snd_row_ref, rcv_row_ref,
                   *rest):
    params = rest[:_N_PARAMS]
    x_out_ref = rest[_N_PARAMS]
    edge_out_ref = rest[_N_PARAMS + 1]
    recv_acc = rest[_N_PARAMS + 2]

    edge_params = params[0:6]
    glob_params = params[6:12]
    node_params = params[12:18]

    t = pl.program_id(0)
    nt = pl.num_programs(0)
    te = edge_ref.shape[0]
    np_nodes, dp = x_ref.shape
    cd = compute_dtype
    one = jnp.ones((), cd)
    zero = jnp.zeros((), cd)

    @pl.when(t == 0)
    def _init():
        recv_acc[...] = jnp.zeros_like(recv_acc)

    # ---- one-hot MXU gathers: x[senders], x[receivers] for this edge tile ----
    # Gather one-hots are (te, N) with the contraction (N) on the lane axis of
    # the LHS -> native MXU orientation.  The x copies are pre-shifted by the
    # wrapper into lanes [d,2d) / [2d,3d), so the gather results drop straight
    # into the packed EdgeModel layer-1 input (no rolls, no extra matmuls).
    e_iota = jax.lax.broadcasted_iota(jnp.int32, (te, np_nodes), 1)
    s_oh = jnp.where(e_iota == snd_col_ref[...], one, zero)
    r_oh = jnp.where(e_iota == rcv_col_ref[...], one, zero)

    edge_tile = edge_ref[...]                       # (te, Ke) f32, data in lanes [0, d)
    packed = (edge_tile
              + jnp.dot(s_oh, x_es_ref[...],
                        preferred_element_type=jnp.float32, precision=mxu_precision)
              + jnp.dot(r_oh, x_er_ref[...],
                        preferred_element_type=jnp.float32, precision=mxu_precision))

    # ---- EdgeModel: MLP(cat(edge_attr, x[senders], x[receivers])) ------------
    messages = _mlp3_packed(packed, edge_params, cd, mxu_precision)

    # edge residual update
    edge_out_ref[...] = edge_tile[:, :dp] + messages

    # ---- fused scatter-add (pre-transposed one-hot, native MXU orientation) --
    # segment_sum(messages, receivers) - segment_sum(messages, senders)
    #   == (r_onehot - s_onehot)^T @ messages.
    # Padded edge rows have sender == receiver == 0 -> zero one-hot difference.
    n_iota = jax.lax.broadcasted_iota(jnp.int32, (np_nodes, te), 0)
    oh_diff_t = (jnp.where(n_iota == rcv_row_ref[...], one, zero)
                 - jnp.where(n_iota == snd_row_ref[...], one, zero))
    recv_acc[...] += jnp.dot(oh_diff_t, messages.astype(cd),
                             preferred_element_type=jnp.float32,
                             precision=mxu_precision)

    # ---- last step: GlobalModel + NodeModel + node residual -------------------
    @pl.when(t == nt - 1)
    def _finalize():
        x = x_ref[...]
        # u[batch] as a single one-hot matmul (rides the MXU, no per-graph loop)
        u_b = jnp.dot(boh_ref[...], u_ref[...],
                      preferred_element_type=jnp.float32, precision=mxu_precision)
        messages_u = _mlp3_split([x, u_b], glob_params, cd, mxu_precision)
        gx = _mlp3_split([x, recv_acc[...], messages_u], node_params,
                         cd, mxu_precision)
        x_out_ref[...] = gx + x


# ---------------------------------------------------------------------------
# parameter padding
#   EdgeModel layer 1: packed contiguously (K = 3d -> round_up(3d, 128))
#   Global/Node layer 1: split layout (each part at a multiple of dp rows)
# ---------------------------------------------------------------------------
def _pad_params(params, d, h, dp, hp, ke, dtype):
    (ew1, eb1, ew2, eb2, ew3, eb3,
     gw1, gb1, gw2, gb2, gw3, gb3,
     nw1, nb1, nw2, nb2, nw3, nb3) = params

    def pad_mat(w, rp, cp):
        return jnp.pad(w, ((0, rp - w.shape[0]), (0, cp - w.shape[1]))).astype(dtype)

    def pad_bias(b, cp):
        return jnp.pad(b, ((0, 0), (0, cp - b.shape[1])))          # stays f32

    def split_w1(w, n_parts):
        wp = jnp.zeros((n_parts * dp, hp), jnp.float32)
        for k in range(n_parts):
            wp = wp.at[k * dp:k * dp + d, :h].set(w[k * d:(k + 1) * d, :])
        return wp.astype(dtype)

    return [
        # EdgeModel (packed first layer)
        pad_mat(ew1, ke, hp), pad_bias(eb1, hp),
        pad_mat(ew2, hp, hp), pad_bias(eb2, hp),
        pad_mat(ew3, hp, dp), pad_bias(eb3, dp),
        # GlobalModel (split first layer: x | u[batch])
        split_w1(gw1, 2), pad_bias(gb1, hp),
        pad_mat(gw2, hp, hp), pad_bias(gb2, hp),
        pad_mat(gw3, hp, dp), pad_bias(gb3, dp),
        # NodeModel (split first layer: x | received | messages_u)
        split_w1(nw1, 3), pad_bias(nb1, hp),
        pad_mat(nw2, hp, hp), pad_bias(nb2, hp),
        pad_mat(nw3, hp, dp), pad_bias(nb3, dp),
    ]


# ---------------------------------------------------------------------------
# wrapper
# ---------------------------------------------------------------------------
def message_passing_step(x, senders, receivers, edge_attr, u, batch, params,
                         *, edge_tile=256, compute_dtype=jnp.bfloat16):
    f32 = jnp.float32
    n_nodes, d = x.shape
    n_edges = edge_attr.shape[0]
    n_graphs = u.shape[0]
    hid = params[0].shape[1]

    exact = jnp.dtype(compute_dtype) == jnp.dtype(jnp.float32)
    prec = jax.lax.Precision.HIGHEST if exact else None
    kdtype = f32 if exact else compute_dtype

    dp = _round_up(d, _LANE)
    hp = _round_up(hid, _LANE)
    ke = _round_up(3 * d, _LANE)            # packed EdgeModel layer-1 width
    np_ = _round_up(n_nodes, _SUB)
    gp = _round_up(n_graphs, _SUB)

    # te multiple of 128 so every streamed block (incl. the (1, te) index rows)
    # is lane-dense; 256 fills the v6e/v7x MXU, use edge_tile=128 on v5e.
    te = max(_LANE, min(_round_up(edge_tile, _LANE), _round_up(n_edges, _LANE)))
    e_pad = _round_up(n_edges, te)
    n_tiles = e_pad // te

    # node features: f32 copy (residual / finalize) + lane-shifted compute-dtype
    # copies that feed the packed EdgeModel first layer straight from the gathers
    x_p = jnp.zeros((np_, dp), f32).at[:n_nodes, :d].set(x.astype(f32))
    x_es = jnp.zeros((np_, ke), kdtype).at[:n_nodes, d:2 * d].set(x.astype(kdtype))
    x_er = jnp.zeros((np_, ke), kdtype).at[:n_nodes, 2 * d:3 * d].set(x.astype(kdtype))

    u_g = jnp.zeros((gp, dp), kdtype).at[:n_graphs, :d].set(u.astype(kdtype))
    bat = jnp.pad(batch.astype(jnp.int32), (0, np_ - n_nodes), constant_values=-1)
    boh = (bat[:, None] == jnp.arange(gp)[None, :]).astype(kdtype)   # u[batch] one-hot

    e_p = jnp.zeros((e_pad, ke), f32).at[:n_edges, :d].set(edge_attr.astype(f32))

    # Padded edges get sender == receiver == 0, so their scatter contribution
    # cancels exactly; their garbage edge_out rows are trimmed below.
    snd = jnp.pad(senders.astype(jnp.int32), (0, e_pad - n_edges))
    rcv = jnp.pad(receivers.astype(jnp.int32), (0, e_pad - n_edges))
    snd_col = snd.reshape(e_pad, 1)
    rcv_col = rcv.reshape(e_pad, 1)
    snd_row = snd.reshape(1, e_pad)
    rcv_row = rcv.reshape(1, e_pad)

    pparams = _pad_params(params, d, hid, dp, hp, ke, kdtype)

    def resident(shape):
        return pl.BlockSpec(shape, lambda i: (0,) * len(shape))

    in_specs = [
        resident((np_, dp)),                            # x (f32, residual/finalize)
        resident((np_, ke)),                            # x shifted to lanes [d, 2d)
        resident((np_, ke)),                            # x shifted to lanes [2d, 3d)
        resident((gp, dp)),                             # u
        resident((np_, gp)),                            # batch one-hot
        pl.BlockSpec((te, ke), lambda i: (i, 0)),       # edge_attr tile
        pl.BlockSpec((te, 1), lambda i: (i, 0)),        # senders (gather orientation)
        pl.BlockSpec((te, 1), lambda i: (i, 0)),        # receivers (gather orientation)
        pl.BlockSpec((1, te), lambda i: (0, i)),        # senders (scatter, lane-dense)
        pl.BlockSpec((1, te), lambda i: (0, i)),        # receivers (scatter, lane-dense)
    ] + [resident(p.shape) for p in pparams]            # weights / biases (resident)

    out_specs = (
        resident((np_, dp)),                            # x_update (written last step)
        pl.BlockSpec((te, dp), lambda i: (i, 0)),       # edge_attr_update tile
    )
    out_shape = (jax.ShapeDtypeStruct((np_, dp), f32),
                 jax.ShapeDtypeStruct((e_pad, dp), f32))

    scratch_shapes = [pltpu.VMEM((np_, dp), f32)]       # per-node message accumulator

    # VMEM budget derived from actual buffer sizes (x2 for double buffering of
    # streams/residents, plus scratch and per-tile intermediates, with margin).
    item = jnp.dtype(kdtype).itemsize
    resident_b = (x_p.size * 4
                  + (x_es.size + x_er.size + u_g.size + boh.size) * item
                  + sum(int(p.size) * p.dtype.itemsize for p in pparams)
                  + np_ * dp * 4)                                   # resident x_out
    stream_b = (te * ke + te * dp) * 4 + 4 * te * 4
    scratch_b = np_ * dp * 4
    temps_b = 3 * te * np_ * item + (te * ke + te * hp + te * dp) * 4
    vmem_limit = int(min(96 << 20,
                         max(32 << 20,
                             2 * (resident_b + stream_b) + scratch_b + 2 * temps_b)))

    kernel = functools.partial(mp_step_kernel, kdtype, prec)

    grid_spec = pltpu.PrefetchScalarGridSpec(
        num_scalar_prefetch=0,
        grid=(n_tiles,),
        in_specs=in_specs,
        out_specs=out_specs,
        scratch_shapes=scratch_shapes,
    )

    x_out_p, e_out_p = pl.pallas_call(
        kernel,
        grid_spec=grid_spec,
        out_shape=out_shape,
        compiler_params=pltpu.CompilerParams(
            # the edge axis carries the node accumulator -> sequential
            dimension_semantics=("arbitrary",),
            vmem_limit_bytes=vmem_limit,
        ),
    )(x_p, x_es, x_er, u_g, boh, e_p, snd_col, rcv_col, snd_row, rcv_row, *pparams)

    return x_out_p[:n_nodes, :d], e_out_p[:n_edges, :d]


# ---------------------------------------------------------------------------
# deterministic parameter init (xavier-normal weights, torch-default biases),
# stored already transposed as [in, out] so everything computes x @ W + b.
# ---------------------------------------------------------------------------
def _linear_params(key, fan_in, fan_out):
    kw, kb = jax.random.split(key)
    std = (2.0 / (fan_in + fan_out)) ** 0.5
    w = std * jax.random.normal(kw, (fan_in, fan_out), jnp.float32)
    bound = 1.0 / (fan_in ** 0.5)
    b = jax.random.uniform(kb, (1, fan_out), jnp.float32, -bound, bound)
    return w, b


def init_params(key, d, h):
    dims = [(3 * d, h), (h, h), (h, d),   # EdgeModel  (input_dim*2 + input_dim)
            (2 * d, h), (h, h), (h, d),   # GlobalModel (input_dim*2)
            (3 * d, h), (h, h), (h, d)]   # NodeModel  (input_dim*3)
    keys = jax.random.split(key, len(dims))
    params = []
    for k, (fi, fo) in zip(keys, dims):
        w, b = _linear_params(k, fi, fo)
        params += [w, b]
    return tuple(params)


# ---------------------------------------------------------------------------
# pure-JAX reference (mirrors the PyTorch forward; with compute_dtype=bf16 it
# also mirrors the kernel's rounding points for an apples-to-apples check).
# ---------------------------------------------------------------------------
def ref_forward(x, senders, receivers, edge_attr, u, batch, params,
                compute_dtype=jnp.float32):
    (ew1, eb1, ew2, eb2, ew3, eb3,
     gw1, gb1, gw2, gb2, gw3, gb3,
     nw1, nb1, nw2, nb2, nw3, nb3) = params

    exact = jnp.dtype(compute_dtype) == jnp.dtype(jnp.float32)
    prec = jax.lax.Precision.HIGHEST if exact else None

    def mm(a, w):
        return jnp.dot(a.astype(compute_dtype), w.astype(compute_dtype),
                       preferred_element_type=jnp.float32, precision=prec)

    def mlp(z, w1, b1, w2, b2, w3, b3):
        h = jnp.maximum(mm(z, w1) + b1, 0.0)
        h = jnp.maximum(mm(h, w2) + b2, 0.0)
        return mm(h, w3) + b3

    messages = mlp(jnp.concatenate([edge_attr, x[senders], x[receivers]], axis=1),
                   ew1, eb1, ew2, eb2, ew3, eb3)
    messages_u = mlp(jnp.concatenate([x, u[batch]], axis=1),
                     gw1, gb1, gw2, gb2, gw3, gb3)

    m = messages.astype(compute_dtype).astype(jnp.float32)
    received = (jax.ops.segment_sum(m, receivers, num_segments=x.shape[0])
                - jax.ops.segment_sum(m, senders, num_segments=x.shape[0]))

    gx = mlp(jnp.concatenate([x, received, messages_u], axis=1),
             nw1, nb1, nw2, nb2, nw3, nb3)
    return gx + x, edge_attr + messages


if __name__ == "__main__":
    key = jax.random.PRNGKey(0)
    N, E, B = 16, 48, 2          # nodes, edges, graphs
    D, H = 32, 32                # input_dim = embed_dim = D (residual adds)

    ks = jax.random.split(key, 6)
    x = jax.random.normal(ks[0], (N, D), jnp.float32)
    edge_attr = jax.random.normal(ks[1], (E, D), jnp.float32)
    u = jax.random.normal(ks[2], (B, D), jnp.float32)
    senders = jax.random.randint(ks[3], (E,), 0, N, jnp.int32)
    receivers = jax.random.randint(ks[4], (E,), 0, N, jnp.int32)
    batch = (jnp.arange(N) >= N // 2).astype(jnp.int32)
    params = init_params(ks[5], D, H)

    # --- exact mode (f32 MXU, HIGHEST): tight structural check ---------------
    x_f32, e_f32 = message_passing_step(
        x, senders, receivers, edge_attr, u, batch, params,
        compute_dtype=jnp.float32)
    jax.block_until_ready((x_f32, e_f32))

    x_ref, e_ref = ref_forward(x, senders, receivers, edge_attr, u, batch, params)
    assert x_f32.shape == (N, D) and e_f32.shape == (E, D)
    assert jnp.allclose(x_f32, x_ref, atol=1e-4, rtol=1e-4), "node update mismatch (f32)"
    assert jnp.allclose(e_f32, e_ref, atol=1e-4, rtol=1e-4), "edge update mismatch (f32)"

    # --- fast mode (bf16 MXU operands, f32 accumulate): default path ---------
    x_bf, e_bf = message_passing_step(
        x, senders, receivers, edge_attr, u, batch, params,
        compute_dtype=jnp.bfloat16)
    jax.block_until_ready((x_bf, e_bf))

    x_ref_bf, e_ref_bf = ref_forward(x, senders, receivers, edge_attr, u, batch,
                                     params, compute_dtype=jnp.bfloat16)
    assert jnp.allclose(x_bf, x_ref_bf, atol=5e-3, rtol=5e-3), "node update mismatch (bf16)"
    assert jnp.allclose(e_bf, e_ref_bf, atol=5e-3, rtol=5e-3), "edge update mismatch (bf16)"

    print("KERNEL_OK")
</pallas_src>

<mosaic_0001>
module attributes {stable_mosaic.version = 11 : i64} {
  func.func @mp_step_kernel(%arg0: i32, %arg1: memref<16x128xf32, #tpu.memory_space<vmem>>, %arg2: memref<16x128xf32, #tpu.memory_space<vmem>>, %arg3: memref<16x128xf32, #tpu.memory_space<vmem>>, %arg4: memref<8x128xf32, #tpu.memory_space<vmem>>, %arg5: memref<16x8xf32, #tpu.memory_space<vmem>>, %arg6: memref<128x128xf32, #tpu.memory_space<vmem>>, %arg7: memref<128x1xi32, #tpu.memory_space<vmem>>, %arg8: memref<128x1xi32, #tpu.memory_space<vmem>>, %arg9: memref<1x128xi32, #tpu.memory_space<vmem>>, %arg10: memref<1x128xi32, #tpu.memory_space<vmem>>, %arg11: memref<128x128xf32, #tpu.memory_space<vmem>>, %arg12: memref<1x128xf32, #tpu.memory_space<vmem>>, %arg13: memref<128x128xf32, #tpu.memory_space<vmem>>, %arg14: memref<1x128xf32, #tpu.memory_space<vmem>>, %arg15: memref<128x128xf32, #tpu.memory_space<vmem>>, %arg16: memref<1x128xf32, #tpu.memory_space<vmem>>, %arg17: memref<256x128xf32, #tpu.memory_space<vmem>>, %arg18: memref<1x128xf32, #tpu.memory_space<vmem>>, %arg19: memref<128x128xf32, #tpu.memory_space<vmem>>, %arg20: memref<1x128xf32, #tpu.memory_space<vmem>>, %arg21: memref<128x128xf32, #tpu.memory_space<vmem>>, %arg22: memref<1x128xf32, #tpu.memory_space<vmem>>, %arg23: memref<384x128xf32, #tpu.memory_space<vmem>>, %arg24: memref<1x128xf32, #tpu.memory_space<vmem>>, %arg25: memref<128x128xf32, #tpu.memory_space<vmem>>, %arg26: memref<1x128xf32, #tpu.memory_space<vmem>>, %arg27: memref<128x128xf32, #tpu.memory_space<vmem>>, %arg28: memref<1x128xf32, #tpu.memory_space<vmem>>, %arg29: memref<16x128xf32, #tpu.memory_space<vmem>>, %arg30: memref<128x128xf32, #tpu.memory_space<vmem>>, %arg31: memref<16x128xf32, #tpu.memory_space<vmem>>) attributes {dimension_semantics = [#tpu.dimension_semantics<arbitrary>], iteration_bounds = array<i64: 1>, scalar_prefetch = 0 : i64, scratch_operands = 1 : i64, tpu.core_type = #tpu.core_type<tc>, window_params = [{pipeline_mode = #tpu.pipeline_mode<synchronous>, transform_indices = @transform_0, window_bounds = array<i64: 16, 128>}, {pipeline_mode = #tpu.pipeline_mode<synchronous>, transform_indices = @transform_1, window_bounds = array<i64: 16, 128>}, {pipeline_mode = #tpu.pipeline_mode<synchronous>, transform_indices = @transform_2, window_bounds = array<i64: 16, 128>}, {pipeline_mode = #tpu.pipeline_mode<synchronous>, transform_indices = @transform_3, window_bounds = array<i64: 8, 128>}, {pipeline_mode = #tpu.pipeline_mode<synchronous>, transform_indices = @transform_4, window_bounds = array<i64: 16, 8>}, {transform_indices = @transform_5, window_bounds = array<i64: 128, 128>}, {transform_indices = @transform_6, window_bounds = array<i64: 128, 1>}, {transform_indices = @transform_7, window_bounds = array<i64: 128, 1>}, {transform_indices = @transform_8, window_bounds = array<i64: 1, 128>}, {transform_indices = @transform_9, window_bounds = array<i64: 1, 128>}, {pipeline_mode = #tpu.pipeline_mode<synchronous>, transform_indices = @transform_10, window_bounds = array<i64: 128, 128>}, {pipeline_mode = #tpu.pipeline_mode<synchronous>, transform_indices = @transform_11, window_bounds = array<i64: 1, 128>}, {pipeline_mode = #tpu.pipeline_mode<synchronous>, transform_indices = @transform_12, window_bounds = array<i64: 128, 128>}, {pipeline_mode = #tpu.pipeline_mode<synchronous>, transform_indices = @transform_13, window_bounds = array<i64: 1, 128>}, {pipeline_mode = #tpu.pipeline_mode<synchronous>, transform_indices = @transform_14, window_bounds = array<i64: 128, 128>}, {pipeline_mode = #tpu.pipeline_mode<synchronous>, transform_indices = @transform_15, window_bounds = array<i64: 1, 128>}, {pipeline_mode = #tpu.pipeline_mode<synchronous>, transform_indices = @transform_16, window_bounds = array<i64: 256, 128>}, {pipeline_mode = #tpu.pipeline_mode<synchronous>, transform_indices = @transform_17, window_bounds = array<i64: 1, 128>}, {pipeline_mode = #tpu.pipeline_mode<synchronous>, transform_indices = @transform_18, window_bounds = array<i64: 128, 128>}, {pipeline_mode = #tpu.pipeline_mode<synchronous>, transform_indices = @transform_19, window_bounds = array<i64: 1, 128>}, {pipeline_mode = #tpu.pipeline_mode<synchronous>, transform_indices = @transform_20, window_bounds = array<i64: 128, 128>}, {pipeline_mode = #tpu.pipeline_mode<synchronous>, transform_indices = @transform_21, window_bounds = array<i64: 1, 128>}, {pipeline_mode = #tpu.pipeline_mode<synchronous>, transform_indices = @transform_22, window_bounds = array<i64: 384, 128>}, {pipeline_mode = #tpu.pipeline_mode<synchronous>, transform_indices = @transform_23, window_bounds = array<i64: 1, 128>}, {pipeline_mode = #tpu.pipeline_mode<synchronous>, transform_indices = @transform_24, window_bounds = array<i64: 128, 128>}, {pipeline_mode = #tpu.pipeline_mode<synchronous>, transform_indices = @transform_25, window_bounds = array<i64: 1, 128>}, {pipeline_mode = #tpu.pipeline_mode<synchronous>, transform_indices = @transform_26, window_bounds = array<i64: 128, 128>}, {pipeline_mode = #tpu.pipeline_mode<synchronous>, transform_indices = @transform_27, window_bounds = array<i64: 1, 128>}, {pipeline_mode = #tpu.pipeline_mode<synchronous>, transform_indices = @transform_28, window_bounds = array<i64: 16, 128>}, {transform_indices = @transform_29, window_bounds = array<i64: 128, 128>}]} {
    %c0_i32 = arith.constant 0 : i32
    %0 = arith.cmpi eq, %arg0, %c0_i32 : i32
    %1 = arith.extui %0 : i1 to i32
    %c0_i32_0 = arith.constant 0 : i32
    %2 = arith.cmpi ne, %1, %c0_i32_0 : i32
    scf.if %2 {
      %cst_49 = arith.constant 0.000000e+00 : f32
      %65 = vector.broadcast %cst_49 : f32 to vector<16x128xf32>
      %c0_50 = arith.constant 0 : index
      %c0_51 = arith.constant 0 : index
      %66 = vector.load %arg31[%c0_50, %c0_51] : memref<16x128xf32, #tpu.memory_space<vmem>>, vector<16x128xf32>
      tpu.vector_store %arg31[%c0_50, %c0_51], %65 {strides = array<i32>} : memref<16x128xf32, #tpu.memory_space<vmem>>, vector<16x128xf32>,
    } else {
    }
    %3 = tpu.iota {dimensions = array<i32: 1>} : vector<128x16xi32>
    %c0 = arith.constant 0 : index
    %c0_1 = arith.constant 0 : index
    %4 = vector.load %arg7[%c0, %c0_1] : memref<128x1xi32, #tpu.memory_space<vmem>>, vector<128x1xi32>
    %5 = vector.broadcast %4 : vector<128x1xi32> to vector<128x16xi32>
    %6 = arith.cmpi eq, %3, %5 : vector<128x16xi32>
    %cst = arith.constant 1.000000e+00 : f32
    %cst_2 = arith.constant 0.000000e+00 : f32
    %7 = vector.broadcast %cst : f32 to vector<128x16xf32>
    %8 = vector.broadcast %cst_2 : f32 to vector<128x16xf32>
    %9 = arith.select %6, %7, %8 : vector<128x16xi1>, vector<128x16xf32>
    %c0_3 = arith.constant 0 : index
    %c0_4 = arith.constant 0 : index
    %10 = vector.load %arg8[%c0_3, %c0_4] : memref<128x1xi32, #tpu.memory_space<vmem>>, vector<128x1xi32>
    %11 = vector.broadcast %10 : vector<128x1xi32> to vector<128x16xi32>
    %12 = arith.cmpi eq, %3, %11 : vector<128x16xi32>
    %cst_5 = arith.constant 1.000000e+00 : f32
    %cst_6 = arith.constant 0.000000e+00 : f32
    %13 = vector.broadcast %cst_5 : f32 to vector<128x16xf32>
    %14 = vector.broadcast %cst_6 : f32 to vector<128x16xf32>
    %15 = arith.select %12, %13, %14 : vector<128x16xi1>, vector<128x16xf32>
    %c0_7 = arith.constant 0 : index
    %c0_8 = arith.constant 0 : index
    %16 = vector.load %arg6[%c0_7, %c0_8] : memref<128x128xf32, #tpu.memory_space<vmem>>, vector<128x128xf32>
    %c0_9 = arith.constant 0 : index
    %c0_10 = arith.constant 0 : index
    %17 = vector.load %arg2[%c0_9, %c0_10] : memref<16x128xf32, #tpu.memory_space<vmem>>, vector<16x128xf32>
    %cst_11 = arith.constant dense<0.000000e+00> : vector<128x128xf32>
    %18 = tpu.matmul %9, %17, %cst_11 {dimension_numbers = #tpu.dot_dimension_numbers<[1], [0], [0], [1], [0, 0, 1, 1], [], []>, precision = #tpu.contract_precision<fp32>} : vector<128x16xf32>, vector<16x128xf32>, vector<128x128xf32> -> vector<128x128xf32>
    %19 = arith.addf %16, %18 : vector<128x128xf32>
    %c0_12 = arith.constant 0 : index
    %c0_13 = arith.constant 0 : index
    %20 = vector.load %arg3[%c0_12, %c0_13] : memref<16x128xf32, #tpu.memory_space<vmem>>, vector<16x128xf32>
    %cst_14 = arith.constant dense<0.000000e+00> : vector<128x128xf32>
    %21 = tpu.matmul %15, %20, %cst_14 {dimension_numbers = #tpu.dot_dimension_numbers<[1], [0], [0], [1], [0, 0, 1, 1], [], []>, precision = #tpu.contract_precision<fp32>} : vector<128x16xf32>, vector<16x128xf32>, vector<128x128xf32> -> vector<128x128xf32>
    %22 = arith.addf %19, %21 : vector<128x128xf32>
    %c0_15 = arith.constant 0 : index
    %c0_16 = arith.constant 0 : index
    %23 = vector.load %arg11[%c0_15, %c0_16] : memref<128x128xf32, #tpu.memory_space<vmem>>, vector<128x128xf32>
    %c0_17 = arith.constant 0 : index
    %c0_18 = arith.constant 0 : index
    %24 = vector.load %arg12[%c0_17, %c0_18] : memref<1x128xf32, #tpu.memory_space<vmem>>, vector<1x128xf32>
    %cst_19 = arith.constant dense<0.000000e+00> : vector<128x128xf32>
    %25 = tpu.matmul %22, %23, %cst_19 {dimension_numbers = #tpu.dot_dimension_numbers<[1], [0], [0], [1], [0, 0, 1, 1], [], []>, precision = #tpu.contract_precision<fp32>} : vector<128x128xf32>, vector<128x128xf32>, vector<128x128xf32> -> vector<128x128xf32>
    %26 = vector.broadcast %24 : vector<1x128xf32> to vector<128x128xf32>
    %27 = arith.addf %25, %26 : vector<128x128xf32>
    %cst_20 = arith.constant 0.000000e+00 : f32
    %28 = vector.broadcast %cst_20 : f32 to vector<128x128xf32>
    %29 = arith.maximumf %27, %28 : vector<128x128xf32>
    %c0_21 = arith.constant 0 : index
    %c0_22 = arith.constant 0 : index
    %30 = vector.load %arg13[%c0_21, %c0_22] : memref<128x128xf32, #tpu.memory_space<vmem>>, vector<128x128xf32>
    %c0_23 = arith.constant 0 : index
    %c0_24 = arith.constant 0 : index
    %31 = vector.load %arg14[%c0_23, %c0_24] : memref<1x128xf32, #tpu.memory_space<vmem>>, vector<1x128xf32>
    %cst_25 = arith.constant dense<0.000000e+00> : vector<128x128xf32>
    %32 = tpu.matmul %29, %30, %cst_25 {dimension_numbers = #tpu.dot_dimension_numbers<[1], [0], [0], [1], [0, 0, 1, 1], [], []>, precision = #tpu.contract_precision<fp32>} : vector<128x128xf32>, vector<128x128xf32>, vector<128x128xf32> -> vector<128x128xf32>
    %33 = vector.broadcast %31 : vector<1x128xf32> to vector<128x128xf32>
    %34 = arith.addf %32, %33 : vector<128x128xf32>
    %cst_26 = arith.constant 0.000000e+00 : f32
    %35 = vector.broadcast %cst_26 : f32 to vector<128x128xf32>
    %36 = arith.maximumf %34, %35 : vector<128x128xf32>
    %c0_27 = arith.constant 0 : index
    %c0_28 = arith.constant 0 : index
    %37 = vector.load %arg15[%c0_27, %c0_28] : memref<128x128xf32, #tpu.memory_space<vmem>>, vector<128x128xf32>
    %c0_29 = arith.constant 0 : index
    %c0_30 = arith.constant 0 : index
    %38 = vector.load %arg16[%c0_29, %c0_30] : memref<1x128xf32, #tpu.memory_space<vmem>>, vector<1x128xf32>
    %cst_31 = arith.constant dense<0.000000e+00> : vector<128x128xf32>
    %39 = tpu.matmul %36, %37, %cst_31 {dimension_numbers = #tpu.dot_dimension_numbers<[1], [0], [0], [1], [0, 0, 1, 1], [], []>, precision = #tpu.contract_precision<fp32>} : vector<128x128xf32>, vector<128x128xf32>, vector<128x128xf32> -> vector<128x128xf32>
    %40 = vector.broadcast %38 : vector<1x128xf32> to vector<128x128xf32>
    %41 = arith.addf %39, %40 : vector<128x128xf32>
    %42 = arith.addf %16, %41 : vector<128x128xf32>
    %c0_32 = arith.constant 0 : index
    %c0_33 = arith.constant 0 : index
    %43 = vector.load %arg30[%c0_32, %c0_33] : memref<128x128xf32, #tpu.memory_space<vmem>>, vector<128x128xf32>
    tpu.vector_store %arg30[%c0_32, %c0_33], %42 {strides = array<i32>} : memref<128x128xf32, #tpu.memory_space<vmem>>, vector<128x128xf32>,
    %44 = tpu.iota {dimensions = array<i32: 0>} : vector<16x128xi32>
    %c0_34 = arith.constant 0 : index
    %c0_35 = arith.constant 0 : index
    %45 = vector.load %arg10[%c0_34, %c0_35] : memref<1x128xi32, #tpu.memory_space<vmem>>, vector<1x128xi32>
    %46 = vector.broadcast %45 : vector<1x128xi32> to vector<16x128xi32>
    %47 = arith.cmpi eq, %44, %46 : vector<16x128xi32>
    %cst_36 = arith.constant 1.000000e+00 : f32
    %cst_37 = arith.constant 0.000000e+00 : f32
    %48 = vector.broadcast %cst_36 : f32 to vector<16x128xf32>
    %49 = vector.broadcast %cst_37 : f32 to vector<16x128xf32>
    %50 = arith.select %47, %48, %49 : vector<16x128xi1>, vector<16x128xf32>
    %c0_38 = arith.constant 0 : index
    %c0_39 = arith.constant 0 : index
    %51 = vector.load %arg9[%c0_38, %c0_39] : memref<1x128xi32, #tpu.memory_space<vmem>>, vector<1x128xi32>
    %52 = vector.broadcast %51 : vector<1x128xi32> to vector<16x128xi32>
    %53 = arith.cmpi eq, %44, %52 : vector<16x128xi32>
    %cst_40 = arith.constant 1.000000e+00 : f32
    %cst_41 = arith.constant 0.000000e+00 : f32
    %54 = vector.broadcast %cst_40 : f32 to vector<16x128xf32>
    %55 = vector.broadcast %cst_41 : f32 to vector<16x128xf32>
    %56 = arith.select %53, %54, %55 : vector<16x128xi1>, vector<16x128xf32>
    %57 = arith.subf %50, %56 : vector<16x128xf32>
    %c0_42 = arith.constant 0 : index
    %c0_43 = arith.constant 0 : index
    %58 = vector.load %arg31[%c0_42, %c0_43] : memref<16x128xf32, #tpu.memory_space<vmem>>, vector<16x128xf32>
    %cst_44 = arith.constant dense<0.000000e+00> : vector<16x128xf32>
    %59 = tpu.matmul %57, %41, %cst_44 {dimension_numbers = #tpu.dot_dimension_numbers<[1], [0], [0], [1], [0, 0, 1, 1], [], []>, precision = #tpu.contract_precision<fp32>} : vector<16x128xf32>, vector<128x128xf32>, vector<16x128xf32> -> vector<16x128xf32>
    %60 = arith.addf %58, %59 : vector<16x128xf32>
    %c0_45 = arith.constant 0 : index
    %c0_46 = arith.constant 0 : index
    %61 = vector.load %arg31[%c0_45, %c0_46] : memref<16x128xf32, #tpu.memory_space<vmem>>, vector<16x128xf32>
    tpu.vector_store %arg31[%c0_45, %c0_46], %60 {strides = array<i32>} : memref<16x128xf32, #tpu.memory_space<vmem>>, vector<16x128xf32>,
    %c0_i32_47 = arith.constant 0 : i32
    %62 = arith.cmpi eq, %arg0, %c0_i32_47 : i32
    %63 = arith.extui %62 : i1 to i32
    %c0_i32_48 = arith.constant 0 : i32
    %64 = arith.cmpi ne, %63, %c0_i32_48 : i32
    scf.if %64 {
      %c0_49 = arith.constant 0 : index
      %c0_50 = arith.constant 0 : index
      %65 = vector.load %arg1[%c0_49, %c0_50] : memref<16x128xf32, #tpu.memory_space<vmem>>, vector<16x128xf32>
      %c0_51 = arith.constant 0 : index
      %c0_52 = arith.constant 0 : index
      %66 = vector.load %arg5[%c0_51, %c0_52] : memref<16x8xf32, #tpu.memory_space<vmem>>, vector<16x8xf32>
      %c0_53 = arith.constant 0 : index
      %c0_54 = arith.constant 0 : index
      %67 = vector.load %arg4[%c0_53, %c0_54] : memref<8x128xf32, #tpu.memory_space<vmem>>, vector<8x128xf32>
      %cst_55 = arith.constant dense<0.000000e+00> : vector<16x128xf32>
      %68 = tpu.matmul %66, %67, %cst_55 {dimension_numbers = #tpu.dot_dimension_numbers<[1], [0], [0], [1], [0, 0, 1, 1], [], []>, precision = #tpu.contract_precision<fp32>} : vector<16x8xf32>, vector<8x128xf32>, vector<16x128xf32> -> vector<16x128xf32>
      %c0_56 = arith.constant 0 : index
      %c0_57 = arith.constant 0 : index
      %69 = vector.load %arg17[%c0_56, %c0_57] : memref<256x128xf32, #tpu.memory_space<vmem>>, vector<256x128xf32>
      %c0_58 = arith.constant 0 : index
      %c0_59 = arith.constant 0 : index
      %70 = vector.load %arg18[%c0_58, %c0_59] : memref<1x128xf32, #tpu.memory_space<vmem>>, vector<1x128xf32>
      %71 = vector.extract_strided_slice %69 {offsets = [0, 0], sizes = [128, 128], strides = [1, 1]} : vector<256x128xf32> to vector<128x128xf32>
      %cst_60 = arith.constant dense<0.000000e+00> : vector<16x128xf32>
      %72 = tpu.matmul %65, %71, %cst_60 {dimension_numbers = #tpu.dot_dimension_numbers<[1], [0], [0], [1], [0, 0, 1, 1], [], []>, precision = #tpu.contract_precision<fp32>} : vector<16x128xf32>, vector<128x128xf32>, vector<16x128xf32> -> vector<16x128xf32>
      %73 = vector.broadcast %70 : vector<1x128xf32> to vector<16x128xf32>
      %74 = arith.addf %73, %72 : vector<16x128xf32>
      %75 = vector.extract_strided_slice %69 {offsets = [128, 0], sizes = [128, 128], strides = [1, 1]} : vector<256x128xf32> to vector<128x128xf32>
      %cst_61 = arith.constant dense<0.000000e+00> : vector<16x128xf32>
      %76 = tpu.matmul %68, %75, %cst_61 {dimension_numbers = #tpu.dot_dimension_numbers<[1], [0], [0], [1], [0, 0, 1, 1], [], []>, precision = #tpu.contract_precision<fp32>} : vector<16x128xf32>, vector<128x128xf32>, vector<16x128xf32> -> vector<16x128xf32>
      %77 = arith.addf %74, %76 : vector<16x128xf32>
      %cst_62 = arith.constant 0.000000e+00 : f32
      %78 = vector.broadcast %cst_62 : f32 to vector<16x128xf32>
      %79 = arith.maximumf %77, %78 : vector<16x128xf32>
      %c0_63 = arith.constant 0 : index
      %c0_64 = arith.constant 0 : index
      %80 = vector.load %arg19[%c0_63, %c0_64] : memref<128x128xf32, #tpu.memory_space<vmem>>, vector<128x128xf32>
      %c0_65 = arith.constant 0 : index
      %c0_66 = arith.constant 0 : index
      %81 = vector.load %arg20[%c0_65, %c0_66] : memref<1x128xf32, #tpu.memory_space<vmem>>, vector<1x128xf32>
      %cst_67 = arith.constant dense<0.000000e+00> : vector<16x128xf32>
      %82 = tpu.matmul %79, %80, %cst_67 {dimension_numbers = #tpu.dot_dimension_numbers<[1], [0], [0], [1], [0, 0, 1, 1], [], []>, precision = #tpu.contract_precision<fp32>} : vector<16x128xf32>, vector<128x128xf32>, vector<16x128xf32> -> vector<16x128xf32>
      %83 = vector.broadcast %81 : vector<1x128xf32> to vector<16x128xf32>
      %84 = arith.addf %82, %83 : vector<16x128xf32>
      %cst_68 = arith.constant 0.000000e+00 : f32
      %85 = vector.broadcast %cst_68 : f32 to vector<16x128xf32>
      %86 = arith.maximumf %84, %85 : vector<16x128xf32>
      %c0_69 = arith.constant 0 : index
      %c0_70 = arith.constant 0 : index
      %87 = vector.load %arg21[%c0_69, %c0_70] : memref<128x128xf32, #tpu.memory_space<vmem>>, vector<128x128xf32>
      %c0_71 = arith.constant 0 : index
      %c0_72 = arith.constant 0 : index
      %88 = vector.load %arg22[%c0_71, %c0_72] : memref<1x128xf32, #tpu.memory_space<vmem>>, vector<1x128xf32>
      %cst_73 = arith.constant dense<0.000000e+00> : vector<16x128xf32>
      %89 = tpu.matmul %86, %87, %cst_73 {dimension_numbers = #tpu.dot_dimension_numbers<[1], [0], [0], [1], [0, 0, 1, 1], [], []>, precision = #tpu.contract_precision<fp32>} : vector<16x128xf32>, vector<128x128xf32>, vector<16x128xf32> -> vector<16x128xf32>
      %90 = vector.broadcast %88 : vector<1x128xf32> to vector<16x128xf32>
      %91 = arith.addf %89, %90 : vector<16x128xf32>
      %c0_74 = arith.constant 0 : index
      %c0_75 = arith.constant 0 : index
      %92 = vector.load %arg31[%c0_74, %c0_75] : memref<16x128xf32, #tpu.memory_space<vmem>>, vector<16x128xf32>
      %c0_76 = arith.constant 0 : index
      %c0_77 = arith.constant 0 : index
      %93 = vector.load %arg23[%c0_76, %c0_77] : memref<384x128xf32, #tpu.memory_space<vmem>>, vector<384x128xf32>
      %c0_78 = arith.constant 0 : index
      %c0_79 = arith.constant 0 : index
      %94 = vector.load %arg24[%c0_78, %c0_79] : memref<1x128xf32, #tpu.memory_space<vmem>>, vector<1x128xf32>
      %95 = vector.extract_strided_slice %93 {offsets = [0, 0], sizes = [128, 128], strides = [1, 1]} : vector<384x128xf32> to vector<128x128xf32>
      %cst_80 = arith.constant dense<0.000000e+00> : vector<16x128xf32>
      %96 = tpu.matmul %65, %95, %cst_80 {dimension_numbers = #tpu.dot_dimension_numbers<[1], [0], [0], [1], [0, 0, 1, 1], [], []>, precision = #tpu.contract_precision<fp32>} : vector<16x128xf32>, vector<128x128xf32>, vector<16x128xf32> -> vector<16x128xf32>
      %97 = vector.broadcast %94 : vector<1x128xf32> to vector<16x128xf32>
      %98 = arith.addf %97, %96 : vector<16x128xf32>
      %99 = vector.extract_strided_slice %93 {offsets = [128, 0], sizes = [128, 128], strides = [1, 1]} : vector<384x128xf32> to vector<128x128xf32>
      %cst_81 = arith.constant dense<0.000000e+00> : vector<16x128xf32>
      %100 = tpu.matmul %92, %99, %cst_81 {dimension_numbers = #tpu.dot_dimension_numbers<[1], [0], [0], [1], [0, 0, 1, 1], [], []>, precision = #tpu.contract_precision<fp32>} : vector<16x128xf32>, vector<128x128xf32>, vector<16x128xf32> -> vector<16x128xf32>
      %101 = arith.addf %98, %100 : vector<16x128xf32>
      %102 = vector.extract_strided_slice %93 {offsets = [256, 0], sizes = [128, 128], strides = [1, 1]} : vector<384x128xf32> to vector<128x128xf32>
      %cst_82 = arith.constant dense<0.000000e+00> : vector<16x128xf32>
      %103 = tpu.matmul %91, %102, %cst_82 {dimension_numbers = #tpu.dot_dimension_numbers<[1], [0], [0], [1], [0, 0, 1, 1], [], []>, precision = #tpu.contract_precision<fp32>} : vector<16x128xf32>, vector<128x128xf32>, vector<16x128xf32> -> vector<16x128xf32>
      %104 = arith.addf %101, %103 : vector<16x128xf32>
      %cst_83 = arith.constant 0.000000e+00 : f32
      %105 = vector.broadcast %cst_83 : f32 to vector<16x128xf32>
      %106 = arith.maximumf %104, %105 : vector<16x128xf32>
      %c0_84 = arith.constant 0 : index
      %c0_85 = arith.constant 0 : index
      %107 = vector.load %arg25[%c0_84, %c0_85] : memref<128x128xf32, #tpu.memory_space<vmem>>, vector<128x128xf32>
      %c0_86 = arith.constant 0 : index
      %c0_87 = arith.constant 0 : index
      %108 = vector.load %arg26[%c0_86, %c0_87] : memref<1x128xf32, #tpu.memory_space<vmem>>, vector<1x128xf32>
      %cst_88 = arith.constant dense<0.000000e+00> : vector<16x128xf32>
      %109 = tpu.matmul %106, %107, %cst_88 {dimension_numbers = #tpu.dot_dimension_numbers<[1], [0], [0], [1], [0, 0, 1, 1], [], []>, precision = #tpu.contract_precision<fp32>} : vector<16x128xf32>, vector<128x128xf32>, vector<16x128xf32> -> vector<16x128xf32>
      %110 = vector.broadcast %108 : vector<1x128xf32> to vector<16x128xf32>
      %111 = arith.addf %109, %110 : vector<16x128xf32>
      %cst_89 = arith.constant 0.000000e+00 : f32
      %112 = vector.broadcast %cst_89 : f32 to vector<16x128xf32>
      %113 = arith.maximumf %111, %112 : vector<16x128xf32>
      %c0_90 = arith.constant 0 : index
      %c0_91 = arith.constant 0 : index
      %114 = vector.load %arg27[%c0_90, %c0_91] : memref<128x128xf32, #tpu.memory_space<vmem>>, vector<128x128xf32>
      %c0_92 = arith.constant 0 : index
      %c0_93 = arith.constant 0 : index
      %115 = vector.load %arg28[%c0_92, %c0_93] : memref<1x128xf32, #tpu.memory_space<vmem>>, vector<1x128xf32>
      %cst_94 = arith.constant dense<0.000000e+00> : vector<16x128xf32>
      %116 = tpu.matmul %113, %114, %cst_94 {dimension_numbers = #tpu.dot_dimension_numbers<[1], [0], [0], [1], [0, 0, 1, 1], [], []>, precision = #tpu.contract_precision<fp32>} : vector<16x128xf32>, vector<128x128xf32>, vector<16x128xf32> -> vector<16x128xf32>
      %117 = vector.broadcast %115 : vector<1x128xf32> to vector<16x128xf32>
      %118 = arith.addf %116, %117 : vector<16x128xf32>
      %119 = arith.addf %118, %65 : vector<16x128xf32>
      %c0_95 = arith.constant 0 : index
      %c0_96 = arith.constant 0 : index
      %120 = vector.load %arg29[%c0_95, %c0_96] : memref<16x128xf32, #tpu.memory_space<vmem>>, vector<16x128xf32>
      tpu.vector_store %arg29[%c0_95, %c0_96], %119 {strides = array<i32>} : memref<16x128xf32, #tpu.memory_space<vmem>>, vector<16x128xf32>,
    } else {
    }
    return
  }
  func.func @transform_0(%arg0: i32) -> (i32, i32) {
    %c0_i32 = arith.constant 0 : i32
    %c0_i32_0 = arith.constant 0 : i32
    %c0_i32_1 = arith.constant 0 : i32
    return %c0_i32, %c0_i32_0 : i32, i32
  }
  func.func @transform_1(%arg0: i32) -> (i32, i32) {
    %c0_i32 = arith.constant 0 : i32
    %c0_i32_0 = arith.constant 0 : i32
    %c0_i32_1 = arith.constant 0 : i32
    return %c0_i32, %c0_i32_0 : i32, i32
  }
  func.func @transform_2(%arg0: i32) -> (i32, i32) {
    %c0_i32 = arith.constant 0 : i32
    %c0_i32_0 = arith.constant 0 : i32
    %c0_i32_1 = arith.constant 0 : i32
    return %c0_i32, %c0_i32_0 : i32, i32
  }
  func.func @transform_3(%arg0: i32) -> (i32, i32) {
    %c0_i32 = arith.constant 0 : i32
    %c0_i32_0 = arith.constant 0 : i32
    %c0_i32_1 = arith.constant 0 : i32
    return %c0_i32, %c0_i32_0 : i32, i32
  }
  func.func @transform_4(%arg0: i32) -> (i32, i32) {
    %c0_i32 = arith.constant 0 : i32
    %c0_i32_0 = arith.constant 0 : i32
    %c0_i32_1 = arith.constant 0 : i32
    return %c0_i32, %c0_i32_0 : i32, i32
  }
  func.func @transform_5(%arg0: i32) -> (i32, i32) {
    %c0_i32 = arith.constant 0 : i32
    %c0_i32_0 = arith.constant 0 : i32
    return %arg0, %c0_i32 : i32, i32
  }
  func.func @transform_6(%arg0: i32) -> (i32, i32) {
    %c0_i32 = arith.constant 0 : i32
    %c0_i32_0 = arith.constant 0 : i32
    return %arg0, %c0_i32 : i32, i32
  }
  func.func @transform_7(%arg0: i32) -> (i32, i32) {
    %c0_i32 = arith.constant 0 : i32
    %c0_i32_0 = arith.constant 0 : i32
    return %arg0, %c0_i32 : i32, i32
  }
  func.func @transform_8(%arg0: i32) -> (i32, i32) {
    %c0_i32 = arith.constant 0 : i32
    %c0_i32_0 = arith.constant 0 : i32
    return %c0_i32, %arg0 : i32, i32
  }
  func.func @transform_9(%arg0: i32) -> (i32, i32) {
    %c0_i32 = arith.constant 0 : i32
    %c0_i32_0 = arith.constant 0 : i32
    return %c0_i32, %arg0 : i32, i32
  }
  func.func @transform_10(%arg0: i32) -> (i32, i32) {
    %c0_i32 = arith.constant 0 : i32
    %c0_i32_0 = arith.constant 0 : i32
    %c0_i32_1 = arith.constant 0 : i32
    return %c0_i32, %c0_i32_0 : i32, i32
  }
  func.func @transform_11(%arg0: i32) -> (i32, i32) {
    %c0_i32 = arith.constant 0 : i32
    %c0_i32_0 = arith.constant 0 : i32
    %c0_i32_1 = arith.constant 0 : i32
    return %c0_i32, %c0_i32_0 : i32, i32
  }
  func.func @transform_12(%arg0: i32) -> (i32, i32) {
    %c0_i32 = arith.constant 0 : i32
    %c0_i32_0 = arith.constant 0 : i32
    %c0_i32_1 = arith.constant 0 : i32
    return %c0_i32, %c0_i32_0 : i32, i32
  }
  func.func @transform_13(%arg0: i32) -> (i32, i32) {
    %c0_i32 = arith.constant 0 : i32
    %c0_i32_0 = arith.constant 0 : i32
    %c0_i32_1 = arith.constant 0 : i32
    return %c0_i32, %c0_i32_0 : i32, i32
  }
  func.func @transform_14(%arg0: i32) -> (i32, i32) {
    %c0_i32 = arith.constant 0 : i32
    %c0_i32_0 = arith.constant 0 : i32
    %c0_i32_1 = arith.constant 0 : i32
    return %c0_i32, %c0_i32_0 : i32, i32
  }
  func.func @transform_15(%arg0: i32) -> (i32, i32) {
    %c0_i32 = arith.constant 0 : i32
    %c0_i32_0 = arith.constant 0 : i32
    %c0_i32_1 = arith.constant 0 : i32
    return %c0_i32, %c0_i32_0 : i32, i32
  }
  func.func @transform_16(%arg0: i32) -> (i32, i32) {
    %c0_i32 = arith.constant 0 : i32
    %c0_i32_0 = arith.constant 0 : i32
    %c0_i32_1 = arith.constant 0 : i32
    return %c0_i32, %c0_i32_0 : i32, i32
  }
  func.func @transform_17(%arg0: i32) -> (i32, i32) {
    %c0_i32 = arith.constant 0 : i32
    %c0_i32_0 = arith.constant 0 : i32
    %c0_i32_1 = arith.constant 0 : i32
    return %c0_i32, %c0_i32_0 : i32, i32
  }
  func.func @transform_18(%arg0: i32) -> (i32, i32) {
    %c0_i32 = arith.constant 0 : i32
    %c0_i32_0 = arith.constant 0 : i32
    %c0_i32_1 = arith.constant 0 : i32
    return %c0_i32, %c0_i32_0 : i32, i32
  }
  func.func @transform_19(%arg0: i32) -> (i32, i32) {
    %c0_i32 = arith.constant 0 : i32
    %c0_i32_0 = arith.constant 0 : i32
    %c0_i32_1 = arith.constant 0 : i32
    return %c0_i32, %c0_i32_0 : i32, i32
  }
  func.func @transform_20(%arg0: i32) -> (i32, i32) {
    %c0_i32 = arith.constant 0 : i32
    %c0_i32_0 = arith.constant 0 : i32
    %c0_i32_1 = arith.constant 0 : i32
    return %c0_i32, %c0_i32_0 : i32, i32
  }
  func.func @transform_21(%arg0: i32) -> (i32, i32) {
    %c0_i32 = arith.constant 0 : i32
    %c0_i32_0 = arith.constant 0 : i32
    %c0_i32_1 = arith.constant 0 : i32
    return %c0_i32, %c0_i32_0 : i32, i32
  }
  func.func @transform_22(%arg0: i32) -> (i32, i32) {
    %c0_i32 = arith.constant 0 : i32
    %c0_i32_0 = arith.constant 0 : i32
    %c0_i32_1 = arith.constant 0 : i32
    return %c0_i32, %c0_i32_0 : i32, i32
  }
  func.func @transform_23(%arg0: i32) -> (i32, i32) {
    %c0_i32 = arith.constant 0 : i32
    %c0_i32_0 = arith.constant 0 : i32
    %c0_i32_1 = arith.constant 0 : i32
    return %c0_i32, %c0_i32_0 : i32, i32
  }
  func.func @transform_24(%arg0: i32) -> (i32, i32) {
    %c0_i32 = arith.constant 0 : i32
    %c0_i32_0 = arith.constant 0 : i32
    %c0_i32_1 = arith.constant 0 : i32
    return %c0_i32, %c0_i32_0 : i32, i32
  }
  func.func @transform_25(%arg0: i32) -> (i32, i32) {
    %c0_i32 = arith.constant 0 : i32
    %c0_i32_0 = arith.constant 0 : i32
    %c0_i32_1 = arith.constant 0 : i32
    return %c0_i32, %c0_i32_0 : i32, i32
  }
  func.func @transform_26(%arg0: i32) -> (i32, i32) {
    %c0_i32 = arith.constant 0 : i32
    %c0_i32_0 = arith.constant 0 : i32
    %c0_i32_1 = arith.constant 0 : i32
    return %c0_i32, %c0_i32_0 : i32, i32
  }
  func.func @transform_27(%arg0: i32) -> (i32, i32) {
    %c0_i32 = arith.constant 0 : i32
    %c0_i32_0 = arith.constant 0 : i32
    %c0_i32_1 = arith.constant 0 : i32
    return %c0_i32, %c0_i32_0 : i32, i32
  }
  func.func @transform_28(%arg0: i32) -> (i32, i32) {
    %c0_i32 = arith.constant 0 : i32
    %c0_i32_0 = arith.constant 0 : i32
    %c0_i32_1 = arith.constant 0 : i32
    return %c0_i32, %c0_i32_0 : i32, i32
  }
  func.func @transform_29(%arg0: i32) -> (i32, i32) {
    %c0_i32 = arith.constant 0 : i32
    %c0_i32_0 = arith.constant 0 : i32
    return %arg0, %c0_i32 : i32, i32
  }
}

</mosaic_0001>

<bundles_post_ra>
// kernel: tpu_custom_call.1
= control target key start
LH: loop header
LB: loop body
LE: loop exit
PB: predicated region body
PF: predicated region fallthrough
CT: control target
= control target key end

     0   :  { %s23385_s6 = smov 1   ;;  %s23386_s10 = smov 2   ;;  %s29393_s0 = inlined_call_operand.smem [shape: u32[30], index: -1, kind: input, shape index: {}] }
   0x1   :  { %s23437_s5 = sld [smem:[%s29393_s0]]   ;;  %s23387_s14 = smov 3  }
   0x2   :  { %s23442_s9 = sld [smem:[%s29393_s0 + %s23385_s6]]   ;;  %s23388_s18 = smov 4  }
   0x3   :  { %s23447_s13 = sld [smem:[%s29393_s0 + %s23386_s10]]   ;;  %s23389_s22 = smov 5  }
   0x4   :  { %s23452_s17 = sld [smem:[%s29393_s0 + %s23387_s14]]   ;;  %s23390_s26 = smov 6  }
   0x5   :  { %s23457_s21 = sld [smem:[%s29393_s0 + %s23388_s18]]   ;;  %s23391_s30 = smov 7  }
   0x6   :  { %s23462_s25 = sld [smem:[%s29393_s0 + %s23389_s22]]   ;;  %s23392_s4 = smov 8  }
   0x7   :  { %29690 = sst [smem:[#allocation28_spill]] %s23437_s5  ;;  %s23393_s10 = smov 9  }
   0x8   :  { %s23467_s29 = sld [smem:[%s29393_s0 + %s23390_s26]]   ;;  %s23394_s15 = smov 10  }
   0x9   :  { %s23472_s3 = sld [smem:[%s29393_s0 + %s23391_s30]]   ;;  %s23395_s20 = smov 11  }
   0xa   :  { %29691 = sst [smem:[#allocation29_spill]] %s23452_s17  ;;  %s23396_s26 = smov 12  }
   0xb   :  { %29692 = sst [smem:[#allocation30_spill]] %s23457_s21  ;;  %s23397_s1 = smov 13  }
   0xc   :  { %s23477_s8 = sld [smem:[%s29393_s0 + %s23392_s4]]   ;;  %s23398_s7 = smov 14  }
   0xd   :  { %s23482_s14 = sld [smem:[%s29393_s0 + %s23393_s10]]   ;;  %s23400_s22 = smov 16  }
   0xe   :  { %s23487_s19 = sld [smem:[%s29393_s0 + %s23394_s15]]   ;;  %s23399_s15 = smov 15  }
   0xf   :  { %s23492_s24 = sld [smem:[%s29393_s0 + %s23395_s20]]   ;;  %s23401_s28 = smov 17  }
  0x10   :  { %s23497_s30 = sld [smem:[%s29393_s0 + %s23396_s26]]  }
  0x11   :  { %s23502_s6 = sld [smem:[%s29393_s0 + %s23397_s1]]  }
  0x12   :  { %29693 = sst [smem:[#allocation31_spill]] %s23477_s8 }
  0x13   :  { %29694 = sst [smem:[#allocation32_spill]] %s23482_s14 }
  0x14   :  { %s23507_s12 = sld [smem:[%s29393_s0 + %s23398_s7]]   ;;  %s23402_s7 = smov 18  }
  0x15   :  { %s23512_s20 = sld [smem:[%s29393_s0 + %s23399_s15]]   ;;  %s23403_s15 = smov 19  }
  0x16   :  { %s23517_s27 = sld [smem:[%s29393_s0 + %s23400_s22]]   ;;  %s23404_s22 = smov 20  }
  0x17   :  { %s23522_s4 = sld [smem:[%s29393_s0 + %s23401_s28]]   ;;  %s23405_s28 = smov 21  }
  0x18   :  { %s23527_s5 = sld [smem:[%s29393_s0 + %s23402_s7]]   ;;  %s23406_s7 = smov 22  }
  0x19   :  { %s23547_s17 = sld [smem:[%s29393_s0 + %s23406_s7]]   ;;  %s23410_s7 = smov 26  }
  0x1a   :  { %s23567_s8 = sld [smem:[%s29393_s0 + %s23410_s7]]  }
  0x1b   :  { %29695 = sst [smem:[#allocation33_spill]] %s23512_s20 }
  0x1c   :  { %29696 = sst [smem:[#allocation34_spill]] %s23517_s27 }
  0x1d   :  { %29697 = sst [smem:[#allocation35_spill]] %s23522_s4 }
  0x1e   :  { %s23532_s20 = sld [smem:[%s29393_s0 + %s23403_s15]]   ;;  %s23407_s15 = smov 23  }
  0x1f   :  { %s23537_s27 = sld [smem:[%s29393_s0 + %s23404_s22]]   ;;  %s23408_s22 = smov 24  }
  0x20   :  { %s23542_s4 = sld [smem:[%s29393_s0 + %s23405_s28]]   ;;  %s23409_s28 = smov 25  }
  0x21   :  { %s23557_s21 = sld [smem:[%s29393_s0 + %s23408_s22]]   ;;  %s23412_s22 = smov 28  }
  0x22   :  { %s23577_s14 = sld [smem:[%s29393_s0 + %s23412_s22]]  }
  0x24   :  { %29698 = sst [smem:[#allocation36_spill]] %s23532_s20 }
  0x25   :  { %s23552_s20 = sld [smem:[%s29393_s0 + %s23407_s15]]   ;;  %s23411_s15 = smov 27  }
  0x26   :  { %29699 = sst [smem:[#allocation37_spill]] %s23542_s4 }
  0x27   :  { %s23562_s4 = sld [smem:[%s29393_s0 + %s23409_s28]]   ;;  %s23413_s28 = smov 29  }
  0x2b   :  { %29700 = sst [smem:[#allocation38_spill]] %s23552_s20 }
  0x2c   :  { %s23572_s20 = sld [smem:[%s29393_s0 + %s23411_s15]]  }
  0x2d   :  { %29701 = sst [smem:[#allocation39_spill]] %s23562_s4 }
  0x2e   :  { %s23582_s4 = sld [smem:[%s29393_s0 + %s23413_s28]]  }
  0x2f   :  { %65 = vsyncpa [#allocation4], 0 }
  0x30   :  { %66 = vsyncpa [#allocation7], 0 }
  0x31   :  { %67 = vsyncpa [#allocation10], 0 }
  0x32   :  { %68 = vsyncpa [#allocation13], 0 }
  0x33   :  { %69 = vsyncpa [#allocation16], 0 }
  0x34   :  { %70 = vsyncpa [#allocation5], 0 }
  0x35   :  { %71 = vsyncpa [#allocation20], 0  ;;  %s23414_s7 = smov [#allocation6]   ;;  %s23415_s11 = smov [#allocation9]  }
  0x36   :  { %s107_s10 = sshll.u32 %s23414_s7, 4  ;;  %s135_s15 = sshll.u32 %s23415_s11, 4  ;;  %s108_s10 = int_to_ptr.vmem [resolvable:$true] %s107_s10  ;;  %s23584_s15 = int_to_ptr.vmem [resolvable:$true] %s135_s15 }
  0x37   :  { %s23129_s16 = scalar_lea.hbm %s23487_s19, 2048 }
  0x38   :  { %p23130_p0 = scmp.ne.s32.totalorder %s23487_s19, %s23129_s16  ;;  %p23133_p1 = scmp.lt.u32.totalorder %s23129_s16, %s23487_s19 }
  0x3a   :  { %p23135_p2 = pnand %p23133_p1, %p23130_p0 }
  0x3c   :  { %23138 = shalt.err (!%p23135_p2)
}
  0x3d   :  { %s23139_s0 = scalar_lea.vmem %s108_s10, 2048  ;;  %p23144_p4 = scmp.lt.s32.totalorder %s108_s10, %s108_s10 }
  0x3e   :  { %p23140_p3 = scmp.ne.s32.totalorder %s108_s10, %s23139_s0  ;;  %p23145_p5 = scmp.lt.s32.totalorder %s23139_s0, %s23139_s0 }
  0x40   :  { %p23146_p6 = por %p23145_p5, %p23144_p4 }
  0x42   :  { %p23147_p7 = pnand %p23146_p6, %p23140_p3 }
  0x44   :  { %23150 = shalt.err (!%p23147_p7)
}
  0x45   :  { %s23416_s18 = smov 128   ;;  %s23417_s22 = smov 8  }
  0x46   :  { %113 = dma.hbm_to_vmem [thread:$0]  %s23487_s19, 2048, %s108_s10, [#allocation7], %s23416_s18, %s23416_s18, %s23417_s22  }
  0x47   :  { %s23151_s23 = scalar_lea.hbm %s23507_s12, 2048 }
  0x48   :  { %p23152_p8 = scmp.ne.s32.totalorder %s23507_s12, %s23151_s23  ;;  %p23155_p9 = scmp.lt.u32.totalorder %s23151_s23, %s23507_s12 }
  0x4a   :  { %p23157_p10 = pnand %p23155_p9, %p23152_p8 }
  0x4c   :  { %23160 = shalt.err (!%p23157_p10)
}
  0x4d   :  { %s23161_s26 = scalar_lea.vmem %s23584_s15, 2048  ;;  %p23166_p12 = scmp.lt.s32.totalorder %s23584_s15, %s23584_s15 }
  0x4e   :  { %p23162_p11 = scmp.ne.s32.totalorder %s23584_s15, %s23161_s26  ;;  %p23167_p13 = scmp.lt.s32.totalorder %s23161_s26, %s23161_s26 }
  0x50   :  { %p23168_p0 = por %p23167_p13, %p23166_p12 }
  0x52   :  { %p23169_p1 = pnand %p23168_p0, %p23162_p11 }
  0x54   :  { %23172 = shalt.err (!%p23169_p1)
}
  0x55   :  { %141 = dma.hbm_to_vmem [thread:$0]  %s23507_s12, 2048, %s23584_s15, [#allocation10], %s23416_s18, %s23416_s18, %s23417_s22  }
  0x56   :  { %s23418_s19 = smov [#allocation12]   ;;  %s23419_s1 = smov [#allocation15]  }
  0x57   :  { %s167_s28 = sshll.u32 %s23418_s19, 4  ;;  %s195_s2 = sshll.u32 %s23419_s1, 4  ;;  %s168_s28 = int_to_ptr.vmem [resolvable:$true] %s167_s28  ;;  %s23605_s2 = int_to_ptr.vmem [resolvable:$true] %s195_s2 }
  0x58   :  { %s23173_s7 = scalar_lea.hbm %s23537_s27, 2048 }
  0x59   :  { %p23174_p2 = scmp.ne.s32.totalorder %s23537_s27, %s23173_s7  ;;  %p23177_p3 = scmp.lt.u32.totalorder %s23173_s7, %s23537_s27 }
  0x5b   :  { %p23179_p4 = pnand %p23177_p3, %p23174_p2 }
  0x5d   :  { %23182 = shalt.err (!%p23179_p4)
}
  0x5e   :  { %s23183_s10 = scalar_lea.vmem %s168_s28, 2048  ;;  %p23188_p6 = scmp.lt.s32.totalorder %s168_s28, %s168_s28 }
  0x5f   :  { %p23184_p5 = scmp.ne.s32.totalorder %s168_s28, %s23183_s10  ;;  %p23189_p7 = scmp.lt.s32.totalorder %s23183_s10, %s23183_s10 }
  0x61   :  { %p23190_p8 = por %p23189_p7, %p23188_p6 }
  0x63   :  { %p23191_p9 = pnand %p23190_p8, %p23184_p5 }
  0x65   :  { %23194 = shalt.err (!%p23191_p9)
}
  0x66   :  { %173 = dma.hbm_to_vmem [thread:$0]  %s23537_s27, 2048, %s168_s28, [#allocation13], %s23416_s18, %s23416_s18, %s23417_s22  }
  0x67   :  { %s23195_s12 = scalar_lea.hbm %s23557_s21, 2048 }
  0x68   :  { %p23196_p10 = scmp.ne.s32.totalorder %s23557_s21, %s23195_s12  ;;  %p23199_p11 = scmp.lt.u32.totalorder %s23195_s12, %s23557_s21 }
  0x6a   :  { %p23201_p12 = pnand %p23199_p11, %p23196_p10 }
  0x6c   :  { %23204 = shalt.err (!%p23201_p12)
}
  0x6d   :  { %s23205_s11 = scalar_lea.vmem %s23605_s2, 2048  ;;  %p23210_p0 = scmp.lt.s32.totalorder %s23605_s2, %s23605_s2 }
  0x6e   :  { %p23206_p13 = scmp.ne.s32.totalorder %s23605_s2, %s23205_s11  ;;  %p23211_p1 = scmp.lt.s32.totalorder %s23205_s11, %s23205_s11 }
  0x70   :  { %p23212_p2 = por %p23211_p1, %p23210_p0 }
  0x72   :  { %p23213_p3 = pnand %p23212_p2, %p23206_p13 }
  0x74   :  { %23216 = shalt.err (!%p23213_p3)
}
  0x75   :  { %201 = dma.hbm_to_vmem [thread:$0]  %s23557_s21, 2048, %s23605_s2, [#allocation16], %s23416_s18, %s23416_s18, %s23417_s22  }
  0x76   :  { %s23420_s27 = smov [#allocation3]   ;;  %s23421_s16 = smov [#allocation8]  }
  0x77   :  { %s87_s15 = sshll.u32 %s23420_s27, 4  ;;  %s121_s0 = sshll.u32 %s23421_s16, 4  ;;  %s88_s15 = int_to_ptr.vmem [resolvable:$true] %s87_s15  ;;  %s23626_s0 = int_to_ptr.vmem [resolvable:$true] %s121_s0 }
  0x78   :  { %s23217_s23 = scalar_lea.hbm %s23462_s25, 2048 }
  0x79   :  { %p23218_p4 = scmp.ne.s32.totalorder %s23462_s25, %s23217_s23  ;;  %p23221_p5 = scmp.lt.u32.totalorder %s23217_s23, %s23462_s25 }
  0x7b   :  { %p23223_p6 = pnand %p23221_p5, %p23218_p4 }
  0x7d   :  { %23226 = shalt.err (!%p23223_p6)
}
  0x7e   :  { %s23227_s26 = scalar_lea.vmem %s88_s15, 2048  ;;  %p23232_p8 = scmp.lt.s32.totalorder %s88_s15, %s88_s15 }
  0x7f   :  { %p23228_p7 = scmp.ne.s32.totalorder %s88_s15, %s23227_s26  ;;  %p23233_p9 = scmp.lt.s32.totalorder %s23227_s26, %s23227_s26 }
  0x81   :  { %p23234_p10 = por %p23233_p9, %p23232_p8 }
  0x83   :  { %p23235_p11 = pnand %p23234_p10, %p23228_p7 }
  0x85   :  { %23238 = shalt.err (!%p23235_p11)
}
  0x86   :  { %93 = dma.hbm_to_vmem [thread:$0]  %s23462_s25, 2048, %s88_s15, [#allocation4], %s23416_s18, %s23416_s18, %s23417_s22  }
  0x87   :  { %s23239_s21 = scalar_lea.hbm %s23497_s30, 2048 }
  0x88   :  { %p23240_p12 = scmp.ne.s32.totalorder %s23497_s30, %s23239_s21  ;;  %p23243_p13 = scmp.lt.u32.totalorder %s23239_s21, %s23497_s30 }
  0x8a   :  { %p23245_p0 = pnand %p23243_p13, %p23240_p12 }
  0x8c   :  { %23248 = shalt.err (!%p23245_p0)
}
  0x8d   :  { %s23249_s19 = scalar_lea.vmem %s23626_s0, 2048  ;;  %p23254_p2 = scmp.lt.s32.totalorder %s23626_s0, %s23626_s0 }
  0x8e   :  { %p23250_p1 = scmp.ne.s32.totalorder %s23626_s0, %s23249_s19  ;;  %p23255_p3 = scmp.lt.s32.totalorder %s23249_s19, %s23249_s19 }
  0x90   :  { %p23256_p4 = por %p23255_p3, %p23254_p2 }
  0x92   :  { %p23257_p5 = pnand %p23256_p4, %p23250_p1 }
  0x94   :  { %23260 = shalt.err (!%p23257_p5)
}
  0x95   :  { %127 = dma.hbm_to_vmem [thread:$0]  %s23497_s30, 2048, %s23626_s0, [#allocation7], %s23416_s18, %s23416_s18, %s23417_s22  }
  0x96   :  { %s23422_s25 = smov [#allocation11]   ;;  %s23423_s1 = smov [#allocation14]  }
  0x97   :  { %s153_s28 = sshll.u32 %s23422_s25, 4  ;;  %s181_s2 = sshll.u32 %s23423_s1, 4  ;;  %s154_s28 = int_to_ptr.vmem [resolvable:$true] %s153_s28  ;;  %s23647_s2 = int_to_ptr.vmem [resolvable:$true] %s181_s2 }
  0x98   :  { %s23261_s7 = scalar_lea.hbm %s23527_s5, 2048 }
  0x99   :  { %p23262_p6 = scmp.ne.s32.totalorder %s23527_s5, %s23261_s7  ;;  %p23265_p7 = scmp.lt.u32.totalorder %s23261_s7, %s23527_s5 }
  0x9b   :  { %p23267_p8 = pnand %p23265_p7, %p23262_p6 }
  0x9d   :  { %23270 = shalt.err (!%p23267_p8)
}
  0x9e   :  { %s23271_s10 = scalar_lea.vmem %s154_s28, 2048  ;;  %p23276_p10 = scmp.lt.s32.totalorder %s154_s28, %s154_s28 }
  0x9f   :  { %p23272_p9 = scmp.ne.s32.totalorder %s154_s28, %s23271_s10  ;;  %p23277_p11 = scmp.lt.s32.totalorder %s23271_s10, %s23271_s10 }
  0xa1   :  { %p23278_p12 = por %p23277_p11, %p23276_p10 }
  0xa3   :  { %p23279_p13 = pnand %p23278_p12, %p23272_p9 }
  0xa5   :  { %23282 = shalt.err (!%p23279_p13)
}
  0xa6   :  { %159 = dma.hbm_to_vmem [thread:$0]  %s23527_s5, 2048, %s154_s28, [#allocation10], %s23416_s18, %s23416_s18, %s23417_s22  }
  0xa7   :  { %s23283_s30 = scalar_lea.hbm %s23547_s17, 6144 }
  0xa8   :  { %p23284_p0 = scmp.ne.s32.totalorder %s23547_s17, %s23283_s30  ;;  %p23287_p1 = scmp.lt.u32.totalorder %s23283_s30, %s23547_s17 }
  0xaa   :  { %p23289_p2 = pnand %p23287_p1, %p23284_p0 }
  0xac   :  { %23292 = shalt.err (!%p23289_p2)
}
  0xad   :  { %s23293_s12 = scalar_lea.vmem %s23647_s2, 6144  ;;  %p23298_p4 = scmp.lt.s32.totalorder %s23647_s2, %s23647_s2 }
  0xae   :  { %p23294_p3 = scmp.ne.s32.totalorder %s23647_s2, %s23293_s12  ;;  %p23299_p5 = scmp.lt.s32.totalorder %s23293_s12, %s23293_s12 }
  0xb0   :  { %p23300_p6 = por %p23299_p5, %p23298_p4 }
  0xb2   :  { %p23301_p7 = pnand %p23300_p6, %p23294_p3 }
  0xb4   :  { %23304 = shalt.err (!%p23301_p7)
}
  0xb5   :  { %187 = dma.hbm_to_vmem [thread:$0]  %s23547_s17, 6144, %s23647_s2, [#allocation13], %s23416_s18, %s23416_s18, %s23417_s22  }
  0xb6   :  { %s23424_s5 = smov [#allocation17]   ;;  %s23305_s27 = scalar_lea.hbm %s23567_s8, 2048 }
  0xb7   :  { %s209_s11 = sshll.u32 %s23424_s5, 4  ;;  %p23306_p8 = scmp.ne.s32.totalorder %s23567_s8, %s23305_s27  ;;  %s210_s11 = int_to_ptr.vmem [resolvable:$true] %s209_s11 }
  0xb8   :  { %p23309_p9 = scmp.lt.u32.totalorder %s23305_s27, %s23567_s8 }
  0xba   :  { %p23311_p10 = pnand %p23309_p9, %p23306_p8 }
  0xbc   :  { %23314 = shalt.err (!%p23311_p10)
}
  0xbd   :  { %s23315_s15 = scalar_lea.vmem %s210_s11, 2048  ;;  %p23320_p12 = scmp.lt.s32.totalorder %s210_s11, %s210_s11 }
  0xbe   :  { %p23316_p11 = scmp.ne.s32.totalorder %s210_s11, %s23315_s15  ;;  %p23321_p13 = scmp.lt.s32.totalorder %s23315_s15, %s23315_s15 }
  0xc0   :  { %p23322_p0 = por %p23321_p13, %p23320_p12 }
  0xc2   :  { %p23323_p1 = pnand %p23322_p0, %p23316_p11 }
  0xc4   :  { %23326 = shalt.err (!%p23323_p1)
}
  0xc5   :  { %215 = dma.hbm_to_vmem [thread:$0]  %s23567_s8, 2048, %s210_s11, [#allocation16], %s23416_s18, %s23416_s18, %s23417_s22  }
  0xc6   :  { %23371 = dma.done.wait [#allocation4], 2048  }
  0xc7   :  { %23372 = vsyncadd [#allocation4], 4294965248 }
  0xc8   :  { %23373 = dma.done.wait [#allocation7], 4096  }
  0xc9   :  { %23374 = vsyncadd [#allocation7], 4294963200 }
  0xca   :  { %23375 = dma.done.wait [#allocation10], 4096  }
  0xcb   :  { %23376 = vsyncadd [#allocation10], 4294963200 }
  0xcc   :  { %23377 = dma.done.wait [#allocation13], 8192  }
  0xcd   :  { %23378 = vsyncadd [#allocation13], 4294959104 }
  0xce   :  { %23379 = dma.done.wait [#allocation16], 4096  }
  0xcf   :  { %23380 = vsyncadd [#allocation16], 4294963200  ;;  %v23425_v0 = vmov 0   ;;  %v255_v1 = vld [vmem:[%s23467_s29 + $0x10] sm:$0xff]  ;;  %v253_v2 = vld [vmem:[%s23467_s29] sm:$0xff]  ;;  %v29397_v48 = vlaneseq  ;;  %vm463_vm0 = vcmask 130048  }
  0xd0   :  { %23110 = vset.pattern.permute.xlu1 %v23425_v0  ;;  %23109 = vset.pattern.permute.xlu0 %v23425_v0  ;;  %v256_v3 = vld [vmem:[%s23467_s29 + $0x18] sm:$0xff]  ;;  %v254_v4 = vld [vmem:[%s23467_s29 + $0x8] sm:$0xff]  ;;  %v257_v6 = vld [vmem:[%s23467_s29 + $0x20] sm:$0xff]  ;;  %v29398_v52 = vmov 0.0   ;;  %s29879_s17 = sld [smem:[#allocation30_spill]]  ;;  %s29897_s8 = sld [smem:[#allocation28_spill]] }
  0xd1   :  { %276 = vperm.xlu1 %23110, %v255_v1   ;;  %270 = vperm.xlu0 %23109, %v253_v2   ;;  %v258_v5 = vld [vmem:[%s23467_s29 + $0x28] sm:$0xff]  ;;  %v260_v7 = vld [vmem:[%s23467_s29 + $0x38] sm:$0xff]  ;;  %v259_v8 = vld [vmem:[%s23467_s29 + $0x30] sm:$0xff]  ;;  %v23733_v49 = vand.u32 127, %v29397_v48  ;;  %s30045_s16 = sld [smem:[#allocation36_spill]]  ;;  %s30054_s0 = sld [smem:[#allocation37_spill]] }
  0xd2   :  { %v461_v9 = vld [vmem:[%s23442_s9] sm:$0xff]  ;;  %v462_v10 = vld [vmem:[%s23442_s9 + $0x8] sm:$0xff]  ;;  %v264_v18 = vld [vmem:[%s23467_s29 + $0x58] sm:$0xff]  ;;  %s29876_s9 = sld [smem:[#allocation32_spill]]  ;;  %s30065_s23 = sld [smem:[#allocation38_spill]] }
  0xd3   :  { %v513_v11 = vand.u32 4294901760, %v461_v9  ;;  %v516_v12 = vand.u32 4294901760, %v462_v10  ;;  %v262_v13 = vld [vmem:[%s23467_s29 + $0x48] sm:$0xff]  ;;  %v261_v14 = vld [vmem:[%s23467_s29 + $0x40] sm:$0xff]  ;;  %v263_v19 = vld [vmem:[%s23467_s29 + $0x50] sm:$0xff]  ;;  %s30073_s26 = sld [smem:[#allocation39_spill]] }
  0xd4   :  { %v266_v24 = vld [vmem:[%s23467_s29 + $0x68] sm:$0xff]  ;;  %v265_v25 = vld [vmem:[%s23467_s29 + $0x60] sm:$0xff]  ;;  %v268_v29 = vld [vmem:[%s23467_s29 + $0x78] sm:$0xff]  ;;  %s23427_s21 = smov [#allocation19]  }
  0xd5   :  { %279 = vperm.xlu1 %23110, %v256_v3   ;;  %273 = vperm.xlu0 %23109, %v254_v4   ;;  %v23687_v15 = vpack.c.bf16 %v516_v12, %v513_v11  ;;  %v23690_v16 = vsub.f32 %v461_v9, %v513_v11  ;;  %v23692_v17 = vsub.f32 %v462_v10, %v516_v12  ;;  %v267_v30 = vld [vmem:[%s23467_s29 + $0x70] sm:$0xff]  ;;  %v350_v31 = vld [vmem:[%s23472_s3 + $0x8] sm:$0xff]  ;;  %v349_v32 = vld [vmem:[%s23472_s3] sm:$0xff]  ;;  %s29881_s29 = sld [smem:[#allocation29_spill]]  ;;  %s14393_s19 = sshll.u32 %s23427_s21, 4  ;;  %s14394_s19 = int_to_ptr.vmem [resolvable:$true] %s14393_s19 }
  0xd6   :  { %v352_v33 = vld [vmem:[%s23472_s3 + $0x18] sm:$0xff]  ;;  %v351_v34 = vld [vmem:[%s23472_s3 + $0x10] sm:$0xff]  ;;  %v354_v35 = vld [vmem:[%s23472_s3 + $0x28] sm:$0xff]  ;;  %s23327_s25 = scalar_lea.vmem %s14394_s19, 2048  ;;  %p23332_p3 = scmp.lt.s32.totalorder %s14394_s19, %s14394_s19 }
  0xd7   :  { %19914 = vmatprep.subr.bf16.mxu0 %v23687_v15  ;;  %v742_v20 = vand.u32 4294901760, %v23690_v16  ;;  %v749_v21 = vand.u32 4294901760, %v23692_v17  ;;  %v353_v36 = vld [vmem:[%s23472_s3 + $0x20] sm:$0xff]  ;;  %v356_v37 = vld [vmem:[%s23472_s3 + $0x38] sm:$0xff]  ;;  %v355_v38 = vld [vmem:[%s23472_s3 + $0x30] sm:$0xff]  ;;  %v23724_v41 = vpack.c.bf16 %v23692_v17, %v23690_v16  ;;  %p23328_p2 = scmp.ne.s32.totalorder %s14394_s19, %s23327_s25  ;;  %p23333_p4 = scmp.lt.s32.totalorder %s23327_s25, %s23327_s25 }
  0xd8   :  { %19916 = vmatpush3.bf16.msra.mxu0 %v23687_v15  ;;  %v358_v39 = vld [vmem:[%s23472_s3 + $0x48] sm:$0xff]  ;;  %v357_v40 = vld [vmem:[%s23472_s3 + $0x40] sm:$0xff]  ;;  %v360_v42 = vld [vmem:[%s23472_s3 + $0x58] sm:$0xff] }
  0xd9   :  { %285 = vperm.xlu1 %23110, %v258_v5   ;;  %282 = vperm.xlu0 %23109, %v257_v6   ;;  %v743_v22 = vsub.f32 %v23690_v16, %v742_v20  ;;  %v750_v23 = vsub.f32 %v23692_v17, %v749_v21  ;;  %v359_v43 = vld [vmem:[%s23472_s3 + $0x50] sm:$0xff]  ;;  %v362_v44 = vld [vmem:[%s23472_s3 + $0x68] sm:$0xff]  ;;  %v361_v45 = vld [vmem:[%s23472_s3 + $0x60] sm:$0xff]  ;;  %p23334_p5 = por %p23333_p4, %p23332_p3 }
  0xda   :  { %v364_v46 = vld [vmem:[%s23472_s3 + $0x78] sm:$0xff]  ;;  %v363_v47 = vld [vmem:[%s23472_s3 + $0x70] sm:$0xff]  ;;  %v1632_v16 = vld [vmem:[%s23447_s13] sm:$0xff]  ;;  %s29882_s3 = sld [smem:[#allocation33_spill]] }
  0xdb   :  { %v744_v26 = vand.u32 4294901760, %v743_v22  ;;  %v751_v27 = vand.u32 4294901760, %v750_v23  ;;  %v1633_v17 = vld [vmem:[%s23447_s13 + $0x8] sm:$0xff]  ;;  %s29877_s13 = sld [smem:[#allocation31_spill]]  ;;  %p23335_p6 = pnand %p23334_p5, %p23328_p2 }
  0xdd   :  { %291 = vperm.xlu1 %23110, %v260_v7   ;;  %288 = vperm.xlu0 %23109, %v259_v8   ;;  %v23707_v28 = vpack.c.bf16 %v751_v27, %v744_v26 }
  0xdf   :  { %19918 = vmatprep.subr.bf16.mxu0 %v23707_v28 }
  0xe1   :  { %297 = vperm.xlu1 %23110, %v262_v13   ;;  %294 = vperm.xlu0 %23109, %v261_v14  }
  0xe5   :  { %303 = vperm.xlu1 %23110, %v264_v18   ;;  %300 = vperm.xlu0 %23109, %v263_v19  }
  0xe9   :  { %309 = vperm.xlu1 %23110, %v266_v24   ;;  %306 = vperm.xlu0 %23109, %v265_v25  }
  0xed   :  { %315 = vperm.xlu1 %23110, %v268_v29   ;;  %312 = vperm.xlu0 %23109, %v267_v30  }
  0xf1   :  { %369 = vperm.xlu1 %23110, %v350_v31   ;;  %366 = vperm.xlu0 %23109, %v349_v32  }
  0xf5   :  { %375 = vperm.xlu1 %23110, %v352_v33   ;;  %372 = vperm.xlu0 %23109, %v351_v34  }
  0xf9   :  { %381 = vperm.xlu1 %23110, %v354_v35   ;;  %378 = vperm.xlu0 %23109, %v353_v36  }
  0xfd   :  { %387 = vperm.xlu1 %23110, %v356_v37   ;;  %384 = vperm.xlu0 %23109, %v355_v38  }
 0x101   :  { %393 = vperm.xlu1 %23110, %v358_v39   ;;  %390 = vperm.xlu0 %23109, %v357_v40  }
 0x105   :  { %399 = vperm.xlu1 %23110, %v360_v42   ;;  %396 = vperm.xlu0 %23109, %v359_v43  }
 0x109   :  { %405 = vperm.xlu1 %23110, %v362_v44   ;;  %402 = vperm.xlu0 %23109, %v361_v45  }
 0x10d   :  { %411 = vperm.xlu1 %23110, %v364_v46   ;;  %408 = vperm.xlu0 %23109, %v363_v47  }
 0x150   :  { %v277_v50 = vpop.permute.xlu1 %276  ;;  %v271_v51 = vpop.permute.xlu0 %270 }
 0x151   :  { %vm319_vm1 = vcmp.eq.s32.totalorder %v23733_v49, %v277_v50  ;;  %vm317_vm2 = vcmp.eq.s32.totalorder %v23733_v49, %v271_v51 }
 0x152   :  { %v23738_v53 = vsel %vm319_vm1, 1.0, %v29398_v52  ;;  %v23741_v54 = vsel %vm317_vm2, 1.0, %v29398_v52 }
 0x153   :  { %v471_v55 = vsel %vm463_vm0, %v23738_v53, 0  ;;  %v465_v56 = vsel %vm463_vm0, %v23741_v54, 0 }
 0x154   :  { %v23747_v57 = vsub.f32 %v471_v55, %v471_v55  ;;  %v280_v58 = vpop.permute.xlu1 %279  ;;  %v274_v59 = vpop.permute.xlu0 %273  ;;  %v23749_v60 = vsub.f32 %v465_v56, %v465_v56 }
 0x155   :  { %vm320_vm3 = vcmp.eq.s32.totalorder %v23733_v49, %v280_v58  ;;  %vm318_vm4 = vcmp.eq.s32.totalorder %v23733_v49, %v274_v59 }
 0x156   :  { %v23754_v61 = vsel %vm320_vm3, 1.0, %v29398_v52  ;;  %v23757_v62 = vsel %vm318_vm4, 1.0, %v29398_v52  ;;  %v581_v63 = vand.u32 4294901760, %v23749_v60  ;;  %v601_v2 = vand.u32 4294901760, %v23747_v57 }
 0x157   :  { %v474_v0 = vsel %vm463_vm0, %v23754_v61, 0  ;;  %v468_v1 = vsel %vm463_vm0, %v23757_v62, 0 }
 0x158   :  { %v23765_v3 = vsub.f32 %v474_v0, %v474_v0  ;;  %v23767_v4 = vsub.f32 %v468_v1, %v468_v1  ;;  %v286_v5 = vpop.permute.xlu1 %285  ;;  %v283_v6 = vpop.permute.xlu0 %282  ;;  %v582_v7 = vsub.f32 %v23749_v60, %v581_v63  ;;  %v602_v14 = vsub.f32 %v23747_v57, %v601_v2 }
 0x159   :  { %vm322_vm5 = vcmp.eq.s32.totalorder %v23733_v49, %v286_v5  ;;  %vm321_vm6 = vcmp.eq.s32.totalorder %v23733_v49, %v283_v6 }
 0x15a   :  { %v23775_v8 = vsel %vm322_vm5, 1.0, %v29398_v52  ;;  %v23778_v9 = vsel %vm321_vm6, 1.0, %v29398_v52  ;;  %v583_v10 = vand.u32 4294901760, %v582_v7  ;;  %v591_v11 = vand.u32 4294901760, %v23767_v4 }
 0x15b   :  { %v480_v12 = vsel %vm463_vm0, %v23775_v8, 0  ;;  %v477_v13 = vsel %vm463_vm0, %v23778_v9, 0  ;;  %v611_v18 = vand.u32 4294901760, %v23765_v3  ;;  %v603_v34 = vand.u32 4294901760, %v602_v14 }
 0x15c   :  { %v23789_v19 = vsub.f32 %v480_v12, %v480_v12  ;;  %v23791_v22 = vsub.f32 %v477_v13, %v477_v13  ;;  %v292_v23 = vpop.permute.xlu1 %291  ;;  %16443 = vmatprep.mubr.f32.mxu0 %v583_v10  ;;  %v289_v24 = vpop.permute.xlu0 %288  ;;  %v592_v25 = vsub.f32 %v23767_v4, %v591_v11 }
 0x15d   :  { %vm324_vm7 = vcmp.eq.s32.totalorder %v23733_v49, %v292_v23  ;;  %vm323_vm8 = vcmp.eq.s32.totalorder %v23733_v49, %v289_v24  ;;  %v612_v26 = vsub.f32 %v23765_v3, %v611_v18 }
 0x15e   :  { %v23802_v27 = vsel %vm324_vm7, 1.0, %v29398_v52  ;;  %v23805_v29 = vsel %vm323_vm8, 1.0, %v29398_v52  ;;  %v593_v30 = vand.u32 4294901760, %v592_v25  ;;  %v621_v31 = vand.u32 4294901760, %v23791_v22 }
 0x15f   :  { %v486_v32 = vsel %vm463_vm0, %v23802_v27, 0  ;;  %v483_v33 = vsel %vm463_vm0, %v23805_v29, 0  ;;  %v631_v35 = vand.u32 4294901760, %v23789_v19  ;;  %v613_v42 = vand.u32 4294901760, %v612_v26 }
 0x160   :  { %v23813_v36 = vsub.f32 %v486_v32, %v486_v32  ;;  %v23815_v37 = vsub.f32 %v483_v33, %v483_v33  ;;  %v298_v38 = vpop.permute.xlu1 %297  ;;  %16444 = vmatmul.mubr.f32.vlgmr.msra.gmra.mrb[0].mxu0 %v593_v30  ;;  %v295_v39 = vpop.permute.xlu0 %294  ;;  %v622_v40 = vsub.f32 %v23791_v22, %v621_v31 }
 0x161   :  { %vm326_vm9 = vcmp.eq.s32.totalorder %v23733_v49, %v298_v38  ;;  %19920 = vmatpush3.bf16.msra.mxu0 %v23707_v28  ;;  %vm325_vm10 = vcmp.eq.s32.totalorder %v23733_v49, %v295_v39  ;;  %16446 = vmatprep.mubr.f32.mxu0 %v603_v34  ;;  %v632_v43 = vsub.f32 %v23789_v19, %v631_v35 }
 0x162   :  { %v23827_v44 = vsel %vm326_vm9, 1.0, %v29398_v52  ;;  %v23830_v45 = vsel %vm325_vm10, 1.0, %v29398_v52  ;;  %v623_v46 = vand.u32 4294901760, %v622_v40  ;;  %v641_v47 = vand.u32 4294901760, %v23815_v37  ;;  %19922 = vmatprep.subr.bf16.mxu0 %v23724_v41 }
 0x163   :  { %v492_v28 = vsel %vm463_vm0, %v23827_v44, 0  ;;  %v489_v50 = vsel %vm463_vm0, %v23830_v45, 0  ;;  %v651_v51 = vand.u32 4294901760, %v23813_v36  ;;  %v633_v1 = vand.u32 4294901760, %v632_v43 }
 0x164   :  { %v23839_v55 = vsub.f32 %v492_v28, %v492_v28  ;;  %v23841_v56 = vsub.f32 %v489_v50, %v489_v50  ;;  %v304_v58 = vpop.permute.xlu1 %303  ;;  %16447 = vmatmul.mubr.f32.gmra.mrb[2].mxu0 %v613_v42  ;;  %v301_v59 = vpop.permute.xlu0 %300  ;;  %v642_v0 = vsub.f32 %v23815_v37, %v641_v47 }
 0x165   :  { %vm328_vm11 = vcmp.eq.s32.totalorder %v23733_v49, %v304_v58  ;;  %vm327_vm12 = vcmp.eq.s32.totalorder %v23733_v49, %v301_v59  ;;  %16449 = vmatprep.mubr.f32.mxu0 %v623_v46  ;;  %v652_v5 = vsub.f32 %v23813_v36, %v651_v51 }
 0x166   :  { %v23852_v6 = vsel %vm328_vm11, 1.0, %v29398_v52  ;;  %v23855_v7 = vsel %vm327_vm12, 1.0, %v29398_v52  ;;  %v643_v10 = vand.u32 4294901760, %v642_v0  ;;  %v661_v12 = vand.u32 4294901760, %v23841_v56 }
 0x167   :  { %v498_v13 = vsel %vm463_vm0, %v23852_v6, 0  ;;  %v495_v14 = vsel %vm463_vm0, %v23855_v7, 0  ;;  %v671_v23 = vand.u32 4294901760, %v23839_v55  ;;  %v653_v33 = vand.u32 4294901760, %v652_v5 }
 0x168   :  { %v23863_v24 = vsub.f32 %v498_v13, %v498_v13  ;;  %v23865_v25 = vsub.f32 %v495_v14, %v495_v14  ;;  %v310_v26 = vpop.permute.xlu1 %309  ;;  %16450 = vmatmul.mubr.f32.gmra.mrb[4].mxu0 %v633_v1  ;;  %v307_v30 = vpop.permute.xlu0 %306  ;;  %v662_v32 = vsub.f32 %v23841_v56, %v661_v12 }
 0x169   :  { %vm330_vm13 = vcmp.eq.s32.totalorder %v23733_v49, %v310_v26  ;;  %vm329_vm14 = vcmp.eq.s32.totalorder %v23733_v49, %v307_v30  ;;  %16452 = vmatprep.mubr.f32.mxu0 %v643_v10  ;;  %v672_v34 = vsub.f32 %v23839_v55, %v671_v23 }
 0x16a   :  { %v23876_v38 = vsel %vm330_vm13, 1.0, %v29398_v52  ;;  %v23879_v39 = vsel %vm329_vm14, 1.0, %v29398_v52  ;;  %v663_v40 = vand.u32 4294901760, %v662_v32  ;;  %v681_v42 = vand.u32 4294901760, %v23865_v25 }
 0x16b   :  { %v504_v43 = vsel %vm463_vm0, %v23876_v38, 0  ;;  %v501_v46 = vsel %vm463_vm0, %v23879_v39, 0  ;;  %v691_v28 = vand.u32 4294901760, %v23863_v24  ;;  %v673_v5 = vand.u32 4294901760, %v672_v34 }
 0x16c   :  { %v23887_v50 = vsub.f32 %v504_v43, %v504_v43  ;;  %v23889_v58 = vsub.f32 %v501_v46, %v501_v46  ;;  %v316_v59 = vpop.permute.xlu1 %315  ;;  %16453 = vmatmul.mubr.f32.gmra.mrb[6].mxu0 %v653_v33  ;;  %v313_v0 = vpop.permute.xlu0 %312  ;;  %v682_v1 = vsub.f32 %v23865_v25, %v681_v42 }
 0x16d   :  { %vm332_vm15 = vcmp.eq.s32.totalorder %v23733_v49, %v316_v59  ;;  %vm331_vm1 = vcmp.eq.s32.totalorder %v23733_v49, %v313_v0  ;;  %16455 = vmatprep.mubr.f32.mxu0 %v663_v40  ;;  %v692_v10 = vsub.f32 %v23863_v24, %v691_v28 }
 0x16e   :  { %v23900_v13 = vsel %vm332_vm15, 1.0, %v29398_v52  ;;  %v23903_v14 = vsel %vm331_vm1, 1.0, %v29398_v52  ;;  %v683_v26 = vand.u32 4294901760, %v682_v1  ;;  %v701_v30 = vand.u32 4294901760, %v23889_v58 }
 0x16f   :  { %v510_v32 = vsel %vm463_vm0, %v23900_v13, 0  ;;  %v507_v33 = vsel %vm463_vm0, %v23903_v14, 0  ;;  %v711_v34 = vand.u32 4294901760, %v23887_v50  ;;  %v693_v59 = vand.u32 4294901760, %v692_v10 }
 0x170   :  { %v23911_v40 = vsub.f32 %v510_v32, %v510_v32  ;;  %v23913_v43 = vsub.f32 %v507_v33, %v507_v33  ;;  %16456 = vmatmul.mubr.f32.gmra.mrb[8].mxu0 %v673_v5  ;;  %v702_v46 = vsub.f32 %v23889_v58, %v701_v30 }
 0x171   :  { %16458 = vmatprep.mubr.f32.mxu0 %v683_v26  ;;  %v712_v1 = vsub.f32 %v23887_v50, %v711_v34 }
 0x172   :  { %v703_v0 = vand.u32 4294901760, %v702_v46  ;;  %v721_v48 = vand.u32 4294901760, %v23913_v43  ;;  %v731_v52 = vand.u32 4294901760, %v23911_v40 }
 0x173   :  { %v713_v32 = vand.u32 4294901760, %v712_v1 }
 0x174   :  { %16459 = vmatmul.mubr.f32.gmra.mrb[10].mxu0 %v693_v59  ;;  %v722_v5 = vsub.f32 %v23913_v43, %v721_v48  ;;  %v732_v10 = vsub.f32 %v23911_v40, %v731_v52 }
 0x175   :  { %16461 = vmatprep.mubr.f32.mxu0 %v703_v0 }
 0x176   :  { %v723_v33 = vand.u32 4294901760, %v722_v5  ;;  %v733_v26 = vand.u32 4294901760, %v732_v10 }
 0x178   :  { %16462 = vmatmul.mubr.f32.gmra.mrb[12].mxu0 %v713_v32 }
 0x179   :  { %16464 = vmatprep.mubr.f32.mxu0 %v723_v33 }
 0x17c   :  { %16465 = vmatmul.mubr.f32.gmra.mrb[14].mxu0 %v733_v26 }
 0x17d   :  { %16471 = vmatprep.mubr.msk.f32.mxu0 %vm463_vm0, %v23741_v54 }
 0x180   :  { %16472 = vmatmul.mubr.msk.f32.vlgmr.msra.gmra.mrb[0].mxu0 %vm463_vm0, %v23757_v62 }
 0x181   :  { %19924 = vmatpush3.bf16.msra.mxu0 %v23724_v41  ;;  %16474 = vmatprep.mubr.msk.f32.mxu0 %vm463_vm0, %v23738_v53  ;;  %v19929_v41 = vpack.c.bf16 %v749_v21, %v742_v20  ;;  %v1683_v20 = vand.u32 4294901760, %v1632_v16  ;;  %v1686_v21 = vand.u32 4294901760, %v1633_v17 }
 0x182   :  { %19926 = vmatprep.subr.bf16.mxu0 %v23687_v15 }
 0x184   :  { %16475 = vmatmul.mubr.msk.f32.gmra.mrb[2].mxu0 %vm463_vm0, %v23754_v61 }
 0x185   :  { %16477 = vmatprep.mubr.msk.f32.mxu0 %vm463_vm0, %v23778_v9 }
 0x188   :  { %16478 = vmatmul.mubr.msk.f32.gmra.mrb[4].mxu0 %vm463_vm0, %v23775_v8 }
 0x189   :  { %16480 = vmatprep.mubr.msk.f32.mxu0 %vm463_vm0, %v23805_v29 }
 0x18c   :  { %16481 = vmatmul.mubr.msk.f32.gmra.mrb[6].mxu0 %vm463_vm0, %v23802_v27 }
 0x18d   :  { %16483 = vmatprep.mubr.msk.f32.mxu0 %vm463_vm0, %v23830_v45 }
 0x190   :  { %16484 = vmatmul.mubr.msk.f32.gmra.mrb[8].mxu0 %vm463_vm0, %v23827_v44 }
 0x191   :  { %16486 = vmatprep.mubr.msk.f32.mxu0 %vm463_vm0, %v23855_v7 }
 0x194   :  { %16487 = vmatmul.mubr.msk.f32.gmra.mrb[10].mxu0 %vm463_vm0, %v23852_v6 }
 0x195   :  { %16489 = vmatprep.mubr.msk.f32.mxu0 %vm463_vm0, %v23879_v39 }
 0x198   :  { %16490 = vmatmul.mubr.msk.f32.gmra.mrb[12].mxu0 %vm463_vm0, %v23876_v38 }
 0x199   :  { %16492 = vmatprep.mubr.msk.f32.mxu0 %vm463_vm0, %v23903_v14 }
 0x19c   :  { %16493 = vmatmul.mubr.msk.f32.gmra.mrb[14].mxu0 %vm463_vm0, %v23900_v13 }
 0x19d   :  { %16499 = vmatprep.mubr.f32.mxu0 %v23749_v60 }
 0x1a0   :  { %16500 = vmatmul.mubr.f32.vlgmr.msra.gmra.mrb[0].mxu0 %v23767_v4  ;;  %v370_v4 = vpop.permute.xlu1 %369 }
 0x1a1   :  { %19928 = vmatpush3.bf16.msra.mxu0 %v23687_v15  ;;  %16502 = vmatprep.mubr.f32.mxu0 %v23747_v57  ;;  %v24021_v57 = vpack.c.bf16 %v1686_v21, %v1683_v20  ;;  %vm414_vm3 = vcmp.eq.s32.totalorder %v23733_v49, %v370_v4 }
 0x1a2   :  { %19930 = vmatprep.subr.bf16.mxu0 %v19929_v41 }
 0x1a4   :  { %16503 = vmatmul.mubr.f32.gmra.mrb[2].mxu0 %v23765_v3 }
 0x1a5   :  { %16505 = vmatprep.mubr.f32.mxu0 %v23791_v22  ;;  %v376_v22 = vpop.permute.xlu1 %375 }
 0x1a6   :  { %vm416_vm5 = vcmp.eq.s32.totalorder %v23733_v49, %v376_v22 }
 0x1a8   :  { %16506 = vmatmul.mubr.f32.gmra.mrb[4].mxu0 %v23789_v19 }
 0x1a9   :  { %16508 = vmatprep.mubr.f32.mxu0 %v23815_v37 }
 0x1ac   :  { %16509 = vmatmul.mubr.f32.gmra.mrb[6].mxu0 %v23813_v36  ;;  %v382_v36 = vpop.permute.xlu1 %381 }
 0x1ad   :  { %16511 = vmatprep.mubr.f32.mxu0 %v23841_v56  ;;  %vm418_vm7 = vcmp.eq.s32.totalorder %v23733_v49, %v382_v36 }
 0x1b0   :  { %16512 = vmatmul.mubr.f32.gmra.mrb[8].mxu0 %v23839_v55 }
 0x1b1   :  { %16514 = vmatprep.mubr.f32.mxu0 %v23865_v25 }
 0x1b4   :  { %16515 = vmatmul.mubr.f32.gmra.mrb[10].mxu0 %v23863_v24 }
 0x1b5   :  { %16517 = vmatprep.mubr.f32.mxu0 %v23889_v58 }
 0x1b8   :  { %16518 = vmatmul.mubr.f32.gmra.mrb[12].mxu0 %v23887_v50 }
 0x1b9   :  { %16520 = vmatprep.mubr.f32.mxu0 %v23913_v43 }
 0x1bc   :  { %16521 = vmatmul.mubr.f32.gmra.mrb[14].mxu0 %v23911_v40 }
 0x1bd   :  { %16527 = vmatprep.mubr.f32.mxu0 %v581_v63  ;;  %v367_v63 = vpop.permute.xlu0 %366 }
 0x1be   :  { %vm413_vm2 = vcmp.eq.s32.totalorder %v23733_v49, %v367_v63 }
 0x1c0   :  { %16528 = vmatmul.mubr.f32.vlgmr.msra.gmra.mrb[0].mxu0 %v591_v11 }
 0x1c1   :  { %19932 = vmatpush3.bf16.msra.mxu0 %v19929_v41  ;;  %16530 = vmatprep.mubr.f32.mxu0 %v601_v2  ;;  %v373_v19 = vpop.permute.xlu0 %372 }
 0x1c2   :  { %19934 = vmatprep.subr.bf16.mxu0 %v23687_v15  ;;  %vm415_vm4 = vcmp.eq.s32.totalorder %v23733_v49, %v373_v19 }
 0x1c4   :  { %16531 = vmatmul.mubr.f32.gmra.mrb[2].mxu0 %v611_v18 }
 0x1c5   :  { %16533 = vmatprep.mubr.f32.mxu0 %v621_v31 }
 0x1c8   :  { %16534 = vmatmul.mubr.f32.gmra.mrb[4].mxu0 %v631_v35  ;;  %v379_v35 = vpop.permute.xlu0 %378 }
 0x1c9   :  { %16536 = vmatprep.mubr.f32.mxu0 %v641_v47  ;;  %vm417_vm6 = vcmp.eq.s32.totalorder %v23733_v49, %v379_v35 }
 0x1cc   :  { %16537 = vmatmul.mubr.f32.gmra.mrb[6].mxu0 %v651_v51 }
 0x1cd   :  { %16539 = vmatprep.mubr.f32.mxu0 %v661_v12 }
 0x1d0   :  { %16540 = vmatmul.mubr.f32.gmra.mrb[8].mxu0 %v671_v23 }
 0x1d1   :  { %16542 = vmatprep.mubr.f32.mxu0 %v681_v42 }
 0x1d4   :  { %16543 = vmatmul.mubr.f32.gmra.mrb[10].mxu0 %v691_v28 }
 0x1d5   :  { %16545 = vmatprep.mubr.f32.mxu0 %v701_v30 }
 0x1d8   :  { %16546 = vmatmul.mubr.f32.gmra.mrb[12].mxu0 %v711_v34 }
 0x1d9   :  { %16548 = vmatprep.mubr.f32.mxu0 %v721_v48  ;;  %v24043_v48 = vsub.f32 %v1633_v17, %v1686_v21 }
 0x1db   :  { %v1919_v60 = vand.u32 4294901760, %v24043_v48 }
 0x1dc   :  { %16549 = vmatmul.mubr.f32.gmra.mrb[14].mxu0 %v731_v52 }
 0x1dd   :  { %16555 = vmatprep.mubr.msk.f32.mxu0 %vm463_vm0, %v23741_v54  ;;  %v1920_v3 = vsub.f32 %v24043_v48, %v1919_v60 }
 0x1df   :  { %v1921_v18 = vand.u32 4294901760, %v1920_v3 }
 0x1e0   :  { %16556 = vmatmul.mubr.msk.f32.vlgmr.msra.gmra.mrb[0].mxu0 %vm463_vm0, %v23757_v62 }
 0x1e1   :  { %19936 = vmatpush3.bf16.msra.mxu0 %v23687_v15  ;;  %16558 = vmatprep.mubr.msk.f32.mxu0 %vm463_vm0, %v23738_v53  ;;  %v24041_v15 = vsub.f32 %v1632_v16, %v1683_v20 }
 0x1e2   :  { %19938 = vmatprep.subr.bf16.mxu0 %v24021_v57 }
 0x1e3   :  { %v1912_v52 = vand.u32 4294901760, %v24041_v15 }
 0x1e4   :  { %16559 = vmatmul.mubr.msk.f32.gmra.mrb[2].mxu0 %vm463_vm0, %v23754_v61 }
 0x1e5   :  { %16561 = vmatprep.mubr.msk.f32.mxu0 %vm463_vm0, %v23778_v9  ;;  %v1913_v2 = vsub.f32 %v24041_v15, %v1912_v52 }
 0x1e7   :  { %v1914_v11 = vand.u32 4294901760, %v1913_v2 }
 0x1e8   :  { %16562 = vmatmul.mubr.msk.f32.gmra.mrb[4].mxu0 %vm463_vm0, %v23775_v8 }
 0x1e9   :  { %16564 = vmatprep.mubr.msk.f32.mxu0 %vm463_vm0, %v23805_v29  ;;  %v24069_v31 = vpack.c.bf16 %v1921_v18, %v1914_v11 }
 0x1ec   :  { %16565 = vmatmul.mubr.msk.f32.gmra.mrb[6].mxu0 %vm463_vm0, %v23802_v27 }
 0x1ed   :  { %16567 = vmatprep.mubr.msk.f32.mxu0 %vm463_vm0, %v23830_v45 }
 0x1f0   :  { %16568 = vmatmul.mubr.msk.f32.gmra.mrb[8].mxu0 %vm463_vm0, %v23827_v44 }
 0x1f1   :  { %16570 = vmatprep.mubr.msk.f32.mxu0 %vm463_vm0, %v23855_v7 }
 0x1f4   :  { %16571 = vmatmul.mubr.msk.f32.gmra.mrb[10].mxu0 %vm463_vm0, %v23852_v6 }
 0x1f5   :  { %16573 = vmatprep.mubr.msk.f32.mxu0 %vm463_vm0, %v23879_v39 }
 0x1f8   :  { %16574 = vmatmul.mubr.msk.f32.gmra.mrb[12].mxu0 %vm463_vm0, %v23876_v38 }
 0x1f9   :  { %16576 = vmatprep.mubr.msk.f32.mxu0 %vm463_vm0, %v23903_v14 }
 0x1fc   :  { %16577 = vmatmul.mubr.msk.f32.gmra.mrb[14].mxu0 %vm463_vm0, %v23900_v13 }
 0x1fd   :  { %16583 = vmatprep.mubr.msk.f32.mxu0 %vm463_vm0, %v23741_v54  ;;  %v385_v54 = vpop.permute.xlu0 %384 }
 0x1fe   :  { %vm419_vm8 = vcmp.eq.s32.totalorder %v23733_v49, %v385_v54 }
 0x200   :  { %16584 = vmatmul.mubr.msk.f32.vlgmr.msra.gmra.mrb[0].mxu0 %vm463_vm0, %v23757_v62  ;;  %v29702_v62 = vmov 0.0  }
 0x201   :  { %19940 = vmatpush3.bf16.msra.mxu0 %v24021_v57  ;;  %16586 = vmatprep.mubr.msk.f32.mxu0 %vm463_vm0, %v23738_v53  ;;  %v24084_v37 = vsel %vm413_vm2, 1.0, %v29702_v62  ;;  %v24091_v53 = vsel %vm414_vm3, 1.0, %v29702_v62  ;;  %v24102_v47 = vsel %vm415_vm4, 1.0, %v29702_v62  ;;  %v24110_v55 = vsel %vm416_vm5, 1.0, %v29702_v62 }
 0x202   :  { %19942 = vmatprep.subr.bf16.mxu0 %v24069_v31  ;;  %v1644_v23 = vsel %vm463_vm0, %v24110_v55, 0  ;;  %v24132_v28 = vsel %vm418_vm7, 1.0, %v29702_v62  ;;  %v24142_v58 = vsel %vm419_vm8, 1.0, %v29702_v62 }
 0x203   :  { %v1650_v40 = vsel %vm463_vm0, %v24132_v28, 0 }
 0x204   :  { %16587 = vmatmul.mubr.msk.f32.gmra.mrb[2].mxu0 %vm463_vm0, %v23754_v61  ;;  %v388_v61 = vpop.permute.xlu1 %387  ;;  %v24172_v32 = vsub.f32 %v1650_v40, %v1650_v40 }
 0x205   :  { %16589 = vmatprep.mubr.msk.f32.mxu0 %vm463_vm0, %v23778_v9  ;;  %v1635_v9 = vsel %vm463_vm0, %v24084_v37, 0  ;;  %vm420_vm9 = vcmp.eq.s32.totalorder %v23733_v49, %v388_v61 }
 0x206   :  { %v24106_v51 = vsub.f32 %v1635_v9, %v1635_v9  ;;  %v29410_v4 = vand.u32 4294901760, %v24172_v32 }
 0x208   :  { %16590 = vmatmul.mubr.msk.f32.gmra.mrb[4].mxu0 %vm463_vm0, %v23775_v8  ;;  %v1638_v8 = vsel %vm463_vm0, %v24091_v53, 0  ;;  %v394_v12 = vpop.permute.xlu1 %393  ;;  %v29415_v24 = vand.u32 4294901760, %v24106_v51 }
 0x209   :  { %16592 = vmatprep.mubr.msk.f32.mxu0 %vm463_vm0, %v23805_v29  ;;  %v391_v29 = vpop.permute.xlu0 %390  ;;  %v24112_v56 = vsub.f32 %v1638_v8, %v1638_v8  ;;  %vm422_vm11 = vcmp.eq.s32.totalorder %v23733_v49, %v394_v12  ;;  %v1802_v12 = vsub.f32 %v24172_v32, %v29410_v4  ;;  %v2811_v4 = vld [vmem:[#allocation6 + $0x48] sm:$0xff] }
 0x20a   :  { %vm421_vm10 = vcmp.eq.s32.totalorder %v23733_v49, %v391_v29  ;;  %v1752_v34 = vsub.f32 %v24106_v51, %v29415_v24  ;;  %v24186_v17 = vsel %vm422_vm11, 1.0, %v29702_v62 }
 0x20b   :  { %v24164_v0 = vsel %vm421_vm10, 1.0, %v29702_v62  ;;  %v1662_v11 = vsel %vm463_vm0, %v24186_v17, 0 }
 0x20c   :  { %16593 = vmatmul.mubr.msk.f32.gmra.mrb[6].mxu0 %vm463_vm0, %v23802_v27  ;;  %v1641_v27 = vsel %vm463_vm0, %v24102_v47, 0  ;;  %v400_v30 = vpop.permute.xlu1 %399  ;;  %v1753_v10 = vand.u32 4294901760, %v1752_v34  ;;  %v24224_v29 = vsub.f32 %v1662_v11, %v1662_v11 }
 0x20d   :  { %16595 = vmatprep.mubr.msk.f32.mxu0 %vm463_vm0, %v23830_v45  ;;  %v24120_v45 = vsel %vm417_vm6, 1.0, %v29702_v62  ;;  %v24128_v25 = vsub.f32 %v1641_v27, %v1641_v27  ;;  %v397_v42 = vpop.permute.xlu0 %396  ;;  %vm424_vm13 = vcmp.eq.s32.totalorder %v23733_v49, %v400_v30  ;;  %vm7514_vm6 = vcmask 64512  }
 0x20e   :  { %v1647_v50 = vsel %vm463_vm0, %v24120_v45, 0  ;;  %vm423_vm12 = vcmp.eq.s32.totalorder %v23733_v49, %v397_v42  ;;  %v24214_v36 = vsel %vm424_vm13, 1.0, %v29702_v62 }
 0x20f   :  { %v24152_v43 = vsub.f32 %v1647_v50, %v1647_v50  ;;  %v29413_v46 = vand.u32 4294901760, %v24128_v25  ;;  %v24194_v63 = vsel %vm423_vm12, 1.0, %v29702_v62 }
 0x210   :  { %16596 = vmatmul.mubr.msk.f32.gmra.mrb[8].mxu0 %vm463_vm0, %v23827_v44  ;;  %v29414_v44 = vand.u32 4294901760, %v24112_v56  ;;  %v406_v20 = vpop.permute.xlu1 %405  ;;  %v1665_v54 = vsel %vm463_vm0, %v24194_v63, 0 }
 0x211   :  { %16598 = vmatprep.mubr.msk.f32.mxu0 %vm463_vm0, %v23855_v7  ;;  %v24139_v7 = vsub.f32 %v1644_v23, %v1644_v23  ;;  %v403_v1 = vpop.permute.xlu0 %402  ;;  %v1772_v41 = vsub.f32 %v24128_v25, %v29413_v46  ;;  %vm426_vm15 = vcmp.eq.s32.totalorder %v23733_v49, %v406_v20  ;;  %v24234_v42 = vsub.f32 %v1665_v54, %v1665_v54 }
 0x212   :  { %v1762_v59 = vsub.f32 %v24112_v56, %v29414_v44  ;;  %vm425_vm14 = vcmp.eq.s32.totalorder %v23733_v49, %v403_v1  ;;  %v24242_v34 = vsel %vm426_vm15, 1.0, %v29702_v62 }
 0x213   :  { %v29412_v5 = vand.u32 4294901760, %v24139_v7  ;;  %v1773_v19 = vand.u32 4294901760, %v1772_v41  ;;  %v24220_v61 = vsel %vm425_vm14, 1.0, %v29702_v62  ;;  %v29405_v20 = vand.u32 4294901760, %v24234_v42 }
 0x214   :  { %16599 = vmatmul.mubr.msk.f32.gmra.mrb[10].mxu0 %vm463_vm0, %v23852_v6  ;;  %v24155_v6 = vsel %vm420_vm9, 1.0, %v29702_v62  ;;  %v1763_v16 = vand.u32 4294901760, %v1762_v59  ;;  %v412_v27 = vpop.permute.xlu1 %411  ;;  %v1671_v40 = vsel %vm463_vm0, %v24220_v61, 0 }
 0x215   :  { %16601 = vmatprep.mubr.msk.f32.mxu0 %vm463_vm0, %v23879_v39  ;;  %v1653_v39 = vsel %vm463_vm0, %v24142_v58, 0  ;;  %v1656_v33 = vsel %vm463_vm0, %v24155_v6, 0  ;;  %v1782_v2 = vsub.f32 %v24139_v7, %v29412_v5  ;;  %v409_v18 = vpop.permute.xlu0 %408  ;;  %vm428_vm2 = vcmp.eq.s32.totalorder %v23733_v49, %v412_v27 }
 0x216   :  { %v24177_v26 = vsub.f32 %v1653_v39, %v1653_v39  ;;  %v24190_v21 = vsub.f32 %v1656_v33, %v1656_v33  ;;  %vm427_vm1 = vcmp.eq.s32.totalorder %v23733_v49, %v409_v18  ;;  %v1803_v33 = vand.u32 4294901760, %v1802_v12 }
 0x217   :  { %v1783_v9 = vand.u32 4294901760, %v1782_v2  ;;  %v24248_v59 = vsel %vm427_vm1, 1.0, %v29702_v62  ;;  %v1674_v49 = vsel %vm463_vm0, %v24242_v34, 0  ;;  %v24261_v41 = vsub.f32 %v1671_v40, %v1671_v40 }
 0x218   :  { %16602 = vmatmul.mubr.msk.f32.gmra.mrb[12].mxu0 %vm463_vm0, %v23876_v38  ;;  %v1659_v38 = vsel %vm463_vm0, %v24164_v0, 0  ;;  %v29409_v35 = vand.u32 4294901760, %v24177_v26  ;;  %v29408_v8 = vand.u32 4294901760, %v24190_v21  ;;  %v24265_v2 = vsel %vm428_vm2, 1.0, %v29702_v62 }
 0x219   :  { %16604 = vmatprep.mubr.msk.f32.mxu0 %vm463_vm0, %v23903_v14  ;;  %v29411_v14 = vand.u32 4294901760, %v24152_v43  ;;  %v24199_v3 = vsub.f32 %v1659_v38, %v1659_v38  ;;  %v29406_v38 = vand.u32 4294901760, %v24224_v29  ;;  %v1677_v11 = vsel %vm463_vm0, %v24248_v59, 0 }
 0x21a   :  { %v1812_v30 = vsub.f32 %v24177_v26, %v29409_v35  ;;  %v1822_v39 = vsub.f32 %v24190_v21, %v29408_v8  ;;  %v1680_v27 = vsel %vm463_vm0, %v24265_v2, 0  ;;  %v24277_v12 = vsub.f32 %v1677_v11, %v1677_v11  ;;  %v2810_v35 = vld [vmem:[#allocation6 + $0x40] sm:$0xff] }
 0x21b   :  { %v1792_v22 = vsub.f32 %v24152_v43, %v29411_v14  ;;  %v29407_v23 = vand.u32 4294901760, %v24199_v3  ;;  %v1842_v54 = vsub.f32 %v24224_v29, %v29406_v38 }
 0x21c   :  { %16605 = vmatmul.mubr.msk.f32.gmra.mrb[14].mxu0 %vm463_vm0, %v23900_v13  ;;  %v24205_v13 = vpack.c.bf16 %v24043_v48, %v24041_v15  ;;  %v1823_v18 = vand.u32 4294901760, %v1822_v39 }
 0x21d   :  { %16611 = vmatprep.mubr.f32.mxu0 %v1753_v10  ;;  %v1793_v50 = vand.u32 4294901760, %v1792_v22  ;;  %v1832_v10 = vsub.f32 %v24199_v3, %v29407_v23  ;;  %v1843_v40 = vand.u32 4294901760, %v1842_v54 }
 0x21f   :  { %v1833_v22 = vand.u32 4294901760, %v1832_v10 }
 0x220   :  { %16612 = vmatmul.mubr.f32.vlgmr.msra.gmra.mrb[0].mxu0 %v1763_v16  ;;  %v1813_v16 = vand.u32 4294901760, %v1812_v30  ;;  %v24283_v30 = vsub.f32 %v1680_v27, %v1680_v27 }
 0x221   :  { %19944 = vmatpush3.bf16.msra.mxu0 %v24069_v31  ;;  %16614 = vmatprep.mubr.f32.mxu0 %v1773_v19  ;;  %v1668_v31 = vsel %vm463_vm0, %v24214_v36, 0  ;;  %v24269_v19 = vsub.f32 %v1674_v49, %v1674_v49 }
 0x222   :  { %19946 = vmatprep.subr.bf16.mxu0 %v24205_v13  ;;  %v24253_v1 = vsub.f32 %v1668_v31, %v1668_v31  ;;  %v1852_v31 = vsub.f32 %v24234_v42, %v29405_v20 }
 0x224   :  { %16615 = vmatmul.mubr.f32.gmra.mrb[2].mxu0 %v1783_v9  ;;  %v29404_v9 = vand.u32 4294901760, %v24253_v1  ;;  %v1853_v10 = vand.u32 4294901760, %v1852_v31 }
 0x225   :  { %16617 = vmatprep.mubr.f32.mxu0 %v1793_v50  ;;  %v29403_v50 = vand.u32 4294901760, %v24261_v41 }
 0x226   :  { %v1862_v39 = vsub.f32 %v24253_v1, %v29404_v9  ;;  %v2809_v9 = vld [vmem:[#allocation6 + $0x38] sm:$0xff] }
 0x227   :  { %v1872_v49 = vsub.f32 %v24261_v41, %v29403_v50  ;;  %v2808_v50 = vld [vmem:[#allocation6 + $0x30] sm:$0xff] }
 0x228   :  { %16618 = vmatmul.mubr.f32.gmra.mrb[4].mxu0 %v1803_v33  ;;  %v29402_v33 = vand.u32 4294901760, %v24269_v19  ;;  %v1863_v11 = vand.u32 4294901760, %v1862_v39 }
 0x229   :  { %16620 = vmatprep.mubr.f32.mxu0 %v1813_v16  ;;  %v29401_v16 = vand.u32 4294901760, %v24277_v12  ;;  %v1873_v54 = vand.u32 4294901760, %v1872_v49  ;;  %v2803_v49 = vld [vmem:[#allocation6 + $0x8] sm:$0xff] }
 0x22b   :  { %v1892_v27 = vsub.f32 %v24277_v12, %v29401_v16 }
 0x22c   :  { %16621 = vmatmul.mubr.f32.gmra.mrb[6].mxu0 %v1823_v18  ;;  %v1882_v18 = vsub.f32 %v24269_v19, %v29402_v33 }
 0x22d   :  { %16623 = vmatprep.mubr.f32.mxu0 %v1833_v22  ;;  %v29400_v22 = vand.u32 4294901760, %v24283_v30 }
 0x22e   :  { %v1883_v31 = vand.u32 4294901760, %v1882_v18 }
 0x230   :  { %16624 = vmatmul.mubr.f32.gmra.mrb[8].mxu0 %v1843_v40  ;;  %v1902_v40 = vsub.f32 %v24283_v30, %v29400_v22 }
 0x231   :  { %16626 = vmatprep.mubr.f32.mxu0 %v1853_v10  ;;  %v1893_v10 = vand.u32 4294901760, %v1892_v27  ;;  %v2805_v27 = vld [vmem:[#allocation6 + $0x18] sm:$0xff] }
 0x232   :  { %v1903_v39 = vand.u32 4294901760, %v1902_v40  ;;  %v2806_v40 = vld [vmem:[#allocation6 + $0x20] sm:$0xff]  ;;  %v2835_v22 = vand.u32 4294901760, %v2805_v27 }
 0x233   :  { %v2838_v16 = vand.u32 4294901760, %v2806_v40 }
 0x234   :  { %16627 = vmatmul.mubr.f32.gmra.mrb[10].mxu0 %v1863_v11  ;;  %v2804_v11 = vld [vmem:[#allocation6 + $0x10] sm:$0xff]  ;;  %v24355_v48 = vsub.f32 %v2805_v27, %v2835_v22  ;;  %v2853_v27 = vand.u32 4294901760, %v2811_v4 }
 0x235   :  { %16629 = vmatprep.mubr.f32.mxu0 %v1873_v54  ;;  %v2829_v54 = vand.u32 4294901760, %v2803_v49 }
 0x236   :  { %29705 = vst [vmem:[#allocation42_spill] sm:$0xff] %v24355_v48 }
 0x237   :  { %v24348_v23 = vsub.f32 %v2803_v49, %v2829_v54 }
 0x238   :  { %16630 = vmatmul.mubr.f32.gmra.mrb[12].mxu0 %v1883_v31  ;;  %v2832_v31 = vand.u32 4294901760, %v2804_v11 }
 0x239   :  { %16632 = vmatprep.mubr.f32.mxu0 %v1893_v10  ;;  %v2807_v10 = vld [vmem:[#allocation6 + $0x28] sm:$0xff] }
 0x23a   :  { %v2841_v33 = vand.u32 4294901760, %v2807_v10  ;;  %v24350_v8 = vsub.f32 %v2804_v11, %v2832_v31  ;;  %v24353_v15 = vpack.c.bf16 %v2835_v22, %v2832_v31  ;;  %v2844_v11 = vand.u32 4294901760, %v2808_v50  ;;  %v2813_v31 = vld [vmem:[#allocation6 + $0x58] sm:$0xff] }
 0x23c   :  { %16633 = vmatmul.mubr.f32.gmra.mrb[14].mxu0 %v1903_v39  ;;  %v24342_v39 = vpack.c.bf16 %v1919_v60, %v1912_v52  ;;  %29704 = vst [vmem:[#allocation41_spill] sm:$0xff] %v24353_v15  ;;  %v24357_v52 = vpack.c.bf16 %v2841_v33, %v2838_v16  ;;  %v24359_v60 = vsub.f32 %v2806_v40, %v2838_v16  ;;  %v2850_v16 = vand.u32 4294901760, %v2810_v35 }
 0x23d   :  { %16639 = vmatprep.mubr.msk.f32.mxu0 %vm463_vm0, %v24084_v37  ;;  %v24365_v49 = vsub.f32 %v2807_v10, %v2841_v33  ;;  %v20029_v22 = vpack.c.bf16 %v24355_v48, %v24350_v8  ;;  %v2859_v10 = vand.u32 4294901760, %v2813_v31  ;;  %v24378_v46 = vsub.f32 %v2808_v50, %v2844_v11 }
 0x23e   :  { %29706 = vst [vmem:[#allocation43_spill] sm:$0xff] %v24357_v52  ;;  %v24373_v14 = vpack.c.bf16 %v2853_v27, %v2850_v16  ;;  %v24388_v62 = vsub.f32 %v2810_v35, %v2850_v16  ;;  %v24390_v48 = vsub.f32 %v2811_v4, %v2853_v27  ;;  %v29710_v35 = vand.u32 4294901760, %v24112_v56 }
 0x23f   :  { %v20033_v5 = vpack.c.bf16 %v24365_v49, %v24359_v60 }
 0x240   :  { %16640 = vmatmul.mubr.msk.f32.vlgmr.msra.gmra.mrb[0].mxu0 %vm463_vm0, %v24091_v53  ;;  %29708 = vst [vmem:[#allocation45_spill] sm:$0xff] %v24373_v14 }
 0x241   :  { %19948 = vmatpush3.bf16.msra.mxu0 %v24205_v13  ;;  %16642 = vmatprep.mubr.msk.f32.mxu0 %vm463_vm0, %v24102_v47  ;;  %v2802_v13 = vld [vmem:[#allocation6] sm:$0xff] }
 0x242   :  { %19950 = vmatprep.subr.bf16.mxu0 %v24021_v57  ;;  %v2826_v18 = vand.u32 4294901760, %v2802_v13 }
 0x244   :  { %16643 = vmatmul.mubr.msk.f32.gmra.mrb[2].mxu0 %vm463_vm0, %v24110_v55  ;;  %v24344_v20 = vpack.c.bf16 %v2829_v54, %v2826_v18  ;;  %v24346_v38 = vsub.f32 %v2802_v13, %v2826_v18  ;;  %v2847_v18 = vand.u32 4294901760, %v2809_v9  ;;  %v2812_v54 = vld [vmem:[#allocation6 + $0x50] sm:$0xff] }
 0x245   :  { %16645 = vmatprep.mubr.msk.f32.mxu0 %vm463_vm0, %v24120_v45  ;;  %v2856_v33 = vand.u32 4294901760, %v2812_v54 }
 0x246   :  { %29703 = vst [vmem:[#allocation40_spill] sm:$0xff] %v24344_v20  ;;  %v20025_v13 = vpack.c.bf16 %v24348_v23, %v24346_v38  ;;  %v24370_v40 = vpack.c.bf16 %v2847_v18, %v2844_v11  ;;  %v24380_v44 = vsub.f32 %v2809_v9, %v2847_v18  ;;  %v20041_v9 = vpack.c.bf16 %v24390_v48, %v24388_v62 }
 0x247   :  { %v24382_v24 = vpack.c.bf16 %v2859_v10, %v2856_v33  ;;  %v24396_v50 = vsub.f32 %v2812_v54, %v2856_v33  ;;  %v24398_v11 = vsub.f32 %v2813_v31, %v2859_v10  ;;  %v29711_v18 = vand.u32 4294901760, %v24128_v25 }
 0x248   :  { %16646 = vmatmul.mubr.msk.f32.gmra.mrb[4].mxu0 %vm463_vm0, %v24132_v28  ;;  %20026 = vmatprep.subr.bf16.mxu1 %v20025_v13  ;;  %29707 = vst [vmem:[#allocation44_spill] sm:$0xff] %v24370_v40  ;;  %v29712_v54 = vand.u32 4294901760, %v24139_v7  ;;  %v29713_v31 = vand.u32 4294901760, %v24152_v43 }
 0x249   :  { %16648 = vmatprep.mubr.msk.f32.mxu0 %vm463_vm0, %v24142_v58  ;;  %20028 = vmatpush3.bf16.msra.mxu1 %v20025_v13  ;;  %v20037_v13 = vpack.c.bf16 %v24380_v44, %v24378_v46  ;;  %v20045_v4 = vpack.c.bf16 %v24398_v11, %v24396_v50 }
 0x24a   :  { %20030 = vmatprep.subr.bf16.mxu1 %v20029_v22 }
 0x24c   :  { %16649 = vmatmul.mubr.msk.f32.gmra.mrb[6].mxu0 %vm463_vm0, %v24155_v6 }
 0x24d   :  { %16651 = vmatprep.mubr.msk.f32.mxu0 %vm463_vm0, %v24164_v0  ;;  %20032 = vmatpush3.bf16.msra.mxu1 %v20029_v22  ;;  %v29714_v22 = vand.u32 4294901760, %v24172_v32 }
 0x24e   :  { %20034 = vmatprep.subr.bf16.mxu1 %v20033_v5 }
 0x250   :  { %16652 = vmatmul.mubr.msk.f32.gmra.mrb[8].mxu0 %vm463_vm0, %v24186_v17 }
 0x251   :  { %16654 = vmatprep.mubr.msk.f32.mxu0 %vm463_vm0, %v24194_v63  ;;  %20036 = vmatpush3.bf16.msra.mxu1 %v20033_v5  ;;  %v29709_v5 = vand.u32 4294901760, %v24106_v51 }
 0x252   :  { %20038 = vmatprep.subr.bf16.mxu1 %v20037_v13 }
 0x254   :  { %16655 = vmatmul.mubr.msk.f32.gmra.mrb[10].mxu0 %vm463_vm0, %v24214_v36 }
 0x255   :  { %16657 = vmatprep.mubr.msk.f32.mxu0 %vm463_vm0, %v24220_v61  ;;  %20040 = vmatpush3.bf16.msra.mxu1 %v20037_v13 }
 0x256   :  { %20042 = vmatprep.subr.bf16.mxu1 %v20041_v9 }
 0x258   :  { %16658 = vmatmul.mubr.msk.f32.gmra.mrb[12].mxu0 %vm463_vm0, %v24242_v34 }
 0x259   :  { %16660 = vmatprep.mubr.msk.f32.mxu0 %vm463_vm0, %v24248_v59  ;;  %20044 = vmatpush3.bf16.msra.mxu1 %v20041_v9 }
 0x25a   :  { %20046 = vmatprep.subr.bf16.mxu1 %v20045_v4 }
 0x25c   :  { %16661 = vmatmul.mubr.msk.f32.gmra.mrb[14].mxu0 %vm463_vm0, %v24265_v2 }
 0x25d   :  { %16667 = vmatprep.mubr.f32.mxu0 %v24106_v51  ;;  %20048 = vmatpush3.bf16.msra.mxu1 %v20045_v4  ;;  %v29715_v51 = vand.u32 4294901760, %v24177_v26 }
 0x260   :  { %16668 = vmatmul.mubr.f32.vlgmr.msra.gmra.mrb[0].mxu0 %v24112_v56  ;;  %v29716_v56 = vand.u32 4294901760, %v24190_v21 }
 0x261   :  { %19952 = vmatpush3.bf16.msra.mxu0 %v24021_v57  ;;  %16670 = vmatprep.mubr.f32.mxu0 %v24128_v25  ;;  %v29717_v25 = vand.u32 4294901760, %v24199_v3 }
 0x262   :  { %19954 = vmatprep.subr.bf16.mxu0 %v24342_v39 }
 0x264   :  { %16671 = vmatmul.mubr.f32.gmra.mrb[2].mxu0 %v24139_v7  ;;  %v29719_v7 = vand.u32 4294901760, %v24234_v42 }
 0x265   :  { %16673 = vmatprep.mubr.f32.mxu0 %v24152_v43  ;;  %v29720_v43 = vand.u32 4294901760, %v24253_v1 }
 0x268   :  { %16674 = vmatmul.mubr.f32.gmra.mrb[4].mxu0 %v24172_v32  ;;  %v29721_v32 = vand.u32 4294901760, %v24261_v41 }
 0x269   :  { %16676 = vmatprep.mubr.f32.mxu0 %v24177_v26  ;;  %v29722_v26 = vand.u32 4294901760, %v24269_v19 }
 0x26c   :  { %16677 = vmatmul.mubr.f32.gmra.mrb[6].mxu0 %v24190_v21  ;;  %v29723_v21 = vand.u32 4294901760, %v24277_v12 }
 0x26d   :  { %16679 = vmatprep.mubr.f32.mxu0 %v24199_v3  ;;  %v29724_v3 = vand.u32 4294901760, %v24283_v30 }
 0x270   :  { %16680 = vmatmul.mubr.f32.gmra.mrb[8].mxu0 %v24224_v29 }
 0x271   :  { %16682 = vmatprep.mubr.f32.mxu0 %v24234_v42  ;;  %v3069_v42 = vand.u32 4294901760, %v24346_v38 }
 0x274   :  { %16683 = vmatmul.mubr.f32.gmra.mrb[10].mxu0 %v24253_v1  ;;  %v3070_v1 = vsub.f32 %v24346_v38, %v3069_v42 }
 0x275   :  { %16685 = vmatprep.mubr.f32.mxu0 %v24261_v41 }
 0x278   :  { %16686 = vmatmul.mubr.f32.gmra.mrb[12].mxu0 %v24269_v19 }
 0x279   :  { %16688 = vmatprep.mubr.f32.mxu0 %v24277_v12 }
 0x27c   :  { %16689 = vmatmul.mubr.f32.gmra.mrb[14].mxu0 %v24283_v30 }
 0x27d   :  { %16695 = vmatprep.mubr.f32.mxu0 %v29709_v5 }
 0x280   :  { %16696 = vmatmul.mubr.f32.vlgmr.msra.gmra.mrb[0].mxu0 %v29710_v35 }
 0x281   :  { %19956 = vmatpush3.bf16.msra.mxu0 %v24342_v39  ;;  %16698 = vmatprep.mubr.f32.mxu0 %v29711_v18  ;;  %v29718_v39 = vand.u32 4294901760, %v24224_v29 }
 0x282   :  { %19958 = vmatprep.subr.bf16.mxu0 %v24021_v57 }
 0x284   :  { %16699 = vmatmul.mubr.f32.gmra.mrb[2].mxu0 %v29712_v54 }
 0x285   :  { %16701 = vmatprep.mubr.f32.mxu0 %v29713_v31 }
 0x288   :  { %16702 = vmatmul.mubr.f32.gmra.mrb[4].mxu0 %v29714_v22 }
 0x289   :  { %16704 = vmatprep.mubr.f32.mxu0 %v29715_v51 }
 0x28c   :  { %16705 = vmatmul.mubr.f32.gmra.mrb[6].mxu0 %v29716_v56  ;;  %v29430_v56 = vand.u32 4294901760, %v24350_v8 }
 0x28d   :  { %16707 = vmatprep.mubr.f32.mxu0 %v29717_v25  ;;  %v29725_v25 = vld [vmem:[#allocation42_spill] sm:$0xff] }
 0x290   :  { %16708 = vmatmul.mubr.f32.gmra.mrb[8].mxu0 %v29718_v39  ;;  %v29428_v39 = vand.u32 4294901760, %v29725_v25 }
 0x291   :  { %16710 = vmatprep.mubr.f32.mxu0 %v29719_v7  ;;  %v446_v7 = vld [vmem:[#allocation3 + $0x8] sm:$0xff] }
 0x294   :  { %16711 = vmatmul.mubr.f32.gmra.mrb[10].mxu0 %v29720_v43  ;;  %v29424_v43 = vand.u32 4294901760, %v24359_v60 }
 0x295   :  { %16713 = vmatprep.mubr.f32.mxu0 %v29721_v32  ;;  %v29423_v32 = vand.u32 4294901760, %v24365_v49 }
 0x298   :  { %16714 = vmatmul.mubr.f32.gmra.mrb[12].mxu0 %v29722_v26  ;;  %v445_v26 = vld [vmem:[#allocation3] sm:$0xff] }
 0x299   :  { %16716 = vmatprep.mubr.f32.mxu0 %v29723_v21  ;;  %v29421_v21 = vand.u32 4294901760, %v24378_v46 }
 0x29c   :  { %16717 = vmatmul.mubr.f32.gmra.mrb[14].mxu0 %v29724_v3  ;;  %v29420_v3 = vand.u32 4294901760, %v24380_v44 }
 0x29d   :  { %16723 = vmatprep.mubr.msk.f32.mxu0 %vm463_vm0, %v24084_v37 }
 0x2a0   :  { %16724 = vmatmul.mubr.msk.f32.vlgmr.msra.gmra.mrb[0].mxu0 %vm463_vm0, %v24091_v53 }
 0x2a1   :  { %19960 = vmatpush3.bf16.msra.mxu0 %v24021_v57  ;;  %16726 = vmatprep.mubr.msk.f32.mxu0 %vm463_vm0, %v24102_v47  ;;  %v2814_v57 = vld [vmem:[#allocation6 + $0x60] sm:$0xff] }
 0x2a2   :  { %19962 = vmatprep.subr.bf16.mxu0 %v24344_v20 }
 0x2a4   :  { %16727 = vmatmul.mubr.msk.f32.gmra.mrb[2].mxu0 %vm463_vm0, %v24110_v55 }
 0x2a5   :  { %16729 = vmatprep.mubr.msk.f32.mxu0 %vm463_vm0, %v24120_v45 }
 0x2a8   :  { %16730 = vmatmul.mubr.msk.f32.gmra.mrb[4].mxu0 %vm463_vm0, %v24132_v28 }
 0x2a9   :  { %16732 = vmatprep.mubr.msk.f32.mxu0 %vm463_vm0, %v24142_v58 }
 0x2ac   :  { %16733 = vmatmul.mubr.msk.f32.gmra.mrb[6].mxu0 %vm463_vm0, %v24155_v6 }
 0x2ad   :  { %16735 = vmatprep.mubr.msk.f32.mxu0 %vm463_vm0, %v24164_v0 }
 0x2b0   :  { %16736 = vmatmul.mubr.msk.f32.gmra.mrb[8].mxu0 %vm463_vm0, %v24186_v17 }
 0x2b1   :  { %16738 = vmatprep.mubr.msk.f32.mxu0 %vm463_vm0, %v24194_v63 }
 0x2b4   :  { %16739 = vmatmul.mubr.msk.f32.gmra.mrb[10].mxu0 %vm463_vm0, %v24214_v36 }
 0x2b5   :  { %16741 = vmatprep.mubr.msk.f32.mxu0 %vm463_vm0, %v24220_v61 }
 0x2b8   :  { %16742 = vmatmul.mubr.msk.f32.gmra.mrb[12].mxu0 %vm463_vm0, %v24242_v34 }
 0x2b9   :  { %16744 = vmatprep.mubr.msk.f32.mxu0 %vm463_vm0, %v24248_v59 }
 0x2bc   :  { %16745 = vmatmul.mubr.msk.f32.gmra.mrb[14].mxu0 %vm463_vm0, %v24265_v2 }
 0x2bd   :  { %16751 = vmatprep.mubr.msk.f32.mxu0 %vm463_vm0, %v24084_v37  ;;  %v2815_v37 = vld [vmem:[#allocation6 + $0x68] sm:$0xff] }
 0x2c0   :  { %16752 = vmatmul.mubr.msk.f32.vlgmr.msra.gmra.mrb[0].mxu0 %vm463_vm0, %v24091_v53  ;;  %v2862_v53 = vand.u32 4294901760, %v2814_v57 }
 0x2c1   :  { %16754 = vmatprep.mubr.msk.f32.mxu0 %vm463_vm0, %v24102_v47  ;;  %19964 = vmatpush3.bf16.msra.mxu0 %v24344_v20  ;;  %v2865_v47 = vand.u32 4294901760, %v2815_v37 }
 0x2c2   :  { %19966 = vmatprep.subr.bf16.mxu0 %v24353_v15 }
 0x2c3   :  { %v24520_v29 = vpack.c.bf16 %v2865_v47, %v2862_v53 }
 0x2c4   :  { %16755 = vmatmul.mubr.msk.f32.gmra.mrb[2].mxu0 %vm463_vm0, %v24110_v55  ;;  %v3152_v55 = vsub.f32 %v2814_v57, %v2862_v53 }
 0x2c5   :  { %16757 = vmatprep.mubr.msk.f32.mxu0 %vm463_vm0, %v24120_v45  ;;  %19968 = vmatpush3.bf16.msra.mxu0 %v24353_v15  ;;  %v3159_v45 = vsub.f32 %v2815_v37, %v2865_v47  ;;  %v3084_v47 = vsub.f32 %v24350_v8, %v29430_v56 }
 0x2c6   :  { %19970 = vmatprep.subr.bf16.mxu0 %v24357_v52  ;;  %v3153_v30 = vand.u32 4294901760, %v3152_v55 }
 0x2c7   :  { %v3160_v16 = vand.u32 4294901760, %v3159_v45 }
 0x2c8   :  { %16758 = vmatmul.mubr.msk.f32.gmra.mrb[4].mxu0 %vm463_vm0, %v24132_v28  ;;  %v2816_v28 = vld [vmem:[#allocation6 + $0x70] sm:$0xff]  ;;  %v3154_v27 = vsub.f32 %v3152_v55, %v3153_v30 }
 0x2c9   :  { %16760 = vmatprep.mubr.msk.f32.mxu0 %vm463_vm0, %v24142_v58  ;;  %19972 = vmatpush3.bf16.msra.mxu0 %v24357_v52  ;;  %v2817_v58 = vld [vmem:[#allocation6 + $0x78] sm:$0xff]  ;;  %v3161_v33 = vsub.f32 %v3159_v45, %v3160_v16  ;;  %v24542_v22 = vpack.c.bf16 %v3160_v16, %v3153_v30 }
 0x2ca   :  { %19974 = vmatprep.subr.bf16.mxu0 %v24370_v40  ;;  %v3155_v10 = vand.u32 4294901760, %v3154_v27  ;;  %v450_v27 = vld [vmem:[#allocation3 + $0x28] sm:$0xff] }
 0x2cb   :  { %v3162_v13 = vand.u32 4294901760, %v3161_v33 }
 0x2cc   :  { %16761 = vmatmul.mubr.msk.f32.gmra.mrb[6].mxu0 %vm463_vm0, %v24155_v6  ;;  %v20049_v6 = vpack.c.bf16 %v3159_v45, %v3152_v55  ;;  %v3091_v55 = vsub.f32 %v29725_v25, %v29428_v39 }
 0x2cd   :  { %16763 = vmatprep.mubr.msk.f32.mxu0 %vm463_vm0, %v24164_v0  ;;  %19976 = vmatpush3.bf16.msra.mxu0 %v24370_v40  ;;  %v2868_v0 = vand.u32 4294901760, %v2816_v28  ;;  %v24536_v4 = vpack.c.bf16 %v3162_v13, %v3155_v10 }
 0x2ce   :  { %19978 = vmatprep.subr.bf16.mxu0 %v24373_v14  ;;  %20050 = vmatprep.subr.bf16.mxu1 %v20049_v6 }
 0x2cf   :  { %20052 = vmatpush3.bf16.msra.mxu1 %v20049_v6  ;;  %v3105_v6 = vsub.f32 %v24365_v49, %v29423_v32 }
 0x2d0   :  { %16764 = vmatmul.mubr.msk.f32.gmra.mrb[8].mxu0 %vm463_vm0, %v24186_v17  ;;  %v2871_v17 = vand.u32 4294901760, %v2817_v58 }
 0x2d1   :  { %16766 = vmatprep.mubr.msk.f32.mxu0 %vm463_vm0, %v24194_v63  ;;  %19980 = vmatpush3.bf16.msra.mxu0 %v24373_v14  ;;  %v3166_v63 = vsub.f32 %v2816_v28, %v2868_v0  ;;  %v448_v28 = vld [vmem:[#allocation3 + $0x18] sm:$0xff]  ;;  %v3106_v10 = vand.u32 4294901760, %v3105_v6 }
 0x2d2   :  { %19982 = vmatprep.subr.bf16.mxu0 %v24382_v24 }
 0x2d3   :  { %v3167_v9 = vand.u32 4294901760, %v3166_v63 }
 0x2d4   :  { %16767 = vmatmul.mubr.msk.f32.gmra.mrb[10].mxu0 %vm463_vm0, %v24214_v36  ;;  %v3173_v36 = vsub.f32 %v2817_v58, %v2871_v17  ;;  %v3098_v58 = vsub.f32 %v24359_v60, %v29424_v43 }
 0x2d5   :  { %16769 = vmatprep.mubr.msk.f32.mxu0 %vm463_vm0, %v24220_v61  ;;  %19984 = vmatpush3.bf16.msra.mxu0 %v24382_v24  ;;  %v3168_v5 = vsub.f32 %v3166_v63, %v3167_v9 }
 0x2d6   :  { %v20053_v61 = vpack.c.bf16 %v3173_v36, %v3166_v63  ;;  %19986 = vmatprep.subr.bf16.mxu0 %v24520_v29  ;;  %v3174_v38 = vand.u32 4294901760, %v3173_v36  ;;  %v3112_v63 = vsub.f32 %v24378_v46, %v29421_v21  ;;  %v3099_v33 = vand.u32 4294901760, %v3098_v58  ;;  %v452_v58 = vld [vmem:[#allocation3 + $0x38] sm:$0xff] }
 0x2d7   :  { %v3169_v18 = vand.u32 4294901760, %v3168_v5  ;;  %v29434_v21 = vand.u32 4294901760, %v24398_v11 }
 0x2d8   :  { %16770 = vmatmul.mubr.msk.f32.gmra.mrb[12].mxu0 %vm463_vm0, %v24242_v34  ;;  %20054 = vmatprep.subr.bf16.mxu1 %v20053_v61  ;;  %v3076_v34 = vand.u32 4294901760, %v24348_v23  ;;  %v3175_v35 = vsub.f32 %v3173_v36, %v3174_v38  ;;  %v24544_v51 = vpack.c.bf16 %v3174_v38, %v3167_v9  ;;  %v3119_v36 = vsub.f32 %v24380_v44, %v29420_v3  ;;  %v449_v38 = vld [vmem:[#allocation3 + $0x20] sm:$0xff] }
 0x2d9   :  { %16772 = vmatprep.mubr.msk.f32.mxu0 %vm463_vm0, %v24248_v59  ;;  %20056 = vmatpush3.bf16.msra.mxu1 %v20053_v61  ;;  %v24526_v59 = vpack.c.bf16 %v2871_v17, %v2868_v0  ;;  %v447_v17 = vld [vmem:[#allocation3 + $0x10] sm:$0xff]  ;;  %v3113_v5 = vand.u32 4294901760, %v3112_v63 }
 0x2da   :  { %20058 = vmatprep.subr.bf16.mxu1 %v24344_v20  ;;  %19988 = vmatpush3.bf16.msra.mxu0 %v24520_v29  ;;  %v3077_v41 = vsub.f32 %v24348_v23, %v3076_v34  ;;  %v24538_v23 = vpack.c.bf16 %v3076_v34, %v3069_v42  ;;  %v3176_v54 = vand.u32 4294901760, %v3175_v35  ;;  %v3120_v35 = vand.u32 4294901760, %v3119_v36  ;;  %v451_v36 = vld [vmem:[#allocation3 + $0x30] sm:$0xff] }
 0x2db   :  { %19990 = vmatprep.subr.bf16.mxu0 %v24526_v59 }
 0x2dc   :  { %16773 = vmatmul.mubr.msk.f32.gmra.mrb[14].mxu0 %vm463_vm0, %v24265_v2  ;;  %v3071_v2 = vand.u32 4294901760, %v3070_v1  ;;  %v3078_v19 = vand.u32 4294901760, %v3077_v41  ;;  %v24540_v31 = vpack.c.bf16 %v3176_v54, %v3169_v18 }
 0x2de   :  { %19992 = vmatpush3.bf16.msra.mxu0 %v24526_v59  ;;  %v24533_v12 = vpack.c.bf16 %v3078_v19, %v3071_v2  ;;  %v3085_v2 = vand.u32 4294901760, %v3084_v47  ;;  %v3092_v19 = vand.u32 4294901760, %v3091_v55 }
 0x2e0   :  { %19994 = vmatprep.subr.bf16.mxu0 %v24533_v12  ;;  %v24595_v55 = vpack.c.bf16 %v3092_v19, %v3085_v2 }
 0x393   :  { %v16753_v57 = vpop.f32.mrb[0].mxu0 }
 0x394   :  { %v22457_v37 = vadd.f32 %v16753_v57, %v446_v7  ;;  %v2692_v53 = vpop.f32.mrb[1].mxu0 }
 0x395   :  { %v22458_v45 = vadd.f32 %v2692_v53, %v445_v26  ;;  %v29419_v26 = vand.u32 4294901760, %v24388_v62 }
 0x396   :  { %v24564_v0 = vand.u32 4294901760, %v22457_v37 }
 0x397   :  { %v24572_v61 = vand.u32 4294901760, %v22458_v45  ;;  %v16756_v42 = vpop.f32.mrb[2].mxu0 }
 0x398   :  { %v24575_v34 = vsub.f32 %v22457_v37, %v24564_v0  ;;  %v22459_v1 = vadd.f32 %v16756_v42, %v448_v28  ;;  %v2704_v41 = vpop.f32.mrb[3].mxu0 }
 0x399   :  { %v24578_v30 = vsub.f32 %v22458_v45, %v24572_v61  ;;  %v22460_v16 = vadd.f32 %v2704_v41, %v447_v17  ;;  %v24604_v17 = vpack.c.bf16 %v3106_v10, %v3099_v33  ;;  %v29425_v41 = vand.u32 4294901760, %v24390_v48 }
 0x39a   :  { %v29431_v13 = vand.u32 4294901760, %v24575_v34  ;;  %v24581_v9 = vand.u32 4294901760, %v22459_v1  ;;  %v24620_v33 = vsub.f32 %v24388_v62, %v29419_v26  ;;  %v454_v26 = vld [vmem:[#allocation3 + $0x48] sm:$0xff] }
 0x39b   :  { %v24583_v18 = vand.u32 4294901760, %v22460_v16  ;;  %v16759_v54 = vpop.f32.mrb[4].mxu0  ;;  %16919 = vmatprep.mubr.f32.mxu1 %v24578_v30  ;;  %v29433_v7 = vand.u32 4294901760, %v24578_v30 }
 0x39c   :  { %v2919_v57 = vsub.f32 %v24575_v34, %v29431_v13  ;;  %v24592_v37 = vsub.f32 %v22459_v1, %v24581_v9  ;;  %v22461_v53 = vadd.f32 %v16759_v54, %v450_v27  ;;  %v2716_v47 = vpop.f32.mrb[5].mxu0  ;;  %16920 = vmatmul.mubr.f32.vlgmr.msra.gmra.mrb[0].mxu1 %v24575_v34  ;;  %v24610_v1 = vpack.c.bf16 %v3120_v35, %v3113_v5 }
 0x39d   :  { %v24598_v45 = vsub.f32 %v22460_v16, %v24583_v18  ;;  %v22462_v28 = vadd.f32 %v2716_v47, %v449_v38  ;;  %20060 = vmatpush3.bf16.msra.mxu1 %v24344_v20  ;;  %v2909_v6 = vsub.f32 %v24578_v30, %v29433_v7 }
 0x39e   :  { %v24606_v63 = vand.u32 4294901760, %v22461_v53  ;;  %20062 = vmatprep.subr.bf16.mxu1 %v24353_v15  ;;  %v29422_v42 = vand.u32 4294901760, %v24592_v37  ;;  %v2920_v10 = vand.u32 4294901760, %v2919_v57 }
 0x39f   :  { %v24613_v2 = vand.u32 4294901760, %v22462_v28  ;;  %v16762_v19 = vpop.f32.mrb[6].mxu0  ;;  %16922 = vmatprep.mubr.f32.mxu1 %v24598_v45  ;;  %v2910_v16 = vand.u32 4294901760, %v2909_v6  ;;  %v29426_v27 = vand.u32 4294901760, %v24598_v45 }
 0x3a0   :  { %v24623_v38 = vsub.f32 %v22461_v53, %v24606_v63  ;;  %v22463_v5 = vadd.f32 %v16762_v19, %v452_v58  ;;  %v2728_v35 = vpop.f32.mrb[7].mxu0  ;;  %16923 = vmatmul.mubr.f32.gmra.mrb[2].mxu1 %v24592_v37  ;;  %v2939_v54 = vsub.f32 %v24592_v37, %v29422_v42  ;;  %v453_v58 = vld [vmem:[#allocation3 + $0x40] sm:$0xff] }
 0x3a1   :  { %v24630_v47 = vsub.f32 %v22462_v28, %v24613_v2  ;;  %v22464_v6 = vadd.f32 %v2728_v35, %v451_v36  ;;  %20064 = vmatpush3.bf16.msra.mxu1 %v24353_v15  ;;  %16807 = vmatprep.mubr.f32.mxu0 %v2910_v16  ;;  %v2929_v57 = vsub.f32 %v24598_v45, %v29426_v27  ;;  %v29432_v36 = vand.u32 4294901760, %v24396_v50 }
 0x3a2   :  { %v24636_v53 = vand.u32 4294901760, %v22463_v5  ;;  %16808 = vmatmul.mubr.f32.vlgmr.msra.gmra.mrb[16].mxu0 %v2920_v10  ;;  %20066 = vmatprep.subr.bf16.mxu1 %v24357_v52  ;;  %v29427_v19 = vand.u32 4294901760, %v24623_v38  ;;  %v3133_v28 = vsub.f32 %v24390_v48, %v29425_v41  ;;  %v2940_v41 = vand.u32 4294901760, %v2939_v54 }
 0x3a3   :  { %v24644_v16 = vand.u32 4294901760, %v22464_v6  ;;  %v16765_v35 = vpop.f32.mrb[8].mxu0  ;;  %19996 = vmatpush3.bf16.msra.mxu0 %v24533_v12  ;;  %16925 = vmatprep.mubr.f32.mxu1 %v24630_v47  ;;  %v2930_v3 = vand.u32 4294901760, %v2929_v57  ;;  %v29429_v10 = vand.u32 4294901760, %v24630_v47  ;;  %v3127_v54 = vand.u32 4294901760, %v24620_v33 }
 0x3a4   :  { %v24651_v42 = vsub.f32 %v22463_v5, %v24636_v53  ;;  %v22465_v32 = vadd.f32 %v16765_v35, %v454_v26  ;;  %v2740_v43 = vpop.f32.mrb[9].mxu0  ;;  %16926 = vmatmul.mubr.f32.gmra.mrb[4].mxu1 %v24623_v38  ;;  %19998 = vmatprep.subr.bf16.mxu0 %v24595_v55  ;;  %v2959_v12 = vsub.f32 %v24623_v38, %v29427_v19  ;;  %v456_v5 = vld [vmem:[#allocation3 + $0x58] sm:$0xff]  ;;  %v455_v19 = vld [vmem:[#allocation3 + $0x50] sm:$0xff]  ;;  %v3134_v39 = vand.u32 4294901760, %v3133_v28 }
 0x3a5   :  { %v24659_v57 = vsub.f32 %v22464_v6, %v24644_v16  ;;  %v22466_v27 = vadd.f32 %v2740_v43, %v453_v58  ;;  %20068 = vmatpush3.bf16.msra.mxu1 %v24357_v52  ;;  %16810 = vmatprep.mubr.f32.mxu0 %v2930_v3  ;;  %v2949_v26 = vsub.f32 %v24630_v47, %v29429_v10 }
 0x3a6   :  { %v24666_v35 = vand.u32 4294901760, %v22465_v32  ;;  %16811 = vmatmul.mubr.f32.gmra.mrb[18].mxu0 %v2940_v41  ;;  %20070 = vmatprep.subr.bf16.mxu1 %v24370_v40  ;;  %v29435_v6 = vand.u32 4294901760, %v24651_v42  ;;  %v3140_v43 = vsub.f32 %v24396_v50, %v29432_v36  ;;  %v3147_v10 = vsub.f32 %v24398_v11, %v29434_v21 }
 0x3a7   :  { %v24673_v3 = vand.u32 4294901760, %v22466_v27  ;;  %v16768_v58 = vpop.f32.mrb[10].mxu0  ;;  %20000 = vmatpush3.bf16.msra.mxu0 %v24595_v55  ;;  %16928 = vmatprep.mubr.f32.mxu1 %v24659_v57  ;;  %v2950_v33 = vand.u32 4294901760, %v2949_v26  ;;  %v29438_v41 = vand.u32 4294901760, %v24659_v57  ;;  %v2960_v36 = vand.u32 4294901760, %v2959_v12  ;;  %v457_v12 = vld [vmem:[#allocation3 + $0x60] sm:$0xff] }
 0x3a8   :  { %v24682_v28 = vsub.f32 %v22465_v32, %v24666_v35  ;;  %v22467_v56 = vadd.f32 %v16768_v58, %v456_v5  ;;  %v2752_v13 = vpop.f32.mrb[11].mxu0  ;;  %16929 = vmatmul.mubr.f32.gmra.mrb[6].mxu1 %v24651_v42  ;;  %20002 = vmatprep.subr.bf16.mxu0 %v24604_v17  ;;  %v2979_v55 = vsub.f32 %v24651_v42, %v29435_v6  ;;  %v458_v32 = vld [vmem:[#allocation3 + $0x68] sm:$0xff] }
 0x3a9   :  { %v24690_v26 = vsub.f32 %v22466_v27, %v24673_v3  ;;  %v22468_v7 = vadd.f32 %v2752_v13, %v455_v19  ;;  %20072 = vmatpush3.bf16.msra.mxu1 %v24370_v40  ;;  %16813 = vmatprep.mubr.f32.mxu0 %v2950_v33  ;;  %v2969_v5 = vsub.f32 %v24659_v57, %v29438_v41  ;;  %v3141_v27 = vand.u32 4294901760, %v3140_v43 }
 0x3aa   :  { %v24696_v58 = vand.u32 4294901760, %v22467_v56  ;;  %16814 = vmatmul.mubr.f32.gmra.mrb[20].mxu0 %v2960_v36  ;;  %20074 = vmatprep.subr.bf16.mxu1 %v24373_v14  ;;  %v29443_v21 = vand.u32 4294901760, %v24682_v28  ;;  %v20009_v6 = vpack.c.bf16 %v3134_v39, %v3127_v54  ;;  %v3148_v41 = vand.u32 4294901760, %v3147_v10 }
 0x3ab   :  { %v24700_v52 = vand.u32 4294901760, %v22468_v7  ;;  %v16771_v13 = vpop.f32.mrb[12].mxu0  ;;  %20004 = vmatpush3.bf16.msra.mxu0 %v24604_v17  ;;  %16931 = vmatprep.mubr.f32.mxu1 %v24690_v26  ;;  %v2970_v19 = vand.u32 4294901760, %v2969_v5  ;;  %v29444_v33 = vand.u32 4294901760, %v24690_v26  ;;  %v2980_v39 = vand.u32 4294901760, %v2979_v55  ;;  %v459_v55 = vld [vmem:[#allocation3 + $0x70] sm:$0xff] }
 0x3ac   :  { %v24706_v36 = vsub.f32 %v22467_v56, %v24696_v58  ;;  %v22469_v40 = vadd.f32 %v16771_v13, %v458_v32  ;;  %v2764_v15 = vpop.f32.mrb[13].mxu0  ;;  %16932 = vmatmul.mubr.f32.gmra.mrb[8].mxu1 %v24682_v28  ;;  %20006 = vmatprep.subr.bf16.mxu0 %v24610_v1  ;;  %v2999_v17 = vsub.f32 %v24682_v28, %v29443_v21  ;;  %v460_v56 = vld [vmem:[#allocation3 + $0x78] sm:$0xff] }
 0x3ad   :  { %v24714_v54 = vsub.f32 %v22468_v7, %v24700_v52  ;;  %v22470_v43 = vadd.f32 %v2764_v15, %v457_v12  ;;  %20076 = vmatpush3.bf16.msra.mxu1 %v24373_v14  ;;  %16816 = vmatprep.mubr.f32.mxu0 %v2970_v19  ;;  %v2989_v10 = vsub.f32 %v24690_v26, %v29444_v33 }
 0x3ae   :  { %v24720_v32 = vand.u32 4294901760, %v22469_v40  ;;  %16817 = vmatmul.mubr.f32.gmra.mrb[22].mxu0 %v2980_v39  ;;  %20078 = vmatprep.subr.bf16.mxu1 %v24382_v24  ;;  %v3018_v5 = vand.u32 4294901760, %v24706_v36  ;;  %v20013_v19 = vpack.c.bf16 %v3148_v41, %v3141_v27  ;;  %v3000_v14 = vand.u32 4294901760, %v2999_v17 }
 0x3af   :  { %v24724_v13 = vand.u32 4294901760, %v22470_v43  ;;  %v16774_v7 = vpop.f32.mrb[14].mxu0  ;;  %20008 = vmatpush3.bf16.msra.mxu0 %v24610_v1  ;;  %16934 = vmatprep.mubr.f32.mxu1 %v24714_v54  ;;  %v2990_v15 = vand.u32 4294901760, %v2989_v10  ;;  %v3008_v12 = vand.u32 4294901760, %v24714_v54 }
 0x3b0   :  { %v24730_v21 = vsub.f32 %v22469_v40, %v24720_v32  ;;  %v22471_v39 = vadd.f32 %v16774_v7, %v460_v56  ;;  %v2776_v33 = vpop.f32.mrb[15].mxu0  ;;  %16935 = vmatmul.mubr.f32.gmra.mrb[10].mxu1 %v24706_v36  ;;  %20010 = vmatprep.subr.bf16.mxu0 %v20009_v6  ;;  %v3019_v20 = vsub.f32 %v24706_v36, %v3018_v5 }
 0x3b1   :  { %v24737_v1 = vsub.f32 %v22470_v43, %v24724_v13  ;;  %v22472_v10 = vadd.f32 %v2776_v33, %v459_v55  ;;  %20080 = vmatpush3.bf16.msra.mxu1 %v24382_v24  ;;  %16819 = vmatprep.mubr.f32.mxu0 %v2990_v15  ;;  %v3009_v40 = vsub.f32 %v24714_v54, %v3008_v12 }
 0x3b2   :  { %v24743_v41 = vand.u32 4294901760, %v22471_v39  ;;  %16820 = vmatmul.mubr.f32.gmra.mrb[24].mxu0 %v3000_v14  ;;  %20082 = vmatprep.subr.bf16.mxu1 %v24520_v29  ;;  %v3038_v27 = vand.u32 4294901760, %v24730_v21  ;;  %v3020_v55 = vand.u32 4294901760, %v3019_v20 }
 0x3b3   :  { %v24747_v17 = vand.u32 4294901760, %v22472_v10  ;;  %20012 = vmatpush3.bf16.msra.mxu0 %v20009_v6  ;;  %16937 = vmatprep.mubr.f32.mxu1 %v24737_v1  ;;  %v3010_v33 = vand.u32 4294901760, %v3009_v40  ;;  %v3028_v43 = vand.u32 4294901760, %v24737_v1 }
 0x3b4   :  { %v24752_v56 = vsub.f32 %v22471_v39, %v24743_v41  ;;  %16938 = vmatmul.mubr.f32.gmra.mrb[12].mxu1 %v24730_v21  ;;  %20014 = vmatprep.subr.bf16.mxu0 %v20013_v19  ;;  %v3039_v14 = vsub.f32 %v24730_v21, %v3038_v27  ;;  %v29750_v21 = vld [vmem:[#allocation44_spill] sm:$0xff] }
 0x3b5   :  { %v24759_v7 = vsub.f32 %v22472_v10, %v24747_v17  ;;  %20084 = vmatpush3.bf16.msra.mxu1 %v24520_v29  ;;  %16822 = vmatprep.mubr.f32.mxu0 %v3010_v33  ;;  %v3029_v6 = vsub.f32 %v24737_v1, %v3028_v43 }
 0x3b6   :  { %16823 = vmatmul.mubr.f32.gmra.mrb[26].mxu0 %v3020_v55  ;;  %20086 = vmatprep.subr.bf16.mxu1 %v24526_v59  ;;  %v29449_v20 = vand.u32 4294901760, %v24752_v56  ;;  %v3040_v10 = vand.u32 4294901760, %v3039_v14  ;;  %v29727_v14 = vand.u32 4294901760, %v24575_v34  ;;  %v29732_v34 = vand.u32 4294901760, %v24365_v49 }
 0x3b7   :  { %20016 = vmatpush3.bf16.msra.mxu0 %v20013_v19  ;;  %16940 = vmatprep.mubr.f32.mxu1 %v24759_v7  ;;  %v3030_v15 = vand.u32 4294901760, %v3029_v6  ;;  %v3048_v39 = vand.u32 4294901760, %v24759_v7  ;;  %v29726_v19 = vand.u32 4294901760, %v24578_v30  ;;  %v29730_v30 = vand.u32 4294901760, %v24598_v45 }
 0x3b8   :  { %16941 = vmatmul.mubr.f32.gmra.mrb[14].mxu1 %v24752_v56  ;;  %20018 = vmatprep.subr.bf16.mxu0 %v24536_v4  ;;  %v3059_v40 = vsub.f32 %v24752_v56, %v29449_v20  ;;  %v29728_v20 = vand.u32 4294901760, %v24350_v8  ;;  %v29733_v8 = vand.u32 4294901760, %v24592_v37  ;;  %v29736_v49 = vand.u32 4294901760, %v24380_v44 }
 0x3b9   :  { %20088 = vmatpush3.bf16.msra.mxu1 %v24526_v59  ;;  %16825 = vmatprep.mubr.f32.mxu0 %v3030_v15  ;;  %v3049_v33 = vsub.f32 %v24759_v7, %v3048_v39  ;;  %v29729_v15 = vand.u32 4294901760, %v29725_v25  ;;  %v29738_v37 = vand.u32 4294901760, %v24659_v57  ;;  %v29739_v45 = vand.u32 4294901760, %v24388_v62 }
 0x3ba   :  { %16975 = vmatprep.mubr.f32.mxu1 %v29726_v19  ;;  %16826 = vmatmul.mubr.f32.gmra.mrb[28].mxu0 %v3040_v10  ;;  %v3060_v6 = vand.u32 4294901760, %v3059_v40  ;;  %v29741_v44 = vand.u32 4294901760, %v24651_v42  ;;  %v29743_v57 = vand.u32 4294901760, %v24396_v50  ;;  %v29746_v50 = vand.u32 4294901760, %v24752_v56  ;;  %v29751_v42 = vld [vmem:[#allocation45_spill] sm:$0xff]  ;;  %v24939_v40 = vld [vmem:[#allocation8 + $0x60] sm:$0xff] }
 0x3bb   :  { %20020 = vmatpush3.bf16.msra.mxu0 %v24536_v4  ;;  %20090 = vmatprep.subr.bf16.mxu1 %v24538_v23  ;;  %v3050_v55 = vand.u32 4294901760, %v3049_v33  ;;  %v20093_v7 = vpack.c.bf16 %v29729_v15, %v29728_v20  ;;  %v29731_v4 = vand.u32 4294901760, %v24359_v60  ;;  %v29735_v60 = vand.u32 4294901760, %v24378_v46  ;;  %v24941_v33 = vld [vmem:[#allocation8 + $0x68] sm:$0xff] }
 0x3bc   :  { %16976 = vmatmul.mubr.f32.vlgmr.msra.gmra.mrb[0].mxu1 %v29727_v14  ;;  %20022 = vmatprep.subr.bf16.mxu0 %v24540_v31  ;;  %v29744_v20 = vand.u32 4294901760, %v24398_v11  ;;  %v29747_v11 = vld [vmem:[#allocation40_spill] sm:$0xff]  ;;  %v4187_v19 = vand.u32 4294901760, %v24939_v40 }
 0x3bd   :  { %20092 = vmatpush3.bf16.msra.mxu1 %v24538_v23  ;;  %16828 = vmatprep.mubr.f32.mxu0 %v3050_v55  ;;  %v20097_v10 = vpack.c.bf16 %v29732_v34, %v29731_v4  ;;  %v29734_v23 = vand.u32 4294901760, %v24630_v47  ;;  %v20101_v25 = vpack.c.bf16 %v29736_v49, %v29735_v60  ;;  %v29740_v47 = vand.u32 4294901760, %v24390_v48 }
 0x3be   :  { %16978 = vmatprep.mubr.f32.mxu1 %v29730_v30  ;;  %16829 = vmatmul.mubr.f32.gmra.mrb[30].mxu0 %v3060_v6  ;;  %v20109_v62 = vpack.c.bf16 %v29744_v20, %v29743_v57  ;;  %v29745_v48 = vand.u32 4294901760, %v24682_v28  ;;  %v24909_v28 = vld [vmem:[#allocation8 + $0x30] sm:$0xff]  ;;  %v4190_v55 = vand.u32 4294901760, %v24941_v33  ;;  %v24959_v30 = vld [vmem:[#allocation8 + $0x78] sm:$0xff] }
 0x3bf   :  { %20024 = vmatpush3.bf16.msra.mxu0 %v24540_v31  ;;  %16863 = vmatprep.mubr.f32.mxu0 %v24572_v61  ;;  %v29737_v31 = vand.u32 4294901760, %v24623_v38  ;;  %v20105_v46 = vpack.c.bf16 %v29740_v47, %v29739_v45  ;;  %v29742_v38 = vand.u32 4294901760, %v24690_v26  ;;  %v24911_v26 = vld [vmem:[#allocation8 + $0x38] sm:$0xff]  ;;  %v4169_v36 = vand.u32 4294901760, %v24909_v28 }
 0x3c0   :  { %20094 = vmatprep.subr.bf16.mxu1 %v20093_v7  ;;  %16979 = vmatmul.mubr.f32.gmra.mrb[2].mxu1 %v29733_v8  ;;  %v4172_v54 = vand.u32 4294901760, %v24911_v26  ;;  %v24951_v14 = vpack.c.bf16 %v4190_v55, %v4187_v19  ;;  %v4196_v34 = vand.u32 4294901760, %v24959_v30 }
 0x3c1   :  { %20096 = vmatpush3.bf16.msra.mxu1 %v20093_v7  ;;  %16981 = vmatprep.mubr.f32.mxu1 %v29734_v23  ;;  %v24957_v7 = vld [vmem:[#allocation8 + $0x70] sm:$0xff] }
 0x3c2   :  { %16864 = vmatmul.mubr.f32.vlgmr.msra.gmra.mrb[16].mxu0 %v24564_v0  ;;  %20098 = vmatprep.subr.bf16.mxu1 %v20097_v10  ;;  %v4193_v4 = vand.u32 4294901760, %v24957_v7 }
 0x3c3   :  { %16866 = vmatprep.mubr.f32.mxu0 %v24583_v18 }
 0x3c4   :  { %16982 = vmatmul.mubr.f32.gmra.mrb[4].mxu1 %v29737_v31  ;;  %v24971_v23 = vpack.c.bf16 %v4196_v34, %v4193_v4 }
 0x3c5   :  { %20100 = vmatpush3.bf16.msra.mxu1 %v20097_v10  ;;  %16984 = vmatprep.mubr.f32.mxu1 %v29738_v37 }
 0x3c6   :  { %16867 = vmatmul.mubr.f32.gmra.mrb[18].mxu0 %v24581_v9  ;;  %20102 = vmatprep.subr.bf16.mxu1 %v20101_v25 }
 0x3c7   :  { %16869 = vmatprep.mubr.f32.mxu0 %v24613_v2 }
 0x3c8   :  { %16985 = vmatmul.mubr.f32.gmra.mrb[6].mxu1 %v29741_v44 }
 0x3c9   :  { %20104 = vmatpush3.bf16.msra.mxu1 %v20101_v25  ;;  %16987 = vmatprep.mubr.f32.mxu1 %v29742_v38 }
 0x3ca   :  { %16870 = vmatmul.mubr.f32.gmra.mrb[20].mxu0 %v24606_v63  ;;  %20106 = vmatprep.subr.bf16.mxu1 %v20105_v46 }
 0x3cb   :  { %16872 = vmatprep.mubr.f32.mxu0 %v24644_v16 }
 0x3cc   :  { %16988 = vmatmul.mubr.f32.gmra.mrb[8].mxu1 %v29745_v48 }
 0x3cd   :  { %20108 = vmatpush3.bf16.msra.mxu1 %v20105_v46  ;;  %16990 = vmatprep.mubr.f32.mxu1 %v3008_v12 }
 0x3ce   :  { %16873 = vmatmul.mubr.f32.gmra.mrb[22].mxu0 %v24636_v53  ;;  %20110 = vmatprep.subr.bf16.mxu1 %v20109_v62 }
 0x3cf   :  { %16875 = vmatprep.mubr.f32.mxu0 %v24673_v3 }
 0x3d0   :  { %16991 = vmatmul.mubr.f32.gmra.mrb[10].mxu1 %v3018_v5  ;;  %v4135_v5 = vld [vmem:[#allocation8 + $0x40] sm:$0xff] }
 0x3d1   :  { %20112 = vmatpush3.bf16.msra.mxu1 %v20109_v62  ;;  %16993 = vmatprep.mubr.f32.mxu1 %v3028_v43  ;;  %v4175_v12 = vand.u32 4294901760, %v4135_v5 }
 0x3d2   :  { %16876 = vmatmul.mubr.f32.gmra.mrb[24].mxu0 %v24666_v35  ;;  %20114 = vmatprep.subr.bf16.mxu1 %v24542_v22 }
 0x3d3   :  { %16878 = vmatprep.mubr.f32.mxu0 %v24700_v52 }
 0x3d4   :  { %16994 = vmatmul.mubr.f32.gmra.mrb[12].mxu1 %v3038_v27  ;;  %v24929_v27 = vld [vmem:[#allocation8 + $0x50] sm:$0xff] }
 0x3d5   :  { %20116 = vmatpush3.bf16.msra.mxu1 %v24542_v22  ;;  %16996 = vmatprep.mubr.f32.mxu1 %v3048_v39  ;;  %v29748_v22 = vld [vmem:[#allocation41_spill] sm:$0xff]  ;;  %v4181_v43 = vand.u32 4294901760, %v24929_v27 }
 0x3d6   :  { %16879 = vmatmul.mubr.f32.gmra.mrb[26].mxu0 %v24696_v58  ;;  %20118 = vmatprep.subr.bf16.mxu1 %v24544_v51 }
 0x3d7   :  { %16881 = vmatprep.mubr.f32.mxu0 %v24724_v13 }
 0x3d8   :  { %16997 = vmatmul.mubr.f32.gmra.mrb[14].mxu1 %v29746_v50 }
 0x3d9   :  { %20120 = vmatpush3.bf16.msra.mxu1 %v24544_v51  ;;  %17031 = vmatprep.mubr.f32.mxu1 %v24572_v61  ;;  %v29749_v51 = vld [vmem:[#allocation43_spill] sm:$0xff] }
 0x3da   :  { %16882 = vmatmul.mubr.f32.gmra.mrb[28].mxu0 %v24720_v32  ;;  %20122 = vmatprep.subr.bf16.mxu1 %v29747_v11 }
 0x3db   :  { %16884 = vmatprep.mubr.f32.mxu0 %v24747_v17 }
 0x3dc   :  { %17032 = vmatmul.mubr.f32.vlgmr.msra.gmra.mrb[0].mxu1 %v24564_v0 }
 0x3dd   :  { %20124 = vmatpush3.bf16.msra.mxu1 %v29747_v11  ;;  %17034 = vmatprep.mubr.f32.mxu1 %v24583_v18 }
 0x3de   :  { %16885 = vmatmul.mubr.f32.gmra.mrb[30].mxu0 %v24743_v41  ;;  %20126 = vmatprep.subr.bf16.mxu1 %v29748_v22 }
 0x3e0   :  { %17035 = vmatmul.mubr.f32.gmra.mrb[2].mxu1 %v24581_v9 }
 0x3e1   :  { %20128 = vmatpush3.bf16.msra.mxu1 %v29748_v22  ;;  %17037 = vmatprep.mubr.f32.mxu1 %v24613_v2 }
 0x3e2   :  { %20130 = vmatprep.subr.bf16.mxu1 %v29749_v51 }
 0x3e4   :  { %17038 = vmatmul.mubr.f32.gmra.mrb[4].mxu1 %v24606_v63 }
 0x3e5   :  { %20132 = vmatpush3.bf16.msra.mxu1 %v29749_v51  ;;  %17040 = vmatprep.mubr.f32.mxu1 %v24644_v16 }
 0x3e6   :  { %20134 = vmatprep.subr.bf16.mxu1 %v29750_v21 }
 0x3e8   :  { %17041 = vmatmul.mubr.f32.gmra.mrb[6].mxu1 %v24636_v53 }
 0x3e9   :  { %20136 = vmatpush3.bf16.msra.mxu1 %v29750_v21  ;;  %17043 = vmatprep.mubr.f32.mxu1 %v24673_v3 }
 0x3ea   :  { %20138 = vmatprep.subr.bf16.mxu1 %v29751_v42 }
 0x3ec   :  { %17044 = vmatmul.mubr.f32.gmra.mrb[8].mxu1 %v24666_v35 }
 0x3ed   :  { %20140 = vmatpush3.bf16.msra.mxu1 %v29751_v42  ;;  %17046 = vmatprep.mubr.f32.mxu1 %v24700_v52  ;;  %v25011_v42 = vsub.f32 %v24909_v28, %v4169_v36 }
 0x3ee   :  { %20142 = vmatprep.subr.bf16.mxu1 %v24382_v24 }
 0x3ef   :  { %29758 = vst [vmem:[#allocation46_spill] sm:$0xff] %v25011_v42 }
 0x3f0   :  { %17047 = vmatmul.mubr.f32.gmra.mrb[10].mxu1 %v24696_v58 }
 0x3f1   :  { %20144 = vmatpush3.bf16.msra.mxu1 %v24382_v24  ;;  %17049 = vmatprep.mubr.f32.mxu1 %v24724_v13  ;;  %v4127_v24 = vld [vmem:[#allocation8] sm:$0xff] }
 0x3f2   :  { %20146 = vmatprep.subr.bf16.mxu1 %v24520_v29 }
 0x3f4   :  { %17050 = vmatmul.mubr.f32.gmra.mrb[12].mxu1 %v24720_v32 }
 0x3f5   :  { %20148 = vmatpush3.bf16.msra.mxu1 %v24520_v29  ;;  %17052 = vmatprep.mubr.f32.mxu1 %v24747_v17  ;;  %v4128_v29 = vld [vmem:[#allocation8 + $0x8] sm:$0xff] }
 0x3f6   :  { %20150 = vmatprep.subr.bf16.mxu1 %v24526_v59 }
 0x3f8   :  { %17053 = vmatmul.mubr.f32.gmra.mrb[14].mxu1 %v24743_v41 }
 0x3f9   :  { %20152 = vmatpush3.bf16.msra.mxu1 %v24526_v59  ;;  %17087 = vmatprep.mubr.f32.mxu1 %v24572_v61  ;;  %v4129_v59 = vld [vmem:[#allocation8 + $0x10] sm:$0xff]  ;;  %v4154_v61 = vand.u32 4294901760, %v4128_v29 }
 0x3fb   :  { %v24955_v15 = vsub.f32 %v4128_v29, %v4154_v61 }
 0x3fc   :  { %17088 = vmatmul.mubr.f32.vlgmr.msra.gmra.mrb[0].mxu1 %v24564_v0  ;;  %v4151_v0 = vand.u32 4294901760, %v4127_v24 }
 0x3fd   :  { %17090 = vmatprep.mubr.f32.mxu1 %v24583_v18  ;;  %v4157_v18 = vand.u32 4294901760, %v4129_v59  ;;  %29753 = vst [vmem:[#allocation40_spill] sm:$0xff] %v24955_v15  ;;  %v29464_v8 = vand.u32 4294901760, %v24955_v15 }
 0x3fe   :  { %v24953_v6 = vsub.f32 %v4127_v24, %v4151_v0  ;;  %v25014_v24 = vsub.f32 %v24911_v26, %v4172_v54 }
 0x3ff   :  { %v4402_v49 = vsub.f32 %v24955_v15, %v29464_v8  ;;  %v24979_v25 = vsub.f32 %v4129_v59, %v4157_v18 }
 0x400   :  { %17091 = vmatmul.mubr.f32.gmra.mrb[2].mxu1 %v24581_v9  ;;  %v4130_v9 = vld [vmem:[#allocation8 + $0x18] sm:$0xff]  ;;  %29752 = vst [vmem:[#allocation42_spill] sm:$0xff] %v24953_v6  ;;  %v29465_v10 = vand.u32 4294901760, %v24953_v6  ;;  %29759 = vst [vmem:[#allocation47_spill] sm:$0xff] %v25014_v24 }
 0x401   :  { %17093 = vmatprep.mubr.f32.mxu1 %v24613_v2  ;;  %v4160_v2 = vand.u32 4294901760, %v4130_v9  ;;  %29754 = vst [vmem:[#allocation41_spill] sm:$0xff] %v24979_v25  ;;  %v4403_v45 = vand.u32 4294901760, %v4402_v49  ;;  %v29463_v47 = vand.u32 4294901760, %v24979_v25  ;;  %v25040_v49 = vsub.f32 %v24929_v27, %v4181_v43 }
 0x402   :  { %v4395_v60 = vsub.f32 %v24953_v6, %v29465_v10 }
 0x403   :  { %v24981_v31 = vsub.f32 %v4130_v9, %v4160_v2  ;;  %v4409_v38 = vsub.f32 %v24979_v25, %v29463_v47  ;;  %v29458_v9 = vand.u32 4294901760, %v25014_v24  ;;  %29762 = vst [vmem:[#allocation50_spill] sm:$0xff] %v25040_v49 }
 0x404   :  { %17094 = vmatmul.mubr.f32.gmra.mrb[4].mxu1 %v24606_v63  ;;  %v24899_v63 = vld [vmem:[#allocation8 + $0x20] sm:$0xff]  ;;  %v4396_v37 = vand.u32 4294901760, %v4395_v60 }
 0x405   :  { %17096 = vmatprep.mubr.f32.mxu1 %v24644_v16  ;;  %v4163_v16 = vand.u32 4294901760, %v24899_v63  ;;  %29755 = vst [vmem:[#allocation43_spill] sm:$0xff] %v24981_v31  ;;  %v29462_v46 = vand.u32 4294901760, %v24981_v31  ;;  %v4410_v48 = vand.u32 4294901760, %v4409_v38 }
 0x406   :  { %v24987_v44 = vpack.c.bf16 %v4403_v45, %v4396_v37 }
 0x407   :  { %v24993_v57 = vsub.f32 %v24899_v63, %v4163_v16  ;;  %v4416_v62 = vsub.f32 %v24981_v31, %v29462_v46 }
 0x408   :  { %17097 = vmatmul.mubr.f32.gmra.mrb[6].mxu1 %v24636_v53  ;;  %v24903_v53 = vpack.c.bf16 %v4154_v61, %v4151_v0  ;;  %v29459_v61 = vand.u32 4294901760, %v25011_v42 }
 0x409   :  { %17099 = vmatprep.mubr.f32.mxu1 %v24673_v3  ;;  %v24907_v3 = vpack.c.bf16 %v4160_v2, %v4157_v18  ;;  %29756 = vst [vmem:[#allocation44_spill] sm:$0xff] %v24993_v57  ;;  %v29461_v50 = vand.u32 4294901760, %v24993_v57  ;;  %v4417_v22 = vand.u32 4294901760, %v4416_v62  ;;  %v25028_v2 = vsub.f32 %v4135_v5, %v4175_v12 }
 0x40a   :  { %20154 = vmatprep.subr.bf16.mxu1 %v24903_v53  ;;  %v4437_v63 = vsub.f32 %v25011_v42, %v29459_v61 }
 0x40b   :  { %20156 = vmatpush3.bf16.msra.mxu1 %v24903_v53  ;;  %v4423_v51 = vsub.f32 %v24993_v57, %v29461_v50  ;;  %v25016_v29 = vpack.c.bf16 %v4417_v22, %v4410_v48  ;;  %29760 = vst [vmem:[#allocation48_spill] sm:$0xff] %v25028_v2  ;;  %v29457_v26 = vand.u32 4294901760, %v25028_v2 }
 0x40c   :  { %17100 = vmatmul.mubr.f32.gmra.mrb[8].mxu1 %v24666_v35  ;;  %20158 = vmatprep.subr.bf16.mxu1 %v24907_v3 }
 0x40d   :  { %17102 = vmatprep.mubr.f32.mxu1 %v24700_v52  ;;  %v24901_v52 = vld [vmem:[#allocation8 + $0x28] sm:$0xff]  ;;  %v4424_v59 = vand.u32 4294901760, %v4423_v51  ;;  %v4451_v60 = vsub.f32 %v25028_v2, %v29457_v26 }
 0x40e   :  { %v4166_v35 = vand.u32 4294901760, %v24901_v52 }
 0x40f   :  { %20160 = vmatpush3.bf16.msra.mxu1 %v24907_v3 }
 0x410   :  { %17103 = vmatmul.mubr.f32.gmra.mrb[10].mxu1 %v24696_v58  ;;  %v24916_v58 = vpack.c.bf16 %v4166_v35, %v4163_v16  ;;  %v24996_v20 = vsub.f32 %v24901_v52, %v4166_v35  ;;  %v4444_v52 = vsub.f32 %v25014_v24, %v29458_v9  ;;  %v4438_v35 = vand.u32 4294901760, %v4437_v63  ;;  %v25145_v9 = vld [vmem:[%s23492_s24] ss:$0 sm:$0xff]  ;;  %s29898_s24 = sld [smem:[#allocation34_spill]] }
 0x411   :  { %17105 = vmatprep.mubr.f32.mxu1 %v24724_v13  ;;  %v4136_v13 = vld [vmem:[#allocation8 + $0x48] sm:$0xff] }
 0x412   :  { %20162 = vmatprep.subr.bf16.mxu1 %v24916_v58  ;;  %v4178_v1 = vand.u32 4294901760, %v4136_v13  ;;  %29757 = vst [vmem:[#allocation45_spill] sm:$0xff] %v24996_v20  ;;  %v29460_v11 = vand.u32 4294901760, %v24996_v20  ;;  %v4445_v28 = vand.u32 4294901760, %v4444_v52 }
 0x413   :  { %20164 = vmatpush3.bf16.msra.mxu1 %v24916_v58 }
 0x414   :  { %17106 = vmatmul.mubr.f32.gmra.mrb[12].mxu1 %v24720_v32  ;;  %v24922_v32 = vpack.c.bf16 %v4172_v54, %v4169_v36  ;;  %v4430_v21 = vsub.f32 %v24996_v20, %v29460_v11  ;;  %v25030_v16 = vsub.f32 %v4136_v13, %v4178_v1  ;;  %v25034_v54 = vpack.c.bf16 %v4445_v28, %v4438_v35 }
 0x415   :  { %17108 = vmatprep.mubr.f32.mxu1 %v24747_v17  ;;  %v24931_v17 = vld [vmem:[#allocation8 + $0x58] sm:$0xff] }
 0x416   :  { %20166 = vmatprep.subr.bf16.mxu1 %v24922_v32  ;;  %v4184_v56 = vand.u32 4294901760, %v24931_v17  ;;  %v4431_v0 = vand.u32 4294901760, %v4430_v21  ;;  %29761 = vst [vmem:[#allocation49_spill] sm:$0xff] %v25030_v16  ;;  %v29456_v36 = vand.u32 4294901760, %v25030_v16 }
 0x417   :  { %20168 = vmatpush3.bf16.msra.mxu1 %v24922_v32 }
 0x418   :  { %17109 = vmatmul.mubr.f32.gmra.mrb[14].mxu1 %v24743_v41  ;;  %v24927_v41 = vpack.c.bf16 %v4178_v1, %v4175_v12  ;;  %v24937_v39 = vpack.c.bf16 %v4184_v56, %v4181_v43  ;;  %v25020_v18 = vpack.c.bf16 %v4431_v0, %v4424_v59  ;;  %v25043_v5 = vsub.f32 %v24931_v17, %v4184_v56 }
 0x419   :  { %v4458_v13 = vsub.f32 %v25030_v16, %v29456_v36  ;;  %v4452_v12 = vand.u32 4294901760, %v4451_v60  ;;  %v29455_v1 = vand.u32 4294901760, %v25040_v49  ;;  %v25059_v17 = vsub.f32 %v24939_v40, %v4187_v19 }
 0x41a   :  { %20170 = vmatprep.subr.bf16.mxu1 %v24927_v41  ;;  %29763 = vst [vmem:[#allocation51_spill] sm:$0xff] %v25043_v5  ;;  %v29454_v37 = vand.u32 4294901760, %v25043_v5  ;;  %v25064_v43 = vsub.f32 %v24941_v33, %v4190_v55  ;;  %v25081_v33 = vsub.f32 %v24957_v7, %v4193_v4  ;;  %v25086_v55 = vsub.f32 %v24959_v30, %v4196_v34 }
 0x41b   :  { %20172 = vmatpush3.bf16.msra.mxu1 %v24927_v41  ;;  %v4459_v45 = vand.u32 4294901760, %v4458_v13  ;;  %v4465_v38 = vsub.f32 %v25040_v49, %v29455_v1  ;;  %29764 = vst [vmem:[#allocation52_spill] sm:$0xff] %v25059_v17  ;;  %v29453_v22 = vand.u32 4294901760, %v25059_v17  ;;  %v25100_v30 = vpack.c.bf16 %v24955_v15, %v24953_v6 }
 0x41c   :  { %20174 = vmatprep.subr.bf16.mxu1 %v24937_v39  ;;  %v4472_v27 = vsub.f32 %v25043_v5, %v29454_v37  ;;  %29765 = vst [vmem:[#allocation53_spill] sm:$0xff] %v25064_v43  ;;  %v29452_v51 = vand.u32 4294901760, %v25064_v43  ;;  %29766 = vst [vmem:[#allocation54_spill] sm:$0xff] %v25081_v33  ;;  %v29451_v63 = vand.u32 4294901760, %v25081_v33  ;;  %v29450_v52 = vand.u32 4294901760, %v25086_v55 }
 0x41d   :  { %v25066_v56 = vpack.c.bf16 %v4459_v45, %v4452_v12  ;;  %v4466_v62 = vand.u32 4294901760, %v4465_v38  ;;  %v4479_v40 = vsub.f32 %v25059_v17, %v29453_v22  ;;  %29767 = vst [vmem:[#allocation55_spill] sm:$0xff] %v25086_v55  ;;  %v25106_v13 = vpack.c.bf16 %v24981_v31, %v24979_v25 }
 0x41e   :  { %v4473_v48 = vand.u32 4294901760, %v4472_v27  ;;  %v4486_v19 = vsub.f32 %v25064_v43, %v29452_v51  ;;  %v4493_v28 = vsub.f32 %v25081_v33, %v29451_v63  ;;  %v4500_v7 = vsub.f32 %v25086_v55, %v29450_v52 }
 0x41f   :  { %20176 = vmatpush3.bf16.msra.mxu1 %v24937_v39  ;;  %v4480_v59 = vand.u32 4294901760, %v4479_v40  ;;  %v25110_v12 = vpack.c.bf16 %v24996_v20, %v24993_v57  ;;  %v25114_v45 = vpack.c.bf16 %v25014_v24, %v25011_v42  ;;  %v25118_v38 = vpack.c.bf16 %v25030_v16, %v25028_v2 }
 0x420   :  { %20178 = vmatprep.subr.bf16.mxu1 %v24951_v14  ;;  %v25070_v21 = vpack.c.bf16 %v4473_v48, %v4466_v62  ;;  %v4487_v0 = vand.u32 4294901760, %v4486_v19  ;;  %v4494_v4 = vand.u32 4294901760, %v4493_v28  ;;  %v4501_v60 = vand.u32 4294901760, %v4500_v7 }
 0x421   :  { %v25122_v27 = vpack.c.bf16 %v25043_v5, %v25040_v49  ;;  %v25126_v48 = vpack.c.bf16 %v25064_v43, %v25059_v17 }
 0x422   :  { %v25090_v35 = vpack.c.bf16 %v4487_v0, %v4480_v59  ;;  %v25102_v34 = vpack.c.bf16 %v4501_v60, %v4494_v4  ;;  %v25130_v59 = vpack.c.bf16 %v25086_v55, %v25081_v33 }
 0x423   :  { %20180 = vmatpush3.bf16.msra.mxu1 %v24951_v14 }
 0x424   :  { %20182 = vmatprep.subr.bf16.mxu1 %v24971_v23 }
 0x427   :  { %20184 = vmatpush3.bf16.msra.mxu1 %v24971_v23 }
 0x428   :  { %20186 = vmatprep.subr.bf16.mxu1 %v24987_v44 }
 0x495   :  { %v16865_v62 = vpop.f32.mrb[16].mxu0 }
 0x496   :  { %v3213_v40 = vpop.f32.mrb[17].mxu0  ;;  %v22473_v61 = vadd.f32 %v16865_v62, %v25145_v9 }
 0x497   :  { %v22475_v11 = vadd.f32 %v25145_v9, %v3213_v40 }
 0x499   :  { %v16868_v19 = vpop.f32.mrb[18].mxu0 }
 0x49a   :  { %v3225_v0 = vpop.f32.mrb[19].mxu0  ;;  %v22477_v10 = vadd.f32 %v16868_v19, %v25145_v9 }
 0x49b   :  { %v22479_v33 = vadd.f32 %v25145_v9, %v3225_v0 }
 0x49d   :  { %v16871_v28 = vpop.f32.mrb[20].mxu0 }
 0x49e   :  { %v3237_v7 = vpop.f32.mrb[21].mxu0  ;;  %v22481_v40 = vadd.f32 %v16871_v28, %v25145_v9 }
 0x4a1   :  { %v16874_v4 = vpop.f32.mrb[22].mxu0 }
 0x4a2   :  { %v3249_v60 = vpop.f32.mrb[23].mxu0 }
 0x4a5   :  { %v16877_v52 = vpop.f32.mrb[24].mxu0 }
 0x4a6   :  { %v3261_v63 = vpop.f32.mrb[25].mxu0 }
 0x4a9   :  { %v25132_v51 = vpop.f32.mrb[26].mxu0 }
 0x4aa   :  { %v25134_v22 = vpop.f32.mrb[27].mxu0 }
 0x4ad   :  { %v25136_v37 = vpop.f32.mrb[28].mxu0 }
 0x4ae   :  { %v25138_v1 = vpop.f32.mrb[29].mxu0 }
 0x4b1   :  { %v25140_v36 = vpop.f32.mrb[30].mxu0 }
 0x4b2   :  { %v25142_v26 = vpop.f32.mrb[31].mxu0 }
 0x4cf   :  { %v17089_v50 = vpop.f32.mrb[0].mxu1 }
 0x4d0   :  { %v22474_v46 = vadd.f32 %v22473_v61, %v17089_v50  ;;  %v4017_v47 = vpop.f32.mrb[1].mxu1 }
 0x4d1   :  { %v22476_v8 = vadd.f32 %v22475_v11, %v4017_v47  ;;  %v22483_v11 = vadd.f32 %v25145_v9, %v3237_v7 }
 0x4d2   :  { %v4112_v55 = vmax.f32 %v22474_v46, 0.0 }
 0x4d3   :  { %v4111_v43 = vmax.f32 %v22476_v8, 0.0  ;;  %v17092_v17 = vpop.f32.mrb[2].mxu1 }
 0x4d4   :  { %v25151_v5 = vand.u32 4294901760, %v4112_v55  ;;  %v22478_v49 = vadd.f32 %v22477_v10, %v17092_v17  ;;  %v4029_v16 = vpop.f32.mrb[3].mxu1 }
 0x4d5   :  { %v25153_v2 = vand.u32 4294901760, %v4111_v43  ;;  %v22480_v62 = vadd.f32 %v22479_v33, %v4029_v16 }
 0x4d6   :  { %v25157_v50 = vsub.f32 %v4112_v55, %v25151_v5  ;;  %v4114_v47 = vmax.f32 %v22478_v49, 0.0  ;;  %v22485_v49 = vadd.f32 %v16874_v4, %v25145_v9  ;;  %v22489_v4 = vadd.f32 %v16877_v52, %v25145_v9 }
 0x4d7   :  { %v25161_v46 = vsub.f32 %v4111_v43, %v25153_v2  ;;  %v4113_v8 = vmax.f32 %v22480_v62, 0.0  ;;  %v17095_v61 = vpop.f32.mrb[4].mxu1  ;;  %v22487_v62 = vadd.f32 %v25145_v9, %v3249_v60 }
 0x4d8   :  { %v29475_v19 = vand.u32 4294901760, %v25157_v50  ;;  %v25164_v10 = vand.u32 4294901760, %v4114_v47  ;;  %v22482_v17 = vadd.f32 %v22481_v40, %v17095_v61  ;;  %v4041_v0 = vpop.f32.mrb[5].mxu1 }
 0x4d9   :  { %v25166_v16 = vand.u32 4294901760, %v4113_v8  ;;  %v22484_v33 = vadd.f32 %v22483_v11, %v4041_v0  ;;  %v29480_v55 = vand.u32 4294901760, %v25161_v46 }
 0x4da   :  { %v4244_v43 = vsub.f32 %v25157_v50, %v29475_v19  ;;  %v25174_v28 = vsub.f32 %v4114_v47, %v25164_v10  ;;  %v4116_v7 = vmax.f32 %v22482_v17, 0.0 }
 0x4db   :  { %v25178_v40 = vsub.f32 %v4113_v8, %v25166_v16  ;;  %v4115_v61 = vmax.f32 %v22484_v33, 0.0  ;;  %v17098_v24 = vpop.f32.mrb[6].mxu1  ;;  %v4234_v11 = vsub.f32 %v25161_v46, %v29480_v55 }
 0x4dc   :  { %v25184_v0 = vand.u32 4294901760, %v4116_v7  ;;  %v22486_v19 = vadd.f32 %v22485_v49, %v17098_v24  ;;  %v4053_v42 = vpop.f32.mrb[7].mxu1  ;;  %v29482_v47 = vand.u32 4294901760, %v25174_v28  ;;  %v4245_v33 = vand.u32 4294901760, %v4244_v43 }
 0x4dd   :  { %v25187_v17 = vand.u32 4294901760, %v4115_v61  ;;  %v22488_v60 = vadd.f32 %v22487_v62, %v4053_v42  ;;  %v4235_v20 = vand.u32 4294901760, %v4234_v11  ;;  %v29483_v8 = vand.u32 4294901760, %v25178_v40 }
 0x4de   :  { %v25191_v57 = vsub.f32 %v4116_v7, %v25184_v0  ;;  %v4118_v31 = vmax.f32 %v22486_v19, 0.0  ;;  %v4264_v52 = vsub.f32 %v25174_v28, %v29482_v47  ;;  %v22491_v24 = vadd.f32 %v25145_v9, %v3261_v63 }
 0x4df   :  { %v25198_v49 = vsub.f32 %v4115_v61, %v25187_v17  ;;  %v4117_v55 = vmax.f32 %v22488_v60, 0.0  ;;  %v17101_v25 = vpop.f32.mrb[8].mxu1  ;;  %17143 = vmatprep.mubr.f32.mxu1 %v4235_v20  ;;  %v4254_v42 = vsub.f32 %v25178_v40, %v29483_v8  ;;  %v22493_v43 = vadd.f32 %v25132_v51, %v25145_v9 }
 0x4e0   :  { %v25205_v19 = vand.u32 4294901760, %v4118_v31  ;;  %v22490_v7 = vadd.f32 %v22489_v4, %v17101_v25  ;;  %v4065_v62 = vpop.f32.mrb[9].mxu1  ;;  %17144 = vmatmul.mubr.f32.vlgmr.msra.gmra.mrb[16].mxu1 %v4245_v33  ;;  %v29484_v63 = vand.u32 4294901760, %v25191_v57  ;;  %v4265_v51 = vand.u32 4294901760, %v4264_v52 }
 0x4e1   :  { %v25208_v11 = vand.u32 4294901760, %v4117_v55  ;;  %v22492_v61 = vadd.f32 %v22491_v24, %v4065_v62  ;;  %20188 = vmatpush3.bf16.msra.mxu1 %v24987_v44  ;;  %v4255_v20 = vand.u32 4294901760, %v4254_v42  ;;  %v29485_v60 = vand.u32 4294901760, %v25198_v49 }
 0x4e2   :  { %v25213_v47 = vsub.f32 %v4118_v31, %v25205_v19  ;;  %v4120_v8 = vmax.f32 %v22490_v7, 0.0  ;;  %20190 = vmatprep.subr.bf16.mxu1 %v25016_v29  ;;  %v4284_v25 = vsub.f32 %v25191_v57, %v29484_v63  ;;  %v22495_v4 = vadd.f32 %v25145_v9, %v25134_v22 }
 0x4e3   :  { %v25222_v33 = vsub.f32 %v4117_v55, %v25208_v11  ;;  %v4119_v44 = vmax.f32 %v22492_v61, 0.0  ;;  %v17104_v24 = vpop.f32.mrb[10].mxu1  ;;  %17146 = vmatprep.mubr.f32.mxu1 %v4255_v20  ;;  %v4274_v31 = vsub.f32 %v25198_v49, %v29485_v60  ;;  %v22497_v52 = vadd.f32 %v25136_v37, %v25145_v9 }
 0x4e4   :  { %v25229_v42 = vand.u32 4294901760, %v4120_v8  ;;  %v22494_v7 = vadd.f32 %v22493_v43, %v17104_v24  ;;  %v4077_v62 = vpop.f32.mrb[11].mxu1  ;;  %17147 = vmatmul.mubr.f32.gmra.mrb[18].mxu1 %v4265_v51  ;;  %v29487_v22 = vand.u32 4294901760, %v25213_v47  ;;  %v4285_v37 = vand.u32 4294901760, %v4284_v25 }
 0x4e5   :  { %v25232_v63 = vand.u32 4294901760, %v4119_v44  ;;  %v22496_v55 = vadd.f32 %v22495_v4, %v4077_v62  ;;  %20192 = vmatpush3.bf16.msra.mxu1 %v25016_v29  ;;  %v4275_v61 = vand.u32 4294901760, %v4274_v31  ;;  %v29488_v20 = vand.u32 4294901760, %v25222_v33 }
 0x4e6   :  { %v25237_v60 = vsub.f32 %v4120_v8, %v25229_v42  ;;  %v4122_v15 = vmax.f32 %v22494_v7, 0.0  ;;  %20194 = vmatprep.subr.bf16.mxu1 %v25020_v18  ;;  %v4304_v43 = vsub.f32 %v25213_v47, %v29487_v22  ;;  %v22499_v51 = vadd.f32 %v25145_v9, %v25138_v1 }
 0x4e7   :  { %v25246_v4 = vsub.f32 %v4119_v44, %v25232_v63  ;;  %v4121_v29 = vmax.f32 %v22496_v55, 0.0  ;;  %v17107_v24 = vpop.f32.mrb[12].mxu1  ;;  %17149 = vmatprep.mubr.f32.mxu1 %v4275_v61  ;;  %v4294_v8 = vsub.f32 %v25222_v33, %v29488_v20  ;;  %v22501_v25 = vadd.f32 %v25140_v36, %v25145_v9 }
 0x4e8   :  { %v25253_v31 = vand.u32 4294901760, %v4122_v15  ;;  %v22498_v7 = vadd.f32 %v22497_v52, %v17107_v24  ;;  %v4089_v62 = vpop.f32.mrb[13].mxu1  ;;  %17150 = vmatmul.mubr.f32.gmra.mrb[20].mxu1 %v4285_v37  ;;  %v29490_v1 = vand.u32 4294901760, %v25237_v60  ;;  %v4305_v36 = vand.u32 4294901760, %v4304_v43 }
 0x4e9   :  { %v25256_v22 = vand.u32 4294901760, %v4121_v29  ;;  %v22500_v44 = vadd.f32 %v22499_v51, %v4089_v62  ;;  %20196 = vmatpush3.bf16.msra.mxu1 %v25020_v18  ;;  %v4295_v55 = vand.u32 4294901760, %v4294_v8  ;;  %v29491_v61 = vand.u32 4294901760, %v25246_v4 }
 0x4ea   :  { %v25261_v20 = vsub.f32 %v4122_v15, %v25253_v31  ;;  %v4124_v6 = vmax.f32 %v22498_v7, 0.0  ;;  %20198 = vmatprep.subr.bf16.mxu1 %v25034_v54  ;;  %v4324_v52 = vsub.f32 %v25237_v60, %v29490_v1  ;;  %v22503_v37 = vadd.f32 %v25145_v9, %v25142_v26 }
 0x4eb   :  { %v25270_v51 = vsub.f32 %v4121_v29, %v25256_v22  ;;  %v4123_v18 = vmax.f32 %v22500_v44, 0.0  ;;  %v17110_v24 = vpop.f32.mrb[14].mxu1  ;;  %17152 = vmatprep.mubr.f32.mxu1 %v4295_v55  ;;  %v4314_v15 = vsub.f32 %v25246_v4, %v29491_v61 }
 0x4ec   :  { %v25275_v8 = vand.u32 4294901760, %v4124_v6  ;;  %v22502_v43 = vadd.f32 %v22501_v25, %v17110_v24  ;;  %v4101_v7 = vpop.f32.mrb[15].mxu1  ;;  %17153 = vmatmul.mubr.f32.gmra.mrb[22].mxu1 %v4305_v36  ;;  %v29504_v62 = vand.u32 4294901760, %v25261_v20  ;;  %v4325_v61 = vand.u32 4294901760, %v4324_v52 }
 0x4ed   :  { %v25278_v1 = vand.u32 4294901760, %v4123_v18  ;;  %v22504_v9 = vadd.f32 %v22503_v37, %v4101_v7  ;;  %20200 = vmatpush3.bf16.msra.mxu1 %v25034_v54  ;;  %v4315_v26 = vand.u32 4294901760, %v4314_v15  ;;  %v29505_v29 = vand.u32 4294901760, %v25270_v51 }
 0x4ee   :  { %v25283_v44 = vsub.f32 %v4124_v6, %v25275_v8  ;;  %v4126_v55 = vmax.f32 %v22502_v43, 0.0  ;;  %20202 = vmatprep.subr.bf16.mxu1 %v25066_v56  ;;  %v4344_v25 = vsub.f32 %v25261_v20, %v29504_v62 }
 0x4ef   :  { %v25290_v36 = vsub.f32 %v4123_v18, %v25278_v1  ;;  %v4125_v37 = vmax.f32 %v22504_v9, 0.0  ;;  %17155 = vmatprep.mubr.f32.mxu1 %v4315_v26  ;;  %v4334_v54 = vsub.f32 %v25270_v51, %v29505_v29  ;;  %v29778_v29 = vand.u32 4294901760, %v25157_v50 }
 0x4f0   :  { %v25295_v24 = vand.u32 4294901760, %v4126_v55  ;;  %17156 = vmatmul.mubr.f32.gmra.mrb[24].mxu1 %v4325_v61  ;;  %v29502_v6 = vand.u32 4294901760, %v25283_v44  ;;  %v4345_v7 = vand.u32 4294901760, %v4344_v25 }
 0x4f1   :  { %v25298_v15 = vand.u32 4294901760, %v4125_v37  ;;  %20204 = vmatpush3.bf16.msra.mxu1 %v25066_v56  ;;  %v4335_v52 = vand.u32 4294901760, %v4334_v54  ;;  %v29503_v43 = vand.u32 4294901760, %v25290_v36 }
 0x4f2   :  { %v25303_v18 = vsub.f32 %v4126_v55, %v25295_v24  ;;  %20206 = vmatprep.subr.bf16.mxu1 %v25070_v21  ;;  %v4364_v9 = vsub.f32 %v25283_v44, %v29502_v6  ;;  %v29776_v6 = vld [vmem:[#allocation43_spill] sm:$0xff] }
 0x4f3   :  { %v25310_v61 = vsub.f32 %v4125_v37, %v25298_v15  ;;  %17158 = vmatprep.mubr.f32.mxu1 %v4335_v52  ;;  %v4354_v56 = vsub.f32 %v25290_v36, %v29503_v43  ;;  %v29777_v43 = vand.u32 4294901760, %v29776_v6  ;;  %v29785_v6 = vand.u32 4294901760, %v25198_v49 }
 0x4f4   :  { %17159 = vmatmul.mubr.f32.gmra.mrb[26].mxu1 %v4345_v7  ;;  %v29500_v26 = vand.u32 4294901760, %v25303_v18  ;;  %v4365_v54 = vand.u32 4294901760, %v4364_v9 }
 0x4f5   :  { %20208 = vmatpush3.bf16.msra.mxu1 %v25070_v21  ;;  %v4355_v55 = vand.u32 4294901760, %v4354_v56  ;;  %v29501_v25 = vand.u32 4294901760, %v25310_v61 }
 0x4f6   :  { %20210 = vmatprep.subr.bf16.mxu1 %v25090_v35  ;;  %v4384_v37 = vsub.f32 %v25303_v18, %v29500_v26  ;;  %v29774_v26 = vld [vmem:[#allocation41_spill] sm:$0xff] }
 0x4f7   :  { %17161 = vmatprep.mubr.f32.mxu1 %v4355_v55  ;;  %v4374_v52 = vsub.f32 %v25310_v61, %v29501_v25  ;;  %v29775_v25 = vand.u32 4294901760, %v29774_v26 }
 0x4f8   :  { %17162 = vmatmul.mubr.f32.gmra.mrb[28].mxu1 %v4365_v54  ;;  %v4385_v21 = vand.u32 4294901760, %v4384_v37  ;;  %v25395_v37 = vld [vmem:[#allocation9 + $0x30] sm:$0xff] }
 0x4f9   :  { %20212 = vmatpush3.bf16.msra.mxu1 %v25090_v35  ;;  %v4375_v7 = vand.u32 4294901760, %v4374_v52  ;;  %v25359_v35 = vld [vmem:[#allocation9] sm:$0xff]  ;;  %v25397_v52 = vld [vmem:[#allocation9 + $0x38] sm:$0xff]  ;;  %v20285_v62 = vpack.c.bf16 %v29777_v43, %v29775_v25  ;;  %v29788_v43 = vld [vmem:[#allocation47_spill] sm:$0xff]  ;;  %v29790_v25 = vand.u32 4294901760, %v25191_v57 }
 0x4fa   :  { %20214 = vmatprep.subr.bf16.mxu1 %v25102_v34  ;;  %v29789_v26 = vand.u32 4294901760, %v29788_v43  ;;  %v29806_v43 = vld [vmem:[#allocation53_spill] sm:$0xff] }
 0x4fb   :  { %17164 = vmatprep.mubr.f32.mxu1 %v4375_v7 }
 0x4fc   :  { %17165 = vmatmul.mubr.f32.gmra.mrb[30].mxu1 %v4385_v21  ;;  %v29495_v21 = vand.u32 4294901760, %v25395_v37 }
 0x4fd   :  { %20216 = vmatpush3.bf16.msra.mxu1 %v25102_v34  ;;  %17199 = vmatprep.mubr.f32.mxu1 %v25153_v2  ;;  %v25363_v34 = vld [vmem:[#allocation9 + $0x10] sm:$0xff] }
 0x4fe   :  { %20218 = vmatprep.subr.bf16.mxu1 %v25100_v30 }
 0x500   :  { %17200 = vmatmul.mubr.f32.vlgmr.msra.gmra.mrb[16].mxu1 %v25151_v5 }
 0x501   :  { %20220 = vmatpush3.bf16.msra.mxu1 %v25100_v30  ;;  %17202 = vmatprep.mubr.f32.mxu1 %v25166_v16  ;;  %v25361_v30 = vld [vmem:[#allocation9 + $0x8] sm:$0xff] }
 0x502   :  { %20222 = vmatprep.subr.bf16.mxu1 %v25106_v13 }
 0x504   :  { %17203 = vmatmul.mubr.f32.gmra.mrb[18].mxu1 %v25164_v10 }
 0x505   :  { %20224 = vmatpush3.bf16.msra.mxu1 %v25106_v13  ;;  %17205 = vmatprep.mubr.f32.mxu1 %v25187_v17  ;;  %v29499_v13 = vand.u32 4294901760, %v25359_v35 }
 0x506   :  { %20226 = vmatprep.subr.bf16.mxu1 %v25110_v12 }
 0x508   :  { %17206 = vmatmul.mubr.f32.gmra.mrb[20].mxu1 %v25184_v0 }
 0x509   :  { %20228 = vmatpush3.bf16.msra.mxu1 %v25110_v12  ;;  %17208 = vmatprep.mubr.f32.mxu1 %v25208_v11  ;;  %v29498_v12 = vand.u32 4294901760, %v25361_v30 }
 0x50a   :  { %20230 = vmatprep.subr.bf16.mxu1 %v25114_v45 }
 0x50c   :  { %17209 = vmatmul.mubr.f32.gmra.mrb[22].mxu1 %v25205_v19 }
 0x50d   :  { %20232 = vmatpush3.bf16.msra.mxu1 %v25114_v45  ;;  %17211 = vmatprep.mubr.f32.mxu1 %v25232_v63  ;;  %v25369_v45 = vld [vmem:[#allocation9 + $0x18] sm:$0xff] }
 0x50e   :  { %20234 = vmatprep.subr.bf16.mxu1 %v25118_v38  ;;  %v29492_v9 = vand.u32 4294901760, %v25369_v45 }
 0x510   :  { %17212 = vmatmul.mubr.f32.gmra.mrb[24].mxu1 %v25229_v42 }
 0x511   :  { %20236 = vmatpush3.bf16.msra.mxu1 %v25118_v38  ;;  %17214 = vmatprep.mubr.f32.mxu1 %v25256_v22  ;;  %v29497_v38 = vand.u32 4294901760, %v25363_v34 }
 0x512   :  { %20238 = vmatprep.subr.bf16.mxu1 %v25122_v27 }
 0x513   :  { %v25389_v56 = vpack.c.bf16 %v29492_v9, %v29497_v38  ;;  %v29494_v9 = vand.u32 4294901760, %v25397_v52 }
 0x514   :  { %17215 = vmatmul.mubr.f32.gmra.mrb[26].mxu1 %v25253_v31 }
 0x515   :  { %20240 = vmatpush3.bf16.msra.mxu1 %v25122_v27  ;;  %17217 = vmatprep.mubr.f32.mxu1 %v25278_v1  ;;  %v25372_v27 = vld [vmem:[#allocation9 + $0x20] sm:$0xff] }
 0x516   :  { %20242 = vmatprep.subr.bf16.mxu1 %v25126_v48  ;;  %v29496_v55 = vand.u32 4294901760, %v25372_v27 }
 0x518   :  { %17218 = vmatmul.mubr.f32.gmra.mrb[28].mxu1 %v25275_v8 }
 0x519   :  { %20244 = vmatpush3.bf16.msra.mxu1 %v25126_v48  ;;  %17220 = vmatprep.mubr.f32.mxu1 %v25298_v15  ;;  %v25374_v48 = vld [vmem:[#allocation9 + $0x28] sm:$0xff] }
 0x51a   :  { %20246 = vmatprep.subr.bf16.mxu1 %v25130_v59  ;;  %v29493_v54 = vand.u32 4294901760, %v25374_v48 }
 0x51c   :  { %17221 = vmatmul.mubr.f32.gmra.mrb[30].mxu1 %v25295_v24  ;;  %v25408_v7 = vpack.c.bf16 %v29493_v54, %v29496_v55  ;;  %v25422_v54 = vpack.c.bf16 %v29494_v9, %v29495_v21  ;;  %v29769_v9 = vld [vmem:[#allocation42_spill] sm:$0xff]  ;;  %v29771_v55 = vld [vmem:[#allocation40_spill] sm:$0xff] }
 0x51d   :  { %20248 = vmatpush3.bf16.msra.mxu1 %v25130_v59  ;;  %17255 = vmatprep.mubr.f32.mxu1 %v25161_v46  ;;  %v25382_v59 = vpack.c.bf16 %v29498_v12, %v29499_v13  ;;  %v29770_v21 = vand.u32 4294901760, %v29769_v9  ;;  %v29772_v38 = vand.u32 4294901760, %v29771_v55  ;;  %v29773_v13 = vand.u32 4294901760, %v25161_v46 }
 0x51e   :  { %20250 = vmatprep.subr.bf16.mxu1 %v24903_v53  ;;  %29768 = vst [vmem:[#allocation56_spill] sm:$0xff] %v25422_v54  ;;  %v29779_v9 = vand.u32 4294901760, %v25178_v40 }
 0x51f   :  { %20346 = vmatprep.subr.bf16.mxu0 %v25382_v59  ;;  %v20281_v12 = vpack.c.bf16 %v29772_v38, %v29770_v21  ;;  %v29780_v38 = vld [vmem:[#allocation44_spill] sm:$0xff]  ;;  %v29782_v21 = vld [vmem:[#allocation45_spill] sm:$0xff] }
 0x520   :  { %17256 = vmatmul.mubr.f32.vlgmr.msra.gmra.mrb[16].mxu1 %v25157_v50  ;;  %20348 = vmatpush3.bf16.msra.mxu0 %v25382_v59  ;;  %v29781_v55 = vand.u32 4294901760, %v29780_v38  ;;  %v29786_v50 = vld [vmem:[#allocation46_spill] sm:$0xff]  ;;  %v29796_v38 = vand.u32 4294901760, %v25213_v47 }
 0x521   :  { %20252 = vmatpush3.bf16.msra.mxu1 %v24903_v53  ;;  %17258 = vmatprep.mubr.f32.mxu1 %v25178_v40 }
 0x522   :  { %20254 = vmatprep.subr.bf16.mxu1 %v24907_v3  ;;  %20350 = vmatprep.subr.bf16.mxu0 %v25389_v56 }
 0x524   :  { %17259 = vmatmul.mubr.f32.gmra.mrb[18].mxu1 %v25174_v28  ;;  %20352 = vmatpush3.bf16.msra.mxu0 %v25389_v56 }
 0x525   :  { %20256 = vmatpush3.bf16.msra.mxu1 %v24907_v3  ;;  %17261 = vmatprep.mubr.f32.mxu1 %v25198_v49 }
 0x526   :  { %20258 = vmatprep.subr.bf16.mxu1 %v24916_v58  ;;  %20354 = vmatprep.subr.bf16.mxu0 %v25408_v7 }
 0x528   :  { %17262 = vmatmul.mubr.f32.gmra.mrb[20].mxu1 %v25191_v57  ;;  %20356 = vmatpush3.bf16.msra.mxu0 %v25408_v7  ;;  %v29798_v57 = vld [vmem:[#allocation50_spill] sm:$0xff] }
 0x529   :  { %20260 = vmatpush3.bf16.msra.mxu1 %v24916_v58  ;;  %17264 = vmatprep.mubr.f32.mxu1 %v25222_v33 }
 0x52a   :  { %20262 = vmatprep.subr.bf16.mxu1 %v24922_v32  ;;  %20358 = vmatprep.subr.bf16.mxu0 %v25422_v54 }
 0x52c   :  { %17265 = vmatmul.mubr.f32.gmra.mrb[22].mxu1 %v25213_v47  ;;  %20360 = vmatpush3.bf16.msra.mxu0 %v25422_v54  ;;  %v29783_v54 = vand.u32 4294901760, %v29782_v21  ;;  %v29799_v21 = vand.u32 4294901760, %v29798_v57  ;;  %v29804_v47 = vld [vmem:[#allocation52_spill] sm:$0xff] }
 0x52d   :  { %20264 = vmatpush3.bf16.msra.mxu1 %v24922_v32  ;;  %17267 = vmatprep.mubr.f32.mxu1 %v25246_v4 }
 0x52e   :  { %20266 = vmatprep.subr.bf16.mxu1 %v24927_v41  ;;  %v20289_v46 = vpack.c.bf16 %v29783_v54, %v29781_v55  ;;  %v29797_v55 = vand.u32 4294901760, %v25246_v4 }
 0x530   :  { %17268 = vmatmul.mubr.f32.gmra.mrb[24].mxu1 %v25237_v60 }
 0x531   :  { %20268 = vmatpush3.bf16.msra.mxu1 %v24927_v41  ;;  %17270 = vmatprep.mubr.f32.mxu1 %v25270_v51 }
 0x532   :  { %20270 = vmatprep.subr.bf16.mxu1 %v24937_v39 }
 0x534   :  { %17271 = vmatmul.mubr.f32.gmra.mrb[26].mxu1 %v25261_v20 }
 0x535   :  { %20272 = vmatpush3.bf16.msra.mxu1 %v24937_v39  ;;  %17273 = vmatprep.mubr.f32.mxu1 %v25290_v36 }
 0x536   :  { %20274 = vmatprep.subr.bf16.mxu1 %v24951_v14 }
 0x538   :  { %17274 = vmatmul.mubr.f32.gmra.mrb[28].mxu1 %v25283_v44 }
 0x539   :  { %20276 = vmatpush3.bf16.msra.mxu1 %v24951_v14  ;;  %17276 = vmatprep.mubr.f32.mxu1 %v25310_v61 }
 0x53a   :  { %20278 = vmatprep.subr.bf16.mxu1 %v24971_v23 }
 0x53c   :  { %17277 = vmatmul.mubr.f32.gmra.mrb[30].mxu1 %v25303_v18 }
 0x53d   :  { %20280 = vmatpush3.bf16.msra.mxu1 %v24971_v23  ;;  %17311 = vmatprep.mubr.f32.mxu1 %v29773_v13  ;;  %v29784_v13 = vand.u32 4294901760, %v25174_v28  ;;  %v29792_v28 = vld [vmem:[#allocation48_spill] sm:$0xff] }
 0x53e   :  { %20282 = vmatprep.subr.bf16.mxu1 %v20281_v12  ;;  %v29793_v54 = vand.u32 4294901760, %v29792_v28  ;;  %v29812_v28 = vld [vmem:[#allocation55_spill] sm:$0xff] }
 0x540   :  { %17312 = vmatmul.mubr.f32.vlgmr.msra.gmra.mrb[16].mxu1 %v29778_v29  ;;  %v29787_v29 = vand.u32 4294901760, %v29786_v50  ;;  %v29803_v50 = vand.u32 4294901760, %v25270_v51 }
 0x541   :  { %20284 = vmatpush3.bf16.msra.mxu1 %v20281_v12  ;;  %17314 = vmatprep.mubr.f32.mxu1 %v29779_v9  ;;  %v29791_v12 = vand.u32 4294901760, %v25222_v33 }
 0x542   :  { %20286 = vmatprep.subr.bf16.mxu1 %v20285_v62  ;;  %v20293_v40 = vpack.c.bf16 %v29789_v26, %v29787_v29  ;;  %v29805_v29 = vand.u32 4294901760, %v29804_v47  ;;  %v29807_v26 = vand.u32 4294901760, %v29806_v43 }
 0x544   :  { %17315 = vmatmul.mubr.f32.gmra.mrb[18].mxu1 %v29784_v13  ;;  %v20305_v4 = vpack.c.bf16 %v29807_v26, %v29805_v29 }
 0x545   :  { %20288 = vmatpush3.bf16.msra.mxu1 %v20285_v62  ;;  %17317 = vmatprep.mubr.f32.mxu1 %v29785_v6  ;;  %v29794_v62 = vld [vmem:[#allocation49_spill] sm:$0xff]  ;;  %v29802_v6 = vand.u32 4294901760, %v25237_v60  ;;  %v29810_v60 = vld [vmem:[#allocation54_spill] sm:$0xff] }
 0x546   :  { %20290 = vmatprep.subr.bf16.mxu1 %v20289_v46  ;;  %v29795_v9 = vand.u32 4294901760, %v29794_v62  ;;  %v29814_v62 = vand.u32 4294901760, %v25283_v44 }
 0x548   :  { %17318 = vmatmul.mubr.f32.gmra.mrb[20].mxu1 %v29790_v25  ;;  %v20297_v49 = vpack.c.bf16 %v29795_v9, %v29793_v54  ;;  %v29809_v25 = vand.u32 4294901760, %v25290_v36  ;;  %v29813_v54 = vand.u32 4294901760, %v29812_v28  ;;  %v29815_v9 = vand.u32 4294901760, %v25310_v61 }
 0x549   :  { %20292 = vmatpush3.bf16.msra.mxu1 %v20289_v46  ;;  %17320 = vmatprep.mubr.f32.mxu1 %v29791_v12  ;;  %v29800_v46 = vld [vmem:[#allocation51_spill] sm:$0xff]  ;;  %v29811_v12 = vand.u32 4294901760, %v29810_v60 }
 0x54a   :  { %20294 = vmatprep.subr.bf16.mxu1 %v20293_v40  ;;  %v29801_v13 = vand.u32 4294901760, %v29800_v46 }
 0x54b   :  { %v20309_v51 = vpack.c.bf16 %v29813_v54, %v29811_v12 }
 0x54c   :  { %17321 = vmatmul.mubr.f32.gmra.mrb[22].mxu1 %v29796_v38  ;;  %v20301_v33 = vpack.c.bf16 %v29801_v13, %v29799_v21 }
 0x54d   :  { %20296 = vmatpush3.bf16.msra.mxu1 %v20293_v40  ;;  %17323 = vmatprep.mubr.f32.mxu1 %v29797_v55  ;;  %v29808_v40 = vand.u32 4294901760, %v25261_v20  ;;  %v29816_v20 = vand.u32 4294901760, %v25303_v18 }
 0x54e   :  { %20298 = vmatprep.subr.bf16.mxu1 %v20297_v49 }
 0x550   :  { %17324 = vmatmul.mubr.f32.gmra.mrb[24].mxu1 %v29802_v6 }
 0x551   :  { %20300 = vmatpush3.bf16.msra.mxu1 %v20297_v49  ;;  %17326 = vmatprep.mubr.f32.mxu1 %v29803_v50 }
 0x552   :  { %20302 = vmatprep.subr.bf16.mxu1 %v20301_v33 }
 0x554   :  { %17327 = vmatmul.mubr.f32.gmra.mrb[26].mxu1 %v29808_v40 }
 0x555   :  { %20304 = vmatpush3.bf16.msra.mxu1 %v20301_v33  ;;  %17329 = vmatprep.mubr.f32.mxu1 %v29809_v25 }
 0x556   :  { %20306 = vmatprep.subr.bf16.mxu1 %v20305_v4 }
 0x558   :  { %17330 = vmatmul.mubr.f32.gmra.mrb[28].mxu1 %v29814_v62 }
 0x559   :  { %20308 = vmatpush3.bf16.msra.mxu1 %v20305_v4  ;;  %17332 = vmatprep.mubr.f32.mxu1 %v29815_v9 }
 0x55a   :  { %20310 = vmatprep.subr.bf16.mxu1 %v20309_v51 }
 0x55c   :  { %17333 = vmatmul.mubr.f32.gmra.mrb[30].mxu1 %v29816_v20 }
 0x55d   :  { %20312 = vmatpush3.bf16.msra.mxu1 %v20309_v51  ;;  %17367 = vmatprep.mubr.f32.mxu1 %v25153_v2 }
 0x55e   :  { %20314 = vmatprep.subr.bf16.mxu1 %v24903_v53 }
 0x560   :  { %17368 = vmatmul.mubr.f32.vlgmr.msra.gmra.mrb[16].mxu1 %v25151_v5 }
 0x561   :  { %20316 = vmatpush3.bf16.msra.mxu1 %v24903_v53  ;;  %17370 = vmatprep.mubr.f32.mxu1 %v25166_v16  ;;  %v5460_v53 = vld [vmem:[#allocation9 + $0x40] sm:$0xff] }
 0x562   :  { %20318 = vmatprep.subr.bf16.mxu1 %v24907_v3 }
 0x564   :  { %17371 = vmatmul.mubr.f32.gmra.mrb[18].mxu1 %v25164_v10 }
 0x565   :  { %20320 = vmatpush3.bf16.msra.mxu1 %v24907_v3  ;;  %17373 = vmatprep.mubr.f32.mxu1 %v25187_v17  ;;  %v5461_v3 = vld [vmem:[#allocation9 + $0x48] sm:$0xff] }
 0x566   :  { %20322 = vmatprep.subr.bf16.mxu1 %v24916_v58 }
 0x568   :  { %17374 = vmatmul.mubr.f32.gmra.mrb[20].mxu1 %v25184_v0 }
 0x569   :  { %20324 = vmatpush3.bf16.msra.mxu1 %v24916_v58  ;;  %17376 = vmatprep.mubr.f32.mxu1 %v25208_v11  ;;  %v5500_v58 = vand.u32 4294901760, %v5460_v53 }
 0x56a   :  { %20326 = vmatprep.subr.bf16.mxu1 %v24922_v32 }
 0x56b   :  { %v25597_v38 = vsub.f32 %v5460_v53, %v5500_v58 }
 0x56c   :  { %17377 = vmatmul.mubr.f32.gmra.mrb[22].mxu1 %v25205_v19 }
 0x56d   :  { %20328 = vmatpush3.bf16.msra.mxu1 %v24922_v32  ;;  %17379 = vmatprep.mubr.f32.mxu1 %v25232_v63  ;;  %v5503_v32 = vand.u32 4294901760, %v5461_v3  ;;  %29823 = vst [vmem:[#allocation44_spill] sm:$0xff] %v25597_v38  ;;  %v29515_v57 = vand.u32 4294901760, %v25597_v38 }
 0x56e   :  { %20330 = vmatprep.subr.bf16.mxu1 %v24927_v41 }
 0x56f   :  { %v25599_v55 = vsub.f32 %v5461_v3, %v5503_v32  ;;  %v5776_v46 = vsub.f32 %v25597_v38, %v29515_v57 }
 0x570   :  { %17380 = vmatmul.mubr.f32.gmra.mrb[24].mxu1 %v25229_v42 }
 0x571   :  { %20332 = vmatpush3.bf16.msra.mxu1 %v24927_v41  ;;  %17382 = vmatprep.mubr.f32.mxu1 %v25256_v22  ;;  %v25560_v41 = vpack.c.bf16 %v5503_v32, %v5500_v58  ;;  %29824 = vst [vmem:[#allocation45_spill] sm:$0xff] %v25599_v55  ;;  %v29514_v21 = vand.u32 4294901760, %v25599_v55  ;;  %v5777_v50 = vand.u32 4294901760, %v5776_v46 }
 0x572   :  { %20334 = vmatprep.subr.bf16.mxu1 %v24937_v39 }
 0x573   :  { %20362 = vmatprep.subr.bf16.mxu0 %v25560_v41  ;;  %v5783_v6 = vsub.f32 %v25599_v55, %v29514_v21 }
 0x574   :  { %17383 = vmatmul.mubr.f32.gmra.mrb[26].mxu1 %v25253_v31  ;;  %20364 = vmatpush3.bf16.msra.mxu0 %v25560_v41 }
 0x575   :  { %20336 = vmatpush3.bf16.msra.mxu1 %v24937_v39  ;;  %17385 = vmatprep.mubr.f32.mxu1 %v25278_v1  ;;  %v5462_v39 = vld [vmem:[#allocation9 + $0x50] sm:$0xff]  ;;  %v5784_v43 = vand.u32 4294901760, %v5783_v6  ;;  %v29834_v6 = vand.u32 4294901760, %v25374_v48 }
 0x576   :  { %20338 = vmatprep.subr.bf16.mxu1 %v24951_v14 }
 0x577   :  { %v25625_v60 = vpack.c.bf16 %v5784_v43, %v5777_v50  ;;  %v25691_v50 = vsub.f32 %v25374_v48, %v29834_v6  ;;  %v25694_v43 = vld [vmem:[%s23502_s6] ss:$0 sm:$0xff]  ;;  %s29961_s6 = sld [smem:[#allocation35_spill]] }
 0x578   :  { %17386 = vmatmul.mubr.f32.gmra.mrb[28].mxu1 %v25275_v8 }
 0x579   :  { %20340 = vmatpush3.bf16.msra.mxu1 %v24951_v14  ;;  %17388 = vmatprep.mubr.f32.mxu1 %v25298_v15  ;;  %v5463_v14 = vld [vmem:[#allocation9 + $0x58] sm:$0xff] }
 0x57a   :  { %20342 = vmatprep.subr.bf16.mxu1 %v24971_v23 }
 0x57c   :  { %17389 = vmatmul.mubr.f32.gmra.mrb[30].mxu1 %v25295_v24 }
 0x57d   :  { %20344 = vmatpush3.bf16.msra.mxu1 %v24971_v23  ;;  %17423 = vmatprep.mubr.f32.mxu1 %v25153_v2  ;;  %v5506_v23 = vand.u32 4294901760, %v5462_v39  ;;  %v5509_v2 = vand.u32 4294901760, %v5463_v14 }
 0x57f   :  { %v25606_v13 = vsub.f32 %v5462_v39, %v5506_v23  ;;  %v25608_v33 = vsub.f32 %v5463_v14, %v5509_v2 }
 0x580   :  { %17424 = vmatmul.mubr.f32.vlgmr.msra.gmra.mrb[16].mxu1 %v25151_v5  ;;  %v25564_v5 = vpack.c.bf16 %v5509_v2, %v5506_v23 }
 0x581   :  { %17426 = vmatprep.mubr.f32.mxu1 %v25166_v16  ;;  %v5465_v16 = vld [vmem:[#allocation9 + $0x68] sm:$0xff]  ;;  %29825 = vst [vmem:[#allocation46_spill] sm:$0xff] %v25606_v13  ;;  %29826 = vst [vmem:[#allocation47_spill] sm:$0xff] %v25608_v33  ;;  %v29513_v47 = vand.u32 4294901760, %v25606_v13  ;;  %v29512_v29 = vand.u32 4294901760, %v25608_v33 }
 0x582   :  { %20366 = vmatprep.subr.bf16.mxu0 %v25564_v5 }
 0x583   :  { %20368 = vmatpush3.bf16.msra.mxu0 %v25564_v5  ;;  %v5790_v26 = vsub.f32 %v25606_v13, %v29513_v47  ;;  %v5797_v4 = vsub.f32 %v25608_v33, %v29512_v29 }
 0x584   :  { %17427 = vmatmul.mubr.f32.gmra.mrb[18].mxu1 %v25164_v10  ;;  %v5464_v10 = vld [vmem:[#allocation9 + $0x60] sm:$0xff] }
 0x585   :  { %17429 = vmatprep.mubr.f32.mxu1 %v25187_v17  ;;  %v5515_v17 = vand.u32 4294901760, %v5465_v16  ;;  %v5791_v12 = vand.u32 4294901760, %v5790_v26  ;;  %v5798_v28 = vand.u32 4294901760, %v5797_v4 }
 0x587   :  { %v25623_v25 = vsub.f32 %v5465_v16, %v5515_v17  ;;  %v25629_v62 = vpack.c.bf16 %v5798_v28, %v5791_v12 }
 0x588   :  { %17430 = vmatmul.mubr.f32.gmra.mrb[20].mxu1 %v25184_v0  ;;  %v5512_v0 = vand.u32 4294901760, %v5464_v10 }
 0x589   :  { %17432 = vmatprep.mubr.f32.mxu1 %v25208_v11  ;;  %29828 = vst [vmem:[#allocation49_spill] sm:$0xff] %v25623_v25  ;;  %v29510_v51 = vand.u32 4294901760, %v25623_v25 }
 0x58a   :  { %v25621_v40 = vsub.f32 %v5464_v10, %v5512_v0 }
 0x58b   :  { %v5811_v20 = vsub.f32 %v25623_v25, %v29510_v51 }
 0x58c   :  { %17433 = vmatmul.mubr.f32.gmra.mrb[22].mxu1 %v25205_v19  ;;  %v25568_v19 = vpack.c.bf16 %v5515_v17, %v5512_v0  ;;  %29827 = vst [vmem:[#allocation48_spill] sm:$0xff] %v25621_v40  ;;  %v29511_v54 = vand.u32 4294901760, %v25621_v40 }
 0x58d   :  { %17435 = vmatprep.mubr.f32.mxu1 %v25232_v63  ;;  %v29818_v63 = vand.u32 4294901760, %v25359_v35  ;;  %v5812_v32 = vand.u32 4294901760, %v5811_v20 }
 0x58e   :  { %29817 = vst [vmem:[#allocation42_spill] sm:$0xff] %v25568_v19  ;;  %20370 = vmatprep.subr.bf16.mxu0 %v25568_v19  ;;  %v5804_v9 = vsub.f32 %v25621_v40, %v29511_v54 }
 0x58f   :  { %v25573_v11 = vsub.f32 %v25359_v35, %v29818_v63  ;;  %20372 = vmatpush3.bf16.msra.mxu0 %v25568_v19 }
 0x590   :  { %17436 = vmatmul.mubr.f32.gmra.mrb[24].mxu1 %v25229_v42  ;;  %v29820_v42 = vand.u32 4294901760, %v25361_v30  ;;  %v5805_v58 = vand.u32 4294901760, %v5804_v9 }
 0x591   :  { %17438 = vmatprep.mubr.f32.mxu1 %v25256_v22  ;;  %29819 = vst [vmem:[#allocation40_spill] sm:$0xff] %v25573_v11  ;;  %v29524_v36 = vand.u32 4294901760, %v25573_v11 }
 0x592   :  { %v25578_v22 = vsub.f32 %v25361_v30, %v29820_v42  ;;  %v25643_v23 = vpack.c.bf16 %v5812_v32, %v5805_v58  ;;  %v25659_v42 = vpack.c.bf16 %v25599_v55, %v25597_v38 }
 0x593   :  { %v5720_v18 = vsub.f32 %v25573_v11, %v29524_v36 }
 0x594   :  { %17439 = vmatmul.mubr.f32.gmra.mrb[26].mxu1 %v25253_v31  ;;  %29821 = vst [vmem:[#allocation41_spill] sm:$0xff] %v25578_v22  ;;  %v5466_v31 = vld [vmem:[#allocation9 + $0x70] sm:$0xff]  ;;  %v25653_v17 = vpack.c.bf16 %v25578_v22, %v25573_v11 }
 0x595   :  { %17441 = vmatprep.mubr.f32.mxu1 %v25278_v1  ;;  %v5467_v1 = vld [vmem:[#allocation9 + $0x78] sm:$0xff]  ;;  %v5721_v35 = vand.u32 4294901760, %v5720_v18 }
 0x596   :  { %v5521_v44 = vand.u32 4294901760, %v5467_v1 }
 0x598   :  { %17442 = vmatmul.mubr.f32.gmra.mrb[28].mxu1 %v25275_v8  ;;  %v5518_v8 = vand.u32 4294901760, %v5466_v31  ;;  %v25639_v3 = vsub.f32 %v5467_v1, %v5521_v44  ;;  %v25667_v1 = vpack.c.bf16 %v25623_v25, %v25621_v40 }
 0x599   :  { %17444 = vmatprep.mubr.f32.mxu1 %v25298_v15 }
 0x59a   :  { %v25584_v15 = vpack.c.bf16 %v5521_v44, %v5518_v8  ;;  %v25637_v53 = vsub.f32 %v5466_v31, %v5518_v8  ;;  %29830 = vst [vmem:[#allocation51_spill] sm:$0xff] %v25639_v3  ;;  %v29508_v14 = vand.u32 4294901760, %v25639_v3  ;;  %v25663_v31 = vpack.c.bf16 %v25608_v33, %v25606_v13 }
 0x59b   :  { %v29831_v44 = vand.u32 4294901760, %v25363_v34 }
 0x59c   :  { %17445 = vmatmul.mubr.f32.gmra.mrb[30].mxu1 %v25295_v24  ;;  %v29523_v24 = vand.u32 4294901760, %v25578_v22  ;;  %29822 = vst [vmem:[#allocation43_spill] sm:$0xff] %v25584_v15  ;;  %20374 = vmatprep.subr.bf16.mxu0 %v25584_v15  ;;  %29829 = vst [vmem:[#allocation50_spill] sm:$0xff] %v25637_v53  ;;  %v29509_v39 = vand.u32 4294901760, %v25637_v53  ;;  %v5825_v10 = vsub.f32 %v25639_v3, %v29508_v14 }
 0x59d   :  { %20376 = vmatpush3.bf16.msra.mxu0 %v25584_v15  ;;  %v25671_v8 = vpack.c.bf16 %v25639_v3, %v25637_v53  ;;  %v25676_v18 = vsub.f32 %v25363_v34, %v29831_v44 }
 0x59e   :  { %v5727_v61 = vsub.f32 %v25578_v22, %v29523_v24  ;;  %v5818_v2 = vsub.f32 %v25637_v53, %v29509_v39  ;;  %v5826_v0 = vand.u32 4294901760, %v5825_v10 }
 0x59f   :  { %v29520_v34 = vand.u32 4294901760, %v25676_v18 }
 0x5a0   :  { %v5728_v30 = vand.u32 4294901760, %v5727_v61  ;;  %v5819_v16 = vand.u32 4294901760, %v5818_v2  ;;  %v29832_v61 = vand.u32 4294901760, %v25369_v45 }
 0x5a1   :  { %v5734_v48 = vsub.f32 %v25676_v18, %v29520_v34 }
 0x5a2   :  { %v25594_v49 = vpack.c.bf16 %v5728_v30, %v5721_v35  ;;  %v25655_v63 = vpack.c.bf16 %v5826_v0, %v5819_v16  ;;  %v25681_v35 = vsub.f32 %v25369_v45, %v29832_v61  ;;  %v29833_v30 = vand.u32 4294901760, %v25372_v27 }
 0x5a3   :  { %v29516_v45 = vand.u32 4294901760, %v25691_v50  ;;  %v29835_v0 = vand.u32 4294901760, %v25395_v37  ;;  %v5735_v14 = vand.u32 4294901760, %v5734_v48 }
 0x5a4   :  { %20378 = vmatprep.subr.bf16.mxu0 %v25594_v49  ;;  %v25686_v46 = vsub.f32 %v25372_v27, %v29833_v30  ;;  %v29518_v26 = vand.u32 4294901760, %v25681_v35 }
 0x5a5   :  { %v5755_v2 = vsub.f32 %v25691_v50, %v29516_v45  ;;  %v25717_v44 = vsub.f32 %v25395_v37, %v29835_v0 }
 0x5a6   :  { %v29517_v4 = vand.u32 4294901760, %v25686_v46  ;;  %v5741_v20 = vsub.f32 %v25681_v35, %v29518_v26 }
 0x5a7   :  { %v5756_v54 = vand.u32 4294901760, %v5755_v2 }
 0x5a8   :  { %v5748_v32 = vsub.f32 %v25686_v46, %v29517_v4  ;;  %v5742_v39 = vand.u32 4294901760, %v5741_v20 }
 0x5aa   :  { %v5749_v0 = vand.u32 4294901760, %v5748_v32 }
 0x5ac   :  { %v25752_v45 = vpack.c.bf16 %v5756_v54, %v5749_v0 }
 0x653   :  { %v17425_v12 = vpop.f32.mrb[16].mxu1 }
 0x654   :  { %v22505_v28 = vadd.f32 %v17425_v12, %v25694_v43  ;;  %v5342_v27 = vpop.f32.mrb[17].mxu1  ;;  %v29836_v12 = vand.u32 4294901760, %v25397_v52 }
 0x655   :  { %v22506_v9 = vadd.f32 %v25694_v43, %v5342_v27 }
 0x656   :  { %v5437_v58 = vmax.f32 %v22505_v28, 0.0  ;;  %v25725_v28 = vsub.f32 %v25397_v52, %v29836_v12  ;;  %v29522_v52 = vand.u32 4294901760, %v25717_v44 }
 0x657   :  { %v5436_v10 = vmax.f32 %v22506_v9, 0.0  ;;  %v17428_v16 = vpop.f32.mrb[18].mxu1 }
 0x658   :  { %v25719_v61 = vand.u32 4294901760, %v5437_v58  ;;  %v22507_v30 = vadd.f32 %v17428_v16, %v25694_v43  ;;  %v5354_v6 = vpop.f32.mrb[19].mxu1 }
 0x659   :  { %v25727_v27 = vand.u32 4294901760, %v5436_v10  ;;  %v22508_v9 = vadd.f32 %v25694_v43, %v5354_v6 }
 0x65a   :  { %v25731_v51 = vsub.f32 %v5437_v58, %v25719_v61  ;;  %v5439_v37 = vmax.f32 %v22507_v30, 0.0  ;;  %v29525_v58 = vand.u32 4294901760, %v25725_v28 }
 0x65b   :  { %v25734_v16 = vsub.f32 %v5436_v10, %v25727_v27  ;;  %v5438_v29 = vmax.f32 %v22508_v9, 0.0  ;;  %v17431_v47 = vpop.f32.mrb[20].mxu1  ;;  %v20381_v10 = vpack.c.bf16 %v5742_v39, %v5735_v14  ;;  %v5762_v39 = vsub.f32 %v25717_v44, %v29522_v52 }
 0x65c   :  { %v29519_v12 = vand.u32 4294901760, %v25731_v51  ;;  %v25738_v21 = vand.u32 4294901760, %v5439_v37  ;;  %v22509_v48 = vadd.f32 %v17431_v47, %v25694_v43  ;;  %v5366_v20 = vpop.f32.mrb[21].mxu1 }
 0x65d   :  { %v25742_v6 = vand.u32 4294901760, %v5438_v29  ;;  %v22510_v32 = vadd.f32 %v25694_v43, %v5366_v20  ;;  %v29521_v2 = vand.u32 4294901760, %v25734_v16 }
 0x65e   :  { %v5569_v30 = vsub.f32 %v25731_v51, %v29519_v12  ;;  %v25750_v9 = vsub.f32 %v5439_v37, %v25738_v21  ;;  %v5441_v57 = vmax.f32 %v22509_v48, 0.0 }
 0x65f   :  { %v25755_v47 = vsub.f32 %v5438_v29, %v25742_v6  ;;  %v5440_v4 = vmax.f32 %v22510_v32, 0.0  ;;  %v17434_v26 = vpop.f32.mrb[22].mxu1  ;;  %v5559_v20 = vsub.f32 %v25734_v16, %v29521_v2  ;;  %v5769_v29 = vsub.f32 %v25725_v28, %v29525_v58 }
 0x660   :  { %v25763_v14 = vand.u32 4294901760, %v5441_v57  ;;  %v22511_v37 = vadd.f32 %v17434_v26, %v25694_v43  ;;  %v5378_v48 = vpop.f32.mrb[23].mxu1  ;;  %v29528_v54 = vand.u32 4294901760, %v25750_v9  ;;  %v5570_v2 = vand.u32 4294901760, %v5569_v30 }
 0x661   :  { %v25770_v0 = vand.u32 4294901760, %v5440_v4  ;;  %v22512_v32 = vadd.f32 %v25694_v43, %v5378_v48  ;;  %v5560_v12 = vand.u32 4294901760, %v5559_v20  ;;  %v29530_v34 = vand.u32 4294901760, %v25755_v47 }
 0x662   :  { %v25775_v52 = vsub.f32 %v5441_v57, %v25763_v14  ;;  %v5443_v24 = vmax.f32 %v22511_v37, 0.0  ;;  %v5589_v26 = vsub.f32 %v25750_v9, %v29528_v54  ;;  %v5763_v48 = vand.u32 4294901760, %v5762_v39 }
 0x663   :  { %v25781_v36 = vsub.f32 %v5440_v4, %v25770_v0  ;;  %v5442_v58 = vmax.f32 %v22512_v32, 0.0  ;;  %v17437_v3 = vpop.f32.mrb[24].mxu1  ;;  %17479 = vmatprep.mubr.f32.mxu0 %v5560_v12  ;;  %v5579_v20 = vsub.f32 %v25755_v47, %v29530_v34  ;;  %v5770_v54 = vand.u32 4294901760, %v5769_v29 }
 0x664   :  { %v25786_v30 = vand.u32 4294901760, %v5443_v24  ;;  %v22513_v57 = vadd.f32 %v17437_v3, %v25694_v43  ;;  %v5390_v37 = vpop.f32.mrb[25].mxu1  ;;  %17480 = vmatmul.mubr.f32.vlgmr.msra.gmra.mrb[32].mxu0 %v5570_v2  ;;  %v29533_v53 = vand.u32 4294901760, %v25775_v52  ;;  %v5590_v3 = vand.u32 4294901760, %v5589_v26 }
 0x665   :  { %v25790_v25 = vand.u32 4294901760, %v5442_v58  ;;  %v22514_v4 = vadd.f32 %v25694_v43, %v5390_v37  ;;  %20380 = vmatpush3.bf16.msra.mxu0 %v25594_v49  ;;  %v5580_v12 = vand.u32 4294901760, %v5579_v20  ;;  %v29535_v32 = vand.u32 4294901760, %v25781_v36 }
 0x666   :  { %v25796_v39 = vsub.f32 %v5443_v24, %v25786_v30  ;;  %v5445_v34 = vmax.f32 %v22513_v57, 0.0  ;;  %20382 = vmatprep.subr.bf16.mxu0 %v20381_v10  ;;  %v5609_v2 = vsub.f32 %v25775_v52, %v29533_v53  ;;  %v20389_v26 = vpack.c.bf16 %v5770_v54, %v5763_v48 }
 0x667   :  { %v25802_v29 = vsub.f32 %v5442_v58, %v25790_v25  ;;  %v5444_v40 = vmax.f32 %v22514_v4, 0.0  ;;  %v17440_v37 = vpop.f32.mrb[26].mxu1  ;;  %17482 = vmatprep.mubr.f32.mxu0 %v5580_v12  ;;  %v5599_v49 = vsub.f32 %v25781_v36, %v29535_v32 }
 0x668   :  { %v25807_v20 = vand.u32 4294901760, %v5445_v34  ;;  %v22515_v24 = vadd.f32 %v17440_v37, %v25694_v43  ;;  %v5402_v57 = vpop.f32.mrb[27].mxu1  ;;  %17483 = vmatmul.mubr.f32.gmra.mrb[34].mxu0 %v5590_v3  ;;  %v29537_v33 = vand.u32 4294901760, %v25796_v39  ;;  %v5610_v37 = vand.u32 4294901760, %v5609_v2 }
 0x669   :  { %v25811_v53 = vand.u32 4294901760, %v5444_v40  ;;  %v22516_v58 = vadd.f32 %v25694_v43, %v5402_v57  ;;  %20384 = vmatpush3.bf16.msra.mxu0 %v20381_v10  ;;  %v5600_v4 = vand.u32 4294901760, %v5599_v49  ;;  %v29538_v12 = vand.u32 4294901760, %v25802_v29 }
 0x66a   :  { %v25816_v13 = vsub.f32 %v5445_v34, %v25807_v20  ;;  %v5447_v32 = vmax.f32 %v22515_v24, 0.0  ;;  %20386 = vmatprep.subr.bf16.mxu0 %v25752_v45  ;;  %v5629_v54 = vsub.f32 %v25796_v39, %v29537_v33 }
 0x66b   :  { %v25823_v48 = vsub.f32 %v5444_v40, %v25811_v53  ;;  %v5446_v3 = vmax.f32 %v22516_v58, 0.0  ;;  %v17443_v57 = vpop.f32.mrb[28].mxu1  ;;  %17485 = vmatprep.mubr.f32.mxu0 %v5600_v4  ;;  %v5619_v10 = vsub.f32 %v25802_v29, %v29538_v12 }
 0x66c   :  { %v25828_v34 = vand.u32 4294901760, %v5447_v32  ;;  %v22517_v49 = vadd.f32 %v17443_v57, %v25694_v43  ;;  %v5414_v24 = vpop.f32.mrb[29].mxu1  ;;  %17486 = vmatmul.mubr.f32.gmra.mrb[36].mxu0 %v5610_v37  ;;  %v29542_v2 = vand.u32 4294901760, %v25816_v13  ;;  %v5630_v38 = vand.u32 4294901760, %v5629_v54 }
 0x66d   :  { %v25832_v55 = vand.u32 4294901760, %v5446_v3  ;;  %v22518_v40 = vadd.f32 %v25694_v43, %v5414_v24  ;;  %20388 = vmatpush3.bf16.msra.mxu0 %v25752_v45  ;;  %v5620_v58 = vand.u32 4294901760, %v5619_v10  ;;  %v29543_v4 = vand.u32 4294901760, %v25823_v48 }
 0x66e   :  { %v25838_v33 = vsub.f32 %v5447_v32, %v25828_v34  ;;  %v5449_v12 = vmax.f32 %v22517_v49, 0.0  ;;  %20390 = vmatprep.subr.bf16.mxu0 %v20389_v26  ;;  %v5649_v37 = vsub.f32 %v25816_v13, %v29542_v2 }
 0x66f   :  { %v25844_v57 = vsub.f32 %v5446_v3, %v25832_v55  ;;  %v5448_v22 = vmax.f32 %v22518_v40, 0.0  ;;  %v17446_v24 = vpop.f32.mrb[30].mxu1  ;;  %17488 = vmatprep.mubr.f32.mxu0 %v5620_v58  ;;  %v5639_v45 = vsub.f32 %v25823_v48, %v29543_v4 }
 0x670   :  { %v25849_v10 = vand.u32 4294901760, %v5449_v12  ;;  %v22519_v32 = vadd.f32 %v17446_v24, %v25694_v43  ;;  %v5426_v49 = vpop.f32.mrb[31].mxu1  ;;  %17489 = vmatmul.mubr.f32.gmra.mrb[38].mxu0 %v5630_v38  ;;  %v5668_v54 = vand.u32 4294901760, %v25838_v33  ;;  %v5650_v15 = vand.u32 4294901760, %v5649_v37 }
 0x671   :  { %v25853_v11 = vand.u32 4294901760, %v5448_v22  ;;  %v22520_v3 = vadd.f32 %v25694_v43, %v5426_v49  ;;  %20392 = vmatpush3.bf16.msra.mxu0 %v20389_v26  ;;  %v5640_v40 = vand.u32 4294901760, %v5639_v45  ;;  %v5658_v58 = vand.u32 4294901760, %v25844_v57 }
 0x672   :  { %v25858_v2 = vsub.f32 %v5449_v12, %v25849_v10  ;;  %v5451_v4 = vmax.f32 %v22519_v32, 0.0  ;;  %20394 = vmatprep.subr.bf16.mxu0 %v25625_v60  ;;  %v5669_v38 = vsub.f32 %v25838_v33, %v5668_v54 }
 0x673   :  { %v25865_v24 = vsub.f32 %v5448_v22, %v25853_v11  ;;  %v5450_v19 = vmax.f32 %v22520_v3, 0.0  ;;  %17491 = vmatprep.mubr.f32.mxu0 %v5640_v40  ;;  %v5659_v43 = vsub.f32 %v25844_v57, %v5658_v58 }
 0x674   :  { %v25870_v26 = vand.u32 4294901760, %v5451_v4  ;;  %17492 = vmatmul.mubr.f32.gmra.mrb[40].mxu0 %v5650_v15  ;;  %v5688_v12 = vand.u32 4294901760, %v25858_v2  ;;  %v5670_v49 = vand.u32 4294901760, %v5669_v38 }
 0x675   :  { %v25873_v45 = vand.u32 4294901760, %v5450_v19  ;;  %20396 = vmatpush3.bf16.msra.mxu0 %v25625_v60  ;;  %v5660_v37 = vand.u32 4294901760, %v5659_v43  ;;  %v5678_v32 = vand.u32 4294901760, %v25865_v24 }
 0x676   :  { %v25878_v22 = vsub.f32 %v5451_v4, %v25870_v26  ;;  %20398 = vmatprep.subr.bf16.mxu0 %v25629_v62  ;;  %v5689_v3 = vsub.f32 %v25858_v2, %v5688_v12 }
 0x677   :  { %v25885_v15 = vsub.f32 %v5450_v19, %v25873_v45  ;;  %17494 = vmatprep.mubr.f32.mxu0 %v5660_v37  ;;  %v5679_v60 = vsub.f32 %v25865_v24, %v5678_v32 }
 0x678   :  { %17495 = vmatmul.mubr.f32.gmra.mrb[42].mxu0 %v5670_v49  ;;  %v5708_v40 = vand.u32 4294901760, %v25878_v22  ;;  %v5690_v43 = vand.u32 4294901760, %v5689_v3  ;;  %v20413_v3 = vpack.c.bf16 %v25681_v35, %v25676_v18 }
 0x679   :  { %20400 = vmatpush3.bf16.msra.mxu0 %v25629_v62  ;;  %v5680_v4 = vand.u32 4294901760, %v5679_v60  ;;  %v5698_v38 = vand.u32 4294901760, %v25885_v15  ;;  %v29842_v60 = vld [vmem:[#allocation41_spill] sm:$0xff] }
 0x67a   :  { %20402 = vmatprep.subr.bf16.mxu0 %v25643_v23  ;;  %v5709_v19 = vsub.f32 %v25878_v22, %v5708_v40 }
 0x67b   :  { %17497 = vmatprep.mubr.f32.mxu0 %v5680_v4  ;;  %v5699_v37 = vsub.f32 %v25885_v15, %v5698_v38  ;;  %v29843_v4 = vand.u32 4294901760, %v29842_v60  ;;  %v29855_v60 = vand.u32 4294901760, %v25775_v52 }
 0x67c   :  { %17498 = vmatmul.mubr.f32.gmra.mrb[44].mxu0 %v5690_v43  ;;  %v5710_v62 = vand.u32 4294901760, %v5709_v19  ;;  %v29844_v19 = vand.u32 4294901760, %v25734_v16 }
 0x67d   :  { %20404 = vmatpush3.bf16.msra.mxu0 %v25643_v23  ;;  %v5700_v49 = vand.u32 4294901760, %v5699_v37  ;;  %v20417_v23 = vpack.c.bf16 %v25691_v50, %v25686_v46  ;;  %v29845_v37 = vand.u32 4294901760, %v25676_v18  ;;  %v29852_v18 = vand.u32 4294901760, %v25781_v36 }
 0x67e   :  { %20406 = vmatprep.subr.bf16.mxu0 %v25655_v63 }
 0x67f   :  { %17500 = vmatprep.mubr.f32.mxu0 %v5700_v49  ;;  %v29846_v49 = vand.u32 4294901760, %v25681_v35  ;;  %v29854_v35 = vand.u32 4294901760, %v25725_v28 }
 0x680   :  { %17501 = vmatmul.mubr.f32.gmra.mrb[46].mxu0 %v5710_v62 }
 0x681   :  { %20408 = vmatpush3.bf16.msra.mxu0 %v25655_v63  ;;  %17535 = vmatprep.mubr.f32.mxu0 %v25727_v27  ;;  %v20421_v63 = vpack.c.bf16 %v25725_v28, %v25717_v44  ;;  %v20477_v62 = vpack.c.bf16 %v29846_v49, %v29845_v37  ;;  %v29863_v28 = vld [vmem:[#allocation46_spill] sm:$0xff]  ;;  %v29865_v37 = vld [vmem:[#allocation47_spill] sm:$0xff] }
 0x682   :  { %20410 = vmatprep.subr.bf16.mxu0 %v25653_v17  ;;  %v29866_v49 = vand.u32 4294901760, %v29865_v37 }
 0x684   :  { %17536 = vmatmul.mubr.f32.vlgmr.msra.gmra.mrb[32].mxu0 %v25719_v61 }
 0x685   :  { %20412 = vmatpush3.bf16.msra.mxu0 %v25653_v17  ;;  %17538 = vmatprep.mubr.f32.mxu0 %v25742_v6  ;;  %v29837_v17 = vld [vmem:[#allocation56_spill] sm:$0xff] }
 0x686   :  { %20414 = vmatprep.subr.bf16.mxu0 %v20413_v3 }
 0x688   :  { %17539 = vmatmul.mubr.f32.gmra.mrb[34].mxu0 %v25738_v21 }
 0x689   :  { %20416 = vmatpush3.bf16.msra.mxu0 %v20413_v3  ;;  %17541 = vmatprep.mubr.f32.mxu0 %v25770_v0  ;;  %v29847_v3 = vand.u32 4294901760, %v25731_v51 }
 0x68a   :  { %20418 = vmatprep.subr.bf16.mxu0 %v20417_v23 }
 0x68c   :  { %17542 = vmatmul.mubr.f32.gmra.mrb[36].mxu0 %v25763_v14 }
 0x68d   :  { %20420 = vmatpush3.bf16.msra.mxu0 %v20417_v23  ;;  %17544 = vmatprep.mubr.f32.mxu0 %v25790_v25  ;;  %v29848_v23 = vand.u32 4294901760, %v25755_v47 }
 0x68e   :  { %20422 = vmatprep.subr.bf16.mxu0 %v20421_v63 }
 0x690   :  { %17545 = vmatmul.mubr.f32.gmra.mrb[38].mxu0 %v25786_v30 }
 0x691   :  { %20424 = vmatpush3.bf16.msra.mxu0 %v20421_v63  ;;  %17547 = vmatprep.mubr.f32.mxu0 %v25811_v53  ;;  %v29849_v63 = vand.u32 4294901760, %v25686_v46  ;;  %v29856_v46 = vand.u32 4294901760, %v25802_v29 }
 0x692   :  { %20426 = vmatprep.subr.bf16.mxu0 %v25659_v42 }
 0x694   :  { %17548 = vmatmul.mubr.f32.gmra.mrb[40].mxu0 %v25807_v20 }
 0x695   :  { %20428 = vmatpush3.bf16.msra.mxu0 %v25659_v42  ;;  %17550 = vmatprep.mubr.f32.mxu0 %v25832_v55  ;;  %v29838_v42 = vld [vmem:[#allocation42_spill] sm:$0xff] }
 0x696   :  { %20430 = vmatprep.subr.bf16.mxu0 %v25663_v31 }
 0x698   :  { %17551 = vmatmul.mubr.f32.gmra.mrb[42].mxu0 %v25828_v34 }
 0x699   :  { %20432 = vmatpush3.bf16.msra.mxu0 %v25663_v31  ;;  %17553 = vmatprep.mubr.f32.mxu0 %v25853_v11  ;;  %v29839_v31 = vld [vmem:[#allocation43_spill] sm:$0xff] }
 0x69a   :  { %20434 = vmatprep.subr.bf16.mxu0 %v25667_v1 }
 0x69c   :  { %17554 = vmatmul.mubr.f32.gmra.mrb[44].mxu0 %v25849_v10 }
 0x69d   :  { %20436 = vmatpush3.bf16.msra.mxu0 %v25667_v1  ;;  %17556 = vmatprep.mubr.f32.mxu0 %v25873_v45  ;;  %v29840_v1 = vld [vmem:[#allocation40_spill] sm:$0xff] }
 0x69e   :  { %20438 = vmatprep.subr.bf16.mxu0 %v25671_v8 }
 0x6a0   :  { %17557 = vmatmul.mubr.f32.gmra.mrb[46].mxu0 %v25870_v26 }
 0x6a1   :  { %20440 = vmatpush3.bf16.msra.mxu0 %v25671_v8  ;;  %17591 = vmatprep.mubr.f32.mxu0 %v25734_v16  ;;  %v29841_v8 = vand.u32 4294901760, %v29840_v1  ;;  %v29850_v1 = vand.u32 4294901760, %v25691_v50  ;;  %v29857_v50 = vld [vmem:[#allocation44_spill] sm:$0xff] }
 0x6a2   :  { %20442 = vmatprep.subr.bf16.mxu0 %v25382_v59 }
 0x6a3   :  { %v20473_v43 = vpack.c.bf16 %v29843_v4, %v29841_v8  ;;  %v20481_v16 = vpack.c.bf16 %v29850_v1, %v29849_v63  ;;  %v29851_v8 = vand.u32 4294901760, %v25750_v9  ;;  %v29859_v4 = vld [vmem:[#allocation45_spill] sm:$0xff] }
 0x6a4   :  { %17592 = vmatmul.mubr.f32.vlgmr.msra.gmra.mrb[32].mxu0 %v25731_v51  ;;  %v29853_v51 = vand.u32 4294901760, %v25717_v44  ;;  %v29862_v44 = vand.u32 4294901760, %v25823_v48 }
 0x6a5   :  { %20444 = vmatpush3.bf16.msra.mxu0 %v25382_v59  ;;  %17594 = vmatprep.mubr.f32.mxu0 %v25755_v47 }
 0x6a6   :  { %20446 = vmatprep.subr.bf16.mxu0 %v25389_v56  ;;  %v20485_v47 = vpack.c.bf16 %v29854_v35, %v29853_v51 }
 0x6a8   :  { %17595 = vmatmul.mubr.f32.gmra.mrb[34].mxu0 %v25750_v9  ;;  %v29858_v9 = vand.u32 4294901760, %v29857_v50 }
 0x6a9   :  { %20448 = vmatpush3.bf16.msra.mxu0 %v25389_v56  ;;  %17597 = vmatprep.mubr.f32.mxu0 %v25781_v36 }
 0x6aa   :  { %20450 = vmatprep.subr.bf16.mxu0 %v25408_v7 }
 0x6ac   :  { %17598 = vmatmul.mubr.f32.gmra.mrb[36].mxu0 %v25775_v52  ;;  %v29864_v52 = vand.u32 4294901760, %v29863_v28 }
 0x6ad   :  { %20452 = vmatpush3.bf16.msra.mxu0 %v25408_v7  ;;  %17600 = vmatprep.mubr.f32.mxu0 %v25802_v29 }
 0x6ae   :  { %20454 = vmatprep.subr.bf16.mxu0 %v29837_v17  ;;  %v20493_v29 = vpack.c.bf16 %v29866_v49, %v29864_v52 }
 0x6b0   :  { %17601 = vmatmul.mubr.f32.gmra.mrb[38].mxu0 %v25796_v39 }
 0x6b1   :  { %20456 = vmatpush3.bf16.msra.mxu0 %v29837_v17  ;;  %17603 = vmatprep.mubr.f32.mxu0 %v25823_v48 }
 0x6b2   :  { %20458 = vmatprep.subr.bf16.mxu0 %v25560_v41 }
 0x6b4   :  { %17604 = vmatmul.mubr.f32.gmra.mrb[40].mxu0 %v25816_v13 }
 0x6b5   :  { %20460 = vmatpush3.bf16.msra.mxu0 %v25560_v41  ;;  %17606 = vmatprep.mubr.f32.mxu0 %v25844_v57 }
 0x6b6   :  { %20462 = vmatprep.subr.bf16.mxu0 %v25564_v5 }
 0x6b8   :  { %17607 = vmatmul.mubr.f32.gmra.mrb[42].mxu0 %v25838_v33 }
 0x6b9   :  { %20464 = vmatpush3.bf16.msra.mxu0 %v25564_v5  ;;  %17609 = vmatprep.mubr.f32.mxu0 %v25865_v24 }
 0x6ba   :  { %20466 = vmatprep.subr.bf16.mxu0 %v29838_v42 }
 0x6bc   :  { %17610 = vmatmul.mubr.f32.gmra.mrb[44].mxu0 %v25858_v2 }
 0x6bd   :  { %20468 = vmatpush3.bf16.msra.mxu0 %v29838_v42  ;;  %17612 = vmatprep.mubr.f32.mxu0 %v25885_v15  ;;  %v26115_v15 = vld [vmem:[%s29882_s3] ss:$0 sm:$0xff] }
 0x6be   :  { %20470 = vmatprep.subr.bf16.mxu0 %v29839_v31 }
 0x6c0   :  { %17613 = vmatmul.mubr.f32.gmra.mrb[46].mxu0 %v25878_v22 }
 0x6c1   :  { %20472 = vmatpush3.bf16.msra.mxu0 %v29839_v31  ;;  %17647 = vmatprep.mubr.f32.mxu0 %v29844_v19  ;;  %v29861_v19 = vand.u32 4294901760, %v25796_v39  ;;  %v29868_v39 = vld [vmem:[#allocation48_spill] sm:$0xff] }
 0x6c2   :  { %20474 = vmatprep.subr.bf16.mxu0 %v20473_v43 }
 0x6c4   :  { %17648 = vmatmul.mubr.f32.vlgmr.msra.gmra.mrb[32].mxu0 %v29847_v3  ;;  %v29869_v3 = vand.u32 4294901760, %v29868_v39 }
 0x6c5   :  { %20476 = vmatpush3.bf16.msra.mxu0 %v20473_v43  ;;  %17650 = vmatprep.mubr.f32.mxu0 %v29848_v23  ;;  %v29860_v43 = vand.u32 4294901760, %v29859_v4  ;;  %v29870_v23 = vld [vmem:[#allocation49_spill] sm:$0xff]  ;;  %v23112_v4 = vld [vmem:[#allocation3] sm:$0xff] }
 0x6c6   :  { %20478 = vmatprep.subr.bf16.mxu0 %v20477_v62  ;;  %v29871_v63 = vand.u32 4294901760, %v29870_v23  ;;  %v23113_v23 = vld [vmem:[#allocation3 + $0x18] sm:$0xff] }
 0x6c7   :  { %v20489_v36 = vpack.c.bf16 %v29860_v43, %v29858_v9 }
 0x6c8   :  { %17651 = vmatmul.mubr.f32.gmra.mrb[34].mxu0 %v29851_v8  ;;  %v20497_v48 = vpack.c.bf16 %v29871_v63, %v29869_v3 }
 0x6c9   :  { %20480 = vmatpush3.bf16.msra.mxu0 %v20477_v62  ;;  %17653 = vmatprep.mubr.f32.mxu0 %v29852_v18  ;;  %v29867_v62 = vand.u32 4294901760, %v25816_v13  ;;  %v29872_v13 = vld [vmem:[#allocation50_spill] sm:$0xff] }
 0x6ca   :  { %20482 = vmatprep.subr.bf16.mxu0 %v20481_v16  ;;  %v29873_v1 = vand.u32 4294901760, %v29872_v13 }
 0x6cc   :  { %17654 = vmatmul.mubr.f32.gmra.mrb[36].mxu0 %v29855_v60  ;;  %v23111_v60 = vld [vmem:[#allocation3 + $0x8] sm:$0xff] }
 0x6cd   :  { %20484 = vmatpush3.bf16.msra.mxu0 %v20481_v16  ;;  %17656 = vmatprep.mubr.f32.mxu0 %v29856_v46  ;;  %v29874_v16 = vld [vmem:[#allocation51_spill] sm:$0xff] }
 0x6ce   :  { %20486 = vmatprep.subr.bf16.mxu0 %v20485_v47  ;;  %v29875_v8 = vand.u32 4294901760, %v29874_v16  ;;  %v23114_v16 = vld [vmem:[#allocation3 + $0x10] sm:$0xff] }
 0x6d0   :  { %17657 = vmatmul.mubr.f32.gmra.mrb[38].mxu0 %v29861_v19  ;;  %v20501_v57 = vpack.c.bf16 %v29875_v8, %v29873_v1 }
 0x6d1   :  { %20488 = vmatpush3.bf16.msra.mxu0 %v20485_v47  ;;  %17659 = vmatprep.mubr.f32.mxu0 %v29862_v44 }
 0x6d2   :  { %20490 = vmatprep.subr.bf16.mxu0 %v20489_v36 }
 0x6d4   :  { %17660 = vmatmul.mubr.f32.gmra.mrb[40].mxu0 %v29867_v62 }
 0x6d5   :  { %20492 = vmatpush3.bf16.msra.mxu0 %v20489_v36  ;;  %17662 = vmatprep.mubr.f32.mxu0 %v5658_v58 }
 0x6d6   :  { %20494 = vmatprep.subr.bf16.mxu0 %v20493_v29 }
 0x6d8   :  { %17663 = vmatmul.mubr.f32.gmra.mrb[42].mxu0 %v5668_v54 }
 0x6d9   :  { %20496 = vmatpush3.bf16.msra.mxu0 %v20493_v29  ;;  %17665 = vmatprep.mubr.f32.mxu0 %v5678_v32 }
 0x6da   :  { %20498 = vmatprep.subr.bf16.mxu0 %v20497_v48 }
 0x6dc   :  { %17666 = vmatmul.mubr.f32.gmra.mrb[44].mxu0 %v5688_v12 }
 0x6dd   :  { %20500 = vmatpush3.bf16.msra.mxu0 %v20497_v48  ;;  %17668 = vmatprep.mubr.f32.mxu0 %v5698_v38 }
 0x6de   :  { %20502 = vmatprep.subr.bf16.mxu0 %v20501_v57 }
 0x6e0   :  { %17669 = vmatmul.mubr.f32.gmra.mrb[46].mxu0 %v5708_v40 }
 0x6e1   :  { %20504 = vmatpush3.bf16.msra.mxu0 %v20501_v57  ;;  %17703 = vmatprep.mubr.f32.mxu0 %v25727_v27 }
 0x6e2   :  { %20506 = vmatprep.subr.bf16.mxu0 %v25382_v59 }
 0x6e4   :  { %17704 = vmatmul.mubr.f32.vlgmr.msra.gmra.mrb[32].mxu0 %v25719_v61 }
 0x6e5   :  { %20508 = vmatpush3.bf16.msra.mxu0 %v25382_v59  ;;  %17706 = vmatprep.mubr.f32.mxu0 %v25742_v6  ;;  %v29878_v59 = vlaneseq }
 0x6e6   :  { %20510 = vmatprep.subr.bf16.mxu0 %v25389_v56 }
 0x6e8   :  { %17707 = vmatmul.mubr.f32.gmra.mrb[34].mxu0 %v25738_v21 }
 0x6e9   :  { %20512 = vmatpush3.bf16.msra.mxu0 %v25389_v56  ;;  %17709 = vmatprep.mubr.f32.mxu0 %v25770_v0  ;;  %v6794_v56 = vshrl.u32 %v29878_v59, 7 }
 0x6ea   :  { %20514 = vmatprep.subr.bf16.mxu0 %v25408_v7 }
 0x6ec   :  { %17710 = vmatmul.mubr.f32.gmra.mrb[36].mxu0 %v25763_v14 }
 0x6ed   :  { %20516 = vmatpush3.bf16.msra.mxu0 %v25408_v7  ;;  %17712 = vmatprep.mubr.f32.mxu0 %v25790_v25  ;;  %v6795_v7 = vadd.s32 8, %v6794_v56 }
 0x6ee   :  { %20518 = vmatprep.subr.bf16.mxu0 %v29837_v17 }
 0x6f0   :  { %17713 = vmatmul.mubr.f32.gmra.mrb[38].mxu0 %v25786_v30 }
 0x6f1   :  { %20520 = vmatpush3.bf16.msra.mxu0 %v29837_v17  ;;  %17715 = vmatprep.mubr.f32.mxu0 %v25811_v53 }
 0x6f2   :  { %20522 = vmatprep.subr.bf16.mxu0 %v25560_v41 }
 0x6f4   :  { %17716 = vmatmul.mubr.f32.gmra.mrb[40].mxu0 %v25807_v20 }
 0x6f5   :  { %20524 = vmatpush3.bf16.msra.mxu0 %v25560_v41  ;;  %17718 = vmatprep.mubr.f32.mxu0 %v25832_v55  ;;  %v14541_v41 = vld [vmem:[%s29876_s9] ss:$0 sm:$0xff] }
 0x6f6   :  { %20526 = vmatprep.subr.bf16.mxu0 %v25564_v5  ;;  %vm6801_vm0 = vcmp.eq.s32.totalorder %v6794_v56, %v14541_v41  ;;  %vm6802_vm4 = vcmp.eq.s32.totalorder %v6795_v7, %v14541_v41 }
 0x6f8   :  { %17719 = vmatmul.mubr.f32.gmra.mrb[42].mxu0 %v25828_v34 }
 0x6f9   :  { %20528 = vmatpush3.bf16.msra.mxu0 %v25564_v5  ;;  %17721 = vmatprep.mubr.f32.mxu0 %v25853_v11  ;;  %v14542_v5 = vld [vmem:[%s29877_s13] ss:$0 sm:$0xff] }
 0x6fa   :  { %20530 = vmatprep.subr.bf16.mxu0 %v29838_v42  ;;  %vm6810_vm3 = vcmp.eq.s32.totalorder %v6794_v56, %v14542_v5  ;;  %vm6811_vm5 = vcmp.eq.s32.totalorder %v6795_v7, %v14542_v5 }
 0x6fc   :  { %17722 = vmatmul.mubr.f32.gmra.mrb[44].mxu0 %v25849_v10 }
 0x6fd   :  { %20532 = vmatpush3.bf16.msra.mxu0 %v29838_v42  ;;  %17724 = vmatprep.mubr.f32.mxu0 %v25873_v45 }
 0x6fe   :  { %20534 = vmatprep.subr.bf16.mxu0 %v29839_v31 }
 0x700   :  { %17725 = vmatmul.mubr.f32.gmra.mrb[46].mxu0 %v25870_v26 }
 0x701   :  { %20536 = vmatpush3.bf16.msra.mxu0 %v29839_v31  ;;  %17759 = vmatprep.mubr.f32.mxu0 %v25727_v27 }
 0x704   :  { %17760 = vmatmul.mubr.f32.vlgmr.msra.gmra.mrb[32].mxu0 %v25719_v61 }
 0x705   :  { %17762 = vmatprep.mubr.f32.mxu0 %v25742_v6 }
 0x708   :  { %17763 = vmatmul.mubr.f32.gmra.mrb[34].mxu0 %v25738_v21 }
 0x709   :  { %17765 = vmatprep.mubr.f32.mxu0 %v25770_v0 }
 0x70c   :  { %17766 = vmatmul.mubr.f32.gmra.mrb[36].mxu0 %v25763_v14 }
 0x70d   :  { %17768 = vmatprep.mubr.f32.mxu0 %v25790_v25 }
 0x710   :  { %17769 = vmatmul.mubr.f32.gmra.mrb[38].mxu0 %v25786_v30 }
 0x711   :  { %17771 = vmatprep.mubr.f32.mxu0 %v25811_v53 }
 0x714   :  { %17772 = vmatmul.mubr.f32.gmra.mrb[40].mxu0 %v25807_v20  ;;  %v7511_v20 = vld [vmem:[%s29879_s17] sm:$0xff] }
 0x715   :  { %17774 = vmatprep.mubr.f32.mxu0 %v25832_v55  ;;  %v29880_v55 = vmov 0.0   ;;  %v7516_v2 = vsel %vm7514_vm6, %v7511_v20, 0 }
 0x716   :  { %v6803_v21 = vsel %vm6801_vm0, 1.0, %v29880_v55  ;;  %v6804_v33 = vsel %vm6802_vm4, 1.0, %v29880_v55  ;;  %v6813_v25 = vsel %vm6811_vm5, 1.0, %v29880_v55  ;;  %v26100_v58 = vand.u32 4294901760, %v7516_v2 }
 0x717   :  { %v6815_v61 = vsub.f32 %v6804_v33, %v6813_v25 }
 0x718   :  { %17775 = vmatmul.mubr.f32.gmra.mrb[42].mxu0 %v25828_v34  ;;  %v7512_v34 = vld [vmem:[%s29879_s17 + $0x8] sm:$0xff] }
 0x719   :  { %17777 = vmatprep.mubr.f32.mxu0 %v25853_v11  ;;  %v6812_v11 = vsel %vm6810_vm3, 1.0, %v29880_v55  ;;  %v7519_v54 = vsel %vm7514_vm6, %v7512_v34, 0 }
 0x71a   :  { %v6814_v53 = vsub.f32 %v6803_v21, %v6812_v11  ;;  %v26106_v12 = vand.u32 4294901760, %v7519_v54 }
 0x71c   :  { %17778 = vmatmul.mubr.f32.gmra.mrb[44].mxu0 %v25849_v10  ;;  %v26086_v27 = vand.u32 4294901760, %v6814_v53  ;;  %v26098_v10 = vand.u32 4294901760, %v6815_v61  ;;  %v26118_v40 = vsub.f32 %v7519_v54, %v26106_v12  ;;  %v23116_v54 = vld [vmem:[#allocation3 + $0x20] sm:$0xff] }
 0x71d   :  { %17780 = vmatprep.mubr.f32.mxu0 %v25873_v45  ;;  %v26109_v45 = vsub.f32 %v7516_v2, %v26100_v58 }
 0x71e   :  { %17850 = vmatprep.mubr.f32.mxu1 %v26086_v27  ;;  %v26090_v6 = vsub.f32 %v6814_v53, %v26086_v27  ;;  %v26103_v24 = vsub.f32 %v6815_v61, %v26098_v10  ;;  %v29550_v47 = vand.u32 4294901760, %v26118_v40 }
 0x71f   :  { %v29551_v38 = vand.u32 4294901760, %v26109_v45 }
 0x720   :  { %17781 = vmatmul.mubr.f32.gmra.mrb[46].mxu0 %v25870_v26  ;;  %v29549_v14 = vand.u32 4294901760, %v26090_v6  ;;  %v7513_v26 = vld [vmem:[%s29881_s29] sm:$0xff]  ;;  %v29548_v32 = vand.u32 4294901760, %v26103_v24  ;;  %v26152_v3 = vsub.f32 %v26118_v40, %v29550_v47 }
 0x721   :  { %v26112_v22 = vand.u32 4294901760, %v7513_v26  ;;  %v26135_v9 = vsub.f32 %v26109_v45, %v29551_v38 }
 0x722   :  { %v6902_v0 = vsub.f32 %v26090_v6, %v29549_v14  ;;  %v26125_v18 = vsub.f32 %v26103_v24, %v29548_v32 }
 0x723   :  { %v26128_v51 = vsub.f32 %v7513_v26, %v26112_v22 }
 0x724   :  { %v6903_v30 = vand.u32 4294901760, %v6902_v0  ;;  %v23115_v0 = vld [vmem:[#allocation3 + $0x28] sm:$0xff] }
 0x725   :  { %v26142_v49 = vand.u32 4294901760, %v26128_v51 }
 0x726   :  { %17815 = vmatprep.mubr.f32.mxu0 %v6903_v30 }
 0x7d7   :  { %v17761_v17 = vpop.f32.mrb[32].mxu0 }
 0x7d8   :  { %v22521_v42 = vadd.f32 %v17761_v17, %v26115_v15  ;;  %v6667_v31 = vpop.f32.mrb[33].mxu0 }
 0x7d9   :  { %v22522_v35 = vadd.f32 %v26115_v15, %v6667_v31 }
 0x7da   :  { %v6762_v46 = vadd.f32 %v23111_v60, %v22521_v42  ;;  %v6822_v50 = vand.u32 4294901760, %v22521_v42 }
 0x7db   :  { %v6761_v43 = vadd.f32 %v23112_v4, %v22522_v35  ;;  %v6819_v36 = vand.u32 4294901760, %v22522_v35  ;;  %v17764_v19 = vpop.f32.mrb[34].mxu0 }
 0x7dc   :  { %6778 = vst [vmem:[#allocation19 + $0x8] sm:$0xff] %v6762_v46  ;;  %v26137_v44 = vsub.f32 %v22521_v42, %v6822_v50  ;;  %v22523_v28 = vadd.f32 %v17764_v19, %v26115_v15  ;;  %v6679_v52 = vpop.f32.mrb[35].mxu0 }
 0x7dd   :  { %6777 = vst [vmem:[#allocation19] sm:$0xff] %v6761_v43  ;;  %v26144_v29 = vpack.c.bf16 %v6822_v50, %v6819_v36  ;;  %v26146_v62 = vsub.f32 %v22522_v35, %v6819_v36  ;;  %v22524_v39 = vadd.f32 %v26115_v15, %v6679_v52 }
 0x7de   :  { %v6764_v63 = vadd.f32 %v23113_v23, %v22523_v28  ;;  %v6828_v48 = vand.u32 4294901760, %v22523_v28  ;;  %v6929_v13 = vand.u32 4294901760, %v26137_v44 }
 0x7df   :  { %v6763_v8 = vadd.f32 %v23114_v16, %v22524_v39  ;;  %v6825_v57 = vand.u32 4294901760, %v22524_v39  ;;  %v17767_v59 = vpop.f32.mrb[36].mxu0  ;;  %20538 = vmatprep.subr.bf16.mxu0 %v26144_v29  ;;  %v6922_v56 = vand.u32 4294901760, %v26146_v62  ;;  %v26160_v7 = vpack.c.bf16 %v26137_v44, %v26146_v62 }
 0x7e0   :  { %6780 = vst [vmem:[#allocation19 + $0x18] sm:$0xff] %v6764_v63  ;;  %v26162_v41 = vsub.f32 %v22523_v28, %v6828_v48  ;;  %v22525_v5 = vadd.f32 %v17767_v59, %v26115_v15  ;;  %v6691_v55 = vpop.f32.mrb[37].mxu0  ;;  %20540 = vmatpush3.bf16.msra.mxu0 %v26144_v29  ;;  %v6930_v21 = vsub.f32 %v26137_v44, %v6929_v13 }
 0x7e1   :  { %6779 = vst [vmem:[#allocation19 + $0x10] sm:$0xff] %v6763_v8  ;;  %v26171_v33 = vpack.c.bf16 %v6828_v48, %v6825_v57  ;;  %v26173_v25 = vsub.f32 %v22524_v39, %v6825_v57  ;;  %v22526_v53 = vadd.f32 %v26115_v15, %v6691_v55  ;;  %v6923_v61 = vsub.f32 %v26146_v62, %v6922_v56  ;;  %v23117_v39 = vld [vmem:[#allocation3 + $0x38] sm:$0xff]  ;;  %v23118_v8 = vld [vmem:[#allocation3 + $0x30] sm:$0xff] }
 0x7e2   :  { %v6766_v30 = vadd.f32 %v23115_v0, %v22525_v5  ;;  %v6834_v20 = vand.u32 4294901760, %v22525_v5  ;;  %v6931_v34 = vand.u32 4294901760, %v6930_v21  ;;  %v6943_v2 = vand.u32 4294901760, %v26162_v41 }
 0x7e3   :  { %v6765_v26 = vadd.f32 %v23116_v54, %v22526_v53  ;;  %v6831_v17 = vand.u32 4294901760, %v22526_v53  ;;  %v17770_v42 = vpop.f32.mrb[38].mxu0  ;;  %20542 = vmatprep.subr.bf16.mxu0 %v26171_v33  ;;  %v6924_v31 = vand.u32 4294901760, %v6923_v61  ;;  %v6936_v35 = vand.u32 4294901760, %v26173_v25 }
 0x7e4   :  { %6782 = vst [vmem:[#allocation19 + $0x28] sm:$0xff] %v6766_v30  ;;  %v26182_v60 = vsub.f32 %v22525_v5, %v6834_v20  ;;  %v22527_v46 = vadd.f32 %v17770_v42, %v26115_v15  ;;  %v6703_v50 = vpop.f32.mrb[39].mxu0  ;;  %20544 = vmatpush3.bf16.msra.mxu0 %v26171_v33  ;;  %v6944_v4 = vsub.f32 %v26162_v41, %v6943_v2  ;;  %v23119_v42 = vld [vmem:[#allocation3 + $0x48] sm:$0xff] }
 0x7e5   :  { %v26191_v43 = vpack.c.bf16 %v26162_v41, %v26173_v25  ;;  %6781 = vst [vmem:[#allocation19 + $0x20] sm:$0xff] %v6765_v26  ;;  %v26193_v36 = vpack.c.bf16 %v6834_v20, %v6831_v17  ;;  %v26195_v19 = vsub.f32 %v22526_v53, %v6831_v17  ;;  %v22528_v28 = vadd.f32 %v26115_v15, %v6703_v50 }
 0x7e6   :  { %v20569_v52 = vpack.c.bf16 %v6931_v34, %v6924_v31  ;;  %v6768_v23 = vadd.f32 %v23117_v39, %v22527_v46  ;;  %v6840_v63 = vand.u32 4294901760, %v22527_v46  ;;  %v6937_v48 = vsub.f32 %v26173_v25, %v6936_v35 }
 0x7e7   :  { %v6945_v16 = vand.u32 4294901760, %v6944_v4  ;;  %v6767_v57 = vadd.f32 %v23118_v8, %v22528_v28  ;;  %v6837_v59 = vand.u32 4294901760, %v22528_v28  ;;  %v17773_v5 = vpop.f32.mrb[40].mxu0  ;;  %20546 = vmatprep.subr.bf16.mxu0 %v26193_v36  ;;  %v29557_v55 = vand.u32 4294901760, %v26195_v19 }
 0x7e8   :  { %20570 = vmatprep.subr.bf16.mxu1 %v20569_v52  ;;  %v29556_v21 = vand.u32 4294901760, %v26182_v60  ;;  %6784 = vst [vmem:[#allocation19 + $0x38] sm:$0xff] %v6768_v23  ;;  %v26204_v53 = vsub.f32 %v22527_v46, %v6840_v63  ;;  %v22529_v61 = vadd.f32 %v17773_v5, %v26115_v15  ;;  %v6715_v0 = vpop.f32.mrb[41].mxu0  ;;  %20548 = vmatpush3.bf16.msra.mxu0 %v26193_v36  ;;  %v6938_v30 = vand.u32 4294901760, %v6937_v48 }
 0x7e9   :  { %20572 = vmatpush3.bf16.msra.mxu1 %v20569_v52  ;;  %v26210_v20 = vpack.c.bf16 %v26182_v60, %v26195_v19  ;;  %6783 = vst [vmem:[#allocation19 + $0x30] sm:$0xff] %v6767_v57  ;;  %v26212_v34 = vpack.c.bf16 %v6840_v63, %v6837_v59  ;;  %v26214_v54 = vsub.f32 %v22528_v28, %v6837_v59  ;;  %v23120_v52 = vld [vmem:[#allocation3 + $0x40] sm:$0xff]  ;;  %v29884_v62 = vand.u32 4294901760, %v26195_v19 }
 0x7ea   :  { %v22530_v26 = vadd.f32 %v26115_v15, %v6715_v0  ;;  %v6951_v17 = vsub.f32 %v26195_v19, %v29557_v55  ;;  %v6770_v31 = vadd.f32 %v23119_v42, %v22529_v61  ;;  %v6846_v46 = vand.u32 4294901760, %v22529_v61  ;;  %v23121_v42 = vld [vmem:[#allocation3 + $0x58] sm:$0xff] }
 0x7eb   :  { %v20573_v50 = vpack.c.bf16 %v6945_v16, %v6938_v30  ;;  %v6958_v4 = vsub.f32 %v26182_v60, %v29556_v21  ;;  %v17776_v63 = vpop.f32.mrb[42].mxu0  ;;  %20550 = vmatprep.subr.bf16.mxu0 %v26212_v34  ;;  %v29555_v48 = vand.u32 4294901760, %v26214_v54  ;;  %v29554_v5 = vand.u32 4294901760, %v26204_v53 }
 0x7ec   :  { %v6769_v39 = vadd.f32 %v23120_v52, %v22530_v26  ;;  %v6843_v23 = vand.u32 4294901760, %v22530_v26  ;;  %v6952_v28 = vand.u32 4294901760, %v6951_v17  ;;  %6786 = vst [vmem:[#allocation19 + $0x48] sm:$0xff] %v6770_v31  ;;  %v26225_v8 = vsub.f32 %v22529_v61, %v6846_v46  ;;  %v6727_v16 = vpop.f32.mrb[43].mxu0  ;;  %20552 = vmatpush3.bf16.msra.mxu0 %v26212_v34 }
 0x7ed   :  { %v22531_v57 = vadd.f32 %v17776_v63, %v26115_v15  ;;  %20574 = vmatprep.subr.bf16.mxu1 %v20573_v50  ;;  %v6959_v59 = vand.u32 4294901760, %v6958_v4  ;;  %v22532_v17 = vadd.f32 %v26115_v15, %v6727_v16  ;;  %v6965_v61 = vsub.f32 %v26214_v54, %v29555_v48 }
 0x7ee   :  { %6785 = vst [vmem:[#allocation19 + $0x40] sm:$0xff] %v6769_v39  ;;  %v26230_v0 = vpack.c.bf16 %v6846_v46, %v6843_v23  ;;  %v26232_v30 = vsub.f32 %v22530_v26, %v6843_v23  ;;  %20576 = vmatpush3.bf16.msra.mxu1 %v20573_v50  ;;  %v6972_v4 = vsub.f32 %v26204_v53, %v29554_v5  ;;  %v23122_v39 = vld [vmem:[#allocation3 + $0x50] sm:$0xff]  ;;  %v29552_v14 = vand.u32 4294901760, %v26225_v8 }
 0x7ef   :  { %v6772_v31 = vadd.f32 %v23121_v42, %v22531_v57  ;;  %v6852_v52 = vand.u32 4294901760, %v22531_v57  ;;  %v20577_v63 = vpack.c.bf16 %v6959_v59, %v6952_v28  ;;  %v6771_v46 = vadd.f32 %v23122_v39, %v22532_v17  ;;  %v17779_v26 = vpop.f32.mrb[44].mxu0 }
 0x7f0   :  { %v6849_v32 = vand.u32 4294901760, %v22532_v17  ;;  %20554 = vmatprep.subr.bf16.mxu0 %v26230_v0  ;;  %v6966_v23 = vand.u32 4294901760, %v6965_v61  ;;  %v29553_v50 = vand.u32 4294901760, %v26232_v30  ;;  %v22533_v42 = vadd.f32 %v17779_v26, %v26115_v15  ;;  %v6739_v28 = vpop.f32.mrb[45].mxu0 }
 0x7f1   :  { %6788 = vst [vmem:[#allocation19 + $0x58] sm:$0xff] %v6772_v31  ;;  %v26243_v16 = vsub.f32 %v22531_v57, %v6852_v52  ;;  %20578 = vmatprep.subr.bf16.mxu1 %v20577_v63  ;;  %20556 = vmatpush3.bf16.msra.mxu0 %v26230_v0  ;;  %v6973_v59 = vand.u32 4294901760, %v6972_v4  ;;  %6787 = vst [vmem:[#allocation19 + $0x50] sm:$0xff] %v6771_v46  ;;  %v22534_v61 = vadd.f32 %v26115_v15, %v6739_v28  ;;  %v23123_v31 = vld [vmem:[#allocation3 + $0x68] sm:$0xff]  ;;  %v23124_v46 = vld [vmem:[#allocation3 + $0x60] sm:$0xff] }
 0x7f2   :  { %v26248_v39 = vpack.c.bf16 %v6852_v52, %v6849_v32  ;;  %v26250_v47 = vsub.f32 %v22532_v17, %v6849_v32  ;;  %20580 = vmatpush3.bf16.msra.mxu1 %v20577_v63  ;;  %v6979_v57 = vsub.f32 %v26232_v30, %v29553_v50  ;;  %v6774_v26 = vadd.f32 %v23123_v31, %v22533_v42 }
 0x7f3   :  { %v6858_v38 = vand.u32 4294901760, %v22533_v42  ;;  %v20581_v1 = vpack.c.bf16 %v6973_v59, %v6966_v23  ;;  %v6986_v4 = vsub.f32 %v26225_v8, %v29552_v14  ;;  %v6773_v52 = vadd.f32 %v23124_v46, %v22534_v61  ;;  %v17782_v32 = vpop.f32.mrb[46].mxu0 }
 0x7f4   :  { %v6855_v37 = vand.u32 4294901760, %v22534_v61  ;;  %20558 = vmatprep.subr.bf16.mxu0 %v26248_v39  ;;  %v6980_v17 = vand.u32 4294901760, %v6979_v57  ;;  %v29558_v63 = vand.u32 4294901760, %v26250_v47  ;;  %6790 = vst [vmem:[#allocation19 + $0x68] sm:$0xff] %v6774_v26  ;;  %v22535_v31 = vadd.f32 %v17782_v32, %v26115_v15  ;;  %v6751_v23 = vpop.f32.mrb[47].mxu0  ;;  %v23125_v26 = vld [vmem:[#allocation3 + $0x78] sm:$0xff] }
 0x7f5   :  { %v26261_v28 = vsub.f32 %v22533_v42, %v6858_v38  ;;  %20582 = vmatprep.subr.bf16.mxu1 %v20581_v1  ;;  %20560 = vmatpush3.bf16.msra.mxu0 %v26248_v39  ;;  %v6987_v59 = vand.u32 4294901760, %v6986_v4  ;;  %v6999_v14 = vand.u32 4294901760, %v26243_v16  ;;  %6789 = vst [vmem:[#allocation19 + $0x60] sm:$0xff] %v6773_v52  ;;  %v22536_v57 = vadd.f32 %v26115_v15, %v6751_v23  ;;  %v23126_v4 = vld [vmem:[#allocation3 + $0x70] sm:$0xff] }
 0x7f6   :  { %v26266_v46 = vpack.c.bf16 %v6858_v38, %v6855_v37  ;;  %v7005_v50 = vsub.f32 %v22534_v61, %v6855_v37  ;;  %20584 = vmatpush3.bf16.msra.mxu1 %v20581_v1  ;;  %v6993_v42 = vsub.f32 %v26250_v47, %v29558_v63  ;;  %v6776_v32 = vadd.f32 %v23125_v26, %v22535_v31 }
 0x7f7   :  { %v6864_v5 = vand.u32 4294901760, %v22535_v31  ;;  %v20585_v48 = vpack.c.bf16 %v6987_v59, %v6980_v17  ;;  %v7000_v21 = vsub.f32 %v26243_v16, %v6999_v14  ;;  %v6775_v55 = vadd.f32 %v23126_v4, %v22536_v57 }
 0x7f8   :  { %v6861_v11 = vand.u32 4294901760, %v22536_v57  ;;  %20562 = vmatprep.subr.bf16.mxu0 %v26266_v46  ;;  %v6994_v38 = vand.u32 4294901760, %v6993_v42  ;;  %v7006_v37 = vand.u32 4294901760, %v7005_v50  ;;  %6792 = vst [vmem:[#allocation19 + $0x78] sm:$0xff] %v6776_v32  ;;  %v7013_v61 = vand.u32 4294901760, %v26261_v28 }
 0x7f9   :  { %v7026_v15 = vsub.f32 %v22535_v31, %v6864_v5  ;;  %20586 = vmatprep.subr.bf16.mxu1 %v20585_v48  ;;  %20564 = vmatpush3.bf16.msra.mxu0 %v26266_v46  ;;  %v7001_v1 = vand.u32 4294901760, %v7000_v21  ;;  %v26278_v52 = vpack.c.bf16 %v26204_v53, %v26214_v54  ;;  %6791 = vst [vmem:[#allocation19 + $0x70] sm:$0xff] %v6775_v55  ;;  %v29885_v44 = vand.u32 4294901760, %v26182_v60 }
 0x7fa   :  { %v26280_v17 = vpack.c.bf16 %v6864_v5, %v6861_v11  ;;  %v7019_v23 = vsub.f32 %v22536_v57, %v6861_v11  ;;  %20588 = vmatpush3.bf16.msra.mxu1 %v20585_v48  ;;  %v7007_v59 = vsub.f32 %v7005_v50, %v7006_v37  ;;  %v20617_v42 = vpack.c.bf16 %v26225_v8, %v26232_v30 }
 0x7fb   :  { %v20589_v31 = vpack.c.bf16 %v7001_v1, %v6994_v38  ;;  %v7014_v26 = vsub.f32 %v26261_v28, %v7013_v61  ;;  %v7027_v32 = vand.u32 4294901760, %v7026_v15  ;;  %v20621_v21 = vpack.c.bf16 %v26243_v16, %v26250_v47 }
 0x7fc   :  { %20566 = vmatprep.subr.bf16.mxu0 %v26280_v17  ;;  %v7008_v4 = vand.u32 4294901760, %v7007_v59  ;;  %v7020_v63 = vand.u32 4294901760, %v7019_v23  ;;  %v20625_v55 = vpack.c.bf16 %v26261_v28, %v7005_v50  ;;  %v26289_v5 = vpack.c.bf16 %v7026_v15, %v7019_v23 }
 0x7fd   :  { %20590 = vmatprep.subr.bf16.mxu1 %v20589_v31  ;;  %20568 = vmatpush3.bf16.msra.mxu0 %v26280_v17  ;;  %v7015_v11 = vand.u32 4294901760, %v7014_v26  ;;  %v7028_v48 = vsub.f32 %v7026_v15, %v7027_v32  ;;  %v26296_v57 = vpack.c.bf16 %v6929_v13, %v6922_v56  ;;  %v26302_v16 = vpack.c.bf16 %v6943_v2, %v6936_v35 }
 0x7fe   :  { %20592 = vmatpush3.bf16.msra.mxu1 %v20589_v31  ;;  %v7021_v50 = vsub.f32 %v7019_v23, %v7020_v63  ;;  %17993 = vmatprep.subr.mxu0 %v26112_v22  ;;  %v29883_v28 = vsub.f32 %v26128_v51, %v26142_v49  ;;  %v26312_v13 = vpack.c.bf16 %v29885_v44, %v29884_v62  ;;  %v29886_v56 = vand.u32 4294901760, %v26214_v54 }
 0x7ff   :  { %v29887_v41 = vand.u32 4294901760, %v26204_v53  ;;  %v20593_v2 = vpack.c.bf16 %v7015_v11, %v7008_v4  ;;  %v7029_v35 = vand.u32 4294901760, %v7028_v48  ;;  %v29888_v15 = vand.u32 4294901760, %v26232_v30  ;;  %v26467_v4 = vld [vmem:[%s29898_s24 + $0x50] sm:$0xff]  ;;  %v26477_v11 = vld [vmem:[%s29898_s24 + $0x68] sm:$0xff] }
 0x800   :  { %v7612_v38 = vand.u32 4294901760, %v29883_v28  ;;  %v29889_v1 = vand.u32 4294901760, %v26225_v8  ;;  %v29890_v19 = vand.u32 4294901760, %v26250_v47  ;;  %v7022_v60 = vand.u32 4294901760, %v7021_v50 }
 0x801   :  { %v26318_v25 = vpack.c.bf16 %v29887_v41, %v29886_v56  ;;  %v29891_v31 = vand.u32 4294901760, %v26125_v18  ;;  %v7601_v53 = vand.u32 4294901760, %v26152_v3  ;;  %v26333_v54 = vpack.c.bf16 %v7013_v61, %v7006_v37  ;;  %20594 = vmatprep.subr.bf16.mxu1 %v20593_v2 }
 0x802   :  { %v26324_v23 = vpack.c.bf16 %v29889_v1, %v29888_v15  ;;  %v26328_v59 = vpack.c.bf16 %v6999_v14, %v29890_v19  ;;  %v26335_v26 = vpack.c.bf16 %v7027_v32, %v7020_v63  ;;  %20596 = vmatpush3.bf16.msra.mxu1 %v20593_v2  ;;  %v20597_v8 = vpack.c.bf16 %v7029_v35, %v7022_v60  ;;  %v8016_v63 = vld [vmem:[%s29898_s24 + $0x30] sm:$0xff]  ;;  %v26503_v35 = vld [vmem:[%s29898_s24 + $0x78] sm:$0xff] }
 0x803   :  { %17816 = vmatmul.mubr.f32.vlgmr.msra.gmra.mrb[48].mxu0 %v29891_v31  ;;  %v29892_v30 = vand.u32 4294901760, %v26135_v9  ;;  %v29893_v14 = vand.u32 4294901760, %v26109_v45  ;;  %v29894_v18 = vand.u32 4294901760, %v26118_v40  ;;  %v8012_v9 = vld [vmem:[%s29898_s24 + $0x10] sm:$0xff]  ;;  %v8062_v61 = vand.u32 4294901760, %v8016_v63 }
 0x804   :  { %17994 = vmatpush3.msra.mxu0 %v26112_v22  ;;  %20598 = vmatprep.subr.bf16.mxu1 %v20597_v8  ;;  %v8074_v28 = vand.u32 4294901760, %v26467_v4  ;;  %v8083_v44 = vand.u32 4294901760, %v26477_v11  ;;  %v26500_v2 = vld [vmem:[%s29898_s24 + $0x70] sm:$0xff]  ;;  %v8089_v60 = vand.u32 4294901760, %v26503_v35 }
 0x805   :  { %17995 = vmatprep.mubr.f32.mxu0 %v29892_v30  ;;  %17998 = vmatprep.subr.mxu0 %v7612_v38 }
 0x806   :  { %20600 = vmatpush3.bf16.msra.mxu1 %v20597_v8 }
 0x807   :  { %17996 = vmatmul.mubr.f32.vlgmr.msra.gmra.mrb[50].mxu0 %v7601_v53  ;;  %20602 = vmatprep.subr.bf16.mxu1 %v26160_v7 }
 0x808   :  { %17999 = vmatpush3.msra.mxu0 %v7612_v38  ;;  %18000 = vmatprep.mubr.f32.mxu0 %v26100_v58 }
 0x809   :  { %18003 = vmatprep.subr.mxu0 %v26128_v51  ;;  %17851 = vmatmul.mubr.f32.vlgmr.msra.gmra.mrb[32].mxu1 %v26098_v10 }
 0x80a   :  { %20604 = vmatpush3.bf16.msra.mxu1 %v26160_v7  ;;  %17885 = vmatprep.mubr.f32.mxu1 %v26090_v6  ;;  %v8050_v7 = vand.u32 4294901760, %v8012_v9 }
 0x80b   :  { %20606 = vmatprep.subr.bf16.mxu1 %v26191_v43 }
 0x80c   :  { %v26505_v15 = vsub.f32 %v8012_v9, %v8050_v7 }
 0x80e   :  { %20608 = vmatpush3.bf16.msra.mxu1 %v26191_v43  ;;  %v8014_v43 = vld [vmem:[%s29898_s24 + $0x20] sm:$0xff] }
 0x80f   :  { %18001 = vmatmul.mubr.f32.vlgmr.msra.gmra.mrb[50].mxu0 %v26106_v12  ;;  %20610 = vmatprep.subr.bf16.mxu1 %v26210_v20 }
 0x810   :  { %18004 = vmatpush3.msra.mxu0 %v26128_v51  ;;  %18005 = vmatprep.mubr.f32.mxu0 %v26109_v45  ;;  %v29895_v45 = vand.u32 4294901760, %v26090_v6  ;;  %v29896_v6 = vand.u32 4294901760, %v26103_v24 }
 0x811   :  { %18008 = vmatprep.subr.mxu0 %v26112_v22 }
 0x812   :  { %20612 = vmatpush3.bf16.msra.mxu1 %v26210_v20 }
 0x813   :  { %20614 = vmatprep.subr.bf16.mxu1 %v26278_v52 }
 0x816   :  { %20616 = vmatpush3.bf16.msra.mxu1 %v26278_v52 }
 0x817   :  { %18006 = vmatmul.mubr.f32.vlgmr.msra.gmra.mrb[50].mxu0 %v26118_v40  ;;  %20618 = vmatprep.subr.bf16.mxu1 %v20617_v42 }
 0x818   :  { %18009 = vmatpush3.msra.mxu0 %v26112_v22  ;;  %18010 = vmatprep.mubr.f32.mxu0 %v29893_v14 }
 0x819   :  { %18013 = vmatprep.subr.mxu0 %v26142_v49 }
 0x81a   :  { %20620 = vmatpush3.bf16.msra.mxu1 %v20617_v42  ;;  %v8019_v42 = vld [vmem:[%s29898_s24 + $0x48] sm:$0xff] }
 0x81b   :  { %20622 = vmatprep.subr.bf16.mxu1 %v20621_v21 }
 0x81e   :  { %20624 = vmatpush3.bf16.msra.mxu1 %v20621_v21  ;;  %v8071_v21 = vand.u32 4294901760, %v8019_v42 }
 0x81f   :  { %18011 = vmatmul.mubr.f32.vlgmr.msra.gmra.mrb[50].mxu0 %v29894_v18  ;;  %20626 = vmatprep.subr.bf16.mxu1 %v20625_v55  ;;  %v26537_v18 = vsub.f32 %v8016_v63, %v8062_v61 }
 0x820   :  { %18014 = vmatpush3.msra.mxu0 %v26142_v49  ;;  %18015 = vmatprep.mubr.f32.mxu0 %v26100_v58  ;;  %v8013_v49 = vld [vmem:[%s29898_s24 + $0x18] sm:$0xff] }
 0x821   :  { %18018 = vmatprep.subr.mxu0 %v26112_v22 }
 0x822   :  { %20628 = vmatpush3.bf16.msra.mxu1 %v20625_v55  ;;  %v26470_v55 = vld [vmem:[%s29898_s24 + $0x58] sm:$0xff] }
 0x823   :  { %20630 = vmatprep.subr.bf16.mxu1 %v26289_v5  ;;  %v8077_v38 = vand.u32 4294901760, %v26470_v55 }
 0x826   :  { %20632 = vmatpush3.bf16.msra.mxu1 %v26289_v5  ;;  %v26474_v5 = vld [vmem:[%s29898_s24 + $0x60] sm:$0xff] }
 0x827   :  { %18016 = vmatmul.mubr.f32.vlgmr.msra.gmra.mrb[50].mxu0 %v26106_v12  ;;  %20634 = vmatprep.subr.bf16.mxu1 %v26144_v29  ;;  %v8080_v62 = vand.u32 4294901760, %v26474_v5 }
 0x828   :  { %18019 = vmatpush3.msra.mxu0 %v26112_v22  ;;  %18020 = vmatprep.mubr.f32.mxu0 %v26100_v58  ;;  %v7509_v58 = vld [vmem:[%s29897_s8] sm:$0xff]  ;;  %v8011_v22 = vld [vmem:[%s29898_s24 + $0x8] sm:$0xff] }
 0x829   :  { %17886 = vmatmul.mubr.f32.vlgmr.msra.gmra.mrb[32].mxu1 %v26103_v24  ;;  %v26421_v24 = vand.u32 4294901760, %v7509_v58  ;;  %v8047_v47 = vand.u32 4294901760, %v8011_v22 }
 0x82a   :  { %20636 = vmatpush3.bf16.msra.mxu1 %v26144_v29  ;;  %17920 = vmatprep.mubr.f32.mxu1 %v29895_v45 }
 0x82b   :  { %20638 = vmatprep.subr.bf16.mxu1 %v26171_v33 }
 0x82e   :  { %20640 = vmatpush3.bf16.msra.mxu1 %v26171_v33 }
 0x82f   :  { %18021 = vmatmul.mubr.f32.vlgmr.msra.gmra.mrb[50].mxu0 %v26106_v12  ;;  %20642 = vmatprep.subr.bf16.mxu1 %v26193_v36  ;;  %v8010_v12 = vld [vmem:[%s29898_s24] sm:$0xff] }
 0x830   :  { %v8044_v51 = vand.u32 4294901760, %v8010_v12 }
 0x832   :  { %20644 = vmatpush3.bf16.msra.mxu1 %v26193_v36  ;;  %v26442_v3 = vpack.c.bf16 %v8047_v47, %v8044_v51  ;;  %v26479_v48 = vsub.f32 %v8010_v12, %v8044_v51 }
 0x833   :  { %20646 = vmatprep.subr.bf16.mxu1 %v26212_v34 }
 0x834   :  { %v8147_v56 = vand.u32 4294901760, %v26479_v48 }
 0x836   :  { %20648 = vmatpush3.bf16.msra.mxu1 %v26212_v34  ;;  %v8148_v31 = vsub.f32 %v26479_v48, %v8147_v56 }
 0x837   :  { %20650 = vmatprep.subr.bf16.mxu1 %v26230_v0 }
 0x83a   :  { %20652 = vmatpush3.bf16.msra.mxu1 %v26230_v0 }
 0x83b   :  { %20654 = vmatprep.subr.bf16.mxu1 %v26248_v39 }
 0x83e   :  { %20656 = vmatpush3.bf16.msra.mxu1 %v26248_v39 }
 0x83f   :  { %20658 = vmatprep.subr.bf16.mxu1 %v26266_v46 }
 0x842   :  { %20660 = vmatpush3.bf16.msra.mxu1 %v26266_v46 }
 0x843   :  { %20662 = vmatprep.subr.bf16.mxu1 %v26280_v17 }
 0x846   :  { %20664 = vmatpush3.bf16.msra.mxu1 %v26280_v17 }
 0x847   :  { %20666 = vmatprep.subr.bf16.mxu1 %v26296_v57 }
 0x849   :  { %17921 = vmatmul.mubr.f32.vlgmr.msra.gmra.mrb[32].mxu1 %v29896_v6 }
 0x84a   :  { %20668 = vmatpush3.bf16.msra.mxu1 %v26296_v57  ;;  %17955 = vmatprep.mubr.f32.mxu1 %v26086_v27  ;;  %v26481_v57 = vsub.f32 %v8011_v22, %v8047_v47 }
 0x84b   :  { %20670 = vmatprep.subr.bf16.mxu1 %v26302_v16 }
 0x84c   :  { %v8154_v41 = vand.u32 4294901760, %v26481_v57 }
 0x84e   :  { %20672 = vmatpush3.bf16.msra.mxu1 %v26302_v16  ;;  %v7510_v16 = vld [vmem:[%s29897_s8 + $0x8] sm:$0xff]  ;;  %v8155_v53 = vsub.f32 %v26481_v57, %v8154_v41 }
 0x84f   :  { %20674 = vmatprep.subr.bf16.mxu1 %v26312_v13 }
 0x850   :  { %v8156_v12 = vand.u32 4294901760, %v8155_v53 }
 0x852   :  { %20676 = vmatpush3.bf16.msra.mxu1 %v26312_v13  ;;  %v26491_v13 = vand.u32 4294901760, %v7510_v16 }
 0x853   :  { %20678 = vmatprep.subr.bf16.mxu1 %v26318_v25 }
 0x854   :  { %v26516_v19 = vsub.f32 %v7510_v16, %v26491_v13  ;;  %v26588_v16 = vsub.f32 %v26470_v55, %v8077_v38 }
 0x856   :  { %20680 = vmatpush3.bf16.msra.mxu1 %v26318_v25  ;;  %v26497_v25 = vpack.c.bf16 %v8077_v38, %v8074_v28  ;;  %v26535_v14 = vand.u32 4294901760, %v26516_v19 }
 0x857   :  { %20682 = vmatprep.subr.bf16.mxu1 %v26324_v23 }
 0x85a   :  { %20684 = vmatpush3.bf16.msra.mxu1 %v26324_v23  ;;  %v26513_v23 = vpack.c.bf16 %v8083_v44, %v8080_v62 }
 0x85b   :  { %20686 = vmatprep.subr.bf16.mxu1 %v26328_v59 }
 0x85e   :  { %20688 = vmatpush3.bf16.msra.mxu1 %v26328_v59  ;;  %v8086_v59 = vand.u32 4294901760, %v26500_v2 }
 0x85f   :  { %20690 = vmatprep.subr.bf16.mxu1 %v26333_v54 }
 0x860   :  { %v26546_v6 = vpack.c.bf16 %v8089_v60, %v8086_v59 }
 0x862   :  { %20692 = vmatpush3.bf16.msra.mxu1 %v26333_v54  ;;  %v8161_v54 = vand.u32 4294901760, %v26505_v15 }
 0x863   :  { %20694 = vmatprep.subr.bf16.mxu1 %v26335_v26 }
 0x864   :  { %v8162_v22 = vsub.f32 %v26505_v15, %v8161_v54 }
 0x866   :  { %20696 = vmatpush3.bf16.msra.mxu1 %v26335_v26 }
 0x867   :  { %20698 = vmatprep.subr.bf16.mxu1 %v26144_v29 }
 0x869   :  { %17956 = vmatmul.mubr.f32.vlgmr.msra.gmra.mrb[32].mxu1 %v26098_v10 }
 0x86a   :  { %20700 = vmatpush3.bf16.msra.mxu1 %v26144_v29  ;;  %17990 = vmatprep.mubr.f32.mxu1 %v26086_v27  ;;  %v26426_v27 = vsub.f32 %v7509_v58, %v26421_v24  ;;  %v8149_v58 = vand.u32 4294901760, %v8148_v31 }
 0x86b   :  { %20702 = vmatprep.subr.bf16.mxu1 %v26171_v33 }
 0x86c   :  { %v26433_v40 = vand.u32 4294901760, %v26426_v27 }
 0x86e   :  { %20704 = vmatpush3.bf16.msra.mxu1 %v26171_v33  ;;  %v8127_v29 = vsub.f32 %v26426_v27, %v26433_v40  ;;  %v8053_v33 = vand.u32 4294901760, %v8013_v49 }
 0x86f   :  { %20706 = vmatprep.subr.bf16.mxu1 %v26193_v36 }
 0x870   :  { %v26447_v20 = vand.u32 4294901760, %v8127_v29  ;;  %v26507_v1 = vsub.f32 %v8013_v49, %v8053_v33  ;;  %v8137_v49 = vsub.f32 %v26516_v19, %v26535_v14  ;;  %v8189_v29 = vand.u32 4294901760, %v26537_v18 }
 0x872   :  { %20708 = vmatpush3.bf16.msra.mxu1 %v26193_v36  ;;  %v8015_v36 = vld [vmem:[%s29898_s24 + $0x28] sm:$0xff]  ;;  %v8168_v26 = vand.u32 4294901760, %v26507_v1 }
 0x873   :  { %20710 = vmatprep.subr.bf16.mxu1 %v26212_v34 }
 0x874   :  { %v8169_v51 = vsub.f32 %v26507_v1, %v8168_v26 }
 0x876   :  { %20712 = vmatpush3.bf16.msra.mxu1 %v26212_v34  ;;  %v26450_v34 = vpack.c.bf16 %v8053_v33, %v8050_v7  ;;  %v20761_v33 = vpack.c.bf16 %v8156_v12, %v8149_v58 }
 0x877   :  { %20714 = vmatprep.subr.bf16.mxu1 %v26230_v0 }
 0x87a   :  { %20716 = vmatpush3.bf16.msra.mxu1 %v26230_v0  ;;  %v8056_v0 = vand.u32 4294901760, %v8014_v43 }
 0x87b   :  { %20718 = vmatprep.subr.bf16.mxu1 %v26248_v39 }
 0x87c   :  { %v26530_v8 = vsub.f32 %v8014_v43, %v8056_v0 }
 0x87e   :  { %20720 = vmatpush3.bf16.msra.mxu1 %v26248_v39  ;;  %v8059_v39 = vand.u32 4294901760, %v8015_v36  ;;  %v8175_v47 = vand.u32 4294901760, %v26530_v8 }
 0x87f   :  { %20722 = vmatprep.subr.bf16.mxu1 %v26266_v46 }
 0x880   :  { %v26458_v37 = vpack.c.bf16 %v8059_v39, %v8056_v0  ;;  %v26532_v30 = vsub.f32 %v8015_v36, %v8059_v39  ;;  %v26564_v36 = vsub.f32 %v8019_v42, %v8071_v21  ;;  %v8163_v0 = vand.u32 4294901760, %v8162_v22 }
 0x881   :  { %v8170_v39 = vand.u32 4294901760, %v8169_v51  ;;  %v8176_v63 = vsub.f32 %v26530_v8, %v8175_v47 }
 0x882   :  { %20724 = vmatpush3.bf16.msra.mxu1 %v26266_v46  ;;  %v8017_v46 = vld [vmem:[%s29898_s24 + $0x38] sm:$0xff]  ;;  %v8182_v9 = vand.u32 4294901760, %v26532_v30 }
 0x883   :  { %20726 = vmatprep.subr.bf16.mxu1 %v26280_v17  ;;  %v8065_v52 = vand.u32 4294901760, %v8017_v46  ;;  %v20765_v31 = vpack.c.bf16 %v8170_v39, %v8163_v0  ;;  %v8177_v53 = vand.u32 4294901760, %v8176_v63 }
 0x885   :  { %v26539_v45 = vsub.f32 %v8017_v46, %v8065_v52  ;;  %v8183_v46 = vsub.f32 %v26532_v30, %v8182_v9 }
 0x886   :  { %20728 = vmatpush3.bf16.msra.mxu1 %v26280_v17  ;;  %v8018_v17 = vld [vmem:[%s29898_s24 + $0x40] sm:$0xff] }
 0x887   :  { %20730 = vmatprep.subr.bf16.mxu1 %v26442_v3  ;;  %v8068_v32 = vand.u32 4294901760, %v8018_v17  ;;  %v8196_v7 = vand.u32 4294901760, %v26539_v45  ;;  %v8184_v58 = vand.u32 4294901760, %v8183_v46 }
 0x889   :  { %17991 = vmatmul.mubr.f32.vlgmr.msra.gmra.mrb[32].mxu1 %v26098_v10  ;;  %v26464_v10 = vpack.c.bf16 %v8065_v52, %v8062_v61  ;;  %v26485_v50 = vpack.c.bf16 %v8071_v21, %v8068_v32  ;;  %v26562_v43 = vsub.f32 %v8018_v17, %v8068_v32  ;;  %v26573_v61 = vand.u32 4294901760, %v8137_v49 }
 0x88a   :  { %20732 = vmatpush3.bf16.msra.mxu1 %v26442_v3  ;;  %18055 = vmatprep.mubr.f32.mxu1 %v26447_v20  ;;  %v8190_v52 = vsub.f32 %v26537_v18, %v8189_v29  ;;  %v8197_v17 = vsub.f32 %v26539_v45, %v8196_v7  ;;  %v8210_v32 = vand.u32 4294901760, %v26564_v36  ;;  %v26585_v21 = vsub.f32 %v26467_v4, %v8074_v28 }
 0x88b   :  { %20734 = vmatprep.subr.bf16.mxu1 %v26450_v34  ;;  %v8203_v42 = vand.u32 4294901760, %v26562_v43  ;;  %v8224_v28 = vand.u32 4294901760, %v26588_v16  ;;  %v20769_v38 = vpack.c.bf16 %v8184_v58, %v8177_v53  ;;  %v26603_v49 = vsub.f32 %v26474_v5, %v8080_v62 }
 0x88c   :  { %v8191_v12 = vand.u32 4294901760, %v8190_v52  ;;  %v8198_v22 = vand.u32 4294901760, %v8197_v17  ;;  %v8211_v4 = vsub.f32 %v26564_v36, %v8210_v32  ;;  %v8217_v55 = vand.u32 4294901760, %v26585_v21 }
 0x88d   :  { %v8204_v51 = vsub.f32 %v26562_v43, %v8203_v42  ;;  %v8225_v52 = vsub.f32 %v26588_v16, %v8224_v28  ;;  %v8231_v5 = vand.u32 4294901760, %v26603_v49 }
 0x88e   :  { %20736 = vmatpush3.bf16.msra.mxu1 %v26450_v34  ;;  %v20773_v0 = vpack.c.bf16 %v8198_v22, %v8191_v12  ;;  %v8212_v63 = vand.u32 4294901760, %v8211_v4  ;;  %v8218_v46 = vsub.f32 %v26585_v21, %v8217_v55 }
 0x88f   :  { %20738 = vmatprep.subr.bf16.mxu1 %v26458_v37  ;;  %v8205_v39 = vand.u32 4294901760, %v8204_v51  ;;  %v8226_v53 = vand.u32 4294901760, %v8225_v52  ;;  %v8232_v58 = vsub.f32 %v26603_v49, %v8231_v5  ;;  %v20797_v52 = vpack.c.bf16 %v26507_v1, %v26505_v15 }
 0x891   :  { %v20777_v17 = vpack.c.bf16 %v8212_v63, %v8205_v39 }
 0x892   :  { %20740 = vmatpush3.bf16.msra.mxu1 %v26458_v37 }
 0x893   :  { %20742 = vmatprep.subr.bf16.mxu1 %v26464_v10 }
 0x896   :  { %20744 = vmatpush3.bf16.msra.mxu1 %v26464_v10 }
 0x897   :  { %20746 = vmatprep.subr.bf16.mxu1 %v26485_v50 }
 0x89a   :  { %20748 = vmatpush3.bf16.msra.mxu1 %v26485_v50 }
 0x89b   :  { %20750 = vmatprep.subr.bf16.mxu1 %v26497_v25 }
 0x89e   :  { %20752 = vmatpush3.bf16.msra.mxu1 %v26497_v25 }
 0x89f   :  { %20754 = vmatprep.subr.bf16.mxu1 %v26513_v23 }
 0x8a2   :  { %20756 = vmatpush3.bf16.msra.mxu1 %v26513_v23 }
 0x8a3   :  { %20758 = vmatprep.subr.bf16.mxu1 %v26546_v6 }
 0x8a6   :  { %20760 = vmatpush3.bf16.msra.mxu1 %v26546_v6 }
 0x8a7   :  { %20762 = vmatprep.subr.bf16.mxu1 %v20761_v33 }
 0x8a9   :  { %18056 = vmatmul.mubr.f32.vlgmr.msra.gmra.mrb[34].mxu1 %v26573_v61 }
 0x8aa   :  { %20764 = vmatpush3.bf16.msra.mxu1 %v20761_v33  ;;  %18090 = vmatprep.mubr.f32.mxu1 %v26421_v24  ;;  %v26608_v33 = vsub.f32 %v26477_v11, %v8083_v44  ;;  %v26621_v11 = vsub.f32 %v26500_v2, %v8086_v59  ;;  %v26626_v44 = vsub.f32 %v26503_v35, %v8089_v60  ;;  %v8233_v60 = vand.u32 4294901760, %v8232_v58 }
 0x8ab   :  { %20766 = vmatprep.subr.bf16.mxu1 %v20765_v31 }
 0x8ac   :  { %v8238_v62 = vand.u32 4294901760, %v26608_v33  ;;  %v8245_v2 = vand.u32 4294901760, %v26621_v11  ;;  %v8252_v59 = vand.u32 4294901760, %v26626_v44 }
 0x8ae   :  { %20768 = vmatpush3.bf16.msra.mxu1 %v20765_v31  ;;  %v8219_v31 = vand.u32 4294901760, %v8218_v46  ;;  %v8239_v12 = vsub.f32 %v26608_v33, %v8238_v62  ;;  %v8246_v51 = vsub.f32 %v26621_v11, %v8245_v2  ;;  %v8253_v4 = vsub.f32 %v26626_v44, %v8252_v59 }
 0x8af   :  { %20770 = vmatprep.subr.bf16.mxu1 %v20769_v38  ;;  %v20793_v46 = vpack.c.bf16 %v26481_v57, %v26479_v48  ;;  %v20865_v48 = vpack.c.bf16 %v8182_v9, %v8175_v47  ;;  %v20869_v57 = vpack.c.bf16 %v8196_v7, %v8189_v29  ;;  %v20881_v15 = vpack.c.bf16 %v8238_v62, %v8231_v5  ;;  %v8030_v9 = vld [vmem:[%s29898_s24 + $0xa0] sm:$0xff]  ;;  %v8031_v29 = vld [vmem:[%s29898_s24 + $0xa8] sm:$0xff]  ;;  %v26776_v62 = vld [vmem:[%s29898_s24 + $0xd0] sm:$0xff] }
 0x8b0   :  { %v20781_v35 = vpack.c.bf16 %v8226_v53, %v8219_v31  ;;  %v8240_v22 = vand.u32 4294901760, %v8239_v12  ;;  %v8247_v39 = vand.u32 4294901760, %v8246_v51  ;;  %v8254_v63 = vand.u32 4294901760, %v8253_v4 }
 0x8b1   :  { %v20805_v31 = vpack.c.bf16 %v26539_v45, %v26537_v18  ;;  %v20809_v53 = vpack.c.bf16 %v26564_v36, %v26562_v43  ;;  %v20885_v1 = vpack.c.bf16 %v8252_v59, %v8245_v2  ;;  %v8751_v43 = vand.u32 4294901760, %v8031_v29 }
 0x8b2   :  { %20772 = vmatpush3.bf16.msra.mxu1 %v20769_v38  ;;  %v20785_v38 = vpack.c.bf16 %v8240_v22, %v8233_v60  ;;  %v20817_v60 = vpack.c.bf16 %v26608_v33, %v26603_v49  ;;  %v20821_v22 = vpack.c.bf16 %v26626_v44, %v26621_v11  ;;  %v26779_v11 = vld [vmem:[%s29898_s24 + $0xd8] sm:$0xff]  ;;  %v26783_v44 = vld [vmem:[%s29898_s24 + $0xe0] sm:$0xff] }
 0x8b3   :  { %20774 = vmatprep.subr.bf16.mxu1 %v20773_v0 }
 0x8b6   :  { %20776 = vmatpush3.bf16.msra.mxu1 %v20773_v0  ;;  %v20789_v0 = vpack.c.bf16 %v8254_v63, %v8247_v39  ;;  %v20861_v39 = vpack.c.bf16 %v8168_v26, %v8161_v54  ;;  %v8766_v63 = vand.u32 4294901760, %v26776_v62 }
 0x8b7   :  { %20778 = vmatprep.subr.bf16.mxu1 %v20777_v17 }
 0x8ba   :  { %20780 = vmatpush3.bf16.msra.mxu1 %v20777_v17  ;;  %v20801_v17 = vpack.c.bf16 %v26532_v30, %v26530_v8  ;;  %v8028_v30 = vld [vmem:[%s29898_s24 + $0x90] sm:$0xff] }
 0x8bb   :  { %20782 = vmatprep.subr.bf16.mxu1 %v20781_v35  ;;  %v8742_v45 = vand.u32 4294901760, %v8028_v30 }
 0x8be   :  { %20784 = vmatpush3.bf16.msra.mxu1 %v20781_v35  ;;  %v20813_v35 = vpack.c.bf16 %v26588_v16, %v26585_v21 }
 0x8bf   :  { %20786 = vmatprep.subr.bf16.mxu1 %v20785_v38 }
 0x8c2   :  { %20788 = vmatpush3.bf16.msra.mxu1 %v20785_v38  ;;  %v20857_v38 = vpack.c.bf16 %v8154_v41, %v8147_v56  ;;  %v20873_v56 = vpack.c.bf16 %v8210_v32, %v8203_v42  ;;  %v20877_v41 = vpack.c.bf16 %v8224_v28, %v8217_v55  ;;  %v8032_v42 = vld [vmem:[%s29898_s24 + $0xb0] sm:$0xff]  ;;  %v8033_v32 = vld [vmem:[%s29898_s24 + $0xb8] sm:$0xff]  ;;  %v26764_v55 = vld [vmem:[%s29898_s24 + $0xc0] sm:$0xff] }
 0x8c3   :  { %20790 = vmatprep.subr.bf16.mxu1 %v20789_v0  ;;  %v8754_v21 = vand.u32 4294901760, %v8032_v42  ;;  %v8757_v16 = vand.u32 4294901760, %v8033_v32  ;;  %v26767_v28 = vld [vmem:[%s29898_s24 + $0xc8] sm:$0xff]  ;;  %v8760_v33 = vand.u32 4294901760, %v26764_v55 }
 0x8c4   :  { %v8763_v5 = vand.u32 4294901760, %v26767_v28 }
 0x8c5   :  { %v26771_v49 = vpack.c.bf16 %v8757_v16, %v8754_v21 }
 0x8c6   :  { %20792 = vmatpush3.bf16.msra.mxu1 %v20789_v0  ;;  %v26788_v59 = vpack.c.bf16 %v8763_v5, %v8760_v33  ;;  %v8769_v0 = vand.u32 4294901760, %v26779_v11 }
 0x8c7   :  { %20794 = vmatprep.subr.bf16.mxu1 %v20793_v46 }
 0x8c9   :  { %18091 = vmatmul.mubr.f32.vlgmr.msra.gmra.mrb[34].mxu1 %v26491_v13 }
 0x8ca   :  { %20796 = vmatpush3.bf16.msra.mxu1 %v20793_v46  ;;  %18125 = vmatprep.mubr.f32.mxu1 %v26426_v27  ;;  %v26793_v46 = vld [vmem:[%s29898_s24 + $0xe8] sm:$0xff] }
 0x8cb   :  { %20798 = vmatprep.subr.bf16.mxu1 %v20797_v52 }
 0x8ce   :  { %20800 = vmatpush3.bf16.msra.mxu1 %v20797_v52 }
 0x8cf   :  { %20802 = vmatprep.subr.bf16.mxu1 %v20801_v17 }
 0x8d2   :  { %20804 = vmatpush3.bf16.msra.mxu1 %v20801_v17  ;;  %v8772_v17 = vand.u32 4294901760, %v26783_v44 }
 0x8d3   :  { %20806 = vmatprep.subr.bf16.mxu1 %v20805_v31 }
 0x8d6   :  { %v26654_v58 = vpop.f32.mrb[48].mxu0  ;;  %20808 = vmatpush3.bf16.msra.mxu1 %v20805_v31  ;;  %v8775_v31 = vand.u32 4294901760, %v26793_v46 }
 0x8d7   :  { %v26656_v12 = vpop.f32.mrb[49].mxu0  ;;  %20810 = vmatprep.subr.bf16.mxu1 %v20809_v53 }
 0x8da   :  { %20812 = vmatpush3.bf16.msra.mxu1 %v20809_v53  ;;  %v26801_v53 = vld [vmem:[%s29898_s24 + $0xf0] sm:$0xff] }
 0x8db   :  { %20814 = vmatprep.subr.bf16.mxu1 %v20813_v35 }
 0x8de   :  { %20816 = vmatpush3.bf16.msra.mxu1 %v20813_v35  ;;  %v26804_v35 = vld [vmem:[%s29898_s24 + $0xf8] sm:$0xff] }
 0x8df   :  { %20818 = vmatprep.subr.bf16.mxu1 %v20817_v60 }
 0x8e2   :  { %20820 = vmatpush3.bf16.msra.mxu1 %v20817_v60 }
 0x8e3   :  { %20822 = vmatprep.subr.bf16.mxu1 %v20821_v22 }
 0x8e6   :  { %20824 = vmatpush3.bf16.msra.mxu1 %v20821_v22  ;;  %v26807_v22 = vsub.f32 %v8028_v30, %v8742_v45  ;;  %v26842_v30 = vsub.f32 %v8031_v29, %v8751_v43 }
 0x8e7   :  { %20826 = vmatprep.subr.bf16.mxu1 %v26442_v3 }
 0x8e9   :  { %18126 = vmatmul.mubr.f32.vlgmr.msra.gmra.mrb[34].mxu1 %v26516_v19 }
 0x8ea   :  { %20828 = vmatpush3.bf16.msra.mxu1 %v26442_v3  ;;  %18160 = vmatprep.mubr.f32.mxu1 %v26433_v40 }
 0x8eb   :  { %20830 = vmatprep.subr.bf16.mxu1 %v26450_v34 }
 0x8ee   :  { %20832 = vmatpush3.bf16.msra.mxu1 %v26450_v34 }
 0x8ef   :  { %20834 = vmatprep.subr.bf16.mxu1 %v26458_v37 }
 0x8f2   :  { %20836 = vmatpush3.bf16.msra.mxu1 %v26458_v37 }
 0x8f3   :  { %20838 = vmatprep.subr.bf16.mxu1 %v26464_v10 }
 0x8f6   :  { %20840 = vmatpush3.bf16.msra.mxu1 %v26464_v10 }
 0x8f7   :  { %20842 = vmatprep.subr.bf16.mxu1 %v26485_v50 }
 0x8fa   :  { %20844 = vmatpush3.bf16.msra.mxu1 %v26485_v50 }
 0x8fb   :  { %20846 = vmatprep.subr.bf16.mxu1 %v26497_v25 }
 0x8fe   :  { %20848 = vmatpush3.bf16.msra.mxu1 %v26497_v25 }
 0x8ff   :  { %20850 = vmatprep.subr.bf16.mxu1 %v26513_v23 }
 0x902   :  { %v26679_v51 = vpop.f32.mrb[50].mxu0  ;;  %20852 = vmatpush3.bf16.msra.mxu1 %v26513_v23 }
 0x903   :  { %v8000_v4 = vpop.f32.mrb[51].mxu0  ;;  %20854 = vmatprep.subr.bf16.mxu1 %v26546_v6 }
 0x904   :  { %v26729_v54 = vand.u32 4294901760, %v8000_v4 }
 0x906   :  { %20856 = vmatpush3.bf16.msra.mxu1 %v26546_v6 }
 0x907   :  { %20858 = vmatprep.subr.bf16.mxu1 %v20857_v38 }
 0x909   :  { %18161 = vmatmul.mubr.f32.vlgmr.msra.gmra.mrb[34].mxu1 %v26535_v14 }
 0x90a   :  { %20860 = vmatpush3.bf16.msra.mxu1 %v20857_v38  ;;  %18195 = vmatprep.mubr.f32.mxu1 %v26421_v24  ;;  %v26812_v38 = vand.u32 4294901760, %v26679_v51 }
 0x90b   :  { %20862 = vmatprep.subr.bf16.mxu1 %v20861_v39 }
 0x90e   :  { %20864 = vmatpush3.bf16.msra.mxu1 %v20861_v39  ;;  %v26815_v39 = vpack.c.bf16 %v8769_v0, %v8766_v63 }
 0x90f   :  { %20866 = vmatprep.subr.bf16.mxu1 %v20865_v48 }
 0x912   :  { %20868 = vmatpush3.bf16.msra.mxu1 %v20865_v48 }
 0x913   :  { %20870 = vmatprep.subr.bf16.mxu1 %v20869_v57 }
 0x916   :  { %20872 = vmatpush3.bf16.msra.mxu1 %v20869_v57  ;;  %v8778_v57 = vand.u32 4294901760, %v26801_v53 }
 0x917   :  { %20874 = vmatprep.subr.bf16.mxu1 %v20873_v56 }
 0x91a   :  { %20876 = vmatpush3.bf16.msra.mxu1 %v20873_v56  ;;  %v8781_v56 = vand.u32 4294901760, %v26804_v35 }
 0x91b   :  { %20878 = vmatprep.subr.bf16.mxu1 %v20877_v41 }
 0x91e   :  { %20880 = vmatpush3.bf16.msra.mxu1 %v20877_v41  ;;  %v26825_v41 = vpack.c.bf16 %v8775_v31, %v8772_v17 }
 0x91f   :  { %20882 = vmatprep.subr.bf16.mxu1 %v20881_v15 }
 0x922   :  { %20884 = vmatpush3.bf16.msra.mxu1 %v20881_v15 }
 0x923   :  { %20886 = vmatprep.subr.bf16.mxu1 %v20885_v1 }
 0x926   :  { %20888 = vmatpush3.bf16.msra.mxu1 %v20885_v1  ;;  %v29560_v1 = vand.u32 4294901760, %v26807_v22 }
 0x927   :  { %20890 = vmatprep.subr.bf16.mxu1 %v26442_v3 }
 0x929   :  { %18196 = vmatmul.mubr.f32.vlgmr.msra.gmra.mrb[34].mxu1 %v26491_v13 }
 0x92a   :  { %20892 = vmatpush3.bf16.msra.mxu1 %v26442_v3  ;;  %18230 = vmatprep.mubr.f32.mxu1 %v26421_v24  ;;  %v26734_v3 = vsub.f32 %v8000_v4, %v26729_v54 }
 0x92b   :  { %20894 = vmatprep.subr.bf16.mxu1 %v26450_v34 }
 0x92c   :  { %v8818_v8 = vand.u32 4294901760, %v26734_v3 }
 0x92e   :  { %20896 = vmatpush3.bf16.msra.mxu1 %v26450_v34  ;;  %v8026_v34 = vld [vmem:[%s29898_s24 + $0x80] sm:$0xff] }
 0x92f   :  { %20898 = vmatprep.subr.bf16.mxu1 %v26458_v37 }
 0x932   :  { %20900 = vmatpush3.bf16.msra.mxu1 %v26458_v37  ;;  %v8027_v37 = vld [vmem:[%s29898_s24 + $0x88] sm:$0xff] }
 0x933   :  { %20902 = vmatprep.subr.bf16.mxu1 %v26464_v10  ;;  %v8739_v26 = vand.u32 4294901760, %v8027_v37 }
 0x935   :  { %v26795_v52 = vsub.f32 %v8027_v37, %v8739_v26  ;;  %v26834_v37 = vsub.f32 %v26679_v51, %v26812_v38  ;;  %v26851_v51 = vpack.c.bf16 %v8781_v56, %v8778_v57 }
 0x936   :  { %20904 = vmatpush3.bf16.msra.mxu1 %v26464_v10  ;;  %v8736_v10 = vand.u32 4294901760, %v8026_v34 }
 0x937   :  { %20906 = vmatprep.subr.bf16.mxu1 %v26485_v50  ;;  %v29561_v48 = vand.u32 4294901760, %v26795_v52 }
 0x938   :  { %v26745_v18 = vpack.c.bf16 %v8739_v26, %v8736_v10  ;;  %v26785_v2 = vsub.f32 %v8026_v34, %v8736_v10 }
 0x939   :  { %v8847_v10 = vsub.f32 %v26795_v52, %v29561_v48 }
 0x93a   :  { %20908 = vmatpush3.bf16.msra.mxu1 %v26485_v50  ;;  %v8029_v50 = vld [vmem:[%s29898_s24 + $0x98] sm:$0xff]  ;;  %v29567_v60 = vand.u32 4294901760, %v26785_v2 }
 0x93b   :  { %20910 = vmatprep.subr.bf16.mxu1 %v26497_v25  ;;  %v8745_v47 = vand.u32 4294901760, %v8029_v50 }
 0x93c   :  { %v8840_v15 = vsub.f32 %v26785_v2, %v29567_v60 }
 0x93d   :  { %v26754_v7 = vpack.c.bf16 %v8745_v47, %v8742_v45  ;;  %v26809_v4 = vsub.f32 %v8029_v50, %v8745_v47 }
 0x93e   :  { %20912 = vmatpush3.bf16.msra.mxu1 %v26497_v25  ;;  %v8819_v25 = vsub.f32 %v26734_v3, %v8818_v8  ;;  %v8841_v29 = vand.u32 4294901760, %v8840_v15 }
 0x93f   :  { %20914 = vmatprep.subr.bf16.mxu1 %v26513_v23  ;;  %v29559_v34 = vand.u32 4294901760, %v26809_v4 }
 0x940   :  { %v8820_v36 = vand.u32 4294901760, %v8819_v25  ;;  %v26853_v25 = vsub.f32 %v8032_v42, %v8754_v21  ;;  %v8848_v42 = vand.u32 4294901760, %v8847_v10 }
 0x942   :  { %20916 = vmatpush3.bf16.msra.mxu1 %v26513_v23  ;;  %v8748_v23 = vand.u32 4294901760, %v8030_v9  ;;  %v29563_v21 = vand.u32 4294901760, %v26853_v25 }
 0x943   :  { %20918 = vmatprep.subr.bf16.mxu1 %v26546_v6 }
 0x944   :  { %v26840_v26 = vsub.f32 %v8030_v9, %v8748_v23 }
 0x946   :  { %20920 = vmatpush3.bf16.msra.mxu1 %v26546_v6  ;;  %v26761_v6 = vpack.c.bf16 %v8751_v43, %v8748_v23  ;;  %v8861_v23 = vsub.f32 %v26809_v4, %v29559_v34  ;;  %v29565_v43 = vand.u32 4294901760, %v26834_v37  ;;  %v26878_v34 = vsub.f32 %v26767_v28, %v8763_v5 }
 0x947   :  { %20922 = vmatprep.subr.bf16.mxu1 %v26745_v18 }
 0x948   :  { %v8829_v10 = vsub.f32 %v26834_v37, %v29565_v43  ;;  %v8902_v5 = vand.u32 4294901760, %v26878_v34 }
 0x949   :  { %18231 = vmatmul.mubr.f32.vlgmr.msra.gmra.mrb[34].mxu1 %v26491_v13 }
 0x94a   :  { %20924 = vmatpush3.bf16.msra.mxu1 %v26745_v18  ;;  %18265 = vmatprep.mubr.f32.mxu1 %v8820_v36  ;;  %v26855_v36 = vsub.f32 %v8033_v32, %v8757_v16  ;;  %v29564_v32 = vand.u32 4294901760, %v26840_v26 }
 0x94b   :  { %20926 = vmatprep.subr.bf16.mxu1 %v26754_v7 }
 0x94c   :  { %v29566_v16 = vand.u32 4294901760, %v26855_v36  ;;  %v8868_v48 = vsub.f32 %v26840_v26, %v29564_v32 }
 0x94e   :  { %20928 = vmatpush3.bf16.msra.mxu1 %v26754_v7  ;;  %v8889_v28 = vsub.f32 %v26855_v36, %v29566_v16 }
 0x94f   :  { %20930 = vmatprep.subr.bf16.mxu1 %v26761_v6 }
 0x950   :  { %v8890_v16 = vand.u32 4294901760, %v8889_v28 }
 0x952   :  { %20932 = vmatpush3.bf16.msra.mxu1 %v26761_v6 }
 0x953   :  { %20934 = vmatprep.subr.bf16.mxu1 %v26771_v49 }
 0x956   :  { %20936 = vmatpush3.bf16.msra.mxu1 %v26771_v49 }
 0x957   :  { %20938 = vmatprep.subr.bf16.mxu1 %v26788_v59 }
 0x95a   :  { %20940 = vmatpush3.bf16.msra.mxu1 %v26788_v59 }
 0x95b   :  { %20942 = vmatprep.subr.bf16.mxu1 %v26815_v39 }
 0x95c   :  { %v17992_v50 = vpop.f32.mrb[32].mxu1 }
 0x95d   :  { %v26845_v45 = vadd.f32 %v17992_v50, %v26654_v58  ;;  %v7492_v47 = vpop.f32.mrb[33].mxu1  ;;  %v8854_v58 = vsub.f32 %v26807_v22, %v29560_v1  ;;  %v8862_v50 = vand.u32 4294901760, %v8861_v23  ;;  %v20953_v1 = vpack.c.bf16 %v8848_v42, %v8841_v29 }
 0x95e   :  { %v26858_v9 = vadd.f32 %v7492_v47, %v26656_v12  ;;  %20944 = vmatpush3.bf16.msra.mxu1 %v26815_v39  ;;  %v29562_v12 = vand.u32 4294901760, %v26842_v30  ;;  %v26875_v47 = vsub.f32 %v26764_v55, %v8760_v33  ;;  %v8882_v55 = vsub.f32 %v26853_v25, %v29563_v21 }
 0x95f   :  { %20946 = vmatprep.subr.bf16.mxu1 %v26825_v41  ;;  %v8855_v15 = vand.u32 4294901760, %v8854_v58  ;;  %v26900_v29 = vsub.f32 %v26776_v62, %v8766_v63  ;;  %v26903_v23 = vsub.f32 %v26779_v11, %v8769_v0  ;;  %v8830_v42 = vand.u32 4294901760, %v8829_v10 }
 0x960   :  { %v8875_v58 = vsub.f32 %v26842_v30, %v29562_v12  ;;  %v8895_v33 = vand.u32 4294901760, %v26875_v47  ;;  %v8869_v21 = vand.u32 4294901760, %v8868_v48  ;;  %v8883_v43 = vand.u32 4294901760, %v8882_v55 }
 0x961   :  { %v20957_v12 = vpack.c.bf16 %v8862_v50, %v8855_v15  ;;  %v8903_v62 = vsub.f32 %v26878_v34, %v8902_v5  ;;  %v8909_v11 = vand.u32 4294901760, %v26900_v29  ;;  %v8916_v63 = vand.u32 4294901760, %v26903_v23 }
 0x962   :  { %20948 = vmatpush3.bf16.msra.mxu1 %v26825_v41  ;;  %v8876_v32 = vand.u32 4294901760, %v8875_v58  ;;  %v8896_v60 = vsub.f32 %v26875_v47, %v8895_v33  ;;  %v26917_v48 = vsub.f32 %v26783_v44, %v8772_v17  ;;  %v20965_v15 = vpack.c.bf16 %v8890_v16, %v8883_v43 }
 0x963   :  { %20950 = vmatprep.subr.bf16.mxu1 %v26851_v51  ;;  %v8904_v10 = vand.u32 4294901760, %v8903_v62  ;;  %v8910_v58 = vsub.f32 %v26900_v29, %v8909_v11 }
 0x964   :  { %v20961_v0 = vpack.c.bf16 %v8876_v32, %v8869_v21  ;;  %v8897_v50 = vand.u32 4294901760, %v8896_v60  ;;  %v8917_v32 = vsub.f32 %v26903_v23, %v8916_v63  ;;  %v8923_v44 = vand.u32 4294901760, %v26917_v48 }
 0x965   :  { %v8911_v43 = vand.u32 4294901760, %v8910_v58  ;;  %v20989_v58 = vpack.c.bf16 %v26809_v4, %v26807_v22 }
 0x966   :  { %20952 = vmatpush3.bf16.msra.mxu1 %v26851_v51  ;;  %v20969_v60 = vpack.c.bf16 %v8904_v10, %v8897_v50  ;;  %v8924_v21 = vsub.f32 %v26917_v48, %v8923_v44  ;;  %v20985_v10 = vpack.c.bf16 %v26795_v52, %v26785_v2 }
 0x967   :  { %20954 = vmatprep.subr.bf16.mxu1 %v20953_v1 }
 0x969   :  { %18266 = vmatmul.mubr.f32.vlgmr.msra.gmra.mrb[34].mxu1 %v8830_v42 }
 0x96a   :  { %20956 = vmatpush3.bf16.msra.mxu1 %v20953_v1  ;;  %18300 = vmatprep.mubr.f32.mxu1 %v26729_v54  ;;  %v26922_v1 = vsub.f32 %v26793_v46, %v8775_v31  ;;  %v26935_v46 = vsub.f32 %v26801_v53, %v8778_v57  ;;  %v26940_v31 = vsub.f32 %v26804_v35, %v8781_v56  ;;  %v8925_v56 = vand.u32 4294901760, %v8924_v21 }
 0x96b   :  { %20958 = vmatprep.subr.bf16.mxu1 %v20957_v12 }
 0x96c   :  { %v8930_v17 = vand.u32 4294901760, %v26922_v1  ;;  %v8937_v53 = vand.u32 4294901760, %v26935_v46  ;;  %v8944_v57 = vand.u32 4294901760, %v26940_v31  ;;  %v21009_v21 = vpack.c.bf16 %v26922_v1, %v26917_v48 }
 0x96e   :  { %20960 = vmatpush3.bf16.msra.mxu1 %v20957_v12  ;;  %v8918_v12 = vand.u32 4294901760, %v8917_v32  ;;  %v8931_v16 = vsub.f32 %v26922_v1, %v8930_v17  ;;  %v8938_v28 = vsub.f32 %v26935_v46, %v8937_v53  ;;  %v8945_v42 = vsub.f32 %v26940_v31, %v8944_v57  ;;  %v10849_v1 = vld [vmem:[#allocation14 + $0x40] sm:$0xff] }
 0x96f   :  { %20962 = vmatprep.subr.bf16.mxu1 %v20961_v0  ;;  %v20993_v32 = vpack.c.bf16 %v26842_v30, %v26840_v26 }
 0x970   :  { %v20973_v35 = vpack.c.bf16 %v8918_v12, %v8911_v43  ;;  %v8932_v55 = vand.u32 4294901760, %v8931_v16  ;;  %v8946_v50 = vand.u32 4294901760, %v8945_v42  ;;  %v21001_v43 = vpack.c.bf16 %v26878_v34, %v26875_v47 }
 0x971   :  { %v21005_v12 = vpack.c.bf16 %v26903_v23, %v26900_v29  ;;  %v21013_v16 = vpack.c.bf16 %v26940_v31, %v26935_v46  ;;  %v29903_v42 = vand.u32 4294901760, %v26834_v37  ;;  %v21077_v34 = vpack.c.bf16 %v8944_v57, %v8937_v53  ;;  %v10851_v31 = vld [vmem:[#allocation14 + $0x50] sm:$0xff]  ;;  %v10852_v53 = vld [vmem:[#allocation14 + $0x58] sm:$0xff]  ;;  %v27064_v57 = vld [vmem:[#allocation14 + $0x68] sm:$0xff] }
 0x972   :  { %20964 = vmatpush3.bf16.msra.mxu1 %v20961_v0  ;;  %v20977_v62 = vpack.c.bf16 %v8932_v55, %v8925_v56  ;;  %v8939_v0 = vand.u32 4294901760, %v8938_v28  ;;  %v29901_v56 = vand.u32 4294901760, %v26807_v22  ;;  %v29902_v55 = vand.u32 4294901760, %v26809_v4 }
 0x973   :  { %20966 = vmatprep.subr.bf16.mxu1 %v20965_v15  ;;  %v29907_v22 = vand.u32 4294901760, %v26855_v36  ;;  %v10915_v46 = vand.u32 4294901760, %v10849_v1 }
 0x974   :  { %v21053_v28 = vpack.c.bf16 %v29902_v55, %v29901_v56 }
 0x976   :  { %20968 = vmatpush3.bf16.msra.mxu1 %v20965_v15  ;;  %v20981_v15 = vpack.c.bf16 %v8946_v50, %v8939_v0  ;;  %v29906_v0 = vand.u32 4294901760, %v26853_v25 }
 0x977   :  { %20970 = vmatprep.subr.bf16.mxu1 %v20969_v60 }
 0x978   :  { %v21061_v4 = vpack.c.bf16 %v29907_v22, %v29906_v0 }
 0x97a   :  { %20972 = vmatpush3.bf16.msra.mxu1 %v20969_v60  ;;  %v20997_v60 = vpack.c.bf16 %v26855_v36, %v26853_v25  ;;  %v10843_v36 = vld [vmem:[#allocation14 + $0x10] sm:$0xff] }
 0x97b   :  { %20974 = vmatprep.subr.bf16.mxu1 %v20973_v35  ;;  %v10897_v47 = vand.u32 4294901760, %v10843_v36 }
 0x97e   :  { %20976 = vmatpush3.bf16.msra.mxu1 %v20973_v35 }
 0x97f   :  { %20978 = vmatprep.subr.bf16.mxu1 %v20977_v62 }
 0x982   :  { %20980 = vmatpush3.bf16.msra.mxu1 %v20977_v62 }
 0x983   :  { %20982 = vmatprep.subr.bf16.mxu1 %v20981_v15 }
 0x986   :  { %20984 = vmatpush3.bf16.msra.mxu1 %v20981_v15 }
 0x987   :  { %20986 = vmatprep.subr.bf16.mxu1 %v20985_v10 }
 0x989   :  { %18301 = vmatmul.mubr.f32.vlgmr.msra.gmra.mrb[34].mxu1 %v26812_v38 }
 0x98a   :  { %20988 = vmatpush3.bf16.msra.mxu1 %v20985_v10  ;;  %18335 = vmatprep.mubr.f32.mxu1 %v26734_v3  ;;  %v29899_v3 = vand.u32 4294901760, %v26785_v2  ;;  %v29904_v2 = vand.u32 4294901760, %v26840_v26  ;;  %v21069_v26 = vpack.c.bf16 %v8916_v63, %v8909_v11  ;;  %v10847_v11 = vld [vmem:[#allocation14 + $0x30] sm:$0xff]  ;;  %v10848_v63 = vld [vmem:[#allocation14 + $0x38] sm:$0xff] }
 0x98b   :  { %20990 = vmatprep.subr.bf16.mxu1 %v20989_v58  ;;  %v10909_v48 = vand.u32 4294901760, %v10847_v11 }
 0x98e   :  { %20992 = vmatpush3.bf16.msra.mxu1 %v20989_v58  ;;  %v10921_v58 = vand.u32 4294901760, %v10851_v31 }
 0x98f   :  { %20994 = vmatprep.subr.bf16.mxu1 %v20993_v32 }
 0x992   :  { %20996 = vmatpush3.bf16.msra.mxu1 %v20993_v32  ;;  %v10924_v32 = vand.u32 4294901760, %v10852_v53 }
 0x993   :  { %20998 = vmatprep.subr.bf16.mxu1 %v20997_v60 }
 0x996   :  { %21000 = vmatpush3.bf16.msra.mxu1 %v20997_v60 }
 0x997   :  { %21002 = vmatprep.subr.bf16.mxu1 %v21001_v43 }
 0x99a   :  { %21004 = vmatpush3.bf16.msra.mxu1 %v21001_v43  ;;  %v10930_v43 = vand.u32 4294901760, %v27064_v57 }
 0x99b   :  { %21006 = vmatprep.subr.bf16.mxu1 %v21005_v12 }
 0x99e   :  { %21008 = vmatpush3.bf16.msra.mxu1 %v21005_v12 }
 0x99f   :  { %21010 = vmatprep.subr.bf16.mxu1 %v21009_v21 }
 0x9a2   :  { %21012 = vmatpush3.bf16.msra.mxu1 %v21009_v21 }
 0x9a3   :  { %21014 = vmatprep.subr.bf16.mxu1 %v21013_v16 }
 0x9a6   :  { %21016 = vmatpush3.bf16.msra.mxu1 %v21013_v16  ;;  %v27079_v16 = vpack.c.bf16 %v10924_v32, %v10921_v58 }
 0x9a7   :  { %21018 = vmatprep.subr.bf16.mxu1 %v26745_v18 }
 0x9a9   :  { %18336 = vmatmul.mubr.f32.vlgmr.msra.gmra.mrb[34].mxu1 %v26834_v37  ;;  %v21065_v37 = vpack.c.bf16 %v8902_v5, %v8895_v33  ;;  %v10845_v33 = vld [vmem:[#allocation14 + $0x20] sm:$0xff]  ;;  %v10846_v5 = vld [vmem:[#allocation14 + $0x28] sm:$0xff] }
 0x9aa   :  { %21020 = vmatpush3.bf16.msra.mxu1 %v26745_v18  ;;  %18370 = vmatprep.mubr.f32.mxu1 %v8818_v8  ;;  %v29900_v8 = vand.u32 4294901760, %v26795_v52  ;;  %v29905_v52 = vand.u32 4294901760, %v26842_v30  ;;  %v21073_v30 = vpack.c.bf16 %v8930_v17, %v8923_v44  ;;  %v10903_v29 = vand.u32 4294901760, %v10845_v33  ;;  %v10850_v44 = vld [vmem:[#allocation14 + $0x48] sm:$0xff] }
 0x9ab   :  { %21022 = vmatprep.subr.bf16.mxu1 %v26754_v7  ;;  %v10906_v23 = vand.u32 4294901760, %v10846_v5 }
 0x9ac   :  { %v21049_v35 = vpack.c.bf16 %v29900_v8, %v29899_v3  ;;  %v21057_v62 = vpack.c.bf16 %v29905_v52, %v29904_v2  ;;  %v27081_v3 = vld [vmem:[#allocation14 + $0x70] sm:$0xff]  ;;  %v27083_v8 = vld [vmem:[#allocation14 + $0x78] sm:$0xff]  ;;  %v27107_v22 = vsub.f32 %v10845_v33, %v10903_v29  ;;  %v27134_v33 = vsub.f32 %v10849_v1, %v10915_v46 }
 0x9ae   :  { %21024 = vmatpush3.bf16.msra.mxu1 %v26754_v7  ;;  %v29575_v1 = vand.u32 4294901760, %v27134_v33 }
 0x9af   :  { %21026 = vmatprep.subr.bf16.mxu1 %v26761_v6 }
 0x9b2   :  { %21028 = vmatpush3.bf16.msra.mxu1 %v26761_v6 }
 0x9b3   :  { %21030 = vmatprep.subr.bf16.mxu1 %v26771_v49 }
 0x9b6   :  { %21032 = vmatpush3.bf16.msra.mxu1 %v26771_v49 }
 0x9b7   :  { %21034 = vmatprep.subr.bf16.mxu1 %v26788_v59 }
 0x9ba   :  { %21036 = vmatpush3.bf16.msra.mxu1 %v26788_v59 }
 0x9bb   :  { %21038 = vmatprep.subr.bf16.mxu1 %v26815_v39 }
 0x9be   :  { %21040 = vmatpush3.bf16.msra.mxu1 %v26815_v39 }
 0x9bf   :  { %21042 = vmatprep.subr.bf16.mxu1 %v26825_v41 }
 0x9c2   :  { %21044 = vmatpush3.bf16.msra.mxu1 %v26825_v41 }
 0x9c3   :  { %21046 = vmatprep.subr.bf16.mxu1 %v26851_v51 }
 0x9c6   :  { %21048 = vmatpush3.bf16.msra.mxu1 %v26851_v51 }
 0x9c7   :  { %21050 = vmatprep.subr.bf16.mxu1 %v21049_v35 }
 0x9c9   :  { %18371 = vmatmul.mubr.f32.vlgmr.msra.gmra.mrb[34].mxu1 %v29903_v42  ;;  %v10936_v42 = vand.u32 4294901760, %v27083_v8 }
 0x9ca   :  { %21052 = vmatpush3.bf16.msra.mxu1 %v21049_v35  ;;  %18405 = vmatprep.mubr.f32.mxu1 %v26729_v54  ;;  %v27085_v35 = vsub.f32 %v10843_v36, %v10897_v47 }
 0x9cb   :  { %21054 = vmatprep.subr.bf16.mxu1 %v21053_v28 }
 0x9ce   :  { %21056 = vmatpush3.bf16.msra.mxu1 %v21053_v28  ;;  %v10933_v28 = vand.u32 4294901760, %v27081_v3 }
 0x9cf   :  { %21058 = vmatprep.subr.bf16.mxu1 %v21057_v62 }
 0x9d2   :  { %21060 = vmatpush3.bf16.msra.mxu1 %v21057_v62  ;;  %v29581_v62 = vand.u32 4294901760, %v27085_v35 }
 0x9d3   :  { %21062 = vmatprep.subr.bf16.mxu1 %v21061_v4 }
 0x9d6   :  { %21064 = vmatpush3.bf16.msra.mxu1 %v21061_v4  ;;  %v27109_v4 = vsub.f32 %v10846_v5, %v10906_v23 }
 0x9d7   :  { %21066 = vmatprep.subr.bf16.mxu1 %v21065_v37 }
 0x9d8   :  { %v29578_v36 = vand.u32 4294901760, %v27109_v4 }
 0x9da   :  { %21068 = vmatpush3.bf16.msra.mxu1 %v21065_v37  ;;  %v27111_v37 = vsub.f32 %v10847_v11, %v10909_v48 }
 0x9db   :  { %21070 = vmatprep.subr.bf16.mxu1 %v21069_v26 }
 0x9de   :  { %21072 = vmatpush3.bf16.msra.mxu1 %v21069_v26 }
 0x9df   :  { %21074 = vmatprep.subr.bf16.mxu1 %v21073_v30 }
 0x9e2   :  { %21076 = vmatpush3.bf16.msra.mxu1 %v21073_v30  ;;  %v27120_v30 = vpack.c.bf16 %v10936_v42, %v10933_v28 }
 0x9e3   :  { %21078 = vmatprep.subr.bf16.mxu1 %v21077_v34 }
 0x9e6   :  { %21080 = vmatpush3.bf16.msra.mxu1 %v21077_v34 }
 0x9e7   :  { %21082 = vmatprep.subr.bf16.mxu1 %v26745_v18 }
 0x9e9   :  { %18406 = vmatmul.mubr.f32.vlgmr.msra.gmra.mrb[34].mxu1 %v26812_v38 }
 0x9ea   :  { %21084 = vmatpush3.bf16.msra.mxu1 %v26745_v18  ;;  %18440 = vmatprep.mubr.f32.mxu1 %v26729_v54  ;;  %v10841_v18 = vld [vmem:[#allocation14] sm:$0xff]  ;;  %v10842_v54 = vld [vmem:[#allocation14 + $0x8] sm:$0xff] }
 0x9eb   :  { %21086 = vmatprep.subr.bf16.mxu1 %v26754_v7  ;;  %v10894_v25 = vand.u32 4294901760, %v10842_v54 }
 0x9ed   :  { %v27068_v15 = vsub.f32 %v10842_v54, %v10894_v25  ;;  %v11009_v54 = vsub.f32 %v27085_v35, %v29581_v62  ;;  %v27308_v62 = vld [vmem:[#allocation11 + $0x68] sm:$0xff] }
 0x9ee   :  { %21088 = vmatpush3.bf16.msra.mxu1 %v26754_v7  ;;  %v10891_v7 = vand.u32 4294901760, %v10841_v18 }
 0x9ef   :  { %21090 = vmatprep.subr.bf16.mxu1 %v26761_v6  ;;  %v29582_v21 = vand.u32 4294901760, %v27068_v15 }
 0x9f0   :  { %v27066_v50 = vsub.f32 %v10841_v18, %v10891_v7 }
 0x9f1   :  { %v11002_v52 = vsub.f32 %v27068_v15, %v29582_v21 }
 0x9f2   :  { %21092 = vmatpush3.bf16.msra.mxu1 %v26761_v6  ;;  %v10844_v6 = vld [vmem:[#allocation14 + $0x18] sm:$0xff]  ;;  %v29583_v12 = vand.u32 4294901760, %v27066_v50 }
 0x9f3   :  { %21094 = vmatprep.subr.bf16.mxu1 %v26771_v49  ;;  %v11003_v18 = vand.u32 4294901760, %v11002_v52 }
 0x9f4   :  { %v10995_v2 = vsub.f32 %v27066_v50, %v29583_v12  ;;  %v27319_v12 = vld [vmem:[#allocation11 + $0x70] sm:$0xff] }
 0x9f6   :  { %21096 = vmatpush3.bf16.msra.mxu1 %v26771_v49  ;;  %v27045_v49 = vpack.c.bf16 %v10894_v25, %v10891_v7  ;;  %v10996_v34 = vand.u32 4294901760, %v10995_v2  ;;  %v29579_v25 = vand.u32 4294901760, %v27107_v22 }
 0x9f7   :  { %21098 = vmatprep.subr.bf16.mxu1 %v26788_v59 }
 0x9f8   :  { %v11023_v11 = vsub.f32 %v27107_v22, %v29579_v25  ;;  %v27298_v25 = vld [vmem:[#allocation11 + $0x60] sm:$0xff] }
 0x9fa   :  { %21100 = vmatpush3.bf16.msra.mxu1 %v26788_v59  ;;  %v10900_v59 = vand.u32 4294901760, %v10844_v6  ;;  %v11024_v52 = vand.u32 4294901760, %v11023_v11 }
 0x9fb   :  { %21102 = vmatprep.subr.bf16.mxu1 %v26815_v39 }
 0x9fc   :  { %v27087_v56 = vsub.f32 %v10844_v6, %v10900_v59  ;;  %v29577_v6 = vand.u32 4294901760, %v27111_v37 }
 0x9fe   :  { %21104 = vmatpush3.bf16.msra.mxu1 %v26815_v39  ;;  %v27049_v39 = vpack.c.bf16 %v10900_v59, %v10897_v47  ;;  %v29580_v0 = vand.u32 4294901760, %v27087_v56  ;;  %v21529_v59 = vpack.c.bf16 %v11003_v18, %v10996_v34 }
 0x9ff   :  { %21106 = vmatprep.subr.bf16.mxu1 %v26825_v41 }
 0xa00   :  { %v11016_v7 = vsub.f32 %v27087_v56, %v29580_v0 }
 0xa02   :  { %21108 = vmatpush3.bf16.msra.mxu1 %v26825_v41  ;;  %v27055_v41 = vpack.c.bf16 %v10906_v23, %v10903_v29  ;;  %v11010_v29 = vand.u32 4294901760, %v11009_v54  ;;  %v11017_v23 = vand.u32 4294901760, %v11016_v7  ;;  %v11051_v7 = vsub.f32 %v27134_v33, %v29575_v1  ;;  %v27285_v1 = vld [vmem:[#allocation11 + $0x40] sm:$0xff] }
 0xa03   :  { %21110 = vmatprep.subr.bf16.mxu1 %v26851_v51 }
 0xa04   :  { %v21533_v2 = vpack.c.bf16 %v11017_v23, %v11010_v29  ;;  %v11052_v23 = vand.u32 4294901760, %v11051_v7 }
 0xa06   :  { %21112 = vmatpush3.bf16.msra.mxu1 %v26851_v51  ;;  %v10912_v51 = vand.u32 4294901760, %v10848_v63 }
 0xa07   :  { %21498 = vmatprep.subr.bf16.mxu1 %v27045_v49 }
 0xa08   :  { %v27059_v17 = vpack.c.bf16 %v10912_v51, %v10909_v48  ;;  %v27113_v26 = vsub.f32 %v10848_v63, %v10912_v51  ;;  %v11030_v63 = vsub.f32 %v27109_v4, %v29578_v36  ;;  %v11037_v48 = vsub.f32 %v27111_v37, %v29577_v6  ;;  %v27291_v36 = vld [vmem:[#allocation11 + $0x50] sm:$0xff] }
 0xa09   :  { %18441 = vmatmul.mubr.f32.vlgmr.msra.gmra.mrb[34].mxu1 %v26812_v38  ;;  %v10918_v38 = vand.u32 4294901760, %v10850_v44 }
 0xa0a   :  { %21500 = vmatpush3.bf16.msra.mxu1 %v27045_v49  ;;  %18895 = vmatprep.mubr.f32.mxu1 %v26447_v20  ;;  %v27062_v20 = vld [vmem:[#allocation14 + $0x60] sm:$0xff]  ;;  %v29576_v47 = vand.u32 4294901760, %v27113_v26  ;;  %v11031_v34 = vand.u32 4294901760, %v11030_v63  ;;  %v11038_v18 = vand.u32 4294901760, %v11037_v48 }
 0xa0b   :  { %21502 = vmatprep.subr.bf16.mxu1 %v27049_v39  ;;  %v27071_v10 = vpack.c.bf16 %v10918_v38, %v10915_v46  ;;  %v10927_v60 = vand.u32 4294901760, %v27062_v20  ;;  %v27136_v5 = vsub.f32 %v10850_v44, %v10918_v38  ;;  %v27154_v46 = vsub.f32 %v10851_v31, %v10921_v58 }
 0xa0c   :  { %v11044_v51 = vsub.f32 %v27113_v26, %v29576_v47  ;;  %v27156_v38 = vsub.f32 %v10852_v53, %v10924_v32  ;;  %v21537_v32 = vpack.c.bf16 %v11031_v34, %v11024_v52  ;;  %v29588_v47 = vand.u32 4294901760, %v27285_v1 }
 0xa0d   :  { %v27093_v55 = vpack.c.bf16 %v10930_v43, %v10927_v60  ;;  %v29574_v44 = vand.u32 4294901760, %v27136_v5  ;;  %v29573_v53 = vand.u32 4294901760, %v27154_v46 }
 0xa0e   :  { %21504 = vmatpush3.bf16.msra.mxu1 %v27049_v39  ;;  %v11045_v54 = vand.u32 4294901760, %v11044_v51  ;;  %v29572_v58 = vand.u32 4294901760, %v27156_v38 }
 0xa0f   :  { %21506 = vmatprep.subr.bf16.mxu1 %v27055_v41  ;;  %v11058_v31 = vsub.f32 %v27136_v5, %v29574_v44  ;;  %v11065_v63 = vsub.f32 %v27154_v46, %v29573_v53 }
 0xa10   :  { %v21541_v29 = vpack.c.bf16 %v11045_v54, %v11038_v18  ;;  %v11072_v48 = vsub.f32 %v27156_v38, %v29572_v58 }
 0xa11   :  { %v11059_v11 = vand.u32 4294901760, %v11058_v31 }
 0xa12   :  { %21508 = vmatpush3.bf16.msra.mxu1 %v27055_v41  ;;  %v11073_v52 = vand.u32 4294901760, %v11072_v48  ;;  %v21565_v48 = vpack.c.bf16 %v27087_v56, %v27085_v35 }
 0xa13   :  { %21510 = vmatprep.subr.bf16.mxu1 %v27059_v17  ;;  %v21545_v51 = vpack.c.bf16 %v11059_v11, %v11052_v23 }
 0xa16   :  { %21512 = vmatpush3.bf16.msra.mxu1 %v27059_v17 }
 0xa17   :  { %21514 = vmatprep.subr.bf16.mxu1 %v27071_v10 }
 0xa1a   :  { %21516 = vmatpush3.bf16.msra.mxu1 %v27071_v10 }
 0xa1b   :  { %21518 = vmatprep.subr.bf16.mxu1 %v27079_v16 }
 0xa1e   :  { %21520 = vmatpush3.bf16.msra.mxu1 %v27079_v16 }
 0xa1f   :  { %21522 = vmatprep.subr.bf16.mxu1 %v27093_v55 }
 0xa22   :  { %21524 = vmatpush3.bf16.msra.mxu1 %v27093_v55 }
 0xa23   :  { %21526 = vmatprep.subr.bf16.mxu1 %v27120_v30 }
 0xa26   :  { %21528 = vmatpush3.bf16.msra.mxu1 %v27120_v30 }
 0xa27   :  { %21530 = vmatprep.subr.bf16.mxu1 %v21529_v59 }
 0xa29   :  { %18896 = vmatmul.mubr.f32.vlgmr.msra.gmra.mrb[36].mxu1 %v26573_v61  ;;  %v27171_v61 = vsub.f32 %v27062_v20, %v10927_v60 }
 0xa2a   :  { %21532 = vmatpush3.bf16.msra.mxu1 %v21529_v59  ;;  %18930 = vmatprep.mubr.f32.mxu1 %v26421_v24  ;;  %v27176_v59 = vsub.f32 %v27064_v57, %v10930_v43  ;;  %v27189_v57 = vsub.f32 %v27081_v3, %v10933_v28  ;;  %v27194_v43 = vsub.f32 %v27083_v8, %v10936_v42 }
 0xa2b   :  { %21534 = vmatprep.subr.bf16.mxu1 %v21533_v2  ;;  %v29571_v20 = vand.u32 4294901760, %v27171_v61 }
 0xa2c   :  { %v29570_v60 = vand.u32 4294901760, %v27176_v59  ;;  %v29569_v3 = vand.u32 4294901760, %v27189_v57  ;;  %v29568_v28 = vand.u32 4294901760, %v27194_v43  ;;  %v21585_v53 = vpack.c.bf16 %v27176_v59, %v27171_v61 }
 0xa2d   :  { %v11079_v34 = vsub.f32 %v27171_v61, %v29571_v20  ;;  %v21589_v44 = vpack.c.bf16 %v27194_v43, %v27189_v57 }
 0xa2e   :  { %21536 = vmatpush3.bf16.msra.mxu1 %v21533_v2  ;;  %v11066_v2 = vand.u32 4294901760, %v11065_v63  ;;  %v11086_v18 = vsub.f32 %v27176_v59, %v29570_v60  ;;  %v11093_v7 = vsub.f32 %v27189_v57, %v29569_v3  ;;  %v11100_v31 = vsub.f32 %v27194_v43, %v29568_v28  ;;  %v27262_v28 = vld [vmem:[#allocation11 + $0x30] sm:$0xff]  ;;  %v27264_v3 = vld [vmem:[#allocation11 + $0x38] sm:$0xff] }
 0xa2f   :  { %21538 = vmatprep.subr.bf16.mxu1 %v21537_v32  ;;  %v11080_v42 = vand.u32 4294901760, %v11079_v34  ;;  %v21561_v63 = vpack.c.bf16 %v27068_v15, %v27066_v50  ;;  %v21581_v60 = vpack.c.bf16 %v27156_v38, %v27154_v46  ;;  %v29589_v20 = vand.u32 4294901760, %v27262_v28 }
 0xa30   :  { %v21549_v8 = vpack.c.bf16 %v11073_v52, %v11066_v2  ;;  %v11087_v54 = vand.u32 4294901760, %v11086_v18  ;;  %v11094_v23 = vand.u32 4294901760, %v11093_v7  ;;  %v11101_v11 = vand.u32 4294901760, %v11100_v31  ;;  %v27218_v2 = vld [vmem:[#allocation11 + $0x8] sm:$0xff] }
 0xa31   :  { %v21569_v52 = vpack.c.bf16 %v27109_v4, %v27107_v22  ;;  %v9450_v18 = vand.u32 4294901760, %v27218_v2  ;;  %v29584_v58 = vand.u32 4294901760, %v27264_v3 }
 0xa32   :  { %21540 = vmatpush3.bf16.msra.mxu1 %v21537_v32  ;;  %v21553_v32 = vpack.c.bf16 %v11087_v54, %v11080_v42  ;;  %v27232_v42 = vld [vmem:[#allocation11 + $0x18] sm:$0xff]  ;;  %v21573_v54 = vpack.c.bf16 %v27113_v26, %v27111_v37 }
 0xa33   :  { %21542 = vmatprep.subr.bf16.mxu1 %v21541_v29  ;;  %v9456_v31 = vand.u32 4294901760, %v27232_v42 }
 0xa36   :  { %21544 = vmatpush3.bf16.msra.mxu1 %v21541_v29  ;;  %v21557_v29 = vpack.c.bf16 %v11101_v11, %v11094_v23  ;;  %v27246_v23 = vld [vmem:[#allocation11 + $0x20] sm:$0xff]  ;;  %v27248_v11 = vld [vmem:[#allocation11 + $0x28] sm:$0xff] }
 0xa37   :  { %21546 = vmatprep.subr.bf16.mxu1 %v21545_v51 }
 0xa3a   :  { %21548 = vmatpush3.bf16.msra.mxu1 %v21545_v51  ;;  %v27216_v51 = vld [vmem:[#allocation11] sm:$0xff] }
 0xa3b   :  { %21550 = vmatprep.subr.bf16.mxu1 %v21549_v8  ;;  %v9447_v34 = vand.u32 4294901760, %v27216_v51 }
 0xa3e   :  { %21552 = vmatpush3.bf16.msra.mxu1 %v21549_v8  ;;  %v27228_v8 = vpack.c.bf16 %v9450_v18, %v9447_v34 }
 0xa3f   :  { %21554 = vmatprep.subr.bf16.mxu1 %v21553_v32 }
 0xa40   :  { %21114 = vmatprep.subr.bf16.mxu0 %v27228_v8 }
 0xa41   :  { %21116 = vmatpush3.bf16.msra.mxu0 %v27228_v8 }
 0xa42   :  { %21556 = vmatpush3.bf16.msra.mxu1 %v21553_v32 }
 0xa43   :  { %21558 = vmatprep.subr.bf16.mxu1 %v21557_v29 }
 0xa46   :  { %21560 = vmatpush3.bf16.msra.mxu1 %v21557_v29  ;;  %v21577_v29 = vpack.c.bf16 %v27136_v5, %v27134_v33 }
 0xa47   :  { %21562 = vmatprep.subr.bf16.mxu1 %v21561_v63 }
 0xa49   :  { %18931 = vmatmul.mubr.f32.vlgmr.msra.gmra.mrb[36].mxu1 %v26491_v13 }
 0xa4a   :  { %21564 = vmatpush3.bf16.msra.mxu1 %v21561_v63  ;;  %18965 = vmatprep.mubr.f32.mxu1 %v26426_v27  ;;  %v27230_v27 = vld [vmem:[#allocation11 + $0x10] sm:$0xff]  ;;  %v29597_v63 = vand.u32 4294901760, %v27246_v23 }
 0xa4b   :  { %21566 = vmatprep.subr.bf16.mxu1 %v21565_v48  ;;  %v9453_v7 = vand.u32 4294901760, %v27230_v27 }
 0xa4d   :  { %v27244_v32 = vpack.c.bf16 %v9456_v31, %v9453_v7 }
 0xa4e   :  { %21568 = vmatpush3.bf16.msra.mxu1 %v21565_v48  ;;  %v29593_v48 = vand.u32 4294901760, %v27248_v11 }
 0xa4f   :  { %21570 = vmatprep.subr.bf16.mxu1 %v21569_v52  ;;  %21118 = vmatprep.subr.bf16.mxu0 %v27244_v32 }
 0xa50   :  { %21120 = vmatpush3.bf16.msra.mxu0 %v27244_v32 }
 0xa52   :  { %21572 = vmatpush3.bf16.msra.mxu1 %v21569_v52  ;;  %v27260_v52 = vpack.c.bf16 %v29593_v48, %v29597_v63 }
 0xa53   :  { %21574 = vmatprep.subr.bf16.mxu1 %v21573_v54 }
 0xa54   :  { %29908 = vst [vmem:[#allocation52_spill] sm:$0xff] %v27260_v52  ;;  %21122 = vmatprep.subr.bf16.mxu0 %v27260_v52 }
 0xa55   :  { %21124 = vmatpush3.bf16.msra.mxu0 %v27260_v52 }
 0xa56   :  { %21576 = vmatpush3.bf16.msra.mxu1 %v21573_v54  ;;  %v27276_v54 = vpack.c.bf16 %v29584_v58, %v29589_v20  ;;  %v27321_v58 = vld [vmem:[#allocation11 + $0x78] sm:$0xff]  ;;  %v27343_v20 = vsub.f32 %v27218_v2, %v9450_v18 }
 0xa57   :  { %21578 = vmatprep.subr.bf16.mxu1 %v21577_v29 }
 0xa58   :  { %29909 = vst [vmem:[#allocation53_spill] sm:$0xff] %v27276_v54  ;;  %21126 = vmatprep.subr.bf16.mxu0 %v27276_v54  ;;  %29914 = vst [vmem:[#allocation43_spill] sm:$0xff] %v27343_v20 }
 0xa59   :  { %21128 = vmatpush3.bf16.msra.mxu0 %v27276_v54  ;;  %v29938_v54 = vand.u32 4294901760, %v27298_v25 }
 0xa5a   :  { %21580 = vmatpush3.bf16.msra.mxu1 %v21577_v29  ;;  %v27287_v29 = vld [vmem:[#allocation11 + $0x48] sm:$0xff] }
 0xa5b   :  { %21582 = vmatprep.subr.bf16.mxu1 %v21581_v60  ;;  %v29585_v6 = vand.u32 4294901760, %v27287_v29 }
 0xa5d   :  { %v27306_v0 = vpack.c.bf16 %v29585_v6, %v29588_v47  ;;  %v27328_v6 = vsub.f32 %v27216_v51, %v9447_v34  ;;  %v29594_v47 = vand.u32 4294901760, %v27321_v58  ;;  %v29595_v34 = vand.u32 4294901760, %v27343_v20 }
 0xa5e   :  { %21584 = vmatpush3.bf16.msra.mxu1 %v21581_v60  ;;  %v27293_v60 = vld [vmem:[#allocation11 + $0x58] sm:$0xff] }
 0xa5f   :  { %21586 = vmatprep.subr.bf16.mxu1 %v21585_v53  ;;  %29910 = vst [vmem:[#allocation54_spill] sm:$0xff] %v27306_v0  ;;  %21130 = vmatprep.subr.bf16.mxu0 %v27306_v0  ;;  %29912 = vst [vmem:[#allocation56_spill] sm:$0xff] %v27328_v6  ;;  %v29592_v51 = vand.u32 4294901760, %v27328_v6 }
 0xa60   :  { %21132 = vmatpush3.bf16.msra.mxu0 %v27306_v0 }
 0xa61   :  { %v9551_v2 = vsub.f32 %v27328_v6, %v29592_v51 }
 0xa62   :  { %21588 = vmatpush3.bf16.msra.mxu1 %v21585_v53  ;;  %v29587_v53 = vand.u32 4294901760, %v27291_v36 }
 0xa63   :  { %21590 = vmatprep.subr.bf16.mxu1 %v21589_v44 }
 0xa66   :  { %21592 = vmatpush3.bf16.msra.mxu1 %v21589_v44  ;;  %v29586_v44 = vand.u32 4294901760, %v27293_v60 }
 0xa67   :  { %21594 = vmatprep.subr.bf16.mxu1 %v27045_v49 }
 0xa68   :  { %v27316_v21 = vpack.c.bf16 %v29586_v44, %v29587_v53  ;;  %v29596_v53 = vand.u32 4294901760, %v27319_v12 }
 0xa69   :  { %18966 = vmatmul.mubr.f32.vlgmr.msra.gmra.mrb[36].mxu1 %v26516_v19  ;;  %v29591_v19 = vand.u32 4294901760, %v27298_v25 }
 0xa6a   :  { %21596 = vmatpush3.bf16.msra.mxu1 %v27045_v49  ;;  %19000 = vmatprep.mubr.f32.mxu1 %v26433_v40  ;;  %29911 = vst [vmem:[#allocation55_spill] sm:$0xff] %v27316_v21  ;;  %v29590_v40 = vand.u32 4294901760, %v27308_v62  ;;  %v27368_v18 = vpack.c.bf16 %v29594_v47, %v29596_v53 }
 0xa6b   :  { %21598 = vmatprep.subr.bf16.mxu1 %v27049_v39  ;;  %21134 = vmatprep.subr.bf16.mxu0 %v27316_v21 }
 0xa6c   :  { %v27336_v44 = vpack.c.bf16 %v29590_v40, %v29591_v19  ;;  %v27351_v40 = vsub.f32 %v27230_v27, %v9453_v7  ;;  %v27356_v19 = vsub.f32 %v27232_v42, %v9456_v31  ;;  %21136 = vmatpush3.bf16.msra.mxu0 %v27316_v21  ;;  %29917 = vst [vmem:[#allocation44_spill] sm:$0xff] %v27368_v18  ;;  %v9552_v31 = vand.u32 4294901760, %v9551_v2 }
 0xa6d   :  { %v9558_v27 = vsub.f32 %v27343_v20, %v29595_v34  ;;  %v29918_v2 = vand.u32 4294901760, %v27246_v23  ;;  %v29928_v21 = vand.u32 4294901760, %v27287_v29 }
 0xa6e   :  { %21600 = vmatpush3.bf16.msra.mxu1 %v27049_v39  ;;  %29913 = vst [vmem:[#allocation42_spill] sm:$0xff] %v27336_v44  ;;  %29915 = vst [vmem:[#allocation40_spill] sm:$0xff] %v27351_v40  ;;  %21138 = vmatprep.subr.bf16.mxu0 %v27336_v44  ;;  %v29598_v42 = vand.u32 4294901760, %v27351_v40  ;;  %v29599_v7 = vand.u32 4294901760, %v27356_v19 }
 0xa6f   :  { %21602 = vmatprep.subr.bf16.mxu1 %v27055_v41  ;;  %29916 = vst [vmem:[#allocation41_spill] sm:$0xff] %v27356_v19  ;;  %v9559_v51 = vand.u32 4294901760, %v9558_v27  ;;  %v27391_v27 = vsub.f32 %v27246_v23, %v29918_v2  ;;  %v29922_v23 = vand.u32 4294901760, %v27262_v28  ;;  %v27442_v0 = vsub.f32 %v27287_v29, %v29928_v21 }
 0xa70   :  { %v9565_v48 = vsub.f32 %v27351_v40, %v29598_v42  ;;  %v9572_v47 = vsub.f32 %v27356_v19, %v29599_v7  ;;  %21140 = vmatpush3.bf16.msra.mxu0 %v27336_v44  ;;  %v29920_v42 = vand.u32 4294901760, %v27248_v11  ;;  %v29933_v21 = vand.u32 4294901760, %v27068_v15 }
 0xa71   :  { %21142 = vmatprep.subr.bf16.mxu0 %v27368_v18  ;;  %v27385_v34 = vpack.c.bf16 %v9559_v51, %v9552_v31  ;;  %29919 = vst [vmem:[#allocation45_spill] sm:$0xff] %v27391_v27  ;;  %v29602_v51 = vand.u32 4294901760, %v27391_v27  ;;  %29929 = vst [vmem:[#allocation50_spill] sm:$0xff] %v27442_v0 }
 0xa72   :  { %21604 = vmatpush3.bf16.msra.mxu1 %v27055_v41  ;;  %v9566_v53 = vand.u32 4294901760, %v9565_v48  ;;  %v9573_v63 = vand.u32 4294901760, %v9572_v47  ;;  %v27396_v7 = vsub.f32 %v27248_v11, %v29920_v42  ;;  %v27408_v48 = vsub.f32 %v27262_v28, %v29922_v23 }
 0xa73   :  { %21606 = vmatprep.subr.bf16.mxu1 %v27059_v17  ;;  %v29924_v11 = vand.u32 4294901760, %v27264_v3 }
 0xa74   :  { %29921 = vst [vmem:[#allocation46_spill] sm:$0xff] %v27396_v7  ;;  %v27398_v44 = vpack.c.bf16 %v9573_v63, %v9566_v53  ;;  %21144 = vmatpush3.bf16.msra.mxu0 %v27368_v18  ;;  %v29603_v47 = vand.u32 4294901760, %v27396_v7  ;;  %29923 = vst [vmem:[#allocation47_spill] sm:$0xff] %v27408_v48  ;;  %v9579_v53 = vsub.f32 %v27391_v27, %v29602_v51  ;;  %v29610_v31 = vand.u32 4294901760, %v27408_v48 }
 0xa75   :  { %21146 = vmatprep.subr.bf16.mxu0 %v27385_v34  ;;  %v27413_v63 = vsub.f32 %v27264_v3, %v29924_v11 }
 0xa76   :  { %21608 = vmatpush3.bf16.msra.mxu1 %v27059_v17  ;;  %v9586_v42 = vsub.f32 %v27396_v7, %v29603_v47  ;;  %v9580_v2 = vand.u32 4294901760, %v9579_v53  ;;  %v9593_v3 = vsub.f32 %v27408_v48, %v29610_v31  ;;  %v29926_v47 = vand.u32 4294901760, %v27285_v1 }
 0xa77   :  { %21610 = vmatprep.subr.bf16.mxu1 %v27071_v10  ;;  %29925 = vst [vmem:[#allocation48_spill] sm:$0xff] %v27413_v63  ;;  %v29611_v28 = vand.u32 4294901760, %v27413_v63 }
 0xa78   :  { %v9587_v23 = vand.u32 4294901760, %v9586_v42  ;;  %v27437_v18 = vsub.f32 %v27285_v1, %v29926_v47  ;;  %v9594_v53 = vand.u32 4294901760, %v9593_v3  ;;  %v29932_v47 = vand.u32 4294901760, %v27066_v50 }
 0xa79   :  { %v9600_v11 = vsub.f32 %v27413_v63, %v29611_v28 }
 0xa7a   :  { %21612 = vmatpush3.bf16.msra.mxu1 %v27071_v10  ;;  %v27432_v51 = vpack.c.bf16 %v9587_v23, %v9580_v2  ;;  %29927 = vst [vmem:[#allocation49_spill] sm:$0xff] %v27437_v18  ;;  %v29613_v31 = vand.u32 4294901760, %v27437_v18  ;;  %v29612_v2 = vand.u32 4294901760, %v27442_v0  ;;  %v29930_v23 = vand.u32 4294901760, %v27291_v36 }
 0xa7b   :  { %21614 = vmatprep.subr.bf16.mxu1 %v27079_v16  ;;  %v9601_v42 = vand.u32 4294901760, %v9600_v11  ;;  %v21625_v29 = vpack.c.bf16 %v29933_v21, %v29932_v47  ;;  %v29934_v11 = vand.u32 4294901760, %v27293_v60  ;;  %v29937_v21 = vand.u32 4294901760, %v27087_v56 }
 0xa7c   :  { %v27452_v1 = vsub.f32 %v27291_v36, %v29930_v23  ;;  %v9607_v3 = vsub.f32 %v27437_v18, %v29613_v31  ;;  %v9614_v36 = vsub.f32 %v27442_v0, %v29612_v2 }
 0xa7d   :  { %v27446_v28 = vpack.c.bf16 %v9601_v42, %v9594_v53  ;;  %v27465_v53 = vsub.f32 %v27293_v60, %v29934_v11  ;;  %v29936_v60 = vand.u32 4294901760, %v27085_v35  ;;  %v29940_v35 = vand.u32 4294901760, %v27308_v62 }
 0xa7e   :  { %21616 = vmatpush3.bf16.msra.mxu1 %v27079_v16  ;;  %29931 = vst [vmem:[#allocation51_spill] sm:$0xff] %v27452_v1  ;;  %v29616_v42 = vand.u32 4294901760, %v27452_v1  ;;  %v9608_v23 = vand.u32 4294901760, %v9607_v3  ;;  %v9615_v15 = vand.u32 4294901760, %v9614_v36 }
 0xa7f   :  { %21618 = vmatprep.subr.bf16.mxu1 %v27093_v55  ;;  %29935 = vst [vmem:[#allocation57_spill] sm:$0xff] %v27465_v53  ;;  %v29621_v50 = vand.u32 4294901760, %v27465_v53  ;;  %v21629_v11 = vpack.c.bf16 %v29937_v21, %v29936_v60  ;;  %v27494_v56 = vsub.f32 %v27308_v62, %v29940_v35 }
 0xa80   :  { %v9621_v47 = vsub.f32 %v27452_v1, %v29616_v42  ;;  %v27483_v3 = vpack.c.bf16 %v9615_v15, %v9608_v23  ;;  %v27489_v42 = vsub.f32 %v27298_v25, %v29938_v54  ;;  %v29942_v23 = vand.u32 4294901760, %v27107_v22 }
 0xa81   :  { %v9628_v2 = vsub.f32 %v27465_v53, %v29621_v50  ;;  %29941 = vst [vmem:[#allocation59_spill] sm:$0xff] %v27494_v56  ;;  %v29943_v15 = vand.u32 4294901760, %v27109_v4  ;;  %v29619_v25 = vand.u32 4294901760, %v27494_v56  ;;  %v29944_v54 = vand.u32 4294901760, %v27319_v12 }
 0xa82   :  { %21620 = vmatpush3.bf16.msra.mxu1 %v27093_v55  ;;  %v9622_v31 = vand.u32 4294901760, %v9621_v47  ;;  %29939 = vst [vmem:[#allocation58_spill] sm:$0xff] %v27489_v42  ;;  %v29620_v47 = vand.u32 4294901760, %v27489_v42 }
 0xa83   :  { %21622 = vmatprep.subr.bf16.mxu1 %v27120_v30  ;;  %v9629_v36 = vand.u32 4294901760, %v9628_v2  ;;  %v27508_v62 = vsub.f32 %v27319_v12, %v29944_v54  ;;  %v9642_v4 = vsub.f32 %v27494_v56, %v29619_v25  ;;  %v29948_v12 = vand.u32 4294901760, %v27111_v37  ;;  %v27624_v25 = vld [vmem:[#allocation14 + $0xc0] sm:$0xff] }
 0xa84   :  { %v9635_v22 = vsub.f32 %v27489_v42, %v29620_v47  ;;  %v27541_v37 = vpack.c.bf16 %v27356_v19, %v27351_v40  ;;  %v27626_v47 = vld [vmem:[#allocation14 + $0xc8] sm:$0xff] }
 0xa85   :  { %v27501_v2 = vpack.c.bf16 %v9629_v36, %v9622_v31  ;;  %29945 = vst [vmem:[#allocation60_spill] sm:$0xff] %v27508_v62  ;;  %v29617_v31 = vand.u32 4294901760, %v27508_v62  ;;  %v29949_v36 = vand.u32 4294901760, %v27113_v26  ;;  %v29631_v50 = vand.u32 4294901760, %v27626_v47 }
 0xa86   :  { %21624 = vmatpush3.bf16.msra.mxu1 %v27120_v30  ;;  %v9636_v35 = vand.u32 4294901760, %v9635_v22 }
 0xa87   :  { %21626 = vmatprep.subr.bf16.mxu1 %v21625_v29 }
 0xa89   :  { %19001 = vmatmul.mubr.f32.vlgmr.msra.gmra.mrb[36].mxu1 %v26535_v14  ;;  %v21633_v14 = vpack.c.bf16 %v29943_v15, %v29942_v23  ;;  %v9643_v23 = vand.u32 4294901760, %v9642_v4  ;;  %v27529_v15 = vpack.c.bf16 %v27343_v20, %v27328_v6  ;;  %v29950_v4 = vand.u32 4294901760, %v27134_v33 }
 0xa8a   :  { %21628 = vmatpush3.bf16.msra.mxu1 %v21625_v29  ;;  %19035 = vmatprep.mubr.f32.mxu1 %v26421_v24  ;;  %v29946_v29 = vand.u32 4294901760, %v27321_v58  ;;  %v29954_v33 = vand.u32 4294901760, %v27171_v61  ;;  %v27579_v61 = vpack.c.bf16 %v27494_v56, %v27489_v42  ;;  %v27648_v42 = vld [vmem:[#allocation14 + $0xe0] sm:$0xff] }
 0xa8b   :  { %21630 = vmatprep.subr.bf16.mxu1 %v21629_v11 }
 0xa8c   :  { %v27513_v60 = vsub.f32 %v27321_v58, %v29946_v29  ;;  %v21637_v58 = vpack.c.bf16 %v29949_v36, %v29948_v12  ;;  %v27537_v29 = vpack.c.bf16 %v9643_v23, %v9636_v35  ;;  %v29951_v12 = vand.u32 4294901760, %v27136_v5 }
 0xa8d   :  { %v29952_v35 = vand.u32 4294901760, %v27154_v46  ;;  %v29955_v5 = vand.u32 4294901760, %v27176_v59  ;;  %v29956_v46 = vand.u32 4294901760, %v27189_v57  ;;  %v27597_v57 = vand.u32 4294901760, %v26858_v9 }
 0xa8e   :  { %29947 = vst [vmem:[#allocation61_spill] sm:$0xff] %v27513_v60  ;;  %21632 = vmatpush3.bf16.msra.mxu1 %v21629_v11  ;;  %v29618_v21 = vand.u32 4294901760, %v27513_v60  ;;  %v9649_v11 = vsub.f32 %v27508_v62, %v29617_v31  ;;  %v21641_v36 = vpack.c.bf16 %v29951_v12, %v29950_v4  ;;  %v27549_v31 = vpack.c.bf16 %v27396_v7, %v27391_v27  ;;  %v10859_v4 = vld [vmem:[#allocation14 + $0x90] sm:$0xff]  ;;  %v10860_v12 = vld [vmem:[#allocation14 + $0x98] sm:$0xff] }
 0xa8f   :  { %21634 = vmatprep.subr.bf16.mxu1 %v21633_v14  ;;  %v27584_v59 = vpack.c.bf16 %v27513_v60, %v27508_v62 }
 0xa90   :  { %v9656_v54 = vsub.f32 %v27513_v60, %v29618_v21  ;;  %v9650_v26 = vand.u32 4294901760, %v9649_v11  ;;  %v27559_v11 = vpack.c.bf16 %v27413_v63, %v27408_v48 }
 0xa92   :  { %21636 = vmatpush3.bf16.msra.mxu1 %v21633_v14  ;;  %v9657_v22 = vand.u32 4294901760, %v9656_v54  ;;  %v29953_v14 = vand.u32 4294901760, %v27156_v38  ;;  %v21649_v54 = vpack.c.bf16 %v29955_v5, %v29954_v33  ;;  %v29957_v38 = vand.u32 4294901760, %v27194_v43 }
 0xa93   :  { %21638 = vmatprep.subr.bf16.mxu1 %v21637_v58 }
 0xa94   :  { %v27551_v21 = vpack.c.bf16 %v9657_v22, %v9650_v26  ;;  %v21645_v23 = vpack.c.bf16 %v29953_v14, %v29952_v35  ;;  %v21653_v26 = vpack.c.bf16 %v29957_v38, %v29956_v46  ;;  %v27575_v22 = vpack.c.bf16 %v27465_v53, %v27452_v1  ;;  %v10861_v35 = vld [vmem:[#allocation14 + $0xa0] sm:$0xff]  ;;  %v10862_v14 = vld [vmem:[#allocation14 + $0xa8] sm:$0xff]  ;;  %v10864_v46 = vld [vmem:[#allocation14 + $0xb8] sm:$0xff] }
 0xa95   :  { %v11595_v33 = vand.u32 4294901760, %v10861_v35 }
 0xa96   :  { %21640 = vmatpush3.bf16.msra.mxu1 %v21637_v58  ;;  %v27567_v58 = vpack.c.bf16 %v27442_v0, %v27437_v18  ;;  %v27654_v0 = vld [vmem:[#allocation14 + $0xe8] sm:$0xff]  ;;  %v27657_v18 = vand.u32 4294901760, %v26845_v45 }
 0xa97   :  { %21642 = vmatprep.subr.bf16.mxu1 %v21641_v36 }
 0xa9a   :  { %21644 = vmatpush3.bf16.msra.mxu1 %v21641_v36  ;;  %v11592_v36 = vand.u32 4294901760, %v10860_v12 }
 0xa9b   :  { %21646 = vmatprep.subr.bf16.mxu1 %v21645_v23 }
 0xa9e   :  { %21648 = vmatpush3.bf16.msra.mxu1 %v21645_v23 }
 0xa9f   :  { %21650 = vmatprep.subr.bf16.mxu1 %v21649_v54 }
 0xaa2   :  { %21652 = vmatpush3.bf16.msra.mxu1 %v21649_v54  ;;  %v10863_v54 = vld [vmem:[#allocation14 + $0xb0] sm:$0xff] }
 0xaa3   :  { %21654 = vmatprep.subr.bf16.mxu1 %v21653_v26 }
 0xaa6   :  { %21656 = vmatpush3.bf16.msra.mxu1 %v21653_v26  ;;  %v11601_v26 = vand.u32 4294901760, %v10863_v54 }
 0xaa7   :  { %21658 = vmatprep.subr.bf16.mxu1 %v27045_v49 }
 0xaa9   :  { %19036 = vmatmul.mubr.f32.vlgmr.msra.gmra.mrb[36].mxu1 %v26491_v13 }
 0xaaa   :  { %21660 = vmatpush3.bf16.msra.mxu1 %v27045_v49  ;;  %19070 = vmatprep.mubr.f32.mxu1 %v26421_v24  ;;  %v27603_v24 = vsub.f32 %v26858_v9, %v27597_v57  ;;  %v10857_v49 = vld [vmem:[#allocation14 + $0x80] sm:$0xff]  ;;  %v11589_v9 = vand.u32 4294901760, %v10859_v4 }
 0xaab   :  { %21662 = vmatprep.subr.bf16.mxu1 %v27049_v39 }
 0xaac   :  { %v29622_v43 = vand.u32 4294901760, %v27603_v24  ;;  %v27617_v23 = vpack.c.bf16 %v11592_v36, %v11589_v9 }
 0xaae   :  { %21664 = vmatpush3.bf16.msra.mxu1 %v27049_v39  ;;  %v10858_v39 = vld [vmem:[#allocation14 + $0x88] sm:$0xff] }
 0xaaf   :  { %21666 = vmatprep.subr.bf16.mxu1 %v27055_v41 }
 0xab2   :  { %21668 = vmatpush3.bf16.msra.mxu1 %v27055_v41  ;;  %v11583_v41 = vand.u32 4294901760, %v10857_v49 }
 0xab3   :  { %21670 = vmatprep.subr.bf16.mxu1 %v27059_v17 }
 0xab4   :  { %v27650_v53 = vsub.f32 %v10857_v49, %v11583_v41 }
 0xab6   :  { %21672 = vmatpush3.bf16.msra.mxu1 %v27059_v17  ;;  %v11586_v17 = vand.u32 4294901760, %v10858_v39  ;;  %v29966_v48 = vand.u32 4294901760, %v27650_v53 }
 0xab7   :  { %21674 = vmatprep.subr.bf16.mxu1 %v27071_v10 }
 0xab8   :  { %v27652_v1 = vsub.f32 %v10858_v39, %v11586_v17  ;;  %v11687_v56 = vsub.f32 %v27650_v53, %v29966_v48 }
 0xaba   :  { %21676 = vmatpush3.bf16.msra.mxu1 %v27071_v10  ;;  %v27610_v10 = vpack.c.bf16 %v11586_v17, %v11583_v41  ;;  %v29641_v41 = vand.u32 4294901760, %v27654_v0  ;;  %v27673_v17 = vld [vmem:[#allocation14 + $0xf0] sm:$0xff]  ;;  %v29967_v63 = vand.u32 4294901760, %v27652_v1 }
 0xabb   :  { %21678 = vmatprep.subr.bf16.mxu1 %v27079_v16 }
 0xabc   :  { %v11694_v7 = vsub.f32 %v27652_v1, %v29967_v63  ;;  %v27714_v63 = vsub.f32 %v10863_v54, %v11601_v26 }
 0xabe   :  { %21680 = vmatpush3.bf16.msra.mxu1 %v27079_v16  ;;  %v11666_v16 = vsub.f32 %v27603_v24, %v29622_v43  ;;  %v27636_v43 = vld [vmem:[#allocation14 + $0xd8] sm:$0xff]  ;;  %v11695_v40 = vand.u32 4294901760, %v11694_v7 }
 0xabf   :  { %21682 = vmatprep.subr.bf16.mxu1 %v27093_v55  ;;  %v29962_v49 = vand.u32 4294901760, %v27636_v43 }
 0xac0   :  { %v11667_v5 = vand.u32 4294901760, %v11666_v16  ;;  %v29632_v16 = vand.u32 4294901760, %v27624_v25 }
 0xac2   :  { %21684 = vmatpush3.bf16.msra.mxu1 %v27093_v55  ;;  %v11598_v55 = vand.u32 4294901760, %v10862_v14  ;;  %v27643_v60 = vpack.c.bf16 %v29631_v50, %v29632_v16  ;;  %v27659_v50 = vsub.f32 %v10859_v4, %v11589_v9  ;;  %v27661_v16 = vsub.f32 %v10860_v12, %v11592_v36  ;;  %v27677_v9 = vld [vmem:[#allocation14 + $0xf8] sm:$0xff] }
 0xac3   :  { %21686 = vmatprep.subr.bf16.mxu1 %v27120_v30  ;;  %v27681_v36 = vsub.f32 %v26845_v45, %v27657_v18  ;;  %v29964_v4 = vand.u32 4294901760, %v27648_v42 }
 0xac4   :  { %v27622_v38 = vpack.c.bf16 %v11598_v55, %v11595_v33  ;;  %29960 = vst [vmem:[#allocation64_spill] sm:$0xff] %v27643_v60  ;;  %v27704_v19 = vsub.f32 %v10862_v14, %v11598_v55  ;;  %v29969_v6 = vand.u32 4294901760, %v27661_v16 }
 0xac5   :  { %v27693_v12 = vpack.c.bf16 %v29641_v41, %v29964_v4  ;;  %v29968_v41 = vand.u32 4294901760, %v27659_v50  ;;  %v29973_v54 = vand.u32 4294901760, %v27681_v36 }
 0xac6   :  { %21688 = vmatpush3.bf16.msra.mxu1 %v27120_v30  ;;  %29958 = vst [vmem:[#allocation62_spill] sm:$0xff] %v27622_v38  ;;  %v11604_v30 = vand.u32 4294901760, %v10864_v46  ;;  %v11708_v48 = vsub.f32 %v27661_v16, %v29969_v6 }
 0xac7   :  { %21690 = vmatprep.subr.bf16.mxu1 %v27610_v10  ;;  %29965 = vst [vmem:[#allocation66_spill] sm:$0xff] %v27693_v12  ;;  %v11701_v45 = vsub.f32 %v27659_v50, %v29968_v41  ;;  %v11688_v41 = vand.u32 4294901760, %v11687_v56 }
 0xac9   :  { %19071 = vmatmul.mubr.f32.vlgmr.msra.gmra.mrb[36].mxu1 %v26491_v13  ;;  %v27632_v13 = vpack.c.bf16 %v11604_v30, %v11601_v26  ;;  %v11702_v26 = vand.u32 4294901760, %v11701_v45  ;;  %v21721_v45 = vpack.c.bf16 %v11695_v40, %v11688_v41  ;;  %v29976_v41 = vand.u32 4294901760, %v27714_v63 }
 0xaca   :  { %21692 = vmatpush3.bf16.msra.mxu1 %v27610_v10  ;;  %19105 = vmatprep.mubr.f32.mxu1 %v11667_v5  ;;  %v27634_v5 = vld [vmem:[#allocation14 + $0xd0] sm:$0xff] }
 0xacb   :  { %21694 = vmatprep.subr.bf16.mxu1 %v27617_v23  ;;  %29959 = vst [vmem:[#allocation63_spill] sm:$0xff] %v27632_v13  ;;  %v29634_v62 = vand.u32 4294901760, %v27634_v5 }
 0xacd   :  { %v27670_v39 = vpack.c.bf16 %v29962_v49, %v29634_v62  ;;  %v14543_v49 = vld [vmem:[%s29961_s6] ss:$0 sm:$0xff]  ;;  %v27702_v62 = vsub.f32 %v10861_v35, %v11595_v33  ;;  %v27716_v35 = vsub.f32 %v10864_v46, %v11604_v30  ;;  %v29971_v33 = vand.u32 4294901760, %v27677_v9 }
 0xace   :  { %21696 = vmatpush3.bf16.msra.mxu1 %v27617_v23  ;;  %v11676_v46 = vsub.f32 %v27681_v36, %v29973_v54  ;;  %v11709_v30 = vand.u32 4294901760, %v11708_v48  ;;  %v29975_v48 = vand.u32 4294901760, %v27626_v47 }
 0xacf   :  { %21698 = vmatprep.subr.bf16.mxu1 %v27622_v38  ;;  %29963 = vst [vmem:[#allocation65_spill] sm:$0xff] %v27670_v39  ;;  %v29647_v6 = vand.u32 4294901760, %v27702_v62 }
 0xad0   :  { %v27749_v54 = vsub.f32 %v27626_v47, %v29975_v48  ;;  %v21725_v40 = vpack.c.bf16 %v11709_v30, %v11702_v26  ;;  %v29977_v48 = vand.u32 4294901760, %v27716_v35  ;;  %v29978_v26 = vand.u32 4294901760, %v27634_v5 }
 0xad1   :  { %v11715_v7 = vsub.f32 %v27702_v62, %v29647_v6 }
 0xad2   :  { %21700 = vmatpush3.bf16.msra.mxu1 %v27622_v38  ;;  %v11736_v6 = vsub.f32 %v27716_v35, %v29977_v48  ;;  %v27777_v30 = vsub.f32 %v27634_v5, %v29978_v26 }
 0xad3   :  { %21702 = vmatprep.subr.bf16.mxu1 %v27632_v13 }
 0xad4   :  { %v11737_v52 = vand.u32 4294901760, %v11736_v6 }
 0xad6   :  { %21704 = vmatpush3.bf16.msra.mxu1 %v27632_v13 }
 0xad7   :  { %21706 = vmatprep.subr.bf16.mxu1 %v27643_v60 }
 0xada   :  { %21708 = vmatpush3.bf16.msra.mxu1 %v27643_v60 }
 0xadb   :  { %21710 = vmatprep.subr.bf16.mxu1 %v27670_v39 }
 0xadc   :  { %v18442_v27 = vpop.f32.mrb[34].mxu1 }
 0xadd   :  { %v22539_v20 = vadd.f32 %v18442_v27, %v14543_v49  ;;  %v9409_v4 = vpop.f32.mrb[35].mxu1  ;;  %v29970_v27 = vand.u32 4294901760, %v27673_v17 }
 0xade   :  { %v22540_v60 = vadd.f32 %v14543_v49, %v9409_v4  ;;  %21712 = vmatpush3.bf16.msra.mxu1 %v27670_v39  ;;  %v29650_v49 = vand.u32 4294901760, %v27704_v19 }
 0xadf   :  { %v9422_v14 = vmax.f32 %v22539_v20, 0.0  ;;  %21714 = vmatprep.subr.bf16.mxu1 %v27693_v12  ;;  %v27723_v55 = vpack.c.bf16 %v29971_v33, %v29970_v27 }
 0xae0   :  { %v9421_v13 = vmax.f32 %v22540_v60, 0.0  ;;  %v29974_v60 = vand.u32 4294901760, %v27624_v25 }
 0xae1   :  { %29972 = vst [vmem:[#allocation67_spill] sm:$0xff] %v27723_v55  ;;  %v27730_v20 = vand.u32 4294901760, %v9422_v14 }
 0xae2   :  { %v27732_v4 = vand.u32 4294901760, %v9421_v13  ;;  %21716 = vmatpush3.bf16.msra.mxu1 %v27693_v12  ;;  %v27740_v27 = vsub.f32 %v27624_v25, %v29974_v60  ;;  %v11722_v25 = vsub.f32 %v27704_v19, %v29650_v49  ;;  %v11677_v60 = vand.u32 4294901760, %v11676_v46 }
 0xae3   :  { %v27743_v33 = vsub.f32 %v9422_v14, %v27730_v20  ;;  %21718 = vmatprep.subr.bf16.mxu1 %v27723_v55 }
 0xae4   :  { %v27752_v56 = vsub.f32 %v9421_v13, %v27732_v4  ;;  %v11729_v13 = vsub.f32 %v27714_v63, %v29976_v41  ;;  %v29979_v41 = vand.u32 4294901760, %v27636_v43  ;;  %v11723_v39 = vand.u32 4294901760, %v11722_v25 }
 0xae5   :  { %v29655_v14 = vand.u32 4294901760, %v27743_v33  ;;  %v29981_v5 = vand.u32 4294901760, %v27740_v27 }
 0xae6   :  { %21720 = vmatpush3.bf16.msra.mxu1 %v27723_v55  ;;  %v27782_v47 = vsub.f32 %v27636_v43, %v29979_v41  ;;  %v29980_v48 = vand.u32 4294901760, %v27752_v56  ;;  %v11716_v55 = vand.u32 4294901760, %v11715_v7  ;;  %v11730_v46 = vand.u32 4294901760, %v11729_v13 }
 0xae7   :  { %v9540_v49 = vsub.f32 %v27743_v33, %v29655_v14  ;;  %21722 = vmatprep.subr.bf16.mxu1 %v21721_v45  ;;  %v11743_v26 = vsub.f32 %v27740_v27, %v29981_v5  ;;  %v29982_v43 = vand.u32 4294901760, %v27749_v54  ;;  %v11756_v7 = vand.u32 4294901760, %v27777_v30 }
 0xae8   :  { %v9530_v12 = vsub.f32 %v27752_v56, %v29980_v48  ;;  %v11763_v25 = vand.u32 4294901760, %v27782_v47  ;;  %v21733_v13 = vpack.c.bf16 %v11737_v52, %v11730_v46  ;;  %v29985_v52 = vand.u32 4294901760, %v27673_v17 }
 0xae9   :  { %19106 = vmatmul.mubr.f32.vlgmr.msra.gmra.mrb[36].mxu1 %v11677_v60  ;;  %v9541_v38 = vand.u32 4294901760, %v9540_v49  ;;  %v11750_v41 = vsub.f32 %v27749_v54, %v29982_v43  ;;  %v29984_v60 = vand.u32 4294901760, %v27654_v0 }
 0xaea   :  { %21724 = vmatpush3.bf16.msra.mxu1 %v21721_v45  ;;  %19140 = vmatprep.mubr.f32.mxu1 %v27597_v57  ;;  %v9531_v14 = vand.u32 4294901760, %v9530_v12  ;;  %v21729_v45 = vpack.c.bf16 %v11723_v39, %v11716_v55  ;;  %v29983_v12 = vand.u32 4294901760, %v27648_v42  ;;  %v11744_v39 = vand.u32 4294901760, %v11743_v26 }
 0xaeb   :  { %21726 = vmatprep.subr.bf16.mxu1 %v21725_v40  ;;  %v27804_v49 = vsub.f32 %v27654_v0, %v29984_v60  ;;  %v11751_v55 = vand.u32 4294901760, %v11750_v41  ;;  %v11764_v0 = vsub.f32 %v27782_v47, %v11763_v25 }
 0xaec   :  { %18475 = vmatprep.mubr.f32.mxu0 %v9531_v14  ;;  %v27799_v6 = vsub.f32 %v27648_v42, %v29983_v12  ;;  %v11757_v42 = vsub.f32 %v27777_v30, %v11756_v7  ;;  %v27820_v14 = vsub.f32 %v27673_v17, %v29985_v52  ;;  %v29995_v52 = vld [vmem:[#allocation65_spill] sm:$0xff] }
 0xaed   :  { %18476 = vmatmul.mubr.f32.vlgmr.msra.gmra.mrb[52].mxu0 %v9541_v38  ;;  %v21737_v48 = vpack.c.bf16 %v11751_v55, %v11744_v39  ;;  %v11765_v26 = vand.u32 4294901760, %v11764_v0  ;;  %v29994_v0 = vld [vmem:[#allocation54_spill] sm:$0xff] }
 0xaee   :  { %21148 = vmatpush3.bf16.msra.mxu0 %v27385_v34  ;;  %18510 = vmatprep.mubr.f32.mxu0 %v27732_v4  ;;  %v11770_v38 = vand.u32 4294901760, %v27799_v6  ;;  %v11777_v34 = vand.u32 4294901760, %v27804_v49  ;;  %v11758_v5 = vand.u32 4294901760, %v11757_v42 }
 0xaef   :  { %21728 = vmatpush3.bf16.msra.mxu1 %v21725_v40  ;;  %21150 = vmatprep.subr.bf16.mxu0 %v27398_v44  ;;  %v29986_v40 = vand.u32 4294901760, %v27677_v9 }
 0xaf0   :  { %21730 = vmatprep.subr.bf16.mxu1 %v21729_v45  ;;  %v11771_v43 = vsub.f32 %v27799_v6, %v11770_v38  ;;  %v11778_v17 = vsub.f32 %v27804_v49, %v11777_v34 }
 0xaf1   :  { %v27825_v46 = vsub.f32 %v27677_v9, %v29986_v40  ;;  %v11784_v9 = vand.u32 4294901760, %v27820_v14  ;;  %v29996_v40 = vld [vmem:[#allocation55_spill] sm:$0xff] }
 0xaf2   :  { %21152 = vmatpush3.bf16.msra.mxu0 %v27398_v44  ;;  %v21741_v44 = vpack.c.bf16 %v11765_v26, %v11758_v5  ;;  %v11779_v12 = vand.u32 4294901760, %v11778_v17  ;;  %v29998_v5 = vld [vmem:[#allocation42_spill] sm:$0xff]  ;;  %v29999_v26 = vld [vmem:[#allocation67_spill] sm:$0xff]  ;;  %v30001_v17 = vand.u32 4294901760, %v27652_v1 }
 0xaf3   :  { %21732 = vmatpush3.bf16.msra.mxu1 %v21729_v45  ;;  %21154 = vmatprep.subr.bf16.mxu0 %v27432_v51  ;;  %v11791_v41 = vand.u32 4294901760, %v27825_v46  ;;  %v11772_v45 = vand.u32 4294901760, %v11771_v43  ;;  %v11785_v60 = vsub.f32 %v27820_v14, %v11784_v9  ;;  %v30000_v43 = vand.u32 4294901760, %v27650_v53 }
 0xaf4   :  { %21734 = vmatprep.subr.bf16.mxu1 %v21733_v13 }
 0xaf5   :  { %v11792_v39 = vsub.f32 %v27825_v46, %v11791_v41 }
 0xaf6   :  { %21156 = vmatpush3.bf16.msra.mxu0 %v27432_v51  ;;  %v21745_v51 = vpack.c.bf16 %v11779_v12, %v11772_v45  ;;  %v30002_v45 = vld [vmem:[#allocation44_spill] sm:$0xff] }
 0xaf7   :  { %21736 = vmatpush3.bf16.msra.mxu1 %v21733_v13  ;;  %21158 = vmatprep.subr.bf16.mxu0 %v27446_v28  ;;  %v11786_v13 = vand.u32 4294901760, %v11785_v60  ;;  %v11793_v55 = vand.u32 4294901760, %v11792_v39  ;;  %v30003_v12 = vld [vmem:[#allocation56_spill] sm:$0xff]  ;;  %v30005_v39 = vld [vmem:[#allocation43_spill] sm:$0xff] }
 0xaf8   :  { %21738 = vmatprep.subr.bf16.mxu1 %v21737_v48  ;;  %v30004_v60 = vand.u32 4294901760, %v30003_v12  ;;  %v30025_v12 = vld [vmem:[#allocation48_spill] sm:$0xff] }
 0xaf9   :  { %v21749_v42 = vpack.c.bf16 %v11793_v55, %v11786_v13  ;;  %v30007_v55 = vand.u32 4294901760, %v27659_v50 }
 0xafa   :  { %21160 = vmatpush3.bf16.msra.mxu0 %v27446_v28  ;;  %v21753_v28 = vpack.c.bf16 %v27652_v1, %v27650_v53  ;;  %v30009_v1 = vand.u32 4294901760, %v27681_v36 }
 0xafb   :  { %21740 = vmatpush3.bf16.msra.mxu1 %v21737_v48  ;;  %21162 = vmatprep.subr.bf16.mxu0 %v27483_v3  ;;  %v29997_v48 = vld [vmem:[#allocation66_spill] sm:$0xff] }
 0xafc   :  { %21742 = vmatprep.subr.bf16.mxu1 %v21741_v44 }
 0xafe   :  { %21164 = vmatpush3.bf16.msra.mxu0 %v27483_v3  ;;  %v21757_v3 = vpack.c.bf16 %v27661_v16, %v27659_v50  ;;  %v30014_v50 = vand.u32 4294901760, %v27702_v62 }
 0xaff   :  { %21744 = vmatpush3.bf16.msra.mxu1 %v21741_v44  ;;  %21166 = vmatprep.subr.bf16.mxu0 %v27501_v2  ;;  %v21817_v44 = vpack.c.bf16 %v30001_v17, %v30000_v43  ;;  %v30021_v17 = vand.u32 4294901760, %v27714_v63 }
 0xb00   :  { %21746 = vmatprep.subr.bf16.mxu1 %v21745_v51 }
 0xb02   :  { %21168 = vmatpush3.bf16.msra.mxu0 %v27501_v2  ;;  %v21761_v2 = vpack.c.bf16 %v27704_v19, %v27702_v62  ;;  %v30022_v62 = vand.u32 4294901760, %v27716_v35 }
 0xb03   :  { %21748 = vmatpush3.bf16.msra.mxu1 %v21745_v51  ;;  %21170 = vmatprep.subr.bf16.mxu0 %v27537_v29  ;;  %v30006_v51 = vand.u32 4294901760, %v30005_v39 }
 0xb04   :  { %21750 = vmatprep.subr.bf16.mxu1 %v21749_v42 }
 0xb05   :  { %v21241_v13 = vpack.c.bf16 %v30006_v51, %v30004_v60  ;;  %v30026_v60 = vand.u32 4294901760, %v30025_v12  ;;  %v30027_v51 = vand.u32 4294901760, %v27740_v27  ;;  %v10147_v12 = vld [vmem:[#allocation12 + $0x78] sm:$0xff] }
 0xb06   :  { %21172 = vmatpush3.bf16.msra.mxu0 %v27537_v29  ;;  %v21769_v29 = vpack.c.bf16 %v27749_v54, %v27740_v27  ;;  %v30033_v27 = vld [vmem:[#allocation51_spill] sm:$0xff] }
 0xb07   :  { %21752 = vmatpush3.bf16.msra.mxu1 %v21749_v42  ;;  %21174 = vmatprep.subr.bf16.mxu0 %v27551_v21  ;;  %v30008_v42 = vand.u32 4294901760, %v27661_v16  ;;  %v30015_v16 = vand.u32 4294901760, %v27704_v19  ;;  %v21829_v19 = vpack.c.bf16 %v30022_v62, %v30021_v17 }
 0xb08   :  { %21754 = vmatprep.subr.bf16.mxu1 %v21753_v28 }
 0xb09   :  { %v21821_v53 = vpack.c.bf16 %v30008_v42, %v30007_v55  ;;  %v30031_v42 = vld [vmem:[#allocation50_spill] sm:$0xff] }
 0xb0a   :  { %21176 = vmatpush3.bf16.msra.mxu0 %v27551_v21  ;;  %19141 = vmatmul.mubr.f32.vlgmr.msra.gmra.mrb[36].mxu1 %v27657_v18  ;;  %v21765_v21 = vpack.c.bf16 %v27716_v35, %v27714_v63  ;;  %v30029_v63 = vld [vmem:[#allocation49_spill] sm:$0xff] }
 0xb0b   :  { %21756 = vmatpush3.bf16.msra.mxu1 %v21753_v28  ;;  %19175 = vmatprep.mubr.f32.mxu1 %v27603_v24  ;;  %v30010_v28 = vld [vmem:[#allocation40_spill] sm:$0xff]  ;;  %v30030_v35 = vand.u32 4294901760, %v30029_v63 }
 0xb0c   :  { %21178 = vmatprep.subr.bf16.mxu0 %v27529_v15  ;;  %21758 = vmatprep.subr.bf16.mxu1 %v21757_v3 }
 0xb0d   :  { %18511 = vmatmul.mubr.f32.vlgmr.msra.gmra.mrb[52].mxu0 %v27730_v20 }
 0xb0e   :  { %21180 = vmatpush3.bf16.msra.mxu0 %v27529_v15  ;;  %18545 = vmatprep.mubr.f32.mxu0 %v27752_v56  ;;  %v21773_v15 = vpack.c.bf16 %v27782_v47, %v27777_v30  ;;  %v30037_v30 = vld [vmem:[#allocation58_spill] sm:$0xff] }
 0xb0f   :  { %21760 = vmatpush3.bf16.msra.mxu1 %v21757_v3  ;;  %21182 = vmatprep.subr.bf16.mxu0 %v27541_v37  ;;  %v30011_v3 = vand.u32 4294901760, %v30010_v28  ;;  %v21837_v28 = vpack.c.bf16 %v11763_v25, %v11756_v7  ;;  %v30038_v47 = vand.u32 4294901760, %v30037_v30  ;;  %v30039_v7 = vld [vmem:[#allocation59_spill] sm:$0xff] }
 0xb10   :  { %21762 = vmatprep.subr.bf16.mxu1 %v21761_v2  ;;  %v30040_v25 = vand.u32 4294901760, %v30039_v7 }
 0xb12   :  { %21184 = vmatpush3.bf16.msra.mxu0 %v27541_v37  ;;  %v21777_v37 = vpack.c.bf16 %v27804_v49, %v27799_v6  ;;  %v30041_v6 = vld [vmem:[#allocation60_spill] sm:$0xff] }
 0xb13   :  { %21764 = vmatpush3.bf16.msra.mxu1 %v21761_v2  ;;  %21186 = vmatprep.subr.bf16.mxu0 %v27549_v31  ;;  %v30012_v2 = vld [vmem:[#allocation41_spill] sm:$0xff]  ;;  %v30042_v49 = vand.u32 4294901760, %v30041_v6 }
 0xb14   :  { %21766 = vmatprep.subr.bf16.mxu1 %v21765_v21 }
 0xb16   :  { %21188 = vmatpush3.bf16.msra.mxu0 %v27549_v31  ;;  %v21781_v31 = vpack.c.bf16 %v27825_v46, %v27820_v14 }
 0xb17   :  { %21768 = vmatpush3.bf16.msra.mxu1 %v21765_v21  ;;  %21190 = vmatprep.subr.bf16.mxu0 %v27559_v11  ;;  %v30013_v21 = vand.u32 4294901760, %v30012_v2 }
 0xb18   :  { %21770 = vmatprep.subr.bf16.mxu1 %v21769_v29 }
 0xb1a   :  { %21192 = vmatpush3.bf16.msra.mxu0 %v27559_v11  ;;  %v29987_v11 = vand.u32 4294901760, %v27603_v24  ;;  %v29992_v24 = vld [vmem:[#allocation53_spill] sm:$0xff] }
 0xb1b   :  { %21772 = vmatpush3.bf16.msra.mxu1 %v21769_v29  ;;  %21194 = vmatprep.subr.bf16.mxu0 %v27567_v58  ;;  %v21245_v29 = vpack.c.bf16 %v30013_v21, %v30011_v3  ;;  %v30035_v3 = vld [vmem:[#allocation57_spill] sm:$0xff] }
 0xb1c   :  { %21774 = vmatprep.subr.bf16.mxu1 %v21773_v15  ;;  %v30036_v2 = vand.u32 4294901760, %v30035_v3 }
 0xb1e   :  { %21196 = vmatpush3.bf16.msra.mxu0 %v27567_v58  ;;  %v29988_v58 = vand.u32 4294901760, %v27752_v56  ;;  %v29993_v56 = vld [vmem:[#allocation64_spill] sm:$0xff] }
 0xb1f   :  { %21776 = vmatpush3.bf16.msra.mxu1 %v21773_v15  ;;  %21198 = vmatprep.subr.bf16.mxu0 %v27575_v22  ;;  %v21825_v15 = vpack.c.bf16 %v30015_v16, %v30014_v50  ;;  %v21265_v50 = vpack.c.bf16 %v30040_v25, %v30038_v47  ;;  %v21845_v16 = vpack.c.bf16 %v11791_v41, %v11784_v9  ;;  %v28041_v41 = vld [vmem:[#allocation12 + $0x20] sm:$0xff] }
 0xb20   :  { %21778 = vmatprep.subr.bf16.mxu1 %v21777_v37 }
 0xb22   :  { %21200 = vmatpush3.bf16.msra.mxu0 %v27575_v22  ;;  %v29989_v22 = vld [vmem:[#allocation62_spill] sm:$0xff] }
 0xb23   :  { %21780 = vmatpush3.bf16.msra.mxu1 %v21777_v37  ;;  %21202 = vmatprep.subr.bf16.mxu0 %v27579_v61  ;;  %v30016_v37 = vand.u32 4294901760, %v27743_v33 }
 0xb24   :  { %21782 = vmatprep.subr.bf16.mxu1 %v21781_v31 }
 0xb26   :  { %21204 = vmatpush3.bf16.msra.mxu0 %v27579_v61  ;;  %v29990_v61 = vld [vmem:[#allocation52_spill] sm:$0xff] }
 0xb27   :  { %21784 = vmatpush3.bf16.msra.mxu1 %v21781_v31  ;;  %21206 = vmatprep.subr.bf16.mxu0 %v27584_v59 }
 0xb28   :  { %21786 = vmatprep.subr.bf16.mxu1 %v27610_v10 }
 0xb2a   :  { %21208 = vmatpush3.bf16.msra.mxu0 %v27584_v59  ;;  %19176 = vmatmul.mubr.f32.vlgmr.msra.gmra.mrb[36].mxu1 %v27681_v36  ;;  %v29991_v59 = vld [vmem:[#allocation63_spill] sm:$0xff]  ;;  %v30017_v36 = vld [vmem:[#allocation45_spill] sm:$0xff] }
 0xb2b   :  { %21788 = vmatpush3.bf16.msra.mxu1 %v27610_v10  ;;  %19210 = vmatprep.mubr.f32.mxu1 %v29987_v11  ;;  %v30018_v31 = vand.u32 4294901760, %v30017_v36  ;;  %v30019_v11 = vld [vmem:[#allocation46_spill] sm:$0xff]  ;;  %v10143_v36 = vld [vmem:[#allocation12 + $0x58] sm:$0xff] }
 0xb2c   :  { %21210 = vmatprep.subr.bf16.mxu0 %v27228_v8  ;;  %21790 = vmatprep.subr.bf16.mxu1 %v27617_v23 }
 0xb2d   :  { %18546 = vmatmul.mubr.f32.vlgmr.msra.gmra.mrb[52].mxu0 %v27743_v33  ;;  %v30023_v33 = vld [vmem:[#allocation47_spill] sm:$0xff] }
 0xb2e   :  { %21212 = vmatpush3.bf16.msra.mxu0 %v27228_v8  ;;  %18580 = vmatprep.mubr.f32.mxu0 %v29988_v58  ;;  %v30020_v58 = vand.u32 4294901760, %v30019_v11  ;;  %v10144_v11 = vld [vmem:[#allocation12 + $0x60] sm:$0xff] }
 0xb2f   :  { %21792 = vmatpush3.bf16.msra.mxu1 %v27617_v23  ;;  %21214 = vmatprep.subr.bf16.mxu0 %v27244_v32  ;;  %v10192_v62 = vand.u32 4294901760, %v10144_v11 }
 0xb30   :  { %21794 = vmatprep.subr.bf16.mxu1 %v29989_v22  ;;  %v21249_v43 = vpack.c.bf16 %v30020_v58, %v30018_v31  ;;  %v10145_v58 = vld [vmem:[#allocation12 + $0x68] sm:$0xff] }
 0xb32   :  { %21216 = vmatpush3.bf16.msra.mxu0 %v27244_v32 }
 0xb33   :  { %21796 = vmatpush3.bf16.msra.mxu1 %v29989_v22  ;;  %21218 = vmatprep.subr.bf16.mxu0 %v29990_v61 }
 0xb34   :  { %21798 = vmatprep.subr.bf16.mxu1 %v29991_v59 }
 0xb36   :  { %21220 = vmatpush3.bf16.msra.mxu0 %v29990_v61 }
 0xb37   :  { %21800 = vmatpush3.bf16.msra.mxu1 %v29991_v59  ;;  %21222 = vmatprep.subr.bf16.mxu0 %v29992_v24 }
 0xb38   :  { %21802 = vmatprep.subr.bf16.mxu1 %v29993_v56 }
 0xb3a   :  { %21224 = vmatpush3.bf16.msra.mxu0 %v29992_v24 }
 0xb3b   :  { %21804 = vmatpush3.bf16.msra.mxu1 %v29993_v56  ;;  %21226 = vmatprep.subr.bf16.mxu0 %v29994_v0 }
 0xb3c   :  { %21806 = vmatprep.subr.bf16.mxu1 %v29995_v52 }
 0xb3e   :  { %21228 = vmatpush3.bf16.msra.mxu0 %v29994_v0 }
 0xb3f   :  { %21808 = vmatpush3.bf16.msra.mxu1 %v29995_v52  ;;  %21230 = vmatprep.subr.bf16.mxu0 %v29996_v40 }
 0xb40   :  { %21810 = vmatprep.subr.bf16.mxu1 %v29997_v48 }
 0xb42   :  { %21232 = vmatpush3.bf16.msra.mxu0 %v29996_v40 }
 0xb43   :  { %21812 = vmatpush3.bf16.msra.mxu1 %v29997_v48  ;;  %21234 = vmatprep.subr.bf16.mxu0 %v29998_v5 }
 0xb44   :  { %21814 = vmatprep.subr.bf16.mxu1 %v29999_v26 }
 0xb46   :  { %21236 = vmatpush3.bf16.msra.mxu0 %v29998_v5 }
 0xb47   :  { %21816 = vmatpush3.bf16.msra.mxu1 %v29999_v26  ;;  %21238 = vmatprep.subr.bf16.mxu0 %v30002_v45 }
 0xb48   :  { %21818 = vmatprep.subr.bf16.mxu1 %v21817_v44 }
 0xb4a   :  { %21240 = vmatpush3.bf16.msra.mxu0 %v30002_v45  ;;  %19211 = vmatmul.mubr.f32.vlgmr.msra.gmra.mrb[36].mxu1 %v30009_v1 }
 0xb4b   :  { %21820 = vmatpush3.bf16.msra.mxu1 %v21817_v44  ;;  %19245 = vmatprep.mubr.f32.mxu1 %v27597_v57  ;;  %v30024_v44 = vand.u32 4294901760, %v30023_v33  ;;  %v10146_v33 = vld [vmem:[#allocation12 + $0x70] sm:$0xff] }
 0xb4c   :  { %21242 = vmatprep.subr.bf16.mxu0 %v21241_v13  ;;  %21822 = vmatprep.subr.bf16.mxu1 %v21821_v53 }
 0xb4d   :  { %18581 = vmatmul.mubr.f32.vlgmr.msra.gmra.mrb[52].mxu0 %v30016_v37  ;;  %v21253_v39 = vpack.c.bf16 %v30026_v60, %v30024_v44 }
 0xb4e   :  { %21244 = vmatpush3.bf16.msra.mxu0 %v21241_v13  ;;  %18615 = vmatprep.mubr.f32.mxu0 %v27732_v4  ;;  %v30028_v13 = vand.u32 4294901760, %v27749_v54  ;;  %v30034_v54 = vand.u32 4294901760, %v30033_v27 }
 0xb4f   :  { %21824 = vmatpush3.bf16.msra.mxu1 %v21821_v53  ;;  %21246 = vmatprep.subr.bf16.mxu0 %v21245_v29  ;;  %v30032_v53 = vand.u32 4294901760, %v30031_v42 }
 0xb50   :  { %21826 = vmatprep.subr.bf16.mxu1 %v21825_v15  ;;  %v21833_v55 = vpack.c.bf16 %v30028_v13, %v30027_v51  ;;  %v21261_v21 = vpack.c.bf16 %v30036_v2, %v30034_v54  ;;  %v10198_v51 = vand.u32 4294901760, %v10146_v33 }
 0xb51   :  { %v21257_v1 = vpack.c.bf16 %v30032_v53, %v30030_v35 }
 0xb52   :  { %21248 = vmatpush3.bf16.msra.mxu0 %v21245_v29  ;;  %v21841_v29 = vpack.c.bf16 %v11777_v34, %v11770_v38  ;;  %v30043_v38 = vld [vmem:[#allocation61_spill] sm:$0xff] }
 0xb53   :  { %21828 = vmatpush3.bf16.msra.mxu1 %v21825_v15  ;;  %21250 = vmatprep.subr.bf16.mxu0 %v21249_v43  ;;  %v30044_v34 = vand.u32 4294901760, %v30043_v38 }
 0xb54   :  { %21830 = vmatprep.subr.bf16.mxu1 %v21829_v19 }
 0xb55   :  { %v21269_v15 = vpack.c.bf16 %v30044_v34, %v30042_v49 }
 0xb56   :  { %21252 = vmatpush3.bf16.msra.mxu0 %v21249_v43  ;;  %v10189_v43 = vand.u32 4294901760, %v10143_v36 }
 0xb57   :  { %21832 = vmatpush3.bf16.msra.mxu1 %v21829_v19  ;;  %21254 = vmatprep.subr.bf16.mxu0 %v21253_v39  ;;  %v10195_v19 = vand.u32 4294901760, %v10145_v58 }
 0xb58   :  { %21834 = vmatprep.subr.bf16.mxu1 %v21833_v55  ;;  %v28127_v25 = vsub.f32 %v10143_v36, %v10189_v43 }
 0xb59   :  { %v28093_v13 = vpack.c.bf16 %v10195_v19, %v10192_v62 }
 0xb5a   :  { %21256 = vmatpush3.bf16.msra.mxu0 %v21253_v39  ;;  %v29664_v49 = vand.u32 4294901760, %v28127_v25 }
 0xb5b   :  { %21836 = vmatpush3.bf16.msra.mxu1 %v21833_v55  ;;  %21258 = vmatprep.subr.bf16.mxu0 %v21257_v1  ;;  %v10201_v55 = vand.u32 4294901760, %v10147_v12 }
 0xb5c   :  { %21838 = vmatprep.subr.bf16.mxu1 %v21837_v28 }
 0xb5d   :  { %v28153_v36 = vsub.f32 %v10147_v12, %v10201_v55 }
 0xb5e   :  { %21260 = vmatpush3.bf16.msra.mxu0 %v21257_v1  ;;  %v28105_v1 = vpack.c.bf16 %v10201_v55, %v10198_v51 }
 0xb5f   :  { %21840 = vmatpush3.bf16.msra.mxu1 %v21837_v28  ;;  %21262 = vmatprep.subr.bf16.mxu0 %v21261_v21 }
 0xb60   :  { %21842 = vmatprep.subr.bf16.mxu1 %v21841_v29 }
 0xb62   :  { %21264 = vmatpush3.bf16.msra.mxu0 %v21261_v21 }
 0xb63   :  { %21844 = vmatpush3.bf16.msra.mxu1 %v21841_v29  ;;  %21266 = vmatprep.subr.bf16.mxu0 %v21265_v50 }
 0xb64   :  { %21846 = vmatprep.subr.bf16.mxu1 %v21845_v16 }
 0xb66   :  { %21268 = vmatpush3.bf16.msra.mxu0 %v21265_v50 }
 0xb67   :  { %21848 = vmatpush3.bf16.msra.mxu1 %v21845_v16  ;;  %21270 = vmatprep.subr.bf16.mxu0 %v21269_v15 }
 0xb68   :  { %21850 = vmatprep.subr.bf16.mxu1 %v27610_v10 }
 0xb6a   :  { %21272 = vmatpush3.bf16.msra.mxu0 %v21269_v15  ;;  %19246 = vmatmul.mubr.f32.vlgmr.msra.gmra.mrb[36].mxu1 %v27657_v18  ;;  %v28136_v15 = vsub.f32 %v10144_v11, %v10192_v62  ;;  %v29660_v62 = vand.u32 4294901760, %v28153_v36 }
 0xb6b   :  { %21852 = vmatpush3.bf16.msra.mxu1 %v27610_v10  ;;  %19280 = vmatprep.mubr.f32.mxu1 %v27597_v57 }
 0xb6c   :  { %21274 = vmatprep.subr.bf16.mxu0 %v27228_v8  ;;  %21854 = vmatprep.subr.bf16.mxu1 %v27617_v23 }
 0xb6d   :  { %18616 = vmatmul.mubr.f32.vlgmr.msra.gmra.mrb[52].mxu0 %v27730_v20 }
 0xb6e   :  { %21276 = vmatpush3.bf16.msra.mxu0 %v27228_v8  ;;  %18650 = vmatprep.mubr.f32.mxu0 %v27732_v4  ;;  %v10132_v8 = vld [vmem:[#allocation12] sm:$0xff]  ;;  %v28032_v4 = vld [vmem:[#allocation12 + $0x18] sm:$0xff] }
 0xb6f   :  { %21856 = vmatpush3.bf16.msra.mxu1 %v27617_v23  ;;  %21278 = vmatprep.subr.bf16.mxu0 %v27244_v32  ;;  %v10156_v57 = vand.u32 4294901760, %v10132_v8  ;;  %v28030_v23 = vld [vmem:[#allocation12 + $0x10] sm:$0xff]  ;;  %v10165_v9 = vand.u32 4294901760, %v28032_v4 }
 0xb70   :  { %21858 = vmatprep.subr.bf16.mxu1 %v29989_v22  ;;  %v10162_v46 = vand.u32 4294901760, %v28030_v23 }
 0xb71   :  { %v28087_v60 = vsub.f32 %v10132_v8, %v10156_v57  ;;  %v28138_v8 = vsub.f32 %v10145_v58, %v10195_v19 }
 0xb72   :  { %21280 = vmatpush3.bf16.msra.mxu0 %v27244_v32  ;;  %v10133_v32 = vld [vmem:[#allocation12 + $0x8] sm:$0xff] }
 0xb73   :  { %21860 = vmatpush3.bf16.msra.mxu1 %v29989_v22  ;;  %21282 = vmatprep.subr.bf16.mxu0 %v29990_v61  ;;  %v10159_v10 = vand.u32 4294901760, %v10133_v32  ;;  %v28043_v22 = vld [vmem:[#allocation12 + $0x28] sm:$0xff]  ;;  %v10259_v63 = vand.u32 4294901760, %v28087_v60 }
 0xb74   :  { %21862 = vmatprep.subr.bf16.mxu1 %v29991_v59 }
 0xb75   :  { %v28037_v14 = vpack.c.bf16 %v10159_v10, %v10156_v57  ;;  %v28089_v39 = vsub.f32 %v10133_v32, %v10159_v10  ;;  %v10260_v42 = vsub.f32 %v28087_v60, %v10259_v63  ;;  %v10337_v32 = vsub.f32 %v28127_v25, %v29664_v49 }
 0xb76   :  { %21284 = vmatpush3.bf16.msra.mxu0 %v29990_v61  ;;  %v28052_v61 = vpack.c.bf16 %v10165_v9, %v10162_v46  ;;  %v29663_v10 = vand.u32 4294901760, %v28136_v15 }
 0xb77   :  { %21864 = vmatpush3.bf16.msra.mxu1 %v29991_v59  ;;  %21286 = vmatprep.subr.bf16.mxu0 %v29992_v24  ;;  %v10168_v59 = vand.u32 4294901760, %v28041_v41  ;;  %v10266_v35 = vand.u32 4294901760, %v28089_v39  ;;  %v10261_v28 = vand.u32 4294901760, %v10260_v42  ;;  %v28169_v55 = vpack.c.bf16 %v28089_v39, %v28087_v60 }
 0xb78   :  { %21866 = vmatprep.subr.bf16.mxu1 %v29993_v56 }
 0xb79   :  { %v10267_v53 = vsub.f32 %v28089_v39, %v10266_v35 }
 0xb7a   :  { %21288 = vmatpush3.bf16.msra.mxu0 %v29992_v24  ;;  %v10171_v24 = vand.u32 4294901760, %v28043_v22 }
 0xb7b   :  { %21868 = vmatpush3.bf16.msra.mxu1 %v29993_v56  ;;  %21290 = vmatprep.subr.bf16.mxu0 %v29994_v0  ;;  %v28056_v56 = vld [vmem:[#allocation12 + $0x30] sm:$0xff]  ;;  %v10268_v27 = vand.u32 4294901760, %v10267_v53 }
 0xb7c   :  { %21870 = vmatprep.subr.bf16.mxu1 %v29995_v52 }
 0xb7d   :  { %v28109_v54 = vpack.c.bf16 %v10268_v27, %v10261_v28 }
 0xb7e   :  { %21292 = vmatpush3.bf16.msra.mxu0 %v29994_v0  ;;  %v28058_v0 = vld [vmem:[#allocation12 + $0x38] sm:$0xff] }
 0xb7f   :  { %21872 = vmatpush3.bf16.msra.mxu1 %v29995_v52  ;;  %21294 = vmatprep.subr.bf16.mxu0 %v29996_v40  ;;  %v10174_v52 = vand.u32 4294901760, %v28056_v56 }
 0xb80   :  { %21874 = vmatprep.subr.bf16.mxu1 %v29997_v48 }
 0xb82   :  { %21296 = vmatpush3.bf16.msra.mxu0 %v29996_v40  ;;  %v10177_v40 = vand.u32 4294901760, %v28058_v0 }
 0xb83   :  { %21876 = vmatpush3.bf16.msra.mxu1 %v29997_v48  ;;  %21298 = vmatprep.subr.bf16.mxu0 %v29998_v5  ;;  %v10140_v48 = vld [vmem:[#allocation12 + $0x40] sm:$0xff] }
 0xb84   :  { %21878 = vmatprep.subr.bf16.mxu1 %v29999_v26 }
 0xb86   :  { %21300 = vmatpush3.bf16.msra.mxu0 %v29998_v5  ;;  %v10141_v5 = vld [vmem:[#allocation12 + $0x48] sm:$0xff] }
 0xb87   :  { %21880 = vmatpush3.bf16.msra.mxu1 %v29999_v26  ;;  %21302 = vmatprep.subr.bf16.mxu0 %v30002_v45  ;;  %v10142_v26 = vld [vmem:[#allocation12 + $0x50] sm:$0xff]  ;;  %v10183_v37 = vand.u32 4294901760, %v10141_v5 }
 0xb88   :  { %v10186_v31 = vand.u32 4294901760, %v10142_v26 }
 0xb89   :  { %v28115_v2 = vsub.f32 %v10141_v5, %v10183_v37  ;;  %v10338_v5 = vand.u32 4294901760, %v10337_v32 }
 0xb8a   :  { %21304 = vmatpush3.bf16.msra.mxu0 %v30002_v45  ;;  %19281 = vmatmul.mubr.f32.vlgmr.msra.gmra.mrb[36].mxu1 %v27657_v18  ;;  %v28067_v18 = vpack.c.bf16 %v10171_v24, %v10168_v59  ;;  %v10180_v45 = vand.u32 4294901760, %v10140_v48  ;;  %v28084_v44 = vpack.c.bf16 %v10189_v43, %v10186_v31  ;;  %v28125_v7 = vsub.f32 %v10142_v26, %v10186_v31 }
 0xb8b   :  { %21306 = vmatprep.subr.bf16.mxu0 %v28037_v14  ;;  %v10322_v29 = vand.u32 4294901760, %v28115_v2  ;;  %v10344_v26 = vsub.f32 %v28136_v15, %v29663_v10 }
 0xb8c   :  { %v28082_v17 = vpack.c.bf16 %v10183_v37, %v10180_v45  ;;  %v28113_v3 = vsub.f32 %v10140_v48, %v10180_v45  ;;  %v29671_v6 = vand.u32 4294901760, %v28125_v7  ;;  %v29662_v48 = vand.u32 4294901760, %v28138_v8 }
 0xb8d   :  { %18651 = vmatmul.mubr.f32.vlgmr.msra.gmra.mrb[52].mxu0 %v27730_v20  ;;  %v28077_v20 = vpack.c.bf16 %v10177_v40, %v10174_v52  ;;  %v10323_v47 = vsub.f32 %v28115_v2, %v10322_v29  ;;  %v28151_v37 = vsub.f32 %v10146_v33, %v10198_v51  ;;  %v10345_v11 = vand.u32 4294901760, %v10344_v26 }
 0xb8e   :  { %21308 = vmatpush3.bf16.msra.mxu0 %v28037_v14  ;;  %v10315_v21 = vand.u32 4294901760, %v28113_v3  ;;  %v10330_v34 = vsub.f32 %v28125_v7, %v29671_v6  ;;  %v10351_v45 = vsub.f32 %v28138_v8, %v29662_v48  ;;  %v10365_v33 = vsub.f32 %v28153_v36, %v29660_v62 }
 0xb8f   :  { %21310 = vmatprep.subr.bf16.mxu0 %v28052_v61  ;;  %v10324_v16 = vand.u32 4294901760, %v10323_v47  ;;  %v29661_v43 = vand.u32 4294901760, %v28151_v37  ;;  %v28175_v28 = vpack.c.bf16 %v28115_v2, %v28113_v3  ;;  %v28179_v27 = vpack.c.bf16 %v28127_v25, %v28125_v7 }
 0xb90   :  { %v10316_v30 = vsub.f32 %v28113_v3, %v10315_v21  ;;  %v10331_v57 = vand.u32 4294901760, %v10330_v34  ;;  %v10352_v58 = vand.u32 4294901760, %v10351_v45  ;;  %v10366_v51 = vand.u32 4294901760, %v10365_v33 }
 0xb91   :  { %v10358_v42 = vsub.f32 %v28151_v37, %v29661_v43  ;;  %v28187_v47 = vpack.c.bf16 %v28153_v36, %v28151_v37  ;;  %v28198_v34 = vsub.f32 %v28032_v4, %v10165_v9  ;;  %v30050_v3 = vand.u32 4294901760, %v28151_v37 }
 0xb92   :  { %21312 = vmatpush3.bf16.msra.mxu0 %v28052_v61  ;;  %v10317_v50 = vand.u32 4294901760, %v10316_v30  ;;  %v28155_v31 = vpack.c.bf16 %v10338_v5, %v10331_v57  ;;  %v28159_v19 = vpack.c.bf16 %v10352_v58, %v10345_v11  ;;  %v28183_v30 = vpack.c.bf16 %v28138_v8, %v28136_v15 }
 0xb93   :  { %21314 = vmatprep.subr.bf16.mxu0 %v28067_v18  ;;  %v10359_v12 = vand.u32 4294901760, %v10358_v42  ;;  %v10280_v11 = vand.u32 4294901760, %v28198_v34  ;;  %v28205_v58 = vsub.f32 %v28041_v41, %v10168_v59  ;;  %v30051_v2 = vand.u32 4294901760, %v28153_v36 }
 0xb94   :  { %v28131_v38 = vpack.c.bf16 %v10324_v16, %v10317_v50  ;;  %v14544_v50 = vld [vmem:[%s30045_s16] ss:$0 sm:$0xff]  ;;  %v28193_v16 = vsub.f32 %v28030_v23, %v10162_v46  ;;  %v28210_v46 = vsub.f32 %v28043_v22, %v10171_v24  ;;  %v28230_v24 = vsub.f32 %v28056_v56, %v10174_v52 }
 0xb95   :  { %v28171_v53 = vpack.c.bf16 %v10366_v51, %v10359_v12  ;;  %v10281_v41 = vsub.f32 %v28198_v34, %v10280_v11  ;;  %v10287_v59 = vand.u32 4294901760, %v28205_v58  ;;  %v28235_v51 = vsub.f32 %v28058_v0, %v10177_v40 }
 0xb96   :  { %21316 = vmatpush3.bf16.msra.mxu0 %v28067_v18  ;;  %v10273_v45 = vand.u32 4294901760, %v28193_v16  ;;  %v10294_v22 = vand.u32 4294901760, %v28210_v46  ;;  %v10301_v52 = vand.u32 4294901760, %v28230_v24 }
 0xb97   :  { %21318 = vmatprep.subr.bf16.mxu0 %v28077_v20  ;;  %v10308_v40 = vand.u32 4294901760, %v28235_v51 }
 0xb98   :  { %v10274_v33 = vsub.f32 %v28193_v16, %v10273_v45  ;;  %v10295_v0 = vsub.f32 %v28210_v46, %v10294_v22  ;;  %v10302_v10 = vsub.f32 %v28230_v24, %v10301_v52  ;;  %v21441_v60 = vpack.c.bf16 %v10294_v22, %v10287_v59 }
 0xb99   :  { %v10309_v49 = vsub.f32 %v28235_v51, %v10308_v40  ;;  %v21445_v39 = vpack.c.bf16 %v10308_v40, %v10301_v52 }
 0xb9a   :  { %21320 = vmatpush3.bf16.msra.mxu0 %v28077_v20  ;;  %v10296_v48 = vand.u32 4294901760, %v10295_v0 }
 0xb9b   :  { %21322 = vmatprep.subr.bf16.mxu0 %v28082_v17 }
 0xb9e   :  { %21324 = vmatpush3.bf16.msra.mxu0 %v28082_v17 }
 0xb9f   :  { %21326 = vmatprep.subr.bf16.mxu0 %v28084_v44 }
 0xba2   :  { %21328 = vmatpush3.bf16.msra.mxu0 %v28084_v44 }
 0xba3   :  { %21330 = vmatprep.subr.bf16.mxu0 %v28093_v13 }
 0xba6   :  { %21332 = vmatpush3.bf16.msra.mxu0 %v28093_v13 }
 0xba7   :  { %21334 = vmatprep.subr.bf16.mxu0 %v28105_v1 }
 0xbaa   :  { %21336 = vmatpush3.bf16.msra.mxu0 %v28105_v1 }
 0xbab   :  { %21338 = vmatprep.subr.bf16.mxu0 %v28109_v54 }
 0xc60   :  { %v18652_v32 = vpop.f32.mrb[52].mxu0 }
 0xc61   :  { %v22541_v57 = vadd.f32 %v18652_v32, %v14544_v50  ;;  %v10120_v5 = vpop.f32.mrb[53].mxu0 }
 0xc62   :  { %v22542_v26 = vadd.f32 %v14544_v50, %v10120_v5  ;;  %v10275_v5 = vand.u32 4294901760, %v10274_v33 }
 0xc63   :  { %v10131_v23 = vmax.f32 %v22541_v57, 0.0 }
 0xc64   :  { %v10130_v4 = vmax.f32 %v22542_v26, 0.0  ;;  %v10282_v26 = vand.u32 4294901760, %v10281_v41 }
 0xc65   :  { %v28212_v9 = vand.u32 4294901760, %v10131_v23 }
 0xc66   :  { %v28214_v42 = vand.u32 4294901760, %v10130_v4  ;;  %v21341_v41 = vpack.c.bf16 %v10282_v26, %v10275_v5  ;;  %v10303_v5 = vand.u32 4294901760, %v10302_v10  ;;  %v10310_v26 = vand.u32 4294901760, %v10309_v49  ;;  %v28276_v49 = vld [vmem:[#allocation14 + $0x100] sm:$0xff]  ;;  %v28280_v10 = vld [vmem:[#allocation14 + $0x110] sm:$0xff] }
 0xc67   :  { %v28224_v12 = vsub.f32 %v10131_v23, %v28212_v9  ;;  %v10288_v23 = vsub.f32 %v28205_v58, %v10287_v59 }
 0xc68   :  { %v28238_v50 = vsub.f32 %v10130_v4, %v28214_v42 }
 0xc69   :  { %v10248_v32 = vand.u32 4294901760, %v28224_v12  ;;  %v10289_v62 = vand.u32 4294901760, %v10288_v23  ;;  %v21349_v23 = vpack.c.bf16 %v10310_v26, %v10303_v5  ;;  %v28310_v5 = vld [vmem:[#allocation14 + $0x130] sm:$0xff]  ;;  %v28312_v26 = vld [vmem:[#allocation14 + $0x138] sm:$0xff] }
 0xc6a   :  { %v10238_v57 = vand.u32 4294901760, %v28238_v50 }
 0xc6b   :  { %v10249_v56 = vsub.f32 %v28224_v12, %v10248_v32 }
 0xc6c   :  { %v10239_v4 = vsub.f32 %v28238_v50, %v10238_v57 }
 0xc6d   :  { %v10250_v43 = vand.u32 4294901760, %v10249_v56  ;;  %v21377_v56 = vpack.c.bf16 %v28210_v46, %v28205_v58 }
 0xc6e   :  { %v10240_v33 = vand.u32 4294901760, %v10239_v4  ;;  %v21345_v4 = vpack.c.bf16 %v10296_v48, %v10289_v62  ;;  %v29668_v48 = vand.u32 4294901760, %v28276_v49  ;;  %v29666_v62 = vand.u32 4294901760, %v28280_v10 }
 0xc70   :  { %18685 = vmatprep.mubr.f32.mxu0 %v10240_v33 }
 0xc71   :  { %18686 = vmatmul.mubr.f32.vlgmr.msra.gmra.mrb[54].mxu0 %v10250_v43  ;;  %v28286_v43 = vld [vmem:[#allocation14 + $0x118] sm:$0xff] }
 0xc72   :  { %21340 = vmatpush3.bf16.msra.mxu0 %v28109_v54  ;;  %18720 = vmatprep.mubr.f32.mxu0 %v28214_v42  ;;  %v21373_v54 = vpack.c.bf16 %v28198_v34, %v28193_v16  ;;  %v30048_v16 = vand.u32 4294901760, %v28136_v15  ;;  %v30049_v34 = vand.u32 4294901760, %v28138_v8  ;;  %v10888_v15 = vld [vmem:[#allocation14 + $0x178] sm:$0xff] }
 0xc73   :  { %21342 = vmatprep.subr.bf16.mxu0 %v21341_v41 }
 0xc76   :  { %21344 = vmatpush3.bf16.msra.mxu0 %v21341_v41 }
 0xc77   :  { %21346 = vmatprep.subr.bf16.mxu0 %v21345_v4 }
 0xc7a   :  { %21348 = vmatpush3.bf16.msra.mxu0 %v21345_v4 }
 0xc7b   :  { %21350 = vmatprep.subr.bf16.mxu0 %v21349_v23 }
 0xc7e   :  { %21352 = vmatpush3.bf16.msra.mxu0 %v21349_v23  ;;  %v21381_v23 = vpack.c.bf16 %v28235_v51, %v28230_v24 }
 0xc7f   :  { %21354 = vmatprep.subr.bf16.mxu0 %v28131_v38 }
 0xc82   :  { %21356 = vmatpush3.bf16.msra.mxu0 %v28131_v38  ;;  %v28278_v38 = vld [vmem:[#allocation14 + $0x108] sm:$0xff] }
 0xc83   :  { %21358 = vmatprep.subr.bf16.mxu0 %v28155_v31  ;;  %v30053_v58 = vand.u32 4294901760, %v28278_v38 }
 0xc85   :  { %v28446_v46 = vsub.f32 %v28278_v38, %v30053_v58 }
 0xc86   :  { %21360 = vmatpush3.bf16.msra.mxu0 %v28155_v31  ;;  %v29667_v31 = vand.u32 4294901760, %v28278_v38 }
 0xc87   :  { %21362 = vmatprep.subr.bf16.mxu0 %v28159_v19  ;;  %v12379_v59 = vand.u32 4294901760, %v28446_v46 }
 0xc88   :  { %v28300_v0 = vpack.c.bf16 %v29667_v31, %v29668_v48  ;;  %v28327_v31 = vld [vmem:[#allocation14 + $0x140] sm:$0xff]  ;;  %v28329_v48 = vld [vmem:[#allocation14 + $0x148] sm:$0xff] }
 0xc89   :  { %v12296_v6 = vand.u32 4294901760, %v28329_v48  ;;  %v12380_v22 = vsub.f32 %v28446_v46, %v12379_v59 }
 0xc8a   :  { %21364 = vmatpush3.bf16.msra.mxu0 %v28159_v19  ;;  %v28289_v19 = vld [vmem:[#allocation14 + $0x120] sm:$0xff]  ;;  %21882 = vmatprep.subr.bf16.mxu1 %v28300_v0 }
 0xc8b   :  { %21366 = vmatprep.subr.bf16.mxu0 %v28171_v53  ;;  %v29670_v33 = vand.u32 4294901760, %v28289_v19  ;;  %21884 = vmatpush3.bf16.msra.mxu1 %v28300_v0  ;;  %v12381_v51 = vand.u32 4294901760, %v12380_v22 }
 0xc8e   :  { %21368 = vmatpush3.bf16.msra.mxu0 %v28171_v53  ;;  %v28291_v53 = vld [vmem:[#allocation14 + $0x128] sm:$0xff] }
 0xc8f   :  { %21370 = vmatprep.subr.bf16.mxu0 %v28169_v55  ;;  %v29669_v41 = vand.u32 4294901760, %v28291_v53 }
 0xc91   :  { %18721 = vmatmul.mubr.f32.vlgmr.msra.gmra.mrb[54].mxu0 %v28212_v9 }
 0xc92   :  { %21372 = vmatpush3.bf16.msra.mxu0 %v28169_v55  ;;  %18755 = vmatprep.mubr.f32.mxu0 %v28238_v50  ;;  %v29665_v55 = vand.u32 4294901760, %v28286_v43 }
 0xc93   :  { %21374 = vmatprep.subr.bf16.mxu0 %v21373_v54 }
 0xc94   :  { %v28308_v4 = vpack.c.bf16 %v29665_v55, %v29666_v62  ;;  %v28323_v55 = vpack.c.bf16 %v29669_v41, %v29670_v33  ;;  %v12287_v62 = vand.u32 4294901760, %v28310_v5  ;;  %v12293_v33 = vand.u32 4294901760, %v28327_v31 }
 0xc96   :  { %21376 = vmatpush3.bf16.msra.mxu0 %v21373_v54  ;;  %21886 = vmatprep.subr.bf16.mxu1 %v28308_v4  ;;  %v12290_v54 = vand.u32 4294901760, %v28312_v26 }
 0xc97   :  { %21378 = vmatprep.subr.bf16.mxu0 %v21377_v56  ;;  %21888 = vmatpush3.bf16.msra.mxu1 %v28308_v4 }
 0xc98   :  { %21890 = vmatprep.subr.bf16.mxu1 %v28323_v55  ;;  %v28337_v41 = vpack.c.bf16 %v12290_v54, %v12287_v62 }
 0xc9a   :  { %21380 = vmatpush3.bf16.msra.mxu0 %v21377_v56  ;;  %v28348_v56 = vpack.c.bf16 %v12296_v6, %v12293_v33 }
 0xc9b   :  { %21382 = vmatprep.subr.bf16.mxu0 %v21381_v23  ;;  %21892 = vmatpush3.bf16.msra.mxu1 %v28323_v55 }
 0xc9c   :  { %21894 = vmatprep.subr.bf16.mxu1 %v28337_v41 }
 0xc9e   :  { %21384 = vmatpush3.bf16.msra.mxu0 %v21381_v23 }
 0xc9f   :  { %21386 = vmatprep.subr.bf16.mxu0 %v28175_v28  ;;  %21896 = vmatpush3.bf16.msra.mxu1 %v28337_v41 }
 0xca0   :  { %21898 = vmatprep.subr.bf16.mxu1 %v28348_v56 }
 0xca2   :  { %21388 = vmatpush3.bf16.msra.mxu0 %v28175_v28  ;;  %v21433_v28 = vpack.c.bf16 %v10266_v35, %v10259_v63  ;;  %v21449_v63 = vpack.c.bf16 %v10322_v29, %v10315_v21  ;;  %v30046_v35 = vand.u32 4294901760, %v28125_v7  ;;  %v21461_v21 = vpack.c.bf16 %v30051_v2, %v30050_v3 }
 0xca3   :  { %21390 = vmatprep.subr.bf16.mxu0 %v28179_v27  ;;  %21900 = vmatpush3.bf16.msra.mxu1 %v28348_v56 }
 0xca6   :  { %21392 = vmatpush3.bf16.msra.mxu0 %v28179_v27  ;;  %v21437_v27 = vpack.c.bf16 %v10280_v11, %v10273_v45  ;;  %v21457_v45 = vpack.c.bf16 %v30049_v34, %v30048_v16 }
 0xca7   :  { %21394 = vmatprep.subr.bf16.mxu0 %v28183_v30 }
 0xcaa   :  { %21396 = vmatpush3.bf16.msra.mxu0 %v28183_v30  ;;  %v30047_v30 = vand.u32 4294901760, %v28127_v25  ;;  %v10887_v25 = vld [vmem:[#allocation14 + $0x170] sm:$0xff] }
 0xcab   :  { %21398 = vmatprep.subr.bf16.mxu0 %v28187_v47  ;;  %v12311_v37 = vand.u32 4294901760, %v10887_v25 }
 0xcae   :  { %21400 = vmatpush3.bf16.msra.mxu0 %v28187_v47  ;;  %v21453_v47 = vpack.c.bf16 %v30047_v30, %v30046_v35 }
 0xcaf   :  { %21402 = vmatprep.subr.bf16.mxu0 %v28037_v14 }
 0xcb1   :  { %18756 = vmatmul.mubr.f32.vlgmr.msra.gmra.mrb[54].mxu0 %v28224_v12 }
 0xcb2   :  { %21404 = vmatpush3.bf16.msra.mxu0 %v28037_v14  ;;  %18790 = vmatprep.mubr.f32.mxu0 %v10238_v57 }
 0xcb3   :  { %21406 = vmatprep.subr.bf16.mxu0 %v28052_v61 }
 0xcb6   :  { %21408 = vmatpush3.bf16.msra.mxu0 %v28052_v61 }
 0xcb7   :  { %21410 = vmatprep.subr.bf16.mxu0 %v28067_v18 }
 0xcba   :  { %21412 = vmatpush3.bf16.msra.mxu0 %v28067_v18 }
 0xcbb   :  { %21414 = vmatprep.subr.bf16.mxu0 %v28077_v20 }
 0xcbe   :  { %21416 = vmatpush3.bf16.msra.mxu0 %v28077_v20 }
 0xcbf   :  { %21418 = vmatprep.subr.bf16.mxu0 %v28082_v17 }
 0xcc2   :  { %21420 = vmatpush3.bf16.msra.mxu0 %v28082_v17 }
 0xcc3   :  { %21422 = vmatprep.subr.bf16.mxu0 %v28084_v44 }
 0xcc6   :  { %21424 = vmatpush3.bf16.msra.mxu0 %v28084_v44 }
 0xcc7   :  { %21426 = vmatprep.subr.bf16.mxu0 %v28093_v13 }
 0xcca   :  { %21428 = vmatpush3.bf16.msra.mxu0 %v28093_v13 }
 0xccb   :  { %21430 = vmatprep.subr.bf16.mxu0 %v28105_v1 }
 0xcce   :  { %21432 = vmatpush3.bf16.msra.mxu0 %v28105_v1 }
 0xccf   :  { %21434 = vmatprep.subr.bf16.mxu0 %v21433_v28 }
 0xcd1   :  { %18791 = vmatmul.mubr.f32.vlgmr.msra.gmra.mrb[54].mxu0 %v10248_v32 }
 0xcd2   :  { %21436 = vmatpush3.bf16.msra.mxu0 %v21433_v28  ;;  %18825 = vmatprep.mubr.f32.mxu0 %v28214_v42 }
 0xcd3   :  { %21438 = vmatprep.subr.bf16.mxu0 %v21437_v27 }
 0xcd6   :  { %21440 = vmatpush3.bf16.msra.mxu0 %v21437_v27 }
 0xcd7   :  { %21442 = vmatprep.subr.bf16.mxu0 %v21441_v60 }
 0xcda   :  { %21444 = vmatpush3.bf16.msra.mxu0 %v21441_v60 }
 0xcdb   :  { %21446 = vmatprep.subr.bf16.mxu0 %v21445_v39 }
 0xcde   :  { %21448 = vmatpush3.bf16.msra.mxu0 %v21445_v39 }
 0xcdf   :  { %21450 = vmatprep.subr.bf16.mxu0 %v21449_v63 }
 0xce2   :  { %21452 = vmatpush3.bf16.msra.mxu0 %v21449_v63 }
 0xce3   :  { %21454 = vmatprep.subr.bf16.mxu0 %v21453_v47 }
 0xce6   :  { %21456 = vmatpush3.bf16.msra.mxu0 %v21453_v47  ;;  %v28490_v47 = vsub.f32 %v10887_v25, %v12311_v37 }
 0xce7   :  { %21458 = vmatprep.subr.bf16.mxu0 %v21457_v45 }
 0xce8   :  { %v29673_v2 = vand.u32 4294901760, %v28490_v47 }
 0xcea   :  { %21460 = vmatpush3.bf16.msra.mxu0 %v21457_v45 }
 0xceb   :  { %21462 = vmatprep.subr.bf16.mxu0 %v21461_v21 }
 0xcee   :  { %21464 = vmatpush3.bf16.msra.mxu0 %v21461_v21 }
 0xcef   :  { %21466 = vmatprep.subr.bf16.mxu0 %v28037_v14 }
 0xcf1   :  { %18826 = vmatmul.mubr.f32.vlgmr.msra.gmra.mrb[54].mxu0 %v28212_v9 }
 0xcf2   :  { %21468 = vmatpush3.bf16.msra.mxu0 %v28037_v14  ;;  %18860 = vmatprep.mubr.f32.mxu0 %v28214_v42  ;;  %v10883_v14 = vld [vmem:[#allocation14 + $0x150] sm:$0xff] }
 0xcf3   :  { %21470 = vmatprep.subr.bf16.mxu0 %v28052_v61 }
 0xcf6   :  { %21472 = vmatpush3.bf16.msra.mxu0 %v28052_v61  ;;  %v10884_v61 = vld [vmem:[#allocation14 + $0x158] sm:$0xff] }
 0xcf7   :  { %21474 = vmatprep.subr.bf16.mxu0 %v28067_v18  ;;  %v12302_v29 = vand.u32 4294901760, %v10884_v61 }
 0xcf9   :  { %v28468_v57 = vsub.f32 %v10884_v61, %v12302_v29  ;;  %v12471_v61 = vsub.f32 %v28490_v47, %v29673_v2 }
 0xcfa   :  { %21476 = vmatpush3.bf16.msra.mxu0 %v28067_v18  ;;  %v10885_v18 = vld [vmem:[#allocation14 + $0x160] sm:$0xff] }
 0xcfb   :  { %21478 = vmatprep.subr.bf16.mxu0 %v28077_v20  ;;  %v12305_v7 = vand.u32 4294901760, %v10885_v18  ;;  %v12449_v40 = vand.u32 4294901760, %v28468_v57 }
 0xcfd   :  { %v28475_v38 = vsub.f32 %v10885_v18, %v12305_v7  ;;  %v12450_v28 = vsub.f32 %v28468_v57, %v12449_v40 }
 0xcfe   :  { %21480 = vmatpush3.bf16.msra.mxu0 %v28077_v20  ;;  %v12299_v20 = vand.u32 4294901760, %v10883_v14 }
 0xcff   :  { %21482 = vmatprep.subr.bf16.mxu0 %v28082_v17  ;;  %v29675_v60 = vand.u32 4294901760, %v28475_v38  ;;  %v12451_v63 = vand.u32 4294901760, %v12450_v28 }
 0xd00   :  { %v28433_v8 = vpack.c.bf16 %v12302_v29, %v12299_v20  ;;  %v28466_v32 = vsub.f32 %v10883_v14, %v12299_v20  ;;  %v12472_v20 = vand.u32 4294901760, %v12471_v61 }
 0xd01   :  { %v12457_v35 = vsub.f32 %v28475_v38, %v29675_v60 }
 0xd02   :  { %21484 = vmatpush3.bf16.msra.mxu0 %v28082_v17  ;;  %v10886_v17 = vld [vmem:[#allocation14 + $0x168] sm:$0xff]  ;;  %21902 = vmatprep.subr.bf16.mxu1 %v28433_v8  ;;  %v12442_v52 = vand.u32 4294901760, %v28466_v32  ;;  %v28514_v25 = vpack.c.bf16 %v28468_v57, %v28466_v32 }
 0xd03   :  { %21486 = vmatprep.subr.bf16.mxu0 %v28084_v44  ;;  %21904 = vmatpush3.bf16.msra.mxu1 %v28433_v8  ;;  %v12458_v45 = vand.u32 4294901760, %v12457_v35 }
 0xd06   :  { %21488 = vmatpush3.bf16.msra.mxu0 %v28084_v44  ;;  %v12308_v44 = vand.u32 4294901760, %v10886_v17 }
 0xd07   :  { %21490 = vmatprep.subr.bf16.mxu0 %v28093_v13 }
 0xd08   :  { %v28435_v36 = vpack.c.bf16 %v12308_v44, %v12305_v7  ;;  %v28477_v23 = vsub.f32 %v10886_v17, %v12308_v44 }
 0xd0a   :  { %21492 = vmatpush3.bf16.msra.mxu0 %v28093_v13  ;;  %v12314_v13 = vand.u32 4294901760, %v10888_v15  ;;  %21906 = vmatprep.subr.bf16.mxu1 %v28435_v36  ;;  %v29674_v39 = vand.u32 4294901760, %v28477_v23 }
 0xd0b   :  { %21494 = vmatprep.subr.bf16.mxu0 %v28105_v1  ;;  %21908 = vmatpush3.bf16.msra.mxu1 %v28435_v36 }
 0xd0c   :  { %v12464_v30 = vsub.f32 %v28477_v23, %v29674_v39  ;;  %v28492_v16 = vsub.f32 %v10888_v15, %v12314_v13  ;;  %v28518_v15 = vpack.c.bf16 %v28477_v23, %v28475_v38 }
 0xd0e   :  { %21496 = vmatpush3.bf16.msra.mxu0 %v28105_v1  ;;  %v30052_v1 = vand.u32 4294901760, %v28276_v49  ;;  %v12465_v3 = vand.u32 4294901760, %v12464_v30  ;;  %v29672_v21 = vand.u32 4294901760, %v28492_v16  ;;  %v28522_v44 = vpack.c.bf16 %v28492_v16, %v28490_v47 }
 0xd10   :  { %v28441_v11 = vsub.f32 %v28276_v49, %v30052_v1  ;;  %v12443_v49 = vsub.f32 %v28466_v32, %v12442_v52  ;;  %v28498_v14 = vpack.c.bf16 %v12465_v3, %v12458_v45  ;;  %v12478_v18 = vsub.f32 %v28492_v16, %v29672_v21 }
 0xd11   :  { %18861 = vmatmul.mubr.f32.vlgmr.msra.gmra.mrb[54].mxu0 %v28212_v9  ;;  %v28450_v9 = vpack.c.bf16 %v12314_v13, %v12311_v37  ;;  %v30055_v37 = vand.u32 4294901760, %v28280_v10  ;;  %v30056_v1 = vand.u32 4294901760, %v28286_v43 }
 0xd12   :  { %v12372_v42 = vand.u32 4294901760, %v28441_v11  ;;  %v12444_v27 = vand.u32 4294901760, %v12443_v49  ;;  %v12479_v29 = vand.u32 4294901760, %v12478_v18  ;;  %v28508_v17 = vpack.c.bf16 %v28446_v46, %v28441_v11 }
 0xd13   :  { %21910 = vmatprep.subr.bf16.mxu1 %v28450_v9  ;;  %v28527_v13 = vsub.f32 %v28280_v10, %v30055_v37  ;;  %v28532_v58 = vsub.f32 %v28286_v43, %v30056_v1  ;;  %v30057_v49 = vand.u32 4294901760, %v28289_v19  ;;  %v28562_v18 = vsub.f32 %v28310_v5, %v12287_v62 }
 0xd14   :  { %v12373_v12 = vsub.f32 %v28441_v11, %v12372_v42  ;;  %21912 = vmatpush3.bf16.msra.mxu1 %v28450_v9  ;;  %v28494_v34 = vpack.c.bf16 %v12451_v63, %v12444_v27  ;;  %v28510_v7 = vpack.c.bf16 %v12479_v29, %v12472_v20  ;;  %v30058_v27 = vand.u32 4294901760, %v28291_v53 }
 0xd15   :  { %v12386_v22 = vand.u32 4294901760, %v28527_v13  ;;  %v28540_v28 = vsub.f32 %v28289_v19, %v30057_v49  ;;  %v28570_v29 = vsub.f32 %v28312_v26, %v12290_v54  ;;  %v12414_v26 = vand.u32 4294901760, %v28562_v18 }
 0xd16   :  { %v12374_v24 = vand.u32 4294901760, %v12373_v12  ;;  %v14545_v12 = vld [vmem:[%s30054_s0] ss:$0 sm:$0xff]  ;;  %v28545_v10 = vsub.f32 %v28291_v53, %v30058_v27 }
 0xd17   :  { %v12387_v45 = vsub.f32 %v28527_v13, %v12386_v22  ;;  %v12400_v61 = vand.u32 4294901760, %v28540_v28  ;;  %v12421_v27 = vand.u32 4294901760, %v28570_v29  ;;  %v12415_v39 = vsub.f32 %v28562_v18, %v12414_v26 }
 0xd18   :  { %v28462_v50 = vpack.c.bf16 %v12381_v51, %v12374_v24  ;;  %v12393_v24 = vand.u32 4294901760, %v28532_v58  ;;  %v12407_v53 = vand.u32 4294901760, %v28545_v10 }
 0xd19   :  { %v12401_v62 = vsub.f32 %v28540_v28, %v12400_v61  ;;  %v22021_v46 = vpack.c.bf16 %v12421_v27, %v12414_v26 }
 0xd1a   :  { %21914 = vmatprep.subr.bf16.mxu1 %v28462_v50  ;;  %v12394_v3 = vsub.f32 %v28532_v58, %v12393_v24  ;;  %v12408_v5 = vsub.f32 %v28545_v10, %v12407_v53  ;;  %v22017_v11 = vpack.c.bf16 %v12407_v53, %v12400_v61 }
 0xd1b   :  { %v12402_v21 = vand.u32 4294901760, %v12401_v62 }
 0xd1c   :  { %v12409_v2 = vand.u32 4294901760, %v12408_v5 }
 0xde4   :  { %v18862_v51 = vpop.f32.mrb[54].mxu0 }
 0xde5   :  { %v22543_v63 = vadd.f32 %v18862_v51, %v14545_v12  ;;  %v10829_v35 = vpop.f32.mrb[55].mxu0  ;;  %v12395_v51 = vand.u32 4294901760, %v12394_v3 }
 0xde6   :  { %v22544_v43 = vadd.f32 %v14545_v12, %v10829_v35  ;;  %v12388_v12 = vand.u32 4294901760, %v12387_v45  ;;  %v28596_v35 = vsub.f32 %v28329_v48, %v12296_v6 }
 0xde7   :  { %v28547_v30 = vand.u32 4294901760, %v22543_v63 }
 0xde8   :  { %v28555_v19 = vand.u32 4294901760, %v22544_v43  ;;  %v21917_v45 = vpack.c.bf16 %v12395_v51, %v12388_v12  ;;  %v12435_v48 = vand.u32 4294901760, %v28596_v35  ;;  %v12416_v12 = vand.u32 4294901760, %v12415_v39 }
 0xde9   :  { %v28565_v20 = vsub.f32 %v22543_v63, %v28547_v30  ;;  %v28591_v63 = vsub.f32 %v28327_v31, %v12293_v33  ;;  %v12422_v31 = vsub.f32 %v28570_v29, %v12421_v27  ;;  %v21921_v33 = vpack.c.bf16 %v12409_v2, %v12402_v21  ;;  %v28627_v2 = vld [vmem:[#allocation15] sm:$0xff]  ;;  %v28629_v21 = vld [vmem:[#allocation15 + $0x8] sm:$0xff] }
 0xdea   :  { %v28573_v37 = vsub.f32 %v22544_v43, %v28555_v19  ;;  %v12436_v5 = vsub.f32 %v28596_v35, %v12435_v48  ;;  %v21949_v39 = vpack.c.bf16 %v28532_v58, %v28527_v13  ;;  %v30060_v13 = vand.u32 4294901760, %v28477_v23 }
 0xdeb   :  { %v12361_v1 = vand.u32 4294901760, %v28565_v20  ;;  %v12428_v6 = vand.u32 4294901760, %v28591_v63  ;;  %v12423_v51 = vand.u32 4294901760, %v12422_v31  ;;  %v28640_v31 = vld [vmem:[#allocation15 + $0x20] sm:$0xff] }
 0xdec   :  { %v12351_v49 = vand.u32 4294901760, %v28573_v37 }
 0xded   :  { %v12362_v54 = vsub.f32 %v28565_v20, %v12361_v1  ;;  %v12429_v62 = vsub.f32 %v28591_v63, %v12428_v6 }
 0xdee   :  { %v12352_v43 = vsub.f32 %v28573_v37, %v12351_v49 }
 0xdef   :  { %v12363_v60 = vand.u32 4294901760, %v12362_v54  ;;  %v21925_v54 = vpack.c.bf16 %v12423_v51, %v12416_v12  ;;  %v21953_v12 = vpack.c.bf16 %v28545_v10, %v28540_v28  ;;  %v30063_v10 = vand.u32 4294901760, %v28627_v2 }
 0xdf0   :  { %v12353_v3 = vand.u32 4294901760, %v12352_v43  ;;  %v12437_v43 = vand.u32 4294901760, %v12436_v5 }
 0xdf2   :  { %19315 = vmatprep.mubr.f32.mxu1 %v12353_v3 }
 0xdf3   :  { %19316 = vmatmul.mubr.f32.vlgmr.msra.gmra.mrb[36].mxu1 %v12363_v60  ;;  %v12430_v60 = vand.u32 4294901760, %v12429_v62  ;;  %v12992_v62 = vand.u32 4294901760, %v28640_v31 }
 0xdf4   :  { %21916 = vmatpush3.bf16.msra.mxu1 %v28462_v50  ;;  %19350 = vmatprep.mubr.f32.mxu1 %v28555_v19 }
 0xdf5   :  { %21918 = vmatprep.subr.bf16.mxu1 %v21917_v45  ;;  %v21929_v50 = vpack.c.bf16 %v12437_v43, %v12430_v60  ;;  %v28661_v60 = vld [vmem:[#allocation15 + $0x30] sm:$0xff]  ;;  %v28663_v43 = vld [vmem:[#allocation15 + $0x38] sm:$0xff] }
 0xdf8   :  { %21920 = vmatpush3.bf16.msra.mxu1 %v21917_v45  ;;  %v28637_v45 = vld [vmem:[#allocation15 + $0x18] sm:$0xff] }
 0xdf9   :  { %21922 = vmatprep.subr.bf16.mxu1 %v21921_v33 }
 0xdfc   :  { %21924 = vmatpush3.bf16.msra.mxu1 %v21921_v33  ;;  %v28642_v33 = vld [vmem:[#allocation15 + $0x28] sm:$0xff] }
 0xdfd   :  { %21926 = vmatprep.subr.bf16.mxu1 %v21925_v54  ;;  %v12995_v5 = vand.u32 4294901760, %v28642_v33 }
 0xe00   :  { %21928 = vmatpush3.bf16.msra.mxu1 %v21925_v54 }
 0xe01   :  { %21930 = vmatprep.subr.bf16.mxu1 %v21929_v50 }
 0xe04   :  { %21932 = vmatpush3.bf16.msra.mxu1 %v21929_v50  ;;  %v21957_v50 = vpack.c.bf16 %v28570_v29, %v28562_v18 }
 0xe05   :  { %21934 = vmatprep.subr.bf16.mxu1 %v28494_v34 }
 0xe08   :  { %21936 = vmatpush3.bf16.msra.mxu1 %v28494_v34  ;;  %v28631_v34 = vld [vmem:[#allocation15 + $0x10] sm:$0xff] }
 0xe09   :  { %21938 = vmatprep.subr.bf16.mxu1 %v28498_v14  ;;  %v29677_v3 = vand.u32 4294901760, %v28631_v34 }
 0xe0c   :  { %21940 = vmatpush3.bf16.msra.mxu1 %v28498_v14  ;;  %v29679_v14 = vand.u32 4294901760, %v28627_v2 }
 0xe0d   :  { %21942 = vmatprep.subr.bf16.mxu1 %v28510_v7 }
 0xe10   :  { %21944 = vmatpush3.bf16.msra.mxu1 %v28510_v7  ;;  %v29678_v7 = vand.u32 4294901760, %v28629_v21 }
 0xe11   :  { %21946 = vmatprep.subr.bf16.mxu1 %v28508_v17 }
 0xe12   :  { %v28651_v51 = vpack.c.bf16 %v29678_v7, %v29679_v14  ;;  %v21961_v7 = vpack.c.bf16 %v28596_v35, %v28591_v63 }
 0xe13   :  { %19351 = vmatmul.mubr.f32.vlgmr.msra.gmra.mrb[36].mxu1 %v28547_v30 }
 0xe14   :  { %21948 = vmatpush3.bf16.msra.mxu1 %v28508_v17  ;;  %19385 = vmatprep.mubr.f32.mxu1 %v28573_v37  ;;  %v29676_v17 = vand.u32 4294901760, %v28637_v45 }
 0xe15   :  { %21950 = vmatprep.subr.bf16.mxu1 %v21949_v39  ;;  %22074 = vmatprep.subr.bf16.mxu0 %v28651_v51 }
 0xe16   :  { %v28659_v54 = vpack.c.bf16 %v29676_v17, %v29677_v3  ;;  %22076 = vmatpush3.bf16.msra.mxu0 %v28651_v51  ;;  %v28674_v17 = vpack.c.bf16 %v12995_v5, %v12992_v62  ;;  %v12998_v3 = vand.u32 4294901760, %v28661_v60 }
 0xe18   :  { %21952 = vmatpush3.bf16.msra.mxu1 %v21949_v39  ;;  %22078 = vmatprep.subr.bf16.mxu0 %v28659_v54  ;;  %v13001_v39 = vand.u32 4294901760, %v28663_v43 }
 0xe19   :  { %21954 = vmatprep.subr.bf16.mxu1 %v21953_v12 }
 0xe1a   :  { %22080 = vmatpush3.bf16.msra.mxu0 %v28659_v54  ;;  %v28686_v14 = vpack.c.bf16 %v13001_v39, %v12998_v3 }
 0xe1b   :  { %22082 = vmatprep.subr.bf16.mxu0 %v28674_v17 }
 0xe1c   :  { %21956 = vmatpush3.bf16.msra.mxu1 %v21953_v12 }
 0xe1d   :  { %21958 = vmatprep.subr.bf16.mxu1 %v21957_v50 }
 0xe1e   :  { %22084 = vmatpush3.bf16.msra.mxu0 %v28674_v17 }
 0xe1f   :  { %22086 = vmatprep.subr.bf16.mxu0 %v28686_v14 }
 0xe20   :  { %21960 = vmatpush3.bf16.msra.mxu1 %v21957_v50 }
 0xe21   :  { %21962 = vmatprep.subr.bf16.mxu1 %v21961_v7 }
 0xe22   :  { %22088 = vmatpush3.bf16.msra.mxu0 %v28686_v14 }
 0xe24   :  { %21964 = vmatpush3.bf16.msra.mxu1 %v21961_v7 }
 0xe25   :  { %21966 = vmatprep.subr.bf16.mxu1 %v28514_v25 }
 0xe28   :  { %21968 = vmatpush3.bf16.msra.mxu1 %v28514_v25  ;;  %v22009_v25 = vpack.c.bf16 %v12379_v59, %v12372_v42  ;;  %v22025_v42 = vpack.c.bf16 %v12435_v48, %v12428_v6  ;;  %v22029_v59 = vpack.c.bf16 %v12449_v40, %v12442_v52  ;;  %v12968_v52 = vld [vmem:[#allocation15 + $0x60] sm:$0xff]  ;;  %v12969_v40 = vld [vmem:[#allocation15 + $0x68] sm:$0xff] }
 0xe29   :  { %21970 = vmatprep.subr.bf16.mxu1 %v28518_v15  ;;  %v13016_v23 = vand.u32 4294901760, %v12968_v52 }
 0xe2c   :  { %21972 = vmatpush3.bf16.msra.mxu1 %v28518_v15  ;;  %v22013_v15 = vpack.c.bf16 %v12393_v24, %v12386_v22  ;;  %v30061_v22 = vand.u32 4294901760, %v28490_v47  ;;  %v30062_v24 = vand.u32 4294901760, %v28492_v16  ;;  %v12970_v47 = vld [vmem:[#allocation15 + $0x70] sm:$0xff] }
 0xe2d   :  { %21974 = vmatprep.subr.bf16.mxu1 %v28522_v44  ;;  %v13022_v53 = vand.u32 4294901760, %v12970_v47 }
 0xe2e   :  { %v22037_v28 = vpack.c.bf16 %v30062_v24, %v30061_v22 }
 0xe30   :  { %21976 = vmatpush3.bf16.msra.mxu1 %v28522_v44  ;;  %v30059_v44 = vand.u32 4294901760, %v28475_v38 }
 0xe31   :  { %21978 = vmatprep.subr.bf16.mxu1 %v28300_v0 }
 0xe32   :  { %v22033_v58 = vpack.c.bf16 %v30060_v13, %v30059_v44  ;;  %v28830_v13 = vsub.f32 %v12968_v52, %v13016_v23 }
 0xe33   :  { %19386 = vmatmul.mubr.f32.vlgmr.msra.gmra.mrb[36].mxu1 %v28565_v20 }
 0xe34   :  { %21980 = vmatpush3.bf16.msra.mxu1 %v28300_v0  ;;  %19420 = vmatprep.mubr.f32.mxu1 %v12351_v49 }
 0xe35   :  { %21982 = vmatprep.subr.bf16.mxu1 %v28308_v4 }
 0xe38   :  { %21984 = vmatpush3.bf16.msra.mxu1 %v28308_v4 }
 0xe39   :  { %21986 = vmatprep.subr.bf16.mxu1 %v28323_v55 }
 0xe3c   :  { %21988 = vmatpush3.bf16.msra.mxu1 %v28323_v55 }
 0xe3d   :  { %21990 = vmatprep.subr.bf16.mxu1 %v28337_v41 }
 0xe40   :  { %21992 = vmatpush3.bf16.msra.mxu1 %v28337_v41 }
 0xe41   :  { %21994 = vmatprep.subr.bf16.mxu1 %v28348_v56 }
 0xe44   :  { %21996 = vmatpush3.bf16.msra.mxu1 %v28348_v56 }
 0xe45   :  { %21998 = vmatprep.subr.bf16.mxu1 %v28433_v8 }
 0xe48   :  { %22000 = vmatpush3.bf16.msra.mxu1 %v28433_v8 }
 0xe49   :  { %22002 = vmatprep.subr.bf16.mxu1 %v28435_v36 }
 0xe4c   :  { %22004 = vmatpush3.bf16.msra.mxu1 %v28435_v36 }
 0xe4d   :  { %22006 = vmatprep.subr.bf16.mxu1 %v28450_v9 }
 0xe50   :  { %22008 = vmatpush3.bf16.msra.mxu1 %v28450_v9 }
 0xe51   :  { %22010 = vmatprep.subr.bf16.mxu1 %v22009_v25 }
 0xe53   :  { %19421 = vmatmul.mubr.f32.vlgmr.msra.gmra.mrb[36].mxu1 %v12361_v1 }
 0xe54   :  { %22012 = vmatpush3.bf16.msra.mxu1 %v22009_v25  ;;  %19455 = vmatprep.mubr.f32.mxu1 %v28555_v19 }
 0xe55   :  { %22014 = vmatprep.subr.bf16.mxu1 %v22013_v15 }
 0xe58   :  { %22016 = vmatpush3.bf16.msra.mxu1 %v22013_v15 }
 0xe59   :  { %22018 = vmatprep.subr.bf16.mxu1 %v22017_v11 }
 0xe5c   :  { %22020 = vmatpush3.bf16.msra.mxu1 %v22017_v11 }
 0xe5d   :  { %22022 = vmatprep.subr.bf16.mxu1 %v22021_v46 }
 0xe60   :  { %22024 = vmatpush3.bf16.msra.mxu1 %v22021_v46 }
 0xe61   :  { %22026 = vmatprep.subr.bf16.mxu1 %v22025_v42 }
 0xe64   :  { %22028 = vmatpush3.bf16.msra.mxu1 %v22025_v42 }
 0xe65   :  { %22030 = vmatprep.subr.bf16.mxu1 %v22029_v59 }
 0xe68   :  { %22032 = vmatpush3.bf16.msra.mxu1 %v22029_v59 }
 0xe69   :  { %22034 = vmatprep.subr.bf16.mxu1 %v22033_v58 }
 0xe6c   :  { %22036 = vmatpush3.bf16.msra.mxu1 %v22033_v58 }
 0xe6d   :  { %22038 = vmatprep.subr.bf16.mxu1 %v22037_v28 }
 0xe70   :  { %22040 = vmatpush3.bf16.msra.mxu1 %v22037_v28  ;;  %v29683_v28 = vand.u32 4294901760, %v28830_v13 }
 0xe71   :  { %22042 = vmatprep.subr.bf16.mxu1 %v28300_v0 }
 0xe73   :  { %19456 = vmatmul.mubr.f32.vlgmr.msra.gmra.mrb[36].mxu1 %v28547_v30 }
 0xe74   :  { %22044 = vmatpush3.bf16.msra.mxu1 %v28300_v0  ;;  %19490 = vmatprep.mubr.f32.mxu1 %v28555_v19  ;;  %v12965_v0 = vld [vmem:[#allocation15 + $0x48] sm:$0xff]  ;;  %v30064_v19 = vand.u32 4294901760, %v28629_v21 }
 0xe75   :  { %22046 = vmatprep.subr.bf16.mxu1 %v28308_v4  ;;  %v13007_v32 = vand.u32 4294901760, %v12965_v0 }
 0xe76   :  { %v28783_v61 = vsub.f32 %v28629_v21, %v30064_v19 }
 0xe77   :  { %v28809_v48 = vsub.f32 %v12965_v0, %v13007_v32 }
 0xe78   :  { %22048 = vmatpush3.bf16.msra.mxu1 %v28308_v4  ;;  %v13090_v37 = vand.u32 4294901760, %v28783_v61 }
 0xe79   :  { %22050 = vmatprep.subr.bf16.mxu1 %v28323_v55  ;;  %v13146_v21 = vand.u32 4294901760, %v28809_v48 }
 0xe7a   :  { %v13091_v49 = vsub.f32 %v28783_v61, %v13090_v37 }
 0xe7b   :  { %v13147_v12 = vsub.f32 %v28809_v48, %v13146_v21 }
 0xe7c   :  { %22052 = vmatpush3.bf16.msra.mxu1 %v28323_v55  ;;  %v12964_v55 = vld [vmem:[#allocation15 + $0x40] sm:$0xff]  ;;  %v13092_v63 = vand.u32 4294901760, %v13091_v49 }
 0xe7d   :  { %22054 = vmatprep.subr.bf16.mxu1 %v28337_v41  ;;  %v13004_v4 = vand.u32 4294901760, %v12964_v55  ;;  %v13148_v11 = vand.u32 4294901760, %v13147_v12  ;;  %v30066_v12 = vand.u32 4294901760, %v28631_v34 }
 0xe7f   :  { %v28770_v38 = vpack.c.bf16 %v13007_v32, %v13004_v4  ;;  %v28807_v6 = vsub.f32 %v12964_v55, %v13004_v4  ;;  %v28845_v32 = vsub.f32 %v12970_v47, %v13022_v53 }
 0xe80   :  { %22056 = vmatpush3.bf16.msra.mxu1 %v28337_v41  ;;  %v12966_v41 = vld [vmem:[#allocation15 + $0x50] sm:$0xff] }
 0xe81   :  { %22058 = vmatprep.subr.bf16.mxu1 %v28348_v56  ;;  %v13010_v57 = vand.u32 4294901760, %v12966_v41  ;;  %22090 = vmatprep.subr.bf16.mxu0 %v28770_v38 }
 0xe82   :  { %22092 = vmatpush3.bf16.msra.mxu0 %v28770_v38 }
 0xe83   :  { %v28819_v50 = vsub.f32 %v12966_v41, %v13010_v57  ;;  %v13168_v41 = vsub.f32 %v28830_v13, %v29683_v28 }
 0xe84   :  { %22060 = vmatpush3.bf16.msra.mxu1 %v28348_v56  ;;  %v12967_v56 = vld [vmem:[#allocation15 + $0x58] sm:$0xff] }
 0xe85   :  { %22062 = vmatprep.subr.bf16.mxu1 %v28433_v8  ;;  %v13153_v46 = vand.u32 4294901760, %v28819_v50  ;;  %v13169_v52 = vand.u32 4294901760, %v13168_v41 }
 0xe87   :  { %v13154_v44 = vsub.f32 %v28819_v50, %v13153_v46 }
 0xe88   :  { %22064 = vmatpush3.bf16.msra.mxu1 %v28433_v8  ;;  %v13013_v8 = vand.u32 4294901760, %v12967_v56 }
 0xe89   :  { %22066 = vmatprep.subr.bf16.mxu1 %v28435_v36  ;;  %v13155_v24 = vand.u32 4294901760, %v13154_v44 }
 0xe8a   :  { %v28772_v16 = vpack.c.bf16 %v13013_v8, %v13010_v57  ;;  %v28821_v25 = vsub.f32 %v12967_v56, %v13013_v8  ;;  %v29681_v8 = vand.u32 4294901760, %v28845_v32 }
 0xe8c   :  { %22068 = vmatpush3.bf16.msra.mxu1 %v28435_v36  ;;  %v13019_v36 = vand.u32 4294901760, %v12969_v40  ;;  %22094 = vmatprep.subr.bf16.mxu0 %v28772_v16  ;;  %v29684_v42 = vand.u32 4294901760, %v28821_v25  ;;  %v28873_v49 = vpack.c.bf16 %v28821_v25, %v28819_v50 }
 0xe8d   :  { %22070 = vmatprep.subr.bf16.mxu1 %v28450_v9  ;;  %22096 = vmatpush3.bf16.msra.mxu0 %v28772_v16 }
 0xe8e   :  { %v28787_v18 = vpack.c.bf16 %v13019_v36, %v13016_v23  ;;  %v28832_v58 = vsub.f32 %v12969_v40, %v13019_v36  ;;  %v13161_v22 = vsub.f32 %v28821_v25, %v29684_v42 }
 0xe90   :  { %22072 = vmatpush3.bf16.msra.mxu1 %v28450_v9  ;;  %v12971_v9 = vld [vmem:[#allocation15 + $0x78] sm:$0xff]  ;;  %22098 = vmatprep.subr.bf16.mxu0 %v28787_v18  ;;  %v29682_v55 = vand.u32 4294901760, %v28832_v58  ;;  %v13162_v0 = vand.u32 4294901760, %v13161_v22 }
 0xe91   :  { %v13025_v20 = vand.u32 4294901760, %v12971_v9  ;;  %22100 = vmatpush3.bf16.msra.mxu0 %v28787_v18 }
 0xe92   :  { %v13175_v4 = vsub.f32 %v28832_v58, %v29682_v55  ;;  %v28849_v57 = vpack.c.bf16 %v13162_v0, %v13155_v24 }
 0xe93   :  { %19491 = vmatmul.mubr.f32.vlgmr.msra.gmra.mrb[36].mxu1 %v28547_v30  ;;  %v28778_v30 = vsub.f32 %v28627_v2, %v30063_v10  ;;  %v28799_v26 = vpack.c.bf16 %v13025_v20, %v13022_v53  ;;  %v13139_v2 = vand.u32 4294901760, %v28807_v6  ;;  %v28847_v56 = vsub.f32 %v12971_v9, %v13025_v20 }
 0xe94   :  { %v13176_v40 = vand.u32 4294901760, %v13175_v4  ;;  %v13182_v10 = vsub.f32 %v28845_v32, %v29681_v8 }
 0xe95   :  { %v13083_v29 = vand.u32 4294901760, %v28778_v30  ;;  %22102 = vmatprep.subr.bf16.mxu0 %v28799_v26  ;;  %v13140_v7 = vsub.f32 %v28807_v6, %v13139_v2  ;;  %v29680_v23 = vand.u32 4294901760, %v28847_v56  ;;  %v28863_v53 = vpack.c.bf16 %v28783_v61, %v28778_v30 }
 0xe96   :  { %22104 = vmatpush3.bf16.msra.mxu0 %v28799_v26  ;;  %v28853_v36 = vpack.c.bf16 %v13176_v40, %v13169_v52  ;;  %v13183_v9 = vand.u32 4294901760, %v13182_v10  ;;  %v28899_v40 = vsub.f32 %v28640_v31, %v12992_v62  ;;  %v28904_v10 = vsub.f32 %v28642_v33, %v12995_v5 }
 0xe97   :  { %v13084_v1 = vsub.f32 %v28778_v30, %v13083_v29  ;;  %v13141_v15 = vand.u32 4294901760, %v13140_v7  ;;  %v13189_v47 = vsub.f32 %v28847_v56, %v29680_v23  ;;  %v14546_v7 = vld [vmem:[%s30065_s23] ss:$0 sm:$0xff]  ;;  %v28924_v5 = vsub.f32 %v28661_v60, %v12998_v3 }
 0xe98   :  { %v13111_v62 = vand.u32 4294901760, %v28899_v40  ;;  %v13118_v33 = vand.u32 4294901760, %v28904_v10 }
 0xe99   :  { %v13085_v27 = vand.u32 4294901760, %v13084_v1  ;;  %v28825_v59 = vpack.c.bf16 %v13148_v11, %v13141_v15  ;;  %v13190_v19 = vand.u32 4294901760, %v13189_v47  ;;  %v28869_v1 = vpack.c.bf16 %v28809_v48, %v28807_v6 }
 0xe9a   :  { %v28887_v15 = vsub.f32 %v28631_v34, %v30066_v12  ;;  %v30067_v11 = vand.u32 4294901760, %v28637_v45  ;;  %v28929_v12 = vsub.f32 %v28663_v43, %v13001_v39  ;;  %v13119_v60 = vsub.f32 %v28904_v10, %v13118_v33 }
 0xe9b   :  { %v28803_v35 = vpack.c.bf16 %v13092_v63, %v13085_v27  ;;  %v28865_v20 = vpack.c.bf16 %v13190_v19, %v13183_v9  ;;  %v28877_v27 = vpack.c.bf16 %v28832_v58, %v28830_v13  ;;  %v28881_v63 = vpack.c.bf16 %v28847_v56, %v28845_v32 }
 0xe9c   :  { %v28892_v44 = vsub.f32 %v28637_v45, %v30067_v11  ;;  %v13097_v4 = vand.u32 4294901760, %v28887_v15  ;;  %v13125_v43 = vand.u32 4294901760, %v28924_v5  ;;  %v13132_v39 = vand.u32 4294901760, %v28929_v12 }
 0xe9d   :  { %22106 = vmatprep.subr.bf16.mxu0 %v28803_v35  ;;  %v13120_v55 = vand.u32 4294901760, %v13119_v60  ;;  %v22209_v30 = vpack.c.bf16 %v13118_v33, %v13111_v62  ;;  %v30071_v6 = vand.u32 4294901760, %v28845_v32  ;;  %v30072_v48 = vand.u32 4294901760, %v28847_v56  ;;  %v29073_v56 = vld [vmem:[#allocation17 + $0x30] sm:$0xff] }
 0xe9e   :  { %v13104_v52 = vand.u32 4294901760, %v28892_v44  ;;  %v13098_v19 = vsub.f32 %v28887_v15, %v13097_v4  ;;  %v13126_v28 = vsub.f32 %v28924_v5, %v13125_v43  ;;  %v13133_v42 = vsub.f32 %v28929_v12, %v13132_v39 }
 0xe9f   :  { %v22213_v61 = vpack.c.bf16 %v13132_v39, %v13125_v43 }
 0xea0   :  { %v13105_v31 = vsub.f32 %v28892_v44, %v13104_v52 }
 0xf66   :  { %v19492_v22 = vpop.f32.mrb[36].mxu1 }
 0xf67   :  { %v22545_v24 = vadd.f32 %v19492_v22, %v14546_v7  ;;  %v12942_v0 = vpop.f32.mrb[37].mxu1 }
 0xf68   :  { %v22546_v41 = vadd.f32 %v14546_v7, %v12942_v0  ;;  %v13099_v0 = vand.u32 4294901760, %v13098_v19 }
 0xf69   :  { %v12955_v34 = vmax.f32 %v22545_v24, 0.0 }
 0xf6a   :  { %v12954_v45 = vmax.f32 %v22546_v41, 0.0  ;;  %v13106_v41 = vand.u32 4294901760, %v13105_v31 }
 0xf6b   :  { %v28906_v47 = vand.u32 4294901760, %v12955_v34 }
 0xf6c   :  { %v28908_v9 = vand.u32 4294901760, %v12954_v45  ;;  %v22109_v31 = vpack.c.bf16 %v13106_v41, %v13099_v0  ;;  %v13127_v0 = vand.u32 4294901760, %v13126_v28  ;;  %v13134_v41 = vand.u32 4294901760, %v13133_v42 }
 0xf6d   :  { %v28918_v7 = vsub.f32 %v12955_v34, %v28906_v47  ;;  %v13112_v34 = vsub.f32 %v28899_v40, %v13111_v62  ;;  %v22145_v42 = vpack.c.bf16 %v28904_v10, %v28899_v40  ;;  %v22201_v28 = vpack.c.bf16 %v13090_v37, %v13083_v29  ;;  %v13677_v10 = vld [vmem:[#allocation17 + $0x60] sm:$0xff] }
 0xf6e   :  { %v28932_v11 = vsub.f32 %v12954_v45, %v28908_v9  ;;  %v22217_v29 = vpack.c.bf16 %v13146_v21, %v13139_v2  ;;  %v30068_v37 = vand.u32 4294901760, %v28821_v25  ;;  %v22229_v2 = vpack.c.bf16 %v30072_v48, %v30071_v6  ;;  %v13666_v21 = vld [vmem:[#allocation17 + $0x8] sm:$0xff]  ;;  %v29049_v25 = vld [vmem:[#allocation17 + $0x10] sm:$0xff] }
 0xf6f   :  { %v13072_v22 = vand.u32 4294901760, %v28918_v7  ;;  %v13113_v23 = vand.u32 4294901760, %v13112_v34  ;;  %v22117_v34 = vpack.c.bf16 %v13134_v41, %v13127_v0  ;;  %v13692_v50 = vand.u32 4294901760, %v13666_v21 }
 0xf70   :  { %v13062_v24 = vand.u32 4294901760, %v28932_v11 }
 0xf71   :  { %v13073_v3 = vsub.f32 %v28918_v7, %v13072_v22 }
 0xf72   :  { %v13063_v45 = vsub.f32 %v28932_v11, %v13062_v24 }
 0xf73   :  { %v13074_v8 = vand.u32 4294901760, %v13073_v3 }
 0xf74   :  { %v13064_v19 = vand.u32 4294901760, %v13063_v45  ;;  %v22113_v45 = vpack.c.bf16 %v13120_v55, %v13113_v23  ;;  %v22205_v55 = vpack.c.bf16 %v13104_v52, %v13097_v4  ;;  %v30070_v23 = vand.u32 4294901760, %v28832_v58  ;;  %v13676_v52 = vld [vmem:[#allocation17 + $0x58] sm:$0xff] }
 0xf76   :  { %19525 = vmatprep.mubr.f32.mxu0 %v13064_v19 }
 0xf77   :  { %19526 = vmatmul.mubr.f32.vlgmr.msra.gmra.mrb[56].mxu0 %v13074_v8  ;;  %v30069_v8 = vand.u32 4294901760, %v28830_v13  ;;  %v29059_v13 = vld [vmem:[#allocation17 + $0x20] sm:$0xff] }
 0xf78   :  { %22108 = vmatpush3.bf16.msra.mxu0 %v28803_v35  ;;  %19560 = vmatprep.mubr.f32.mxu0 %v28908_v9  ;;  %v22141_v35 = vpack.c.bf16 %v28892_v44, %v28887_v15  ;;  %v13701_v58 = vand.u32 4294901760, %v29059_v13  ;;  %v13675_v15 = vld [vmem:[#allocation17 + $0x50] sm:$0xff] }
 0xf79   :  { %22110 = vmatprep.subr.bf16.mxu0 %v22109_v31  ;;  %v13719_v40 = vand.u32 4294901760, %v13675_v15 }
 0xf7c   :  { %22112 = vmatpush3.bf16.msra.mxu0 %v22109_v31 }
 0xf7d   :  { %22114 = vmatprep.subr.bf16.mxu0 %v22113_v45 }
 0xf80   :  { %22116 = vmatpush3.bf16.msra.mxu0 %v22113_v45 }
 0xf81   :  { %22118 = vmatprep.subr.bf16.mxu0 %v22117_v34 }
 0xf84   :  { %22120 = vmatpush3.bf16.msra.mxu0 %v22117_v34 }
 0xf85   :  { %22122 = vmatprep.subr.bf16.mxu0 %v28825_v59 }
 0xf88   :  { %22124 = vmatpush3.bf16.msra.mxu0 %v28825_v59  ;;  %v22149_v59 = vpack.c.bf16 %v28929_v12, %v28924_v5  ;;  %v13679_v5 = vld [vmem:[#allocation17 + $0x70] sm:$0xff] }
 0xf89   :  { %22126 = vmatprep.subr.bf16.mxu0 %v28849_v57  ;;  %v13731_v3 = vand.u32 4294901760, %v13679_v5 }
 0xf8c   :  { %22128 = vmatpush3.bf16.msra.mxu0 %v28849_v57  ;;  %v22221_v57 = vpack.c.bf16 %v30068_v37, %v13153_v46 }
 0xf8d   :  { %22130 = vmatprep.subr.bf16.mxu0 %v28853_v36 }
 0xf90   :  { %22132 = vmatpush3.bf16.msra.mxu0 %v28853_v36  ;;  %v22225_v36 = vpack.c.bf16 %v30070_v23, %v30069_v8 }
 0xf91   :  { %22134 = vmatprep.subr.bf16.mxu0 %v28865_v20 }
 0xf94   :  { %22136 = vmatpush3.bf16.msra.mxu0 %v28865_v20  ;;  %v13707_v20 = vand.u32 4294901760, %v29073_v56 }
 0xf95   :  { %22138 = vmatprep.subr.bf16.mxu0 %v28863_v53 }
 0xf97   :  { %19561 = vmatmul.mubr.f32.vlgmr.msra.gmra.mrb[56].mxu0 %v28906_v47 }
 0xf98   :  { %22140 = vmatpush3.bf16.msra.mxu0 %v28863_v53  ;;  %19595 = vmatprep.mubr.f32.mxu0 %v28932_v11  ;;  %v29075_v53 = vld [vmem:[#allocation17 + $0x38] sm:$0xff] }
 0xf99   :  { %22142 = vmatprep.subr.bf16.mxu0 %v22141_v35  ;;  %v13680_v11 = vld [vmem:[#allocation17 + $0x78] sm:$0xff] }
 0xf9a   :  { %v13734_v43 = vand.u32 4294901760, %v13680_v11 }
 0xf9c   :  { %22144 = vmatpush3.bf16.msra.mxu0 %v22141_v35  ;;  %v29122_v0 = vpack.c.bf16 %v13734_v43, %v13731_v3 }
 0xf9d   :  { %22146 = vmatprep.subr.bf16.mxu0 %v22145_v42 }
 0xfa0   :  { %22148 = vmatpush3.bf16.msra.mxu0 %v22145_v42 }
 0xfa1   :  { %22150 = vmatprep.subr.bf16.mxu0 %v22149_v59 }
 0xfa4   :  { %22152 = vmatpush3.bf16.msra.mxu0 %v22149_v59 }
 0xfa5   :  { %22154 = vmatprep.subr.bf16.mxu0 %v28869_v1 }
 0xfa8   :  { %22156 = vmatpush3.bf16.msra.mxu0 %v28869_v1  ;;  %v13710_v1 = vand.u32 4294901760, %v29075_v53 }
 0xfa9   :  { %22158 = vmatprep.subr.bf16.mxu0 %v28873_v49 }
 0xfac   :  { %22160 = vmatpush3.bf16.msra.mxu0 %v28873_v49  ;;  %v29094_v49 = vpack.c.bf16 %v13710_v1, %v13707_v20 }
 0xfad   :  { %22162 = vmatprep.subr.bf16.mxu0 %v28877_v27 }
 0xfb0   :  { %22164 = vmatpush3.bf16.msra.mxu0 %v28877_v27  ;;  %v13673_v27 = vld [vmem:[#allocation17 + $0x40] sm:$0xff] }
 0xfb1   :  { %22166 = vmatprep.subr.bf16.mxu0 %v28881_v63  ;;  %v13713_v44 = vand.u32 4294901760, %v13673_v27 }
 0xfb3   :  { %v29130_v42 = vsub.f32 %v13673_v27, %v13713_v44 }
 0xfb4   :  { %22168 = vmatpush3.bf16.msra.mxu0 %v28881_v63  ;;  %v13674_v63 = vld [vmem:[#allocation17 + $0x48] sm:$0xff] }
 0xfb5   :  { %22170 = vmatprep.subr.bf16.mxu0 %v28651_v51  ;;  %v13716_v4 = vand.u32 4294901760, %v13674_v63 }
 0xfb7   :  { %19596 = vmatmul.mubr.f32.vlgmr.msra.gmra.mrb[56].mxu0 %v28918_v7  ;;  %v29099_v62 = vpack.c.bf16 %v13716_v4, %v13713_v44  ;;  %v13725_v7 = vand.u32 4294901760, %v13677_v10  ;;  %v29132_v59 = vsub.f32 %v13674_v63, %v13716_v4  ;;  %v29168_v4 = vsub.f32 %v13679_v5, %v13731_v3 }
 0xfb8   :  { %22172 = vmatpush3.bf16.msra.mxu0 %v28651_v51  ;;  %19630 = vmatprep.mubr.f32.mxu0 %v13062_v24  ;;  %v29106_v24 = vsub.f32 %v13666_v21, %v13692_v50 }
 0xfb9   :  { %22174 = vmatprep.subr.bf16.mxu0 %v28659_v54 }
 0xfba   :  { %v13799_v19 = vand.u32 4294901760, %v29106_v24 }
 0xfbc   :  { %22176 = vmatpush3.bf16.msra.mxu0 %v28659_v54  ;;  %v13800_v45 = vsub.f32 %v29106_v24, %v13799_v19 }
 0xfbd   :  { %22178 = vmatprep.subr.bf16.mxu0 %v28674_v17 }
 0xfbe   :  { %v13801_v34 = vand.u32 4294901760, %v13800_v45 }
 0xfc0   :  { %22180 = vmatpush3.bf16.msra.mxu0 %v28674_v17 }
 0xfc1   :  { %22182 = vmatprep.subr.bf16.mxu0 %v28686_v14 }
 0xfc4   :  { %22184 = vmatpush3.bf16.msra.mxu0 %v28686_v14 }
 0xfc5   :  { %22186 = vmatprep.subr.bf16.mxu0 %v28770_v38 }
 0xfc8   :  { %22188 = vmatpush3.bf16.msra.mxu0 %v28770_v38 }
 0xfc9   :  { %22190 = vmatprep.subr.bf16.mxu0 %v28772_v16 }
 0xfcc   :  { %22192 = vmatpush3.bf16.msra.mxu0 %v28772_v16 }
 0xfcd   :  { %22194 = vmatprep.subr.bf16.mxu0 %v28787_v18 }
 0xfd0   :  { %22196 = vmatpush3.bf16.msra.mxu0 %v28787_v18 }
 0xfd1   :  { %22198 = vmatprep.subr.bf16.mxu0 %v28799_v26 }
 0xfd4   :  { %22200 = vmatpush3.bf16.msra.mxu0 %v28799_v26 }
 0xfd5   :  { %22202 = vmatprep.subr.bf16.mxu0 %v22201_v28 }
 0xfd7   :  { %19631 = vmatmul.mubr.f32.vlgmr.msra.gmra.mrb[56].mxu0 %v13072_v22 }
 0xfd8   :  { %22204 = vmatpush3.bf16.msra.mxu0 %v22201_v28  ;;  %19665 = vmatprep.mubr.f32.mxu0 %v28908_v9  ;;  %v13848_v28 = vand.u32 4294901760, %v29130_v42 }
 0xfd9   :  { %22206 = vmatprep.subr.bf16.mxu0 %v22205_v55 }
 0xfdc   :  { %22208 = vmatpush3.bf16.msra.mxu0 %v22205_v55  ;;  %v13855_v55 = vand.u32 4294901760, %v29132_v59 }
 0xfdd   :  { %22210 = vmatprep.subr.bf16.mxu0 %v22209_v30 }
 0xfe0   :  { %22212 = vmatpush3.bf16.msra.mxu0 %v22209_v30  ;;  %v13849_v30 = vsub.f32 %v29130_v42, %v13848_v28 }
 0xfe1   :  { %22214 = vmatprep.subr.bf16.mxu0 %v22213_v61 }
 0xfe4   :  { %22216 = vmatpush3.bf16.msra.mxu0 %v22213_v61  ;;  %v13856_v61 = vsub.f32 %v29132_v59, %v13855_v55 }
 0xfe5   :  { %22218 = vmatprep.subr.bf16.mxu0 %v22217_v29 }
 0xfe6   :  { %v13857_v8 = vand.u32 4294901760, %v13856_v61 }
 0xfe8   :  { %22220 = vmatpush3.bf16.msra.mxu0 %v22217_v29  ;;  %v29142_v29 = vsub.f32 %v13675_v15, %v13719_v40 }
 0xfe9   :  { %22222 = vmatprep.subr.bf16.mxu0 %v22221_v57 }
 0xfea   :  { %v13862_v23 = vand.u32 4294901760, %v29142_v29 }
 0xfec   :  { %22224 = vmatpush3.bf16.msra.mxu0 %v22221_v57  ;;  %v13850_v57 = vand.u32 4294901760, %v13849_v30  ;;  %v13863_v48 = vsub.f32 %v29142_v29, %v13862_v23 }
 0xfed   :  { %22226 = vmatprep.subr.bf16.mxu0 %v22225_v36 }
 0xfee   :  { %v29148_v6 = vpack.c.bf16 %v13857_v8, %v13850_v57  ;;  %v14547_v57 = vld [vmem:[%s30073_s26] ss:$0 sm:$0xff] }
 0xff0   :  { %22228 = vmatpush3.bf16.msra.mxu0 %v22225_v36 }
 0xff1   :  { %22230 = vmatprep.subr.bf16.mxu0 %v22229_v2 }
 0xff4   :  { %22232 = vmatpush3.bf16.msra.mxu0 %v22229_v2  ;;  %v29153_v2 = vsub.f32 %v13677_v10, %v13725_v7 }
 0xff5   :  { %22234 = vmatprep.subr.bf16.mxu0 %v28651_v51 }
 0xff7   :  { %19666 = vmatmul.mubr.f32.vlgmr.msra.gmra.mrb[56].mxu0 %v28906_v47 }
 0xff8   :  { %22236 = vmatpush3.bf16.msra.mxu0 %v28651_v51  ;;  %19700 = vmatprep.mubr.f32.mxu0 %v28908_v9  ;;  %v13665_v51 = vld [vmem:[#allocation17] sm:$0xff]  ;;  %v13722_v9 = vand.u32 4294901760, %v13676_v52 }
 0xff9   :  { %22238 = vmatprep.subr.bf16.mxu0 %v28659_v54 }
 0xffa   :  { %v29101_v12 = vpack.c.bf16 %v13722_v9, %v13719_v40  ;;  %v29144_v37 = vsub.f32 %v13676_v52, %v13722_v9  ;;  %v29170_v52 = vsub.f32 %v13680_v11, %v13734_v43  ;;  %v29686_v9 = vand.u32 4294901760, %v29168_v4 }
 0xffc   :  { %22240 = vmatpush3.bf16.msra.mxu0 %v28659_v54  ;;  %v13689_v54 = vand.u32 4294901760, %v13665_v51  ;;  %v29689_v36 = vand.u32 4294901760, %v29144_v37  ;;  %v29204_v61 = vpack.c.bf16 %v29170_v52, %v29168_v4 }
 0xffd   :  { %22242 = vmatprep.subr.bf16.mxu0 %v28674_v17 }
 0xffe   :  { %v29104_v22 = vsub.f32 %v13665_v51, %v13689_v54  ;;  %v13870_v21 = vsub.f32 %v29144_v37, %v29689_v36 }
0x1000   :  { %22244 = vmatpush3.bf16.msra.mxu0 %v28674_v17  ;;  %v29051_v17 = vld [vmem:[#allocation17 + $0x18] sm:$0xff]  ;;  %v13792_v39 = vand.u32 4294901760, %v29104_v22  ;;  %v13871_v63 = vand.u32 4294901760, %v13870_v21  ;;  %v29186_v43 = vpack.c.bf16 %v29106_v24, %v29104_v22 }
0x1001   :  { %22246 = vmatprep.subr.bf16.mxu0 %v28686_v14  ;;  %v13698_v46 = vand.u32 4294901760, %v29051_v17 }
0x1002   :  { %v13793_v31 = vsub.f32 %v29104_v22, %v13792_v39 }
0x1004   :  { %22248 = vmatpush3.bf16.msra.mxu0 %v28686_v14  ;;  %v29055_v14 = vpack.c.bf16 %v13692_v50, %v13689_v54  ;;  %v13794_v41 = vand.u32 4294901760, %v13793_v31  ;;  %v13864_v54 = vand.u32 4294901760, %v13863_v48  ;;  %v29688_v50 = vand.u32 4294901760, %v29153_v2 }
0x1005   :  { %22250 = vmatprep.subr.bf16.mxu0 %v28770_v38  ;;  %v13891_v31 = vsub.f32 %v29168_v4, %v29686_v9  ;;  %v29215_v48 = vsub.f32 %v29051_v17, %v13698_v46 }
0x1006   :  { %v29126_v35 = vpack.c.bf16 %v13801_v34, %v13794_v41  ;;  %v13877_v15 = vsub.f32 %v29153_v2, %v29688_v50  ;;  %v29172_v40 = vpack.c.bf16 %v13871_v63, %v13864_v54  ;;  %v29192_v41 = vpack.c.bf16 %v29132_v59, %v29130_v42 }
0x1007   :  { %v13892_v11 = vand.u32 4294901760, %v13891_v31  ;;  %v29196_v34 = vpack.c.bf16 %v29144_v37, %v29142_v29  ;;  %v30077_v42 = vand.u32 4294901760, %v29168_v4  ;;  %v30078_v59 = vand.u32 4294901760, %v29170_v52 }
0x1008   :  { %22252 = vmatpush3.bf16.msra.mxu0 %v28770_v38  ;;  %v13695_v38 = vand.u32 4294901760, %v29049_v25  ;;  %v13878_v10 = vand.u32 4294901760, %v13877_v15 }
0x1009   :  { %22254 = vmatprep.subr.bf16.mxu0 %v28772_v16 }
0x100a   :  { %v29210_v8 = vsub.f32 %v29049_v25, %v13695_v38 }
0x100c   :  { %22256 = vmatpush3.bf16.msra.mxu0 %v28772_v16  ;;  %v29061_v16 = vld [vmem:[#allocation17 + $0x28] sm:$0xff] }
0x100d   :  { %22258 = vmatprep.subr.bf16.mxu0 %v28787_v18  ;;  %v13704_v32 = vand.u32 4294901760, %v29061_v16 }
0x1010   :  { %22260 = vmatpush3.bf16.msra.mxu0 %v28787_v18  ;;  %v29069_v18 = vpack.c.bf16 %v13698_v46, %v13695_v38  ;;  %v29227_v38 = vsub.f32 %v29061_v16, %v13704_v32 }
0x1011   :  { %22262 = vmatprep.subr.bf16.mxu0 %v28799_v26 }
0x1012   :  { %v13827_v16 = vand.u32 4294901760, %v29227_v38 }
0x1014   :  { %22264 = vmatpush3.bf16.msra.mxu0 %v28799_v26  ;;  %v29084_v26 = vpack.c.bf16 %v13704_v32, %v13701_v58  ;;  %v29247_v32 = vsub.f32 %v29073_v56, %v13707_v20 }
0x1015   :  { %22266 = vmatprep.subr.bf16.mxu0 %v29055_v14 }
0x1016   :  { %v13834_v20 = vand.u32 4294901760, %v29247_v32 }
0x1017   :  { %19701 = vmatmul.mubr.f32.vlgmr.msra.gmra.mrb[56].mxu0 %v28906_v47  ;;  %v13678_v47 = vld [vmem:[#allocation17 + $0x68] sm:$0xff] }
0x1018   :  { %22268 = vmatpush3.bf16.msra.mxu0 %v29055_v14  ;;  %v13728_v33 = vand.u32 4294901760, %v13678_v47  ;;  %v13835_v50 = vsub.f32 %v29247_v32, %v13834_v20 }
0x1019   :  { %22270 = vmatprep.subr.bf16.mxu0 %v29069_v18 }
0x101a   :  { %v29110_v60 = vpack.c.bf16 %v13728_v33, %v13725_v7  ;;  %v29155_v51 = vsub.f32 %v13678_v47, %v13728_v33  ;;  %v29685_v7 = vand.u32 4294901760, %v29170_v52 }
0x101c   :  { %22272 = vmatpush3.bf16.msra.mxu0 %v29069_v18  ;;  %v29687_v27 = vand.u32 4294901760, %v29155_v51  ;;  %v13898_v5 = vsub.f32 %v29170_v52, %v29685_v7  ;;  %v29200_v30 = vpack.c.bf16 %v29155_v51, %v29153_v2 }
0x101d   :  { %22274 = vmatprep.subr.bf16.mxu0 %v29084_v26 }
0x101e   :  { %v13884_v44 = vsub.f32 %v29155_v51, %v29687_v27  ;;  %v13899_v3 = vand.u32 4294901760, %v13898_v5 }
0x1020   :  { %22276 = vmatpush3.bf16.msra.mxu0 %v29084_v26  ;;  %v13885_v47 = vand.u32 4294901760, %v13884_v44  ;;  %v29188_v45 = vpack.c.bf16 %v13899_v3, %v13892_v11  ;;  %v13806_v44 = vand.u32 4294901760, %v29210_v8  ;;  %v29252_v3 = vsub.f32 %v29075_v53, %v13710_v1 }
0x1021   :  { %22278 = vmatprep.subr.bf16.mxu0 %v29094_v49  ;;  %v13828_v53 = vsub.f32 %v29227_v38, %v13827_v16 }
0x1022   :  { %v29176_v33 = vpack.c.bf16 %v13885_v47, %v13878_v10  ;;  %v13813_v10 = vand.u32 4294901760, %v29215_v48  ;;  %v29222_v47 = vsub.f32 %v29059_v13, %v13701_v58  ;;  %v13807_v5 = vsub.f32 %v29210_v8, %v13806_v44 }
0x1023   :  { %v13841_v1 = vand.u32 4294901760, %v29252_v3  ;;  %v13829_v27 = vand.u32 4294901760, %v13828_v53 }
0x1024   :  { %22280 = vmatpush3.bf16.msra.mxu0 %v29094_v49  ;;  %v13814_v13 = vsub.f32 %v29215_v48, %v13813_v10  ;;  %v13820_v58 = vand.u32 4294901760, %v29222_v47 }
0x1025   :  { %22282 = vmatprep.subr.bf16.mxu0 %v29099_v62  ;;  %v13842_v36 = vsub.f32 %v29252_v3, %v13841_v1  ;;  %v22405_v24 = vpack.c.bf16 %v13841_v1, %v13834_v20 }
0x1026   :  { %v22401_v22 = vpack.c.bf16 %v13827_v16, %v13820_v58 }
0x1028   :  { %22284 = vmatpush3.bf16.msra.mxu0 %v29099_v62 }
0x1029   :  { %22286 = vmatprep.subr.bf16.mxu0 %v29101_v12 }
0x102c   :  { %22288 = vmatpush3.bf16.msra.mxu0 %v29101_v12 }
0x102d   :  { %22290 = vmatprep.subr.bf16.mxu0 %v29110_v60 }
0x1030   :  { %22292 = vmatpush3.bf16.msra.mxu0 %v29110_v60 }
0x1031   :  { %22294 = vmatprep.subr.bf16.mxu0 %v29122_v0 }
0x1034   :  { %22296 = vmatpush3.bf16.msra.mxu0 %v29122_v0 }
0x1035   :  { %22298 = vmatprep.subr.bf16.mxu0 %v29126_v35 }
0x10ea   :  { %v19702_v21 = vpop.f32.mrb[56].mxu0 }
0x10eb   :  { %v22547_v54 = vadd.f32 %v19702_v21, %v14547_v57  ;;  %v13653_v63 = vpop.f32.mrb[57].mxu0 }
0x10ec   :  { %v22548_v15 = vadd.f32 %v14547_v57, %v13653_v63  ;;  %v13808_v63 = vand.u32 4294901760, %v13807_v5 }
0x10ed   :  { %v13664_v25 = vmax.f32 %v22547_v54, 0.0 }
0x10ee   :  { %v13663_v17 = vmax.f32 %v22548_v15, 0.0  ;;  %v13815_v15 = vand.u32 4294901760, %v13814_v13 }
0x10ef   :  { %v29229_v46 = vand.u32 4294901760, %v13664_v25 }
0x10f0   :  { %v29231_v31 = vand.u32 4294901760, %v13663_v17  ;;  %v22301_v13 = vpack.c.bf16 %v13815_v15, %v13808_v63  ;;  %v13836_v63 = vand.u32 4294901760, %v13835_v50  ;;  %v13843_v15 = vand.u32 4294901760, %v13842_v36 }
0x10f1   :  { %v29241_v11 = vsub.f32 %v13664_v25, %v29229_v46  ;;  %v13821_v25 = vsub.f32 %v29222_v47, %v13820_v58  ;;  %v22337_v36 = vpack.c.bf16 %v29227_v38, %v29222_v47  ;;  %v22393_v50 = vpack.c.bf16 %v13799_v19, %v13792_v39 }
0x10f2   :  { %v29255_v57 = vsub.f32 %v13663_v17, %v29231_v31  ;;  %v22409_v39 = vpack.c.bf16 %v13855_v55, %v13848_v28  ;;  %v30074_v19 = vand.u32 4294901760, %v29144_v37  ;;  %v22421_v28 = vpack.c.bf16 %v30078_v59, %v30077_v42 }
0x10f3   :  { %v13781_v21 = vand.u32 4294901760, %v29241_v11  ;;  %v13822_v7 = vand.u32 4294901760, %v13821_v25  ;;  %v22309_v25 = vpack.c.bf16 %v13843_v15, %v13836_v63 }
0x10f4   :  { %v13771_v54 = vand.u32 4294901760, %v29255_v57 }
0x10f5   :  { %v13782_v56 = vsub.f32 %v29241_v11, %v13781_v21 }
0x10f6   :  { %v13772_v17 = vsub.f32 %v29255_v57, %v13771_v54 }
0x10f7   :  { %v13783_v9 = vand.u32 4294901760, %v13782_v56 }
0x10f8   :  { %v13773_v5 = vand.u32 4294901760, %v13772_v17  ;;  %v22305_v17 = vpack.c.bf16 %v13829_v27, %v13822_v7  ;;  %v22397_v27 = vpack.c.bf16 %v13813_v10, %v13806_v44  ;;  %v30076_v7 = vand.u32 4294901760, %v29155_v51 }
0x10fa   :  { %19735 = vmatprep.mubr.f32.mxu0 %v13773_v5 }
0x10fb   :  { %19736 = vmatmul.mubr.f32.vlgmr.msra.gmra.mrb[58].mxu0 %v13783_v9  ;;  %v30075_v9 = vand.u32 4294901760, %v29153_v2 }
0x10fc   :  { %22300 = vmatpush3.bf16.msra.mxu0 %v29126_v35  ;;  %19770 = vmatprep.mubr.f32.mxu0 %v29231_v31  ;;  %v22333_v35 = vpack.c.bf16 %v29215_v48, %v29210_v8 }
0x10fd   :  { %22302 = vmatprep.subr.bf16.mxu0 %v22301_v13 }
0x1100   :  { %22304 = vmatpush3.bf16.msra.mxu0 %v22301_v13 }
0x1101   :  { %22306 = vmatprep.subr.bf16.mxu0 %v22305_v17 }
0x1104   :  { %22308 = vmatpush3.bf16.msra.mxu0 %v22305_v17 }
0x1105   :  { %22310 = vmatprep.subr.bf16.mxu0 %v22309_v25 }
0x1108   :  { %22312 = vmatpush3.bf16.msra.mxu0 %v22309_v25 }
0x1109   :  { %22314 = vmatprep.subr.bf16.mxu0 %v29148_v6 }
0x110c   :  { %22316 = vmatpush3.bf16.msra.mxu0 %v29148_v6  ;;  %v22341_v6 = vpack.c.bf16 %v29252_v3, %v29247_v32 }
0x110d   :  { %22318 = vmatprep.subr.bf16.mxu0 %v29172_v40 }
0x1110   :  { %22320 = vmatpush3.bf16.msra.mxu0 %v29172_v40  ;;  %v22413_v40 = vpack.c.bf16 %v30074_v19, %v13862_v23 }
0x1111   :  { %22322 = vmatprep.subr.bf16.mxu0 %v29176_v33 }
0x1114   :  { %22324 = vmatpush3.bf16.msra.mxu0 %v29176_v33  ;;  %v22417_v33 = vpack.c.bf16 %v30076_v7, %v30075_v9 }
0x1115   :  { %22326 = vmatprep.subr.bf16.mxu0 %v29188_v45 }
0x1118   :  { %22328 = vmatpush3.bf16.msra.mxu0 %v29188_v45 }
0x1119   :  { %22330 = vmatprep.subr.bf16.mxu0 %v29186_v43 }
0x111b   :  { %19771 = vmatmul.mubr.f32.vlgmr.msra.gmra.mrb[58].mxu0 %v29229_v46 }
0x111c   :  { %22332 = vmatpush3.bf16.msra.mxu0 %v29186_v43  ;;  %19805 = vmatprep.mubr.f32.mxu0 %v29255_v57 }
0x111d   :  { %22334 = vmatprep.subr.bf16.mxu0 %v22333_v35 }
0x1120   :  { %22336 = vmatpush3.bf16.msra.mxu0 %v22333_v35 }
0x1121   :  { %22338 = vmatprep.subr.bf16.mxu0 %v22337_v36 }
0x1124   :  { %22340 = vmatpush3.bf16.msra.mxu0 %v22337_v36 }
0x1125   :  { %22342 = vmatprep.subr.bf16.mxu0 %v22341_v6 }
0x1128   :  { %22344 = vmatpush3.bf16.msra.mxu0 %v22341_v6 }
0x1129   :  { %22346 = vmatprep.subr.bf16.mxu0 %v29192_v41 }
0x112c   :  { %22348 = vmatpush3.bf16.msra.mxu0 %v29192_v41 }
0x112d   :  { %22350 = vmatprep.subr.bf16.mxu0 %v29196_v34 }
0x1130   :  { %22352 = vmatpush3.bf16.msra.mxu0 %v29196_v34 }
0x1131   :  { %22354 = vmatprep.subr.bf16.mxu0 %v29200_v30 }
0x1134   :  { %22356 = vmatpush3.bf16.msra.mxu0 %v29200_v30 }
0x1135   :  { %22358 = vmatprep.subr.bf16.mxu0 %v29204_v61 }
0x1138   :  { %22360 = vmatpush3.bf16.msra.mxu0 %v29204_v61 }
0x1139   :  { %22362 = vmatprep.subr.bf16.mxu0 %v29055_v14 }
0x113b   :  { %19806 = vmatmul.mubr.f32.vlgmr.msra.gmra.mrb[58].mxu0 %v29241_v11 }
0x113c   :  { %22364 = vmatpush3.bf16.msra.mxu0 %v29055_v14  ;;  %19840 = vmatprep.mubr.f32.mxu0 %v13771_v54 }
0x113d   :  { %22366 = vmatprep.subr.bf16.mxu0 %v29069_v18 }
0x1140   :  { %22368 = vmatpush3.bf16.msra.mxu0 %v29069_v18 }
0x1141   :  { %22370 = vmatprep.subr.bf16.mxu0 %v29084_v26 }
0x1144   :  { %22372 = vmatpush3.bf16.msra.mxu0 %v29084_v26 }
0x1145   :  { %22374 = vmatprep.subr.bf16.mxu0 %v29094_v49 }
0x1148   :  { %22376 = vmatpush3.bf16.msra.mxu0 %v29094_v49 }
0x1149   :  { %22378 = vmatprep.subr.bf16.mxu0 %v29099_v62 }
0x114c   :  { %22380 = vmatpush3.bf16.msra.mxu0 %v29099_v62 }
0x114d   :  { %22382 = vmatprep.subr.bf16.mxu0 %v29101_v12 }
0x1150   :  { %22384 = vmatpush3.bf16.msra.mxu0 %v29101_v12 }
0x1151   :  { %22386 = vmatprep.subr.bf16.mxu0 %v29110_v60 }
0x1154   :  { %22388 = vmatpush3.bf16.msra.mxu0 %v29110_v60 }
0x1155   :  { %22390 = vmatprep.subr.bf16.mxu0 %v29122_v0 }
0x1158   :  { %22392 = vmatpush3.bf16.msra.mxu0 %v29122_v0 }
0x1159   :  { %22394 = vmatprep.subr.bf16.mxu0 %v22393_v50 }
0x115b   :  { %19841 = vmatmul.mubr.f32.vlgmr.msra.gmra.mrb[58].mxu0 %v13781_v21 }
0x115c   :  { %22396 = vmatpush3.bf16.msra.mxu0 %v22393_v50  ;;  %19875 = vmatprep.mubr.f32.mxu0 %v29231_v31 }
0x115d   :  { %22398 = vmatprep.subr.bf16.mxu0 %v22397_v27 }
0x1160   :  { %22400 = vmatpush3.bf16.msra.mxu0 %v22397_v27 }
0x1161   :  { %22402 = vmatprep.subr.bf16.mxu0 %v22401_v22 }
0x1164   :  { %22404 = vmatpush3.bf16.msra.mxu0 %v22401_v22 }
0x1165   :  { %22406 = vmatprep.subr.bf16.mxu0 %v22405_v24 }
0x1168   :  { %22408 = vmatpush3.bf16.msra.mxu0 %v22405_v24 }
0x1169   :  { %22410 = vmatprep.subr.bf16.mxu0 %v22409_v39 }
0x116c   :  { %22412 = vmatpush3.bf16.msra.mxu0 %v22409_v39 }
0x116d   :  { %22414 = vmatprep.subr.bf16.mxu0 %v22413_v40 }
0x1170   :  { %22416 = vmatpush3.bf16.msra.mxu0 %v22413_v40 }
0x1171   :  { %22418 = vmatprep.subr.bf16.mxu0 %v22417_v33 }
0x1174   :  { %22420 = vmatpush3.bf16.msra.mxu0 %v22417_v33 }
0x1175   :  { %22422 = vmatprep.subr.bf16.mxu0 %v22421_v28 }
0x1178   :  { %22424 = vmatpush3.bf16.msra.mxu0 %v22421_v28 }
0x1179   :  { %22426 = vmatprep.subr.bf16.mxu0 %v29055_v14 }
0x117b   :  { %19876 = vmatmul.mubr.f32.vlgmr.msra.gmra.mrb[58].mxu0 %v29229_v46 }
0x117c   :  { %22428 = vmatpush3.bf16.msra.mxu0 %v29055_v14  ;;  %19910 = vmatprep.mubr.f32.mxu0 %v29231_v31 }
0x117d   :  { %22430 = vmatprep.subr.bf16.mxu0 %v29069_v18 }
0x1180   :  { %22432 = vmatpush3.bf16.msra.mxu0 %v29069_v18 }
0x1181   :  { %22434 = vmatprep.subr.bf16.mxu0 %v29084_v26 }
0x1184   :  { %22436 = vmatpush3.bf16.msra.mxu0 %v29084_v26 }
0x1185   :  { %22438 = vmatprep.subr.bf16.mxu0 %v29094_v49 }
0x1188   :  { %22440 = vmatpush3.bf16.msra.mxu0 %v29094_v49 }
0x1189   :  { %22442 = vmatprep.subr.bf16.mxu0 %v29099_v62 }
0x118c   :  { %22444 = vmatpush3.bf16.msra.mxu0 %v29099_v62 }
0x118d   :  { %22446 = vmatprep.subr.bf16.mxu0 %v29101_v12 }
0x1190   :  { %22448 = vmatpush3.bf16.msra.mxu0 %v29101_v12 }
0x1191   :  { %22450 = vmatprep.subr.bf16.mxu0 %v29110_v60 }
0x1194   :  { %22452 = vmatpush3.bf16.msra.mxu0 %v29110_v60 }
0x1195   :  { %22454 = vmatprep.subr.bf16.mxu0 %v29122_v0 }
0x1198   :  { %22456 = vmatpush3.bf16.msra.mxu0 %v29122_v0 }
0x119b   :  { %19911 = vmatmul.mubr.f32.vlgmr.msra.gmra.mrb[58].mxu0 %v29229_v46 }
0x119c   :  { %23338 = shalt.err (!%p23335_p6)
}
0x119d   :  { %s23339_s28 = scalar_lea.hbm %s23582_s4, 2048 }
0x119e   :  { %p23340_p7 = scmp.ne.s32.totalorder %s23582_s4, %s23339_s28  ;;  %p23343_p8 = scmp.lt.u32.totalorder %s23339_s28, %s23582_s4 }
0x11a0   :  { %p23345_p9 = pnand %p23343_p8, %p23340_p7 }
0x11a2   :  { %23348 = shalt.err (!%p23345_p9)
}
0x11a3   :  { %14399 = dma.vmem_to_hbm [thread:$0]  %s14394_s19, 2048, %s23582_s4, [#allocation20], %s23416_s18, %s23416_s18, %s23417_s22  }
0x11a4   :  { %v14548_v14 = vld [vmem:[%s23572_s20] ss:$0 sm:$0xff]  ;;  %s23428_s1 = smov [#allocation18]   ;;  %v23127_v12 = vld [vmem:[%s29897_s8 + $0x8] sm:$0xff] }
0x11a5   :  { %s14381_s2 = sshll.u32 %s23428_s1, 4  ;;  %v23128_v0 = vld [vmem:[%s29897_s8] sm:$0xff]  ;;  %s14382_s2 = int_to_ptr.vmem [resolvable:$true] %s14381_s2 }
0x11a6   :  { %s23349_s7 = scalar_lea.vmem %s14382_s2, 256  ;;  %p23354_p11 = scmp.lt.s32.totalorder %s14382_s2, %s14382_s2 }
0x11a7   :  { %p23350_p10 = scmp.ne.s32.totalorder %s14382_s2, %s23349_s7  ;;  %p23355_p12 = scmp.lt.s32.totalorder %s23349_s7, %s23349_s7 }
0x11a9   :  { %p23356_p13 = por %p23355_p12, %p23354_p11 }
0x11ab   :  { %p23357_p0 = pnand %p23356_p13, %p23350_p10 }
0x126e   :  { %v19912_v18 = vpop.f32.mrb[58].mxu0 }
0x126f   :  { %v22549_v26 = vadd.f32 %v19912_v18, %v14548_v14  ;;  %v14362_v49 = vpop.f32.mrb[59].mxu0 }
0x1270   :  { %v22550_v62 = vadd.f32 %v14548_v14, %v14362_v49 }
0x1271   :  { %v14373_v60 = vadd.f32 %v23127_v12, %v22549_v26 }
0x1272   :  { %v14372_v55 = vadd.f32 %v23128_v0, %v22550_v62 }
0x1273   :  { %14375 = vst [vmem:[#allocation18 + $0x8] sm:$0xff] %v14373_v60 }
0x1274   :  { %14374 = vst [vmem:[#allocation18] sm:$0xff] %v14372_v55 }
0x1275   :  { %23360 = shalt.err (!%p23357_p0)
}
0x1276   :  { %s23361_s20 = scalar_lea.hbm %s23577_s14, 256 }
0x1277   :  { %p23362_p1 = scmp.ne.s32.totalorder %s23577_s14, %s23361_s20  ;;  %p23365_p2 = scmp.lt.u32.totalorder %s23361_s20, %s23577_s14 }
0x1279   :  { %p23367_p3 = pnand %p23365_p2, %p23362_p1 }
0x127b   :  { %23370 = shalt.err (!%p23367_p3)
}
0x127c   :  { %14387 = dma.vmem_to_hbm [thread:$0]  %s14382_s2, 256, %s23577_s14, [#allocation5], %s23416_s18, %s23416_s18, %s23417_s22  }
0x127d   :  { %23381 = dma.done.wait [#allocation5], 256  }
0x127e   :  { %23382 = vsyncadd [#allocation5], 4294967040 }
0x127f   :  { %23383 = dma.done.wait [#allocation20], 2048  }
0x1280   :  { %23384 = vsyncadd [#allocation20], 4294965248 }
0x1281   :  { %14406 = vsyncpa [#allocation4], 1 }
0x1282   :  { %14407 = vsyncpa [#allocation7], 1 }
0x1283   :  { %14408 = vsyncpa [#allocation10], 1 }
0x1284   :  { %14409 = vsyncpa [#allocation13], 1 }
0x1285   :  { %14410 = vsyncpa [#allocation16], 1 }
0x1286   :  { %14411 = vsyncpa [#allocation5], 1 }
0x1287   :  { %14412 = vsyncpa [#allocation20], 1 }

</bundles_post_ra>
